<compile_context>
chip_gen: v5e
topology: v5e:2x2
jax: 0.10.0
libtpu: 0.0.40
codegen_flags: <defaults>
</compile_context>

<pallas_src>
import numpy as np
import jax
import jax.numpy as jnp
from jax import lax
from jax.experimental import pallas as pl
from jax.experimental.pallas import tpu as pltpu

LEAKY_SLOPE = 0.01                      # nn.LeakyReLU() default
BN_EPS = 1e-3                           # norm_cfg eps
BN_SCALE = float(1.0 / np.sqrt(1.0 + BN_EPS))   # eval-mode BN1d scale, beta=0


def _vmem_limit_bytes():
    # ~75% of physical VMEM: 48 MiB on v7x (64 MiB), ~96 MiB on v5e/v6e (128 MiB).
    try:
        info = pltpu.get_tpu_info()
        cap = int(getattr(info, "vmem_capacity_bytes", 128 * 1024 * 1024))
        if cap <= 0:
            cap = 128 * 1024 * 1024
    except Exception:
        cap = 128 * 1024 * 1024
    return int(min(cap * 3 // 4, 100 * 1024 * 1024))


def _pack_weight(w, scale):
    """(KD,KH,KW,Cin,Cout) -> (taps*Cin, Cout) bf16 with BN scale folded in."""
    cout = w.shape[-1]
    return (w.astype(jnp.float32) * scale).reshape(-1, cout).astype(jnp.bfloat16)


# -------------------- fused ResBlock body (both branches) --------------------
def _make_resblock_kernel(H, W, Cin, Cout):
    Hp, Wp = H + 2, W + 2

    def kernel(xm_ref, x0_ref, xp_ref, w1_ref, w12_ref, w2_ref, w3_ref,
               out_ref, z1_ref, z2_ref):
        d = pl.program_id(1)
        n_d = pl.num_programs(1)

        # D-halo planes of the padded output stay all-zero.
        @pl.when(jnp.logical_or(d == 0, d == n_d - 1))
        def _():
            out_ref[...] = jnp.zeros(out_ref.shape, out_ref.dtype)

        @pl.when(jnp.logical_and(d >= 1, d <= n_d - 2))
        def _():
            x_refs = (xm_ref, x0_ref, xp_ref)          # input planes d-1, d, d+1
            # 27 shifted (H, W, Cin) windows; pad=1 => tap k starts at row/col k.
            xs = [[[x_refs[kd][kh:kh + H, kw:kw + W, :]
                    for kw in range(3)]
                   for kh in range(3)]
                  for kd in range(3)]

            def conv(pieces, w_ref_):
                # im2col built in registers (bf16), one fat MXU contraction,
                # LeakyReLU with BN scale already folded into the weights.
                xcat = jnp.concatenate(pieces, axis=-1)        # (H, W, taps*C)
                xcat = xcat.reshape(H * W, xcat.shape[-1])
                y = jnp.dot(xcat, w_ref_[...],
                            preferred_element_type=jnp.float32)
                return jnp.where(y > 0.0, y, LEAKY_SLOPE * y)

            zero_row = jnp.zeros((1, Wp, Cout), jnp.bfloat16)
            zero_col = jnp.zeros((Hp, 1, Cout), jnp.bfloat16)

            # ---- shortcut branch: conv1 (3x1x3) -> conv1_2 (1x3x3) ----------
            y1 = conv([xs[kd][1][kw] for kd in range(3) for kw in range(3)],
                      w1_ref)
            # padded bf16 intermediate kept in VMEM only (zero H/W halo strips).
            z1_ref[0:1, :, :] = zero_row
            z1_ref[H + 1:H + 2, :, :] = zero_row
            z1_ref[:, 0:1, :] = zero_col
            z1_ref[:, W + 1:W + 2, :] = zero_col
            z1_ref[1:1 + H, 1:1 + W, :] = y1.reshape(H, W, Cout).astype(jnp.bfloat16)

            sc = conv([z1_ref[kh:kh + H, kw:kw + W, :]
                       for kh in range(3) for kw in range(3)], w12_ref)
            sc = sc.reshape(H, W, Cout)

            # ---- main branch: conv2 (1x3x3) x3 planes -> conv3 (3x1x3) ------
            zero_colw = jnp.zeros((H, 1, 3 * Cout), jnp.bfloat16)
            z2_ref[:, 0:1, :] = zero_colw
            z2_ref[:, W + 1:W + 2, :] = zero_colw
            for kd in range(3):
                y2 = conv([xs[kd][kh][kw] for kh in range(3) for kw in range(3)],
                          w2_ref)
                z2_ref[:, 1:1 + W, kd * Cout:(kd + 1) * Cout] = (
                    y2.reshape(H, W, Cout).astype(jnp.bfloat16))

            y3 = conv([z2_ref[:, kw:kw + W, kd * Cout:(kd + 1) * Cout]
                       for kd in range(3) for kw in range(3)], w3_ref)

            # residual add in natural (H, W, Cout) layout.
            resa = y3.reshape(H, W, Cout) + sc

            # interior write + 4 thin halo strips only (no full-plane rewrite).
            out_ref[0:1, :, :] = zero_row
            out_ref[H + 1:H + 2, :, :] = zero_row
            out_ref[:, 0:1, :] = zero_col
            out_ref[:, W + 1:W + 2, :] = zero_col
            out_ref[1:1 + H, 1:1 + W, :] = resa.astype(out_ref.dtype)

    return kernel


def resblock_body(x_pad, w1p, w12p, w2p, w3p, Cin, Cout, vmem_limit):
    B, Dp, Hp, Wp, _ = x_pad.shape
    D, H, W = Dp - 2, Hp - 2, Wp - 2

    in_specs, inputs = [], []
    for off in (-1, 0, 1):
        in_specs.append(pl.BlockSpec(
            (None, None, Hp, Wp, Cin),
            lambda b, d, o=off: (b, jnp.clip(d + o, 0, Dp - 1), 0, 0, 0)))
        inputs.append(x_pad)
    for wv in (w1p, w12p, w2p, w3p):
        in_specs.append(pl.BlockSpec(wv.shape, lambda b, d: (0, 0)))
        inputs.append(wv)

    flops = 2 * B * D * H * W * 9 * Cout * (4 * Cin + 2 * Cout)
    bytes_accessed = (3 * x_pad.size * x_pad.dtype.itemsize
                      + 2 * (w1p.size + w12p.size + w2p.size + w3p.size)
                      + B * Dp * Hp * Wp * Cout * 2)

    return pl.pallas_call(
        _make_resblock_kernel(H, W, Cin, Cout),
        grid=(B, Dp),
        in_specs=in_specs,
        out_specs=pl.BlockSpec((None, None, Hp, Wp, Cout),
                               lambda b, d: (b, d, 0, 0, 0)),
        out_shape=jax.ShapeDtypeStruct((B, Dp, Hp, Wp, Cout), jnp.bfloat16),
        scratch_shapes=[pltpu.VMEM((Hp, Wp, Cout), jnp.bfloat16),      # conv1 out
                        pltpu.VMEM((H, Wp, 3 * Cout), jnp.bfloat16)],  # conv2 out x3
        compiler_params=pltpu.CompilerParams(
            dimension_semantics=("parallel", "parallel"),
            vmem_limit_bytes=vmem_limit),
        cost_estimate=pl.CostEstimate(flops=flops, transcendentals=0,
                                      bytes_accessed=bytes_accessed),
    )(*inputs)


# -------------------- SparseConv3d pool, stride (2,2,1), pad 1 ---------------
def _make_pool_kernel(Hp, Wp, H, W, Ho, Cin, Cout):
    def kernel(xm_ref, x0_ref, xp_ref, w_ref, out_ref):
        planes = (xm_ref, x0_ref, xp_ref)            # padded D planes 2do, +1, +2
        pieces = []
        for kd in range(3):
            plane = planes[kd][...]                              # (Hp, Wp, Cin) bf16
            folded = plane.reshape(Hp // 2, 2, Wp, Cin)          # even/odd padded rows
            for kh in range(3):
                rows = folded[:, kh % 2, :, :]
                rows = rows[kh // 2:kh // 2 + Ho]                # (Ho, Wp, Cin), H stride 2
                for kw in range(3):
                    pieces.append(rows[:, kw:kw + W, :])
        xcat = jnp.concatenate(pieces, axis=-1).reshape(Ho * W, 27 * Cin)
        y = jnp.dot(xcat, w_ref[...], preferred_element_type=jnp.float32)
        out_ref[...] = y.reshape(Ho, W, Cout).astype(out_ref.dtype)

    return kernel


def pool_conv(x_pad, w_packed, vmem_limit):
    """3x3x3 SparseConv3d, stride (2,2,1), pad 1 -- only strided outputs computed."""
    B, Dp, Hp, Wp, Cin = x_pad.shape
    Cout = w_packed.shape[-1]
    D, H, W = Dp - 2, Hp - 2, Wp - 2
    assert H % 2 == 0, "even/odd H-row packing assumes even H"
    Do = (D - 1) // 2 + 1
    Ho = (H - 1) // 2 + 1

    in_specs = [pl.BlockSpec((None, None, Hp, Wp, Cin),
                             lambda b, do, k=kd: (b, 2 * do + k, 0, 0, 0))
                for kd in range(3)]
    in_specs.append(pl.BlockSpec(w_packed.shape, lambda b, do: (0, 0)))

    flops = 2 * B * Do * Ho * W * 27 * Cin * Cout
    bytes_accessed = (3 * B * Do * Hp * Wp * Cin * 2 + w_packed.size * 2
                      + B * Do * Ho * W * Cout * 2)

    return pl.pallas_call(
        _make_pool_kernel(Hp, Wp, H, W, Ho, Cin, Cout),
        grid=(B, Do),
        in_specs=in_specs,
        out_specs=pl.BlockSpec((None, None, Ho, W, Cout),
                               lambda b, do: (b, do, 0, 0, 0)),
        out_shape=jax.ShapeDtypeStruct((B, Do, Ho, W, Cout), jnp.bfloat16),
        compiler_params=pltpu.CompilerParams(
            dimension_semantics=("parallel", "parallel"),
            vmem_limit_bytes=vmem_limit),
        cost_estimate=pl.CostEstimate(flops=flops, transcendentals=0,
                                      bytes_accessed=bytes_accessed),
    )(x_pad, x_pad, x_pad, w_packed)


# ------------------------------- forward pass --------------------------------
def resblock_forward(x, params):
    """ResBlock forward. x: (B, D, H, W, Cin) channels-last dense voxels."""
    w1, w1_2, w2, w3, wpool = params
    B, D, H, W, Cin = x.shape
    Cout = w1.shape[-1]

    # One-time uniform zero halo of 1; bf16 activations in HBM.
    xp = jnp.pad(x, ((0, 0), (1, 1), (1, 1), (1, 1), (0, 0))).astype(jnp.bfloat16)

    w1p = _pack_weight(w1, BN_SCALE)        # conv1  (3x1x3), BN folded
    w12p = _pack_weight(w1_2, BN_SCALE)     # conv1_2(1x3x3), BN folded
    w2p = _pack_weight(w2, BN_SCALE)        # conv2  (1x3x3), BN folded
    w3p = _pack_weight(w3, BN_SCALE)        # conv3  (3x1x3), BN folded
    wpoolp = _pack_weight(wpool, 1.0)       # pool   (3x3x3)

    vmem_limit = _vmem_limit_bytes()

    resA_p = resblock_body(xp, w1p, w12p, w2p, w3p, Cin, Cout, vmem_limit)
    resB = pool_conv(resA_p, wpoolp, vmem_limit)

    resA = resA_p[:, 1:1 + D, 1:1 + H, 1:1 + W, :].astype(jnp.float32)
    return resB.astype(jnp.float32), resA


# ---------------------------- pure-JAX reference -----------------------------
def _ref_conv(x, w, pad, stride=(1, 1, 1)):
    return lax.conv_general_dilated(
        x, w, window_strides=stride,
        padding=[(pad[0], pad[0]), (pad[1], pad[1]), (pad[2], pad[2])],
        dimension_numbers=('NDHWC', 'DHWIO', 'NDHWC'))


def ref_forward(x, params):
    w1, w1_2, w2, w3, wpool = params
    act = lambda v: jnp.where(v > 0, v, LEAKY_SLOPE * v)
    bn = lambda v: v * BN_SCALE
    sc = bn(act(_ref_conv(x, w1, (1, 0, 1))))
    sc = bn(act(_ref_conv(sc, w1_2, (0, 1, 1))))
    ra = bn(act(_ref_conv(x, w2, (0, 1, 1))))
    ra = bn(act(_ref_conv(ra, w3, (1, 0, 1))))
    resA = ra + sc
    resB = _ref_conv(resA, wpool, (1, 1, 1), stride=(2, 2, 1))
    return resB, resA


# ----------------------------------- main -------------------------------------
if __name__ == "__main__":
    B, D, H, W = 2, 8, 8, 8
    in_filters, out_filters = 8, 16

    key = jax.random.PRNGKey(0)
    kx, k1, k2, k3, k4, k5 = jax.random.split(key, 6)
    x = jax.random.normal(kx, (B, D, H, W, in_filters), jnp.float32)
    params = (
        0.1 * jax.random.normal(k1, (3, 1, 3, in_filters, out_filters), jnp.float32),   # conv1  (3x1)
        0.1 * jax.random.normal(k2, (1, 3, 3, out_filters, out_filters), jnp.float32),  # conv1_2(1x3)
        0.1 * jax.random.normal(k3, (1, 3, 3, in_filters, out_filters), jnp.float32),   # conv2  (1x3)
        0.1 * jax.random.normal(k4, (3, 1, 3, out_filters, out_filters), jnp.float32),  # conv3  (3x1)
        0.1 * jax.random.normal(k5, (3, 3, 3, out_filters, out_filters), jnp.float32),  # pool   (3x3x3)
    )

    fwd = jax.jit(resblock_forward)
    resB, resA = jax.block_until_ready(fwd(x, params))

    refB, refA = ref_forward(x, params)
    # bf16 activation storage + bf16 MXU path -> widened absolute tolerance.
    np.testing.assert_allclose(np.asarray(resA), np.asarray(refA), rtol=5e-2, atol=1e-1)
    np.testing.assert_allclose(np.asarray(resB), np.asarray(refB), rtol=5e-2, atol=1e-1)

    print("KERNEL_OK")
</pallas_src>

<mosaic_0001>
module attributes {stable_mosaic.version = 11 : i64} {
  func.func @kernel(%arg0: i32, %arg1: i32, %arg2: memref<1x1x10x10x8xbf16, #tpu.memory_space<vmem>>, %arg3: memref<1x1x10x10x8xbf16, #tpu.memory_space<vmem>>, %arg4: memref<1x1x10x10x8xbf16, #tpu.memory_space<vmem>>, %arg5: memref<72x16xbf16, #tpu.memory_space<vmem>>, %arg6: memref<144x16xbf16, #tpu.memory_space<vmem>>, %arg7: memref<72x16xbf16, #tpu.memory_space<vmem>>, %arg8: memref<144x16xbf16, #tpu.memory_space<vmem>>, %arg9: memref<1x1x10x10x16xbf16, #tpu.memory_space<vmem>>, %arg10: memref<10x10x16xbf16, #tpu.memory_space<vmem>>, %arg11: memref<8x10x48xbf16, #tpu.memory_space<vmem>>) attributes {dimension_semantics = [#tpu.dimension_semantics<parallel>, #tpu.dimension_semantics<parallel>], iteration_bounds = array<i64: 2, 10>, scalar_prefetch = 0 : i64, scratch_operands = 2 : i64, tpu.core_type = #tpu.core_type<tc>, window_params = [{transform_indices = @transform_0, window_bounds = array<i64: 1, 1, 10, 10, 8>}, {transform_indices = @transform_1, window_bounds = array<i64: 1, 1, 10, 10, 8>}, {transform_indices = @transform_2, window_bounds = array<i64: 1, 1, 10, 10, 8>}, {pipeline_mode = #tpu.pipeline_mode<synchronous>, transform_indices = @transform_3, window_bounds = array<i64: 72, 16>}, {pipeline_mode = #tpu.pipeline_mode<synchronous>, transform_indices = @transform_4, window_bounds = array<i64: 144, 16>}, {pipeline_mode = #tpu.pipeline_mode<synchronous>, transform_indices = @transform_5, window_bounds = array<i64: 72, 16>}, {pipeline_mode = #tpu.pipeline_mode<synchronous>, transform_indices = @transform_6, window_bounds = array<i64: 144, 16>}, {transform_indices = @transform_7, window_bounds = array<i64: 1, 1, 10, 10, 16>}]} {
    %c0_i32 = arith.constant 0 : i32
    %0 = arith.cmpi eq, %arg1, %c0_i32 : i32
    %c9_i32 = arith.constant 9 : i32
    %1 = arith.cmpi eq, %arg1, %c9_i32 : i32
    %2 = arith.ori %0, %1 : i1
    %3 = arith.extui %2 : i1 to i32
    %c0_i32_0 = arith.constant 0 : i32
    %4 = arith.cmpi ne, %3, %c0_i32_0 : i32
    scf.if %4 {
      %cst = arith.constant 0.000000e+00 : bf16
      %10 = vector.broadcast %cst : bf16 to vector<10x10x16xbf16>
      %c0 = arith.constant 0 : index
      %c0_2 = arith.constant 0 : index
      %c0_3 = arith.constant 0 : index
      %c0_4 = arith.constant 0 : index
      %c0_5 = arith.constant 0 : index
      %11 = vector.load %arg9[%c0, %c0_2, %c0_3, %c0_4, %c0_5] : memref<1x1x10x10x16xbf16, #tpu.memory_space<vmem>>, vector<1x1x10x10x16xbf16>
      %12 = vector.shape_cast %11 : vector<1x1x10x10x16xbf16> to vector<10x10x16xbf16>
      %13 = vector.shape_cast %10 : vector<10x10x16xbf16> to vector<1x1x10x10x16xbf16>
      tpu.vector_store %arg9[%c0, %c0_2, %c0_3, %c0_4, %c0_5], %13 {strides = array<i32>} : memref<1x1x10x10x16xbf16, #tpu.memory_space<vmem>>, vector<1x1x10x10x16xbf16>,
    } else {
    }
    %c1_i32 = arith.constant 1 : i32
    %5 = arith.cmpi sge, %arg1, %c1_i32 : i32
    %c8_i32 = arith.constant 8 : i32
    %6 = arith.cmpi sle, %arg1, %c8_i32 : i32
    %7 = arith.andi %5, %6 : i1
    %8 = arith.extui %7 : i1 to i32
    %c0_i32_1 = arith.constant 0 : i32
    %9 = arith.cmpi ne, %8, %c0_i32_1 : i32
    scf.if %9 {
      %c0 = arith.constant 0 : index
      %c0_2 = arith.constant 0 : index
      %c0_3 = arith.constant 0 : index
      %c0_4 = arith.constant 0 : index
      %c0_5 = arith.constant 0 : index
      %10 = vector.load %arg2[%c0, %c0_2, %c0_3, %c0_4, %c0_5] : memref<1x1x10x10x8xbf16, #tpu.memory_space<vmem>>, vector<1x1x8x8x8xbf16>
      %11 = vector.shape_cast %10 : vector<1x1x8x8x8xbf16> to vector<8x8x8xbf16>
      %c0_6 = arith.constant 0 : index
      %c0_7 = arith.constant 0 : index
      %c0_8 = arith.constant 0 : index
      %c1 = arith.constant 1 : index
      %c0_9 = arith.constant 0 : index
      %12 = vector.load %arg2[%c0_6, %c0_7, %c0_8, %c1, %c0_9] : memref<1x1x10x10x8xbf16, #tpu.memory_space<vmem>>, vector<1x1x8x8x8xbf16>
      %13 = vector.shape_cast %12 : vector<1x1x8x8x8xbf16> to vector<8x8x8xbf16>
      %c0_10 = arith.constant 0 : index
      %c0_11 = arith.constant 0 : index
      %c0_12 = arith.constant 0 : index
      %c2 = arith.constant 2 : index
      %c0_13 = arith.constant 0 : index
      %14 = vector.load %arg2[%c0_10, %c0_11, %c0_12, %c2, %c0_13] : memref<1x1x10x10x8xbf16, #tpu.memory_space<vmem>>, vector<1x1x8x8x8xbf16>
      %15 = vector.shape_cast %14 : vector<1x1x8x8x8xbf16> to vector<8x8x8xbf16>
      %c0_14 = arith.constant 0 : index
      %c0_15 = arith.constant 0 : index
      %c1_16 = arith.constant 1 : index
      %c0_17 = arith.constant 0 : index
      %c0_18 = arith.constant 0 : index
      %16 = vector.load %arg2[%c0_14, %c0_15, %c1_16, %c0_17, %c0_18] : memref<1x1x10x10x8xbf16, #tpu.memory_space<vmem>>, vector<1x1x8x8x8xbf16>
      %17 = vector.shape_cast %16 : vector<1x1x8x8x8xbf16> to vector<8x8x8xbf16>
      %c0_19 = arith.constant 0 : index
      %c0_20 = arith.constant 0 : index
      %c1_21 = arith.constant 1 : index
      %c1_22 = arith.constant 1 : index
      %c0_23 = arith.constant 0 : index
      %18 = vector.load %arg2[%c0_19, %c0_20, %c1_21, %c1_22, %c0_23] : memref<1x1x10x10x8xbf16, #tpu.memory_space<vmem>>, vector<1x1x8x8x8xbf16>
      %19 = vector.shape_cast %18 : vector<1x1x8x8x8xbf16> to vector<8x8x8xbf16>
      %c0_24 = arith.constant 0 : index
      %c0_25 = arith.constant 0 : index
      %c1_26 = arith.constant 1 : index
      %c2_27 = arith.constant 2 : index
      %c0_28 = arith.constant 0 : index
      %20 = vector.load %arg2[%c0_24, %c0_25, %c1_26, %c2_27, %c0_28] : memref<1x1x10x10x8xbf16, #tpu.memory_space<vmem>>, vector<1x1x8x8x8xbf16>
      %21 = vector.shape_cast %20 : vector<1x1x8x8x8xbf16> to vector<8x8x8xbf16>
      %c0_29 = arith.constant 0 : index
      %c0_30 = arith.constant 0 : index
      %c2_31 = arith.constant 2 : index
      %c0_32 = arith.constant 0 : index
      %c0_33 = arith.constant 0 : index
      %22 = vector.load %arg2[%c0_29, %c0_30, %c2_31, %c0_32, %c0_33] : memref<1x1x10x10x8xbf16, #tpu.memory_space<vmem>>, vector<1x1x8x8x8xbf16>
      %23 = vector.shape_cast %22 : vector<1x1x8x8x8xbf16> to vector<8x8x8xbf16>
      %c0_34 = arith.constant 0 : index
      %c0_35 = arith.constant 0 : index
      %c2_36 = arith.constant 2 : index
      %c1_37 = arith.constant 1 : index
      %c0_38 = arith.constant 0 : index
      %24 = vector.load %arg2[%c0_34, %c0_35, %c2_36, %c1_37, %c0_38] : memref<1x1x10x10x8xbf16, #tpu.memory_space<vmem>>, vector<1x1x8x8x8xbf16>
      %25 = vector.shape_cast %24 : vector<1x1x8x8x8xbf16> to vector<8x8x8xbf16>
      %c0_39 = arith.constant 0 : index
      %c0_40 = arith.constant 0 : index
      %c2_41 = arith.constant 2 : index
      %c2_42 = arith.constant 2 : index
      %c0_43 = arith.constant 0 : index
      %26 = vector.load %arg2[%c0_39, %c0_40, %c2_41, %c2_42, %c0_43] : memref<1x1x10x10x8xbf16, #tpu.memory_space<vmem>>, vector<1x1x8x8x8xbf16>
      %27 = vector.shape_cast %26 : vector<1x1x8x8x8xbf16> to vector<8x8x8xbf16>
      %c0_44 = arith.constant 0 : index
      %c0_45 = arith.constant 0 : index
      %c0_46 = arith.constant 0 : index
      %c0_47 = arith.constant 0 : index
      %c0_48 = arith.constant 0 : index
      %28 = vector.load %arg3[%c0_44, %c0_45, %c0_46, %c0_47, %c0_48] : memref<1x1x10x10x8xbf16, #tpu.memory_space<vmem>>, vector<1x1x8x8x8xbf16>
      %29 = vector.shape_cast %28 : vector<1x1x8x8x8xbf16> to vector<8x8x8xbf16>
      %c0_49 = arith.constant 0 : index
      %c0_50 = arith.constant 0 : index
      %c0_51 = arith.constant 0 : index
      %c1_52 = arith.constant 1 : index
      %c0_53 = arith.constant 0 : index
      %30 = vector.load %arg3[%c0_49, %c0_50, %c0_51, %c1_52, %c0_53] : memref<1x1x10x10x8xbf16, #tpu.memory_space<vmem>>, vector<1x1x8x8x8xbf16>
      %31 = vector.shape_cast %30 : vector<1x1x8x8x8xbf16> to vector<8x8x8xbf16>
      %c0_54 = arith.constant 0 : index
      %c0_55 = arith.constant 0 : index
      %c0_56 = arith.constant 0 : index
      %c2_57 = arith.constant 2 : index
      %c0_58 = arith.constant 0 : index
      %32 = vector.load %arg3[%c0_54, %c0_55, %c0_56, %c2_57, %c0_58] : memref<1x1x10x10x8xbf16, #tpu.memory_space<vmem>>, vector<1x1x8x8x8xbf16>
      %33 = vector.shape_cast %32 : vector<1x1x8x8x8xbf16> to vector<8x8x8xbf16>
      %c0_59 = arith.constant 0 : index
      %c0_60 = arith.constant 0 : index
      %c1_61 = arith.constant 1 : index
      %c0_62 = arith.constant 0 : index
      %c0_63 = arith.constant 0 : index
      %34 = vector.load %arg3[%c0_59, %c0_60, %c1_61, %c0_62, %c0_63] : memref<1x1x10x10x8xbf16, #tpu.memory_space<vmem>>, vector<1x1x8x8x8xbf16>
      %35 = vector.shape_cast %34 : vector<1x1x8x8x8xbf16> to vector<8x8x8xbf16>
      %c0_64 = arith.constant 0 : index
      %c0_65 = arith.constant 0 : index
      %c1_66 = arith.constant 1 : index
      %c1_67 = arith.constant 1 : index
      %c0_68 = arith.constant 0 : index
      %36 = vector.load %arg3[%c0_64, %c0_65, %c1_66, %c1_67, %c0_68] : memref<1x1x10x10x8xbf16, #tpu.memory_space<vmem>>, vector<1x1x8x8x8xbf16>
      %37 = vector.shape_cast %36 : vector<1x1x8x8x8xbf16> to vector<8x8x8xbf16>
      %c0_69 = arith.constant 0 : index
      %c0_70 = arith.constant 0 : index
      %c1_71 = arith.constant 1 : index
      %c2_72 = arith.constant 2 : index
      %c0_73 = arith.constant 0 : index
      %38 = vector.load %arg3[%c0_69, %c0_70, %c1_71, %c2_72, %c0_73] : memref<1x1x10x10x8xbf16, #tpu.memory_space<vmem>>, vector<1x1x8x8x8xbf16>
      %39 = vector.shape_cast %38 : vector<1x1x8x8x8xbf16> to vector<8x8x8xbf16>
      %c0_74 = arith.constant 0 : index
      %c0_75 = arith.constant 0 : index
      %c2_76 = arith.constant 2 : index
      %c0_77 = arith.constant 0 : index
      %c0_78 = arith.constant 0 : index
      %40 = vector.load %arg3[%c0_74, %c0_75, %c2_76, %c0_77, %c0_78] : memref<1x1x10x10x8xbf16, #tpu.memory_space<vmem>>, vector<1x1x8x8x8xbf16>
      %41 = vector.shape_cast %40 : vector<1x1x8x8x8xbf16> to vector<8x8x8xbf16>
      %c0_79 = arith.constant 0 : index
      %c0_80 = arith.constant 0 : index
      %c2_81 = arith.constant 2 : index
      %c1_82 = arith.constant 1 : index
      %c0_83 = arith.constant 0 : index
      %42 = vector.load %arg3[%c0_79, %c0_80, %c2_81, %c1_82, %c0_83] : memref<1x1x10x10x8xbf16, #tpu.memory_space<vmem>>, vector<1x1x8x8x8xbf16>
      %43 = vector.shape_cast %42 : vector<1x1x8x8x8xbf16> to vector<8x8x8xbf16>
      %c0_84 = arith.constant 0 : index
      %c0_85 = arith.constant 0 : index
      %c2_86 = arith.constant 2 : index
      %c2_87 = arith.constant 2 : index
      %c0_88 = arith.constant 0 : index
      %44 = vector.load %arg3[%c0_84, %c0_85, %c2_86, %c2_87, %c0_88] : memref<1x1x10x10x8xbf16, #tpu.memory_space<vmem>>, vector<1x1x8x8x8xbf16>
      %45 = vector.shape_cast %44 : vector<1x1x8x8x8xbf16> to vector<8x8x8xbf16>
      %c0_89 = arith.constant 0 : index
      %c0_90 = arith.constant 0 : index
      %c0_91 = arith.constant 0 : index
      %c0_92 = arith.constant 0 : index
      %c0_93 = arith.constant 0 : index
      %46 = vector.load %arg4[%c0_89, %c0_90, %c0_91, %c0_92, %c0_93] : memref<1x1x10x10x8xbf16, #tpu.memory_space<vmem>>, vector<1x1x8x8x8xbf16>
      %47 = vector.shape_cast %46 : vector<1x1x8x8x8xbf16> to vector<8x8x8xbf16>
      %c0_94 = arith.constant 0 : index
      %c0_95 = arith.constant 0 : index
      %c0_96 = arith.constant 0 : index
      %c1_97 = arith.constant 1 : index
      %c0_98 = arith.constant 0 : index
      %48 = vector.load %arg4[%c0_94, %c0_95, %c0_96, %c1_97, %c0_98] : memref<1x1x10x10x8xbf16, #tpu.memory_space<vmem>>, vector<1x1x8x8x8xbf16>
      %49 = vector.shape_cast %48 : vector<1x1x8x8x8xbf16> to vector<8x8x8xbf16>
      %c0_99 = arith.constant 0 : index
      %c0_100 = arith.constant 0 : index
      %c0_101 = arith.constant 0 : index
      %c2_102 = arith.constant 2 : index
      %c0_103 = arith.constant 0 : index
      %50 = vector.load %arg4[%c0_99, %c0_100, %c0_101, %c2_102, %c0_103] : memref<1x1x10x10x8xbf16, #tpu.memory_space<vmem>>, vector<1x1x8x8x8xbf16>
      %51 = vector.shape_cast %50 : vector<1x1x8x8x8xbf16> to vector<8x8x8xbf16>
      %c0_104 = arith.constant 0 : index
      %c0_105 = arith.constant 0 : index
      %c1_106 = arith.constant 1 : index
      %c0_107 = arith.constant 0 : index
      %c0_108 = arith.constant 0 : index
      %52 = vector.load %arg4[%c0_104, %c0_105, %c1_106, %c0_107, %c0_108] : memref<1x1x10x10x8xbf16, #tpu.memory_space<vmem>>, vector<1x1x8x8x8xbf16>
      %53 = vector.shape_cast %52 : vector<1x1x8x8x8xbf16> to vector<8x8x8xbf16>
      %c0_109 = arith.constant 0 : index
      %c0_110 = arith.constant 0 : index
      %c1_111 = arith.constant 1 : index
      %c1_112 = arith.constant 1 : index
      %c0_113 = arith.constant 0 : index
      %54 = vector.load %arg4[%c0_109, %c0_110, %c1_111, %c1_112, %c0_113] : memref<1x1x10x10x8xbf16, #tpu.memory_space<vmem>>, vector<1x1x8x8x8xbf16>
      %55 = vector.shape_cast %54 : vector<1x1x8x8x8xbf16> to vector<8x8x8xbf16>
      %c0_114 = arith.constant 0 : index
      %c0_115 = arith.constant 0 : index
      %c1_116 = arith.constant 1 : index
      %c2_117 = arith.constant 2 : index
      %c0_118 = arith.constant 0 : index
      %56 = vector.load %arg4[%c0_114, %c0_115, %c1_116, %c2_117, %c0_118] : memref<1x1x10x10x8xbf16, #tpu.memory_space<vmem>>, vector<1x1x8x8x8xbf16>
      %57 = vector.shape_cast %56 : vector<1x1x8x8x8xbf16> to vector<8x8x8xbf16>
      %c0_119 = arith.constant 0 : index
      %c0_120 = arith.constant 0 : index
      %c2_121 = arith.constant 2 : index
      %c0_122 = arith.constant 0 : index
      %c0_123 = arith.constant 0 : index
      %58 = vector.load %arg4[%c0_119, %c0_120, %c2_121, %c0_122, %c0_123] : memref<1x1x10x10x8xbf16, #tpu.memory_space<vmem>>, vector<1x1x8x8x8xbf16>
      %59 = vector.shape_cast %58 : vector<1x1x8x8x8xbf16> to vector<8x8x8xbf16>
      %c0_124 = arith.constant 0 : index
      %c0_125 = arith.constant 0 : index
      %c2_126 = arith.constant 2 : index
      %c1_127 = arith.constant 1 : index
      %c0_128 = arith.constant 0 : index
      %60 = vector.load %arg4[%c0_124, %c0_125, %c2_126, %c1_127, %c0_128] : memref<1x1x10x10x8xbf16, #tpu.memory_space<vmem>>, vector<1x1x8x8x8xbf16>
      %61 = vector.shape_cast %60 : vector<1x1x8x8x8xbf16> to vector<8x8x8xbf16>
      %c0_129 = arith.constant 0 : index
      %c0_130 = arith.constant 0 : index
      %c2_131 = arith.constant 2 : index
      %c2_132 = arith.constant 2 : index
      %c0_133 = arith.constant 0 : index
      %62 = vector.load %arg4[%c0_129, %c0_130, %c2_131, %c2_132, %c0_133] : memref<1x1x10x10x8xbf16, #tpu.memory_space<vmem>>, vector<1x1x8x8x8xbf16>
      %63 = vector.shape_cast %62 : vector<1x1x8x8x8xbf16> to vector<8x8x8xbf16>
      %cst = arith.constant 0.000000e+00 : bf16
      %64 = vector.broadcast %cst : bf16 to vector<1x10x16xbf16>
      %cst_134 = arith.constant 0.000000e+00 : bf16
      %65 = vector.broadcast %cst_134 : bf16 to vector<10x1x16xbf16>
      %66 = tpu.concatenate %17, %19, %21, %35, %37, %39, %53, %55, %57 in 2 : vector<8x8x8xbf16>, vector<8x8x8xbf16>, vector<8x8x8xbf16>, vector<8x8x8xbf16>, vector<8x8x8xbf16>, vector<8x8x8xbf16>, vector<8x8x8xbf16>, vector<8x8x8xbf16>, vector<8x8x8xbf16> -> vector<8x8x72xbf16>
      %67 = vector.shape_cast %66 : vector<8x8x72xbf16> to vector<64x72xbf16>
      %c0_135 = arith.constant 0 : index
      %c0_136 = arith.constant 0 : index
      %68 = vector.load %arg5[%c0_135, %c0_136] : memref<72x16xbf16, #tpu.memory_space<vmem>>, vector<72x16xbf16>
      %cst_137 = arith.constant dense<0.000000e+00> : vector<64x16xf32>
      %69 = tpu.matmul %67, %68, %cst_137 {dimension_numbers = #tpu.dot_dimension_numbers<[1], [0], [0], [1], [0, 0, 1, 1], [], []>} : vector<64x72xbf16>, vector<72x16xbf16>, vector<64x16xf32> -> vector<64x16xf32>
      %cst_138 = arith.constant 0.000000e+00 : f32
      %70 = vector.broadcast %cst_138 : f32 to vector<64x16xf32>
      %71 = arith.cmpf ogt, %69, %70 : vector<64x16xf32>
      %cst_139 = arith.constant 0.00999999977 : f32
      %72 = vector.broadcast %cst_139 : f32 to vector<64x16xf32>
      %73 = arith.mulf %72, %69 : vector<64x16xf32>
      %74 = arith.select %71, %69, %73 : vector<64x16xi1>, vector<64x16xf32>
      %c0_140 = arith.constant 0 : index
      %c0_141 = arith.constant 0 : index
      %c0_142 = arith.constant 0 : index
      %75 = vector.load %arg10[%c0_140, %c0_141, %c0_142] : memref<10x10x16xbf16, #tpu.memory_space<vmem>>, vector<1x10x16xbf16>
      tpu.vector_store %arg10[%c0_140, %c0_141, %c0_142], %64 {strides = array<i32>} : memref<10x10x16xbf16, #tpu.memory_space<vmem>>, vector<1x10x16xbf16>,
      %c9 = arith.constant 9 : index
      %c0_143 = arith.constant 0 : index
      %c0_144 = arith.constant 0 : index
      %76 = vector.load %arg10[%c9, %c0_143, %c0_144] : memref<10x10x16xbf16, #tpu.memory_space<vmem>>, vector<1x10x16xbf16>
      tpu.vector_store %arg10[%c9, %c0_143, %c0_144], %64 {strides = array<i32>} : memref<10x10x16xbf16, #tpu.memory_space<vmem>>, vector<1x10x16xbf16>,
      %c0_145 = arith.constant 0 : index
      %c0_146 = arith.constant 0 : index
      %c0_147 = arith.constant 0 : index
      %77 = vector.load %arg10[%c0_145, %c0_146, %c0_147] : memref<10x10x16xbf16, #tpu.memory_space<vmem>>, vector<10x1x16xbf16>
      tpu.vector_store %arg10[%c0_145, %c0_146, %c0_147], %65 {strides = array<i32>} : memref<10x10x16xbf16, #tpu.memory_space<vmem>>, vector<10x1x16xbf16>,
      %c0_148 = arith.constant 0 : index
      %c9_149 = arith.constant 9 : index
      %c0_150 = arith.constant 0 : index
      %78 = vector.load %arg10[%c0_148, %c9_149, %c0_150] : memref<10x10x16xbf16, #tpu.memory_space<vmem>>, vector<10x1x16xbf16>
      tpu.vector_store %arg10[%c0_148, %c9_149, %c0_150], %65 {strides = array<i32>} : memref<10x10x16xbf16, #tpu.memory_space<vmem>>, vector<10x1x16xbf16>,
      %79 = vector.shape_cast %74 : vector<64x16xf32> to vector<8x8x16xf32>
      %80 = arith.truncf %79 : vector<8x8x16xf32> to vector<8x8x16xbf16>
      %c1_151 = arith.constant 1 : index
      %c1_152 = arith.constant 1 : index
      %c0_153 = arith.constant 0 : index
      %81 = vector.load %arg10[%c1_151, %c1_152, %c0_153] : memref<10x10x16xbf16, #tpu.memory_space<vmem>>, vector<8x8x16xbf16>
      tpu.vector_store %arg10[%c1_151, %c1_152, %c0_153], %80 {strides = array<i32>} : memref<10x10x16xbf16, #tpu.memory_space<vmem>>, vector<8x8x16xbf16>,
      %c0_154 = arith.constant 0 : index
      %c0_155 = arith.constant 0 : index
      %c0_156 = arith.constant 0 : index
      %82 = vector.load %arg10[%c0_154, %c0_155, %c0_156] : memref<10x10x16xbf16, #tpu.memory_space<vmem>>, vector<8x8x16xbf16>
      %c0_157 = arith.constant 0 : index
      %c1_158 = arith.constant 1 : index
      %c0_159 = arith.constant 0 : index
      %83 = vector.load %arg10[%c0_157, %c1_158, %c0_159] : memref<10x10x16xbf16, #tpu.memory_space<vmem>>, vector<8x8x16xbf16>
      %c0_160 = arith.constant 0 : index
      %c2_161 = arith.constant 2 : index
      %c0_162 = arith.constant 0 : index
      %84 = vector.load %arg10[%c0_160, %c2_161, %c0_162] : memref<10x10x16xbf16, #tpu.memory_space<vmem>>, vector<8x8x16xbf16>
      %c1_163 = arith.constant 1 : index
      %c0_164 = arith.constant 0 : index
      %c0_165 = arith.constant 0 : index
      %85 = vector.load %arg10[%c1_163, %c0_164, %c0_165] : memref<10x10x16xbf16, #tpu.memory_space<vmem>>, vector<8x8x16xbf16>
      %c1_166 = arith.constant 1 : index
      %c1_167 = arith.constant 1 : index
      %c0_168 = arith.constant 0 : index
      %86 = vector.load %arg10[%c1_166, %c1_167, %c0_168] : memref<10x10x16xbf16, #tpu.memory_space<vmem>>, vector<8x8x16xbf16>
      %c1_169 = arith.constant 1 : index
      %c2_170 = arith.constant 2 : index
      %c0_171 = arith.constant 0 : index
      %87 = vector.load %arg10[%c1_169, %c2_170, %c0_171] : memref<10x10x16xbf16, #tpu.memory_space<vmem>>, vector<8x8x16xbf16>
      %c2_172 = arith.constant 2 : index
      %c0_173 = arith.constant 0 : index
      %c0_174 = arith.constant 0 : index
      %88 = vector.load %arg10[%c2_172, %c0_173, %c0_174] : memref<10x10x16xbf16, #tpu.memory_space<vmem>>, vector<8x8x16xbf16>
      %c2_175 = arith.constant 2 : index
      %c1_176 = arith.constant 1 : index
      %c0_177 = arith.constant 0 : index
      %89 = vector.load %arg10[%c2_175, %c1_176, %c0_177] : memref<10x10x16xbf16, #tpu.memory_space<vmem>>, vector<8x8x16xbf16>
      %c2_178 = arith.constant 2 : index
      %c2_179 = arith.constant 2 : index
      %c0_180 = arith.constant 0 : index
      %90 = vector.load %arg10[%c2_178, %c2_179, %c0_180] : memref<10x10x16xbf16, #tpu.memory_space<vmem>>, vector<8x8x16xbf16>
      %91 = tpu.concatenate %82, %83, %84, %85, %86, %87, %88, %89, %90 in 2 : vector<8x8x16xbf16>, vector<8x8x16xbf16>, vector<8x8x16xbf16>, vector<8x8x16xbf16>, vector<8x8x16xbf16>, vector<8x8x16xbf16>, vector<8x8x16xbf16>, vector<8x8x16xbf16>, vector<8x8x16xbf16> -> vector<8x8x144xbf16>
      %92 = vector.shape_cast %91 : vector<8x8x144xbf16> to vector<64x144xbf16>
      %c0_181 = arith.constant 0 : index
      %c0_182 = arith.constant 0 : index
      %93 = vector.load %arg6[%c0_181, %c0_182] : memref<144x16xbf16, #tpu.memory_space<vmem>>, vector<144x16xbf16>
      %cst_183 = arith.constant dense<0.000000e+00> : vector<64x16xf32>
      %94 = tpu.matmul %92, %93, %cst_183 {dimension_numbers = #tpu.dot_dimension_numbers<[1], [0], [0], [1], [0, 0, 1, 1], [], []>} : vector<64x144xbf16>, vector<144x16xbf16>, vector<64x16xf32> -> vector<64x16xf32>
      %cst_184 = arith.constant 0.000000e+00 : f32
      %95 = vector.broadcast %cst_184 : f32 to vector<64x16xf32>
      %96 = arith.cmpf ogt, %94, %95 : vector<64x16xf32>
      %cst_185 = arith.constant 0.00999999977 : f32
      %97 = vector.broadcast %cst_185 : f32 to vector<64x16xf32>
      %98 = arith.mulf %97, %94 : vector<64x16xf32>
      %99 = arith.select %96, %94, %98 : vector<64x16xi1>, vector<64x16xf32>
      %100 = vector.shape_cast %99 : vector<64x16xf32> to vector<8x8x16xf32>
      %cst_186 = arith.constant 0.000000e+00 : bf16
      %101 = vector.broadcast %cst_186 : bf16 to vector<8x1x48xbf16>
      %c0_187 = arith.constant 0 : index
      %c0_188 = arith.constant 0 : index
      %c0_189 = arith.constant 0 : index
      %102 = vector.load %arg11[%c0_187, %c0_188, %c0_189] : memref<8x10x48xbf16, #tpu.memory_space<vmem>>, vector<8x1x48xbf16>
      tpu.vector_store %arg11[%c0_187, %c0_188, %c0_189], %101 {strides = array<i32>} : memref<8x10x48xbf16, #tpu.memory_space<vmem>>, vector<8x1x48xbf16>,
      %c0_190 = arith.constant 0 : index
      %c9_191 = arith.constant 9 : index
      %c0_192 = arith.constant 0 : index
      %103 = vector.load %arg11[%c0_190, %c9_191, %c0_192] : memref<8x10x48xbf16, #tpu.memory_space<vmem>>, vector<8x1x48xbf16>
      tpu.vector_store %arg11[%c0_190, %c9_191, %c0_192], %101 {strides = array<i32>} : memref<8x10x48xbf16, #tpu.memory_space<vmem>>, vector<8x1x48xbf16>,
      %104 = tpu.concatenate %11, %13, %15, %17, %19, %21, %23, %25, %27 in 2 : vector<8x8x8xbf16>, vector<8x8x8xbf16>, vector<8x8x8xbf16>, vector<8x8x8xbf16>, vector<8x8x8xbf16>, vector<8x8x8xbf16>, vector<8x8x8xbf16>, vector<8x8x8xbf16>, vector<8x8x8xbf16> -> vector<8x8x72xbf16>
      %105 = vector.shape_cast %104 : vector<8x8x72xbf16> to vector<64x72xbf16>
      %c0_193 = arith.constant 0 : index
      %c0_194 = arith.constant 0 : index
      %106 = vector.load %arg7[%c0_193, %c0_194] : memref<72x16xbf16, #tpu.memory_space<vmem>>, vector<72x16xbf16>
      %cst_195 = arith.constant dense<0.000000e+00> : vector<64x16xf32>
      %107 = tpu.matmul %105, %106, %cst_195 {dimension_numbers = #tpu.dot_dimension_numbers<[1], [0], [0], [1], [0, 0, 1, 1], [], []>} : vector<64x72xbf16>, vector<72x16xbf16>, vector<64x16xf32> -> vector<64x16xf32>
      %cst_196 = arith.constant 0.000000e+00 : f32
      %108 = vector.broadcast %cst_196 : f32 to vector<64x16xf32>
      %109 = arith.cmpf ogt, %107, %108 : vector<64x16xf32>
      %cst_197 = arith.constant 0.00999999977 : f32
      %110 = vector.broadcast %cst_197 : f32 to vector<64x16xf32>
      %111 = arith.mulf %110, %107 : vector<64x16xf32>
      %112 = arith.select %109, %107, %111 : vector<64x16xi1>, vector<64x16xf32>
      %113 = vector.shape_cast %112 : vector<64x16xf32> to vector<8x8x16xf32>
      %114 = arith.truncf %113 : vector<8x8x16xf32> to vector<8x8x16xbf16>
      %c0_198 = arith.constant 0 : index
      %c1_199 = arith.constant 1 : index
      %c0_200 = arith.constant 0 : index
      %115 = vector.load %arg11[%c0_198, %c1_199, %c0_200] : memref<8x10x48xbf16, #tpu.memory_space<vmem>>, vector<8x8x16xbf16>
      tpu.vector_store %arg11[%c0_198, %c1_199, %c0_200], %114 {strides = array<i32>} : memref<8x10x48xbf16, #tpu.memory_space<vmem>>, vector<8x8x16xbf16>,
      %116 = tpu.concatenate %29, %31, %33, %35, %37, %39, %41, %43, %45 in 2 : vector<8x8x8xbf16>, vector<8x8x8xbf16>, vector<8x8x8xbf16>, vector<8x8x8xbf16>, vector<8x8x8xbf16>, vector<8x8x8xbf16>, vector<8x8x8xbf16>, vector<8x8x8xbf16>, vector<8x8x8xbf16> -> vector<8x8x72xbf16>
      %117 = vector.shape_cast %116 : vector<8x8x72xbf16> to vector<64x72xbf16>
      %c0_201 = arith.constant 0 : index
      %c0_202 = arith.constant 0 : index
      %118 = vector.load %arg7[%c0_201, %c0_202] : memref<72x16xbf16, #tpu.memory_space<vmem>>, vector<72x16xbf16>
      %cst_203 = arith.constant dense<0.000000e+00> : vector<64x16xf32>
      %119 = tpu.matmul %117, %118, %cst_203 {dimension_numbers = #tpu.dot_dimension_numbers<[1], [0], [0], [1], [0, 0, 1, 1], [], []>} : vector<64x72xbf16>, vector<72x16xbf16>, vector<64x16xf32> -> vector<64x16xf32>
      %cst_204 = arith.constant 0.000000e+00 : f32
      %120 = vector.broadcast %cst_204 : f32 to vector<64x16xf32>
      %121 = arith.cmpf ogt, %119, %120 : vector<64x16xf32>
      %cst_205 = arith.constant 0.00999999977 : f32
      %122 = vector.broadcast %cst_205 : f32 to vector<64x16xf32>
      %123 = arith.mulf %122, %119 : vector<64x16xf32>
      %124 = arith.select %121, %119, %123 : vector<64x16xi1>, vector<64x16xf32>
      %125 = vector.shape_cast %124 : vector<64x16xf32> to vector<8x8x16xf32>
      %126 = arith.truncf %125 : vector<8x8x16xf32> to vector<8x8x16xbf16>
      %c0_206 = arith.constant 0 : index
      %c1_207 = arith.constant 1 : index
      %c16 = arith.constant 16 : index
      %127 = vector.load %arg11[%c0_206, %c1_207, %c16] : memref<8x10x48xbf16, #tpu.memory_space<vmem>>, vector<8x8x16xbf16>
      tpu.vector_store %arg11[%c0_206, %c1_207, %c16], %126 {strides = array<i32>} : memref<8x10x48xbf16, #tpu.memory_space<vmem>>, vector<8x8x16xbf16>,
      %128 = tpu.concatenate %47, %49, %51, %53, %55, %57, %59, %61, %63 in 2 : vector<8x8x8xbf16>, vector<8x8x8xbf16>, vector<8x8x8xbf16>, vector<8x8x8xbf16>, vector<8x8x8xbf16>, vector<8x8x8xbf16>, vector<8x8x8xbf16>, vector<8x8x8xbf16>, vector<8x8x8xbf16> -> vector<8x8x72xbf16>
      %129 = vector.shape_cast %128 : vector<8x8x72xbf16> to vector<64x72xbf16>
      %c0_208 = arith.constant 0 : index
      %c0_209 = arith.constant 0 : index
      %130 = vector.load %arg7[%c0_208, %c0_209] : memref<72x16xbf16, #tpu.memory_space<vmem>>, vector<72x16xbf16>
      %cst_210 = arith.constant dense<0.000000e+00> : vector<64x16xf32>
      %131 = tpu.matmul %129, %130, %cst_210 {dimension_numbers = #tpu.dot_dimension_numbers<[1], [0], [0], [1], [0, 0, 1, 1], [], []>} : vector<64x72xbf16>, vector<72x16xbf16>, vector<64x16xf32> -> vector<64x16xf32>
      %cst_211 = arith.constant 0.000000e+00 : f32
      %132 = vector.broadcast %cst_211 : f32 to vector<64x16xf32>
      %133 = arith.cmpf ogt, %131, %132 : vector<64x16xf32>
      %cst_212 = arith.constant 0.00999999977 : f32
      %134 = vector.broadcast %cst_212 : f32 to vector<64x16xf32>
      %135 = arith.mulf %134, %131 : vector<64x16xf32>
      %136 = arith.select %133, %131, %135 : vector<64x16xi1>, vector<64x16xf32>
      %137 = vector.shape_cast %136 : vector<64x16xf32> to vector<8x8x16xf32>
      %138 = arith.truncf %137 : vector<8x8x16xf32> to vector<8x8x16xbf16>
      %c0_213 = arith.constant 0 : index
      %c1_214 = arith.constant 1 : index
      %c32 = arith.constant 32 : index
      %139 = vector.load %arg11[%c0_213, %c1_214, %c32] : memref<8x10x48xbf16, #tpu.memory_space<vmem>>, vector<8x8x16xbf16>
      tpu.vector_store %arg11[%c0_213, %c1_214, %c32], %138 {strides = array<i32>} : memref<8x10x48xbf16, #tpu.memory_space<vmem>>, vector<8x8x16xbf16>,
      %c0_215 = arith.constant 0 : index
      %c0_216 = arith.constant 0 : index
      %c0_217 = arith.constant 0 : index
      %140 = vector.load %arg11[%c0_215, %c0_216, %c0_217] : memref<8x10x48xbf16, #tpu.memory_space<vmem>>, vector<8x8x16xbf16>
      %c0_218 = arith.constant 0 : index
      %c1_219 = arith.constant 1 : index
      %c0_220 = arith.constant 0 : index
      %141 = vector.load %arg11[%c0_218, %c1_219, %c0_220] : memref<8x10x48xbf16, #tpu.memory_space<vmem>>, vector<8x8x16xbf16>
      %c0_221 = arith.constant 0 : index
      %c2_222 = arith.constant 2 : index
      %c0_223 = arith.constant 0 : index
      %142 = vector.load %arg11[%c0_221, %c2_222, %c0_223] : memref<8x10x48xbf16, #tpu.memory_space<vmem>>, vector<8x8x16xbf16>
      %c0_224 = arith.constant 0 : index
      %c0_225 = arith.constant 0 : index
      %c16_226 = arith.constant 16 : index
      %143 = vector.load %arg11[%c0_224, %c0_225, %c16_226] : memref<8x10x48xbf16, #tpu.memory_space<vmem>>, vector<8x8x16xbf16>
      %c0_227 = arith.constant 0 : index
      %c1_228 = arith.constant 1 : index
      %c16_229 = arith.constant 16 : index
      %144 = vector.load %arg11[%c0_227, %c1_228, %c16_229] : memref<8x10x48xbf16, #tpu.memory_space<vmem>>, vector<8x8x16xbf16>
      %c0_230 = arith.constant 0 : index
      %c2_231 = arith.constant 2 : index
      %c16_232 = arith.constant 16 : index
      %145 = vector.load %arg11[%c0_230, %c2_231, %c16_232] : memref<8x10x48xbf16, #tpu.memory_space<vmem>>, vector<8x8x16xbf16>
      %c0_233 = arith.constant 0 : index
      %c0_234 = arith.constant 0 : index
      %c32_235 = arith.constant 32 : index
      %146 = vector.load %arg11[%c0_233, %c0_234, %c32_235] : memref<8x10x48xbf16, #tpu.memory_space<vmem>>, vector<8x8x16xbf16>
      %c0_236 = arith.constant 0 : index
      %c1_237 = arith.constant 1 : index
      %c32_238 = arith.constant 32 : index
      %147 = vector.load %arg11[%c0_236, %c1_237, %c32_238] : memref<8x10x48xbf16, #tpu.memory_space<vmem>>, vector<8x8x16xbf16>
      %c0_239 = arith.constant 0 : index
      %c2_240 = arith.constant 2 : index
      %c32_241 = arith.constant 32 : index
      %148 = vector.load %arg11[%c0_239, %c2_240, %c32_241] : memref<8x10x48xbf16, #tpu.memory_space<vmem>>, vector<8x8x16xbf16>
      %149 = tpu.concatenate %140, %141, %142, %143, %144, %145, %146, %147, %148 in 2 : vector<8x8x16xbf16>, vector<8x8x16xbf16>, vector<8x8x16xbf16>, vector<8x8x16xbf16>, vector<8x8x16xbf16>, vector<8x8x16xbf16>, vector<8x8x16xbf16>, vector<8x8x16xbf16>, vector<8x8x16xbf16> -> vector<8x8x144xbf16>
      %150 = vector.shape_cast %149 : vector<8x8x144xbf16> to vector<64x144xbf16>
      %c0_242 = arith.constant 0 : index
      %c0_243 = arith.constant 0 : index
      %151 = vector.load %arg8[%c0_242, %c0_243] : memref<144x16xbf16, #tpu.memory_space<vmem>>, vector<144x16xbf16>
      %cst_244 = arith.constant dense<0.000000e+00> : vector<64x16xf32>
      %152 = tpu.matmul %150, %151, %cst_244 {dimension_numbers = #tpu.dot_dimension_numbers<[1], [0], [0], [1], [0, 0, 1, 1], [], []>} : vector<64x144xbf16>, vector<144x16xbf16>, vector<64x16xf32> -> vector<64x16xf32>
      %cst_245 = arith.constant 0.000000e+00 : f32
      %153 = vector.broadcast %cst_245 : f32 to vector<64x16xf32>
      %154 = arith.cmpf ogt, %152, %153 : vector<64x16xf32>
      %cst_246 = arith.constant 0.00999999977 : f32
      %155 = vector.broadcast %cst_246 : f32 to vector<64x16xf32>
      %156 = arith.mulf %155, %152 : vector<64x16xf32>
      %157 = arith.select %154, %152, %156 : vector<64x16xi1>, vector<64x16xf32>
      %158 = vector.shape_cast %157 : vector<64x16xf32> to vector<8x8x16xf32>
      %159 = arith.addf %158, %100 : vector<8x8x16xf32>
      %c0_247 = arith.constant 0 : index
      %c0_248 = arith.constant 0 : index
      %c0_249 = arith.constant 0 : index
      %c0_250 = arith.constant 0 : index
      %c0_251 = arith.constant 0 : index
      %160 = vector.load %arg9[%c0_247, %c0_248, %c0_249, %c0_250, %c0_251] : memref<1x1x10x10x16xbf16, #tpu.memory_space<vmem>>, vector<1x1x1x10x16xbf16>
      %161 = vector.shape_cast %160 : vector<1x1x1x10x16xbf16> to vector<1x10x16xbf16>
      %162 = vector.shape_cast %64 : vector<1x10x16xbf16> to vector<1x1x1x10x16xbf16>
      tpu.vector_store %arg9[%c0_247, %c0_248, %c0_249, %c0_250, %c0_251], %162 {strides = array<i32>} : memref<1x1x10x10x16xbf16, #tpu.memory_space<vmem>>, vector<1x1x1x10x16xbf16>,
      %c0_252 = arith.constant 0 : index
      %c0_253 = arith.constant 0 : index
      %c9_254 = arith.constant 9 : index
      %c0_255 = arith.constant 0 : index
      %c0_256 = arith.constant 0 : index
      %163 = vector.load %arg9[%c0_252, %c0_253, %c9_254, %c0_255, %c0_256] : memref<1x1x10x10x16xbf16, #tpu.memory_space<vmem>>, vector<1x1x1x10x16xbf16>
      %164 = vector.shape_cast %163 : vector<1x1x1x10x16xbf16> to vector<1x10x16xbf16>
      %165 = vector.shape_cast %64 : vector<1x10x16xbf16> to vector<1x1x1x10x16xbf16>
      tpu.vector_store %arg9[%c0_252, %c0_253, %c9_254, %c0_255, %c0_256], %165 {strides = array<i32>} : memref<1x1x10x10x16xbf16, #tpu.memory_space<vmem>>, vector<1x1x1x10x16xbf16>,
      %c0_257 = arith.constant 0 : index
      %c0_258 = arith.constant 0 : index
      %c0_259 = arith.constant 0 : index
      %c0_260 = arith.constant 0 : index
      %c0_261 = arith.constant 0 : index
      %166 = vector.load %arg9[%c0_257, %c0_258, %c0_259, %c0_260, %c0_261] : memref<1x1x10x10x16xbf16, #tpu.memory_space<vmem>>, vector<1x1x10x1x16xbf16>
      %167 = vector.shape_cast %166 : vector<1x1x10x1x16xbf16> to vector<10x1x16xbf16>
      %168 = vector.shape_cast %65 : vector<10x1x16xbf16> to vector<1x1x10x1x16xbf16>
      tpu.vector_store %arg9[%c0_257, %c0_258, %c0_259, %c0_260, %c0_261], %168 {strides = array<i32>} : memref<1x1x10x10x16xbf16, #tpu.memory_space<vmem>>, vector<1x1x10x1x16xbf16>,
      %c0_262 = arith.constant 0 : index
      %c0_263 = arith.constant 0 : index
      %c0_264 = arith.constant 0 : index
      %c9_265 = arith.constant 9 : index
      %c0_266 = arith.constant 0 : index
      %169 = vector.load %arg9[%c0_262, %c0_263, %c0_264, %c9_265, %c0_266] : memref<1x1x10x10x16xbf16, #tpu.memory_space<vmem>>, vector<1x1x10x1x16xbf16>
      %170 = vector.shape_cast %169 : vector<1x1x10x1x16xbf16> to vector<10x1x16xbf16>
      %171 = vector.shape_cast %65 : vector<10x1x16xbf16> to vector<1x1x10x1x16xbf16>
      tpu.vector_store %arg9[%c0_262, %c0_263, %c0_264, %c9_265, %c0_266], %171 {strides = array<i32>} : memref<1x1x10x10x16xbf16, #tpu.memory_space<vmem>>, vector<1x1x10x1x16xbf16>,
      %172 = arith.truncf %159 : vector<8x8x16xf32> to vector<8x8x16xbf16>
      %c0_267 = arith.constant 0 : index
      %c0_268 = arith.constant 0 : index
      %c1_269 = arith.constant 1 : index
      %c1_270 = arith.constant 1 : index
      %c0_271 = arith.constant 0 : index
      %173 = vector.load %arg9[%c0_267, %c0_268, %c1_269, %c1_270, %c0_271] : memref<1x1x10x10x16xbf16, #tpu.memory_space<vmem>>, vector<1x1x8x8x16xbf16>
      %174 = vector.shape_cast %173 : vector<1x1x8x8x16xbf16> to vector<8x8x16xbf16>
      %175 = vector.shape_cast %172 : vector<8x8x16xbf16> to vector<1x1x8x8x16xbf16>
      tpu.vector_store %arg9[%c0_267, %c0_268, %c1_269, %c1_270, %c0_271], %175 {strides = array<i32>} : memref<1x1x10x10x16xbf16, #tpu.memory_space<vmem>>, vector<1x1x8x8x16xbf16>,
    } else {
    }
    return
  }
  func.func @transform_0(%arg0: i32, %arg1: i32) -> (i32, i32, i32, i32, i32) {
    %c-1_i32 = arith.constant -1 : i32
    %0 = arith.addi %arg1, %c-1_i32 : i32
    %c0_i32 = arith.constant 0 : i32
    %c9_i32 = arith.constant 9 : i32
    %1 = arith.maxsi %c0_i32, %0 : i32
    %2 = arith.minsi %c9_i32, %1 : i32
    %c0_i32_0 = arith.constant 0 : i32
    %c0_i32_1 = arith.constant 0 : i32
    %c0_i32_2 = arith.constant 0 : i32
    %c0_i32_3 = arith.constant 0 : i32
    return %arg0, %2, %c0_i32_0, %c0_i32_1, %c0_i32_2 : i32, i32, i32, i32, i32
  }
  func.func @transform_1(%arg0: i32, %arg1: i32) -> (i32, i32, i32, i32, i32) {
    %c0_i32 = arith.constant 0 : i32
    %0 = arith.addi %arg1, %c0_i32 : i32
    %c0_i32_0 = arith.constant 0 : i32
    %c9_i32 = arith.constant 9 : i32
    %1 = arith.maxsi %c0_i32_0, %0 : i32
    %2 = arith.minsi %c9_i32, %1 : i32
    %c0_i32_1 = arith.constant 0 : i32
    %c0_i32_2 = arith.constant 0 : i32
    %c0_i32_3 = arith.constant 0 : i32
    %c0_i32_4 = arith.constant 0 : i32
    return %arg0, %2, %c0_i32_1, %c0_i32_2, %c0_i32_3 : i32, i32, i32, i32, i32
  }
  func.func @transform_2(%arg0: i32, %arg1: i32) -> (i32, i32, i32, i32, i32) {
    %c1_i32 = arith.constant 1 : i32
    %0 = arith.addi %arg1, %c1_i32 : i32
    %c0_i32 = arith.constant 0 : i32
    %c9_i32 = arith.constant 9 : i32
    %1 = arith.maxsi %c0_i32, %0 : i32
    %2 = arith.minsi %c9_i32, %1 : i32
    %c0_i32_0 = arith.constant 0 : i32
    %c0_i32_1 = arith.constant 0 : i32
    %c0_i32_2 = arith.constant 0 : i32
    %c0_i32_3 = arith.constant 0 : i32
    return %arg0, %2, %c0_i32_0, %c0_i32_1, %c0_i32_2 : i32, i32, i32, i32, i32
  }
  func.func @transform_3(%arg0: i32, %arg1: i32) -> (i32, i32) {
    %c0_i32 = arith.constant 0 : i32
    %c0_i32_0 = arith.constant 0 : i32
    %c0_i32_1 = arith.constant 0 : i32
    return %c0_i32, %c0_i32_0 : i32, i32
  }
  func.func @transform_4(%arg0: i32, %arg1: i32) -> (i32, i32) {
    %c0_i32 = arith.constant 0 : i32
    %c0_i32_0 = arith.constant 0 : i32
    %c0_i32_1 = arith.constant 0 : i32
    return %c0_i32, %c0_i32_0 : i32, i32
  }
  func.func @transform_5(%arg0: i32, %arg1: i32) -> (i32, i32) {
    %c0_i32 = arith.constant 0 : i32
    %c0_i32_0 = arith.constant 0 : i32
    %c0_i32_1 = arith.constant 0 : i32
    return %c0_i32, %c0_i32_0 : i32, i32
  }
  func.func @transform_6(%arg0: i32, %arg1: i32) -> (i32, i32) {
    %c0_i32 = arith.constant 0 : i32
    %c0_i32_0 = arith.constant 0 : i32
    %c0_i32_1 = arith.constant 0 : i32
    return %c0_i32, %c0_i32_0 : i32, i32
  }
  func.func @transform_7(%arg0: i32, %arg1: i32) -> (i32, i32, i32, i32, i32) {
    %c0_i32 = arith.constant 0 : i32
    %c0_i32_0 = arith.constant 0 : i32
    %c0_i32_1 = arith.constant 0 : i32
    %c0_i32_2 = arith.constant 0 : i32
    return %arg0, %arg1, %c0_i32, %c0_i32_0, %c0_i32_1 : i32, i32, i32, i32, i32
  }
}

module attributes {stable_mosaic.version = 11 : i64} {
  func.func @kernel(%arg0: i32, %arg1: i32, %arg2: memref<1x1x10x10x16xbf16, #tpu.memory_space<vmem>>, %arg3: memref<1x1x10x10x16xbf16, #tpu.memory_space<vmem>>, %arg4: memref<1x1x10x10x16xbf16, #tpu.memory_space<vmem>>, %arg5: memref<432x16xbf16, #tpu.memory_space<vmem>>, %arg6: memref<1x1x4x8x16xbf16, #tpu.memory_space<vmem>>) attributes {dimension_semantics = [#tpu.dimension_semantics<parallel>, #tpu.dimension_semantics<parallel>], iteration_bounds = array<i64: 2, 4>, scalar_prefetch = 0 : i64, scratch_operands = 0 : i64, tpu.core_type = #tpu.core_type<tc>, window_params = [{transform_indices = @transform_0, window_bounds = array<i64: 1, 1, 10, 10, 16>}, {transform_indices = @transform_1, window_bounds = array<i64: 1, 1, 10, 10, 16>}, {transform_indices = @transform_2, window_bounds = array<i64: 1, 1, 10, 10, 16>}, {pipeline_mode = #tpu.pipeline_mode<synchronous>, transform_indices = @transform_3, window_bounds = array<i64: 432, 16>}, {transform_indices = @transform_4, window_bounds = array<i64: 1, 1, 4, 8, 16>}]} {
    %c0 = arith.constant 0 : index
    %c0_0 = arith.constant 0 : index
    %c0_1 = arith.constant 0 : index
    %c0_2 = arith.constant 0 : index
    %c0_3 = arith.constant 0 : index
    %0 = vector.load %arg2[%c0, %c0_0, %c0_1, %c0_2, %c0_3] : memref<1x1x10x10x16xbf16, #tpu.memory_space<vmem>>, vector<1x1x10x10x16xbf16>
    %1 = vector.shape_cast %0 : vector<1x1x10x10x16xbf16> to vector<10x10x16xbf16>
    %2 = vector.shape_cast %1 : vector<10x10x16xbf16> to vector<5x2x10x16xbf16>
    %3 = vector.extract_strided_slice %2 {offsets = [0, 0, 0, 0], sizes = [5, 1, 10, 16], strides = [1, 1, 1, 1]} : vector<5x2x10x16xbf16> to vector<5x1x10x16xbf16>
    %4 = vector.shape_cast %3 : vector<5x1x10x16xbf16> to vector<5x10x16xbf16>
    %5 = vector.extract_strided_slice %4 {offsets = [0, 0, 0], sizes = [4, 10, 16], strides = [1, 1, 1]} : vector<5x10x16xbf16> to vector<4x10x16xbf16>
    %6 = vector.extract_strided_slice %5 {offsets = [0, 0, 0], sizes = [4, 8, 16], strides = [1, 1, 1]} : vector<4x10x16xbf16> to vector<4x8x16xbf16>
    %7 = vector.extract_strided_slice %5 {offsets = [0, 1, 0], sizes = [4, 8, 16], strides = [1, 1, 1]} : vector<4x10x16xbf16> to vector<4x8x16xbf16>
    %8 = vector.extract_strided_slice %5 {offsets = [0, 2, 0], sizes = [4, 8, 16], strides = [1, 1, 1]} : vector<4x10x16xbf16> to vector<4x8x16xbf16>
    %9 = vector.extract_strided_slice %2 {offsets = [0, 1, 0, 0], sizes = [5, 1, 10, 16], strides = [1, 1, 1, 1]} : vector<5x2x10x16xbf16> to vector<5x1x10x16xbf16>
    %10 = vector.shape_cast %9 : vector<5x1x10x16xbf16> to vector<5x10x16xbf16>
    %11 = vector.extract_strided_slice %10 {offsets = [0, 0, 0], sizes = [4, 10, 16], strides = [1, 1, 1]} : vector<5x10x16xbf16> to vector<4x10x16xbf16>
    %12 = vector.extract_strided_slice %11 {offsets = [0, 0, 0], sizes = [4, 8, 16], strides = [1, 1, 1]} : vector<4x10x16xbf16> to vector<4x8x16xbf16>
    %13 = vector.extract_strided_slice %11 {offsets = [0, 1, 0], sizes = [4, 8, 16], strides = [1, 1, 1]} : vector<4x10x16xbf16> to vector<4x8x16xbf16>
    %14 = vector.extract_strided_slice %11 {offsets = [0, 2, 0], sizes = [4, 8, 16], strides = [1, 1, 1]} : vector<4x10x16xbf16> to vector<4x8x16xbf16>
    %15 = vector.extract_strided_slice %2 {offsets = [0, 0, 0, 0], sizes = [5, 1, 10, 16], strides = [1, 1, 1, 1]} : vector<5x2x10x16xbf16> to vector<5x1x10x16xbf16>
    %16 = vector.shape_cast %15 : vector<5x1x10x16xbf16> to vector<5x10x16xbf16>
    %17 = vector.extract_strided_slice %16 {offsets = [1, 0, 0], sizes = [4, 10, 16], strides = [1, 1, 1]} : vector<5x10x16xbf16> to vector<4x10x16xbf16>
    %18 = vector.extract_strided_slice %17 {offsets = [0, 0, 0], sizes = [4, 8, 16], strides = [1, 1, 1]} : vector<4x10x16xbf16> to vector<4x8x16xbf16>
    %19 = vector.extract_strided_slice %17 {offsets = [0, 1, 0], sizes = [4, 8, 16], strides = [1, 1, 1]} : vector<4x10x16xbf16> to vector<4x8x16xbf16>
    %20 = vector.extract_strided_slice %17 {offsets = [0, 2, 0], sizes = [4, 8, 16], strides = [1, 1, 1]} : vector<4x10x16xbf16> to vector<4x8x16xbf16>
    %c0_4 = arith.constant 0 : index
    %c0_5 = arith.constant 0 : index
    %c0_6 = arith.constant 0 : index
    %c0_7 = arith.constant 0 : index
    %c0_8 = arith.constant 0 : index
    %21 = vector.load %arg3[%c0_4, %c0_5, %c0_6, %c0_7, %c0_8] : memref<1x1x10x10x16xbf16, #tpu.memory_space<vmem>>, vector<1x1x10x10x16xbf16>
    %22 = vector.shape_cast %21 : vector<1x1x10x10x16xbf16> to vector<10x10x16xbf16>
    %23 = vector.shape_cast %22 : vector<10x10x16xbf16> to vector<5x2x10x16xbf16>
    %24 = vector.extract_strided_slice %23 {offsets = [0, 0, 0, 0], sizes = [5, 1, 10, 16], strides = [1, 1, 1, 1]} : vector<5x2x10x16xbf16> to vector<5x1x10x16xbf16>
    %25 = vector.shape_cast %24 : vector<5x1x10x16xbf16> to vector<5x10x16xbf16>
    %26 = vector.extract_strided_slice %25 {offsets = [0, 0, 0], sizes = [4, 10, 16], strides = [1, 1, 1]} : vector<5x10x16xbf16> to vector<4x10x16xbf16>
    %27 = vector.extract_strided_slice %26 {offsets = [0, 0, 0], sizes = [4, 8, 16], strides = [1, 1, 1]} : vector<4x10x16xbf16> to vector<4x8x16xbf16>
    %28 = vector.extract_strided_slice %26 {offsets = [0, 1, 0], sizes = [4, 8, 16], strides = [1, 1, 1]} : vector<4x10x16xbf16> to vector<4x8x16xbf16>
    %29 = vector.extract_strided_slice %26 {offsets = [0, 2, 0], sizes = [4, 8, 16], strides = [1, 1, 1]} : vector<4x10x16xbf16> to vector<4x8x16xbf16>
    %30 = vector.extract_strided_slice %23 {offsets = [0, 1, 0, 0], sizes = [5, 1, 10, 16], strides = [1, 1, 1, 1]} : vector<5x2x10x16xbf16> to vector<5x1x10x16xbf16>
    %31 = vector.shape_cast %30 : vector<5x1x10x16xbf16> to vector<5x10x16xbf16>
    %32 = vector.extract_strided_slice %31 {offsets = [0, 0, 0], sizes = [4, 10, 16], strides = [1, 1, 1]} : vector<5x10x16xbf16> to vector<4x10x16xbf16>
    %33 = vector.extract_strided_slice %32 {offsets = [0, 0, 0], sizes = [4, 8, 16], strides = [1, 1, 1]} : vector<4x10x16xbf16> to vector<4x8x16xbf16>
    %34 = vector.extract_strided_slice %32 {offsets = [0, 1, 0], sizes = [4, 8, 16], strides = [1, 1, 1]} : vector<4x10x16xbf16> to vector<4x8x16xbf16>
    %35 = vector.extract_strided_slice %32 {offsets = [0, 2, 0], sizes = [4, 8, 16], strides = [1, 1, 1]} : vector<4x10x16xbf16> to vector<4x8x16xbf16>
    %36 = vector.extract_strided_slice %23 {offsets = [0, 0, 0, 0], sizes = [5, 1, 10, 16], strides = [1, 1, 1, 1]} : vector<5x2x10x16xbf16> to vector<5x1x10x16xbf16>
    %37 = vector.shape_cast %36 : vector<5x1x10x16xbf16> to vector<5x10x16xbf16>
    %38 = vector.extract_strided_slice %37 {offsets = [1, 0, 0], sizes = [4, 10, 16], strides = [1, 1, 1]} : vector<5x10x16xbf16> to vector<4x10x16xbf16>
    %39 = vector.extract_strided_slice %38 {offsets = [0, 0, 0], sizes = [4, 8, 16], strides = [1, 1, 1]} : vector<4x10x16xbf16> to vector<4x8x16xbf16>
    %40 = vector.extract_strided_slice %38 {offsets = [0, 1, 0], sizes = [4, 8, 16], strides = [1, 1, 1]} : vector<4x10x16xbf16> to vector<4x8x16xbf16>
    %41 = vector.extract_strided_slice %38 {offsets = [0, 2, 0], sizes = [4, 8, 16], strides = [1, 1, 1]} : vector<4x10x16xbf16> to vector<4x8x16xbf16>
    %c0_9 = arith.constant 0 : index
    %c0_10 = arith.constant 0 : index
    %c0_11 = arith.constant 0 : index
    %c0_12 = arith.constant 0 : index
    %c0_13 = arith.constant 0 : index
    %42 = vector.load %arg4[%c0_9, %c0_10, %c0_11, %c0_12, %c0_13] : memref<1x1x10x10x16xbf16, #tpu.memory_space<vmem>>, vector<1x1x10x10x16xbf16>
    %43 = vector.shape_cast %42 : vector<1x1x10x10x16xbf16> to vector<10x10x16xbf16>
    %44 = vector.shape_cast %43 : vector<10x10x16xbf16> to vector<5x2x10x16xbf16>
    %45 = vector.extract_strided_slice %44 {offsets = [0, 0, 0, 0], sizes = [5, 1, 10, 16], strides = [1, 1, 1, 1]} : vector<5x2x10x16xbf16> to vector<5x1x10x16xbf16>
    %46 = vector.shape_cast %45 : vector<5x1x10x16xbf16> to vector<5x10x16xbf16>
    %47 = vector.extract_strided_slice %46 {offsets = [0, 0, 0], sizes = [4, 10, 16], strides = [1, 1, 1]} : vector<5x10x16xbf16> to vector<4x10x16xbf16>
    %48 = vector.extract_strided_slice %47 {offsets = [0, 0, 0], sizes = [4, 8, 16], strides = [1, 1, 1]} : vector<4x10x16xbf16> to vector<4x8x16xbf16>
    %49 = vector.extract_strided_slice %47 {offsets = [0, 1, 0], sizes = [4, 8, 16], strides = [1, 1, 1]} : vector<4x10x16xbf16> to vector<4x8x16xbf16>
    %50 = vector.extract_strided_slice %47 {offsets = [0, 2, 0], sizes = [4, 8, 16], strides = [1, 1, 1]} : vector<4x10x16xbf16> to vector<4x8x16xbf16>
    %51 = vector.extract_strided_slice %44 {offsets = [0, 1, 0, 0], sizes = [5, 1, 10, 16], strides = [1, 1, 1, 1]} : vector<5x2x10x16xbf16> to vector<5x1x10x16xbf16>
    %52 = vector.shape_cast %51 : vector<5x1x10x16xbf16> to vector<5x10x16xbf16>
    %53 = vector.extract_strided_slice %52 {offsets = [0, 0, 0], sizes = [4, 10, 16], strides = [1, 1, 1]} : vector<5x10x16xbf16> to vector<4x10x16xbf16>
    %54 = vector.extract_strided_slice %53 {offsets = [0, 0, 0], sizes = [4, 8, 16], strides = [1, 1, 1]} : vector<4x10x16xbf16> to vector<4x8x16xbf16>
    %55 = vector.extract_strided_slice %53 {offsets = [0, 1, 0], sizes = [4, 8, 16], strides = [1, 1, 1]} : vector<4x10x16xbf16> to vector<4x8x16xbf16>
    %56 = vector.extract_strided_slice %53 {offsets = [0, 2, 0], sizes = [4, 8, 16], strides = [1, 1, 1]} : vector<4x10x16xbf16> to vector<4x8x16xbf16>
    %57 = vector.extract_strided_slice %44 {offsets = [0, 0, 0, 0], sizes = [5, 1, 10, 16], strides = [1, 1, 1, 1]} : vector<5x2x10x16xbf16> to vector<5x1x10x16xbf16>
    %58 = vector.shape_cast %57 : vector<5x1x10x16xbf16> to vector<5x10x16xbf16>
    %59 = vector.extract_strided_slice %58 {offsets = [1, 0, 0], sizes = [4, 10, 16], strides = [1, 1, 1]} : vector<5x10x16xbf16> to vector<4x10x16xbf16>
    %60 = vector.extract_strided_slice %59 {offsets = [0, 0, 0], sizes = [4, 8, 16], strides = [1, 1, 1]} : vector<4x10x16xbf16> to vector<4x8x16xbf16>
    %61 = vector.extract_strided_slice %59 {offsets = [0, 1, 0], sizes = [4, 8, 16], strides = [1, 1, 1]} : vector<4x10x16xbf16> to vector<4x8x16xbf16>
    %62 = vector.extract_strided_slice %59 {offsets = [0, 2, 0], sizes = [4, 8, 16], strides = [1, 1, 1]} : vector<4x10x16xbf16> to vector<4x8x16xbf16>
    %63 = tpu.concatenate %6, %7, %8, %12, %13, %14, %18, %19, %20, %27, %28, %29, %33, %34, %35, %39 in 2 : vector<4x8x16xbf16>, vector<4x8x16xbf16>, vector<4x8x16xbf16>, vector<4x8x16xbf16>, vector<4x8x16xbf16>, vector<4x8x16xbf16>, vector<4x8x16xbf16>, vector<4x8x16xbf16>, vector<4x8x16xbf16>, vector<4x8x16xbf16>, vector<4x8x16xbf16>, vector<4x8x16xbf16>, vector<4x8x16xbf16>, vector<4x8x16xbf16>, vector<4x8x16xbf16>, vector<4x8x16xbf16> -> vector<4x8x256xbf16>
    %64 = tpu.concatenate %40, %41, %48, %49, %50, %54, %55, %56, %60, %61, %62 in 2 : vector<4x8x16xbf16>, vector<4x8x16xbf16>, vector<4x8x16xbf16>, vector<4x8x16xbf16>, vector<4x8x16xbf16>, vector<4x8x16xbf16>, vector<4x8x16xbf16>, vector<4x8x16xbf16>, vector<4x8x16xbf16>, vector<4x8x16xbf16>, vector<4x8x16xbf16> -> vector<4x8x176xbf16>
    %65 = tpu.concatenate %63, %64 in 2 : vector<4x8x256xbf16>, vector<4x8x176xbf16> -> vector<4x8x432xbf16>
    %66 = vector.shape_cast %65 : vector<4x8x432xbf16> to vector<32x432xbf16>
    %c0_14 = arith.constant 0 : index
    %c0_15 = arith.constant 0 : index
    %67 = vector.load %arg5[%c0_14, %c0_15] : memref<432x16xbf16, #tpu.memory_space<vmem>>, vector<432x16xbf16>
    %cst = arith.constant dense<0.000000e+00> : vector<32x16xf32>
    %68 = tpu.matmul %66, %67, %cst {dimension_numbers = #tpu.dot_dimension_numbers<[1], [0], [0], [1], [0, 0, 1, 1], [], []>} : vector<32x432xbf16>, vector<432x16xbf16>, vector<32x16xf32> -> vector<32x16xf32>
    %69 = vector.shape_cast %68 : vector<32x16xf32> to vector<4x8x16xf32>
    %70 = arith.truncf %69 : vector<4x8x16xf32> to vector<4x8x16xbf16>
    %c0_16 = arith.constant 0 : index
    %c0_17 = arith.constant 0 : index
    %c0_18 = arith.constant 0 : index
    %c0_19 = arith.constant 0 : index
    %c0_20 = arith.constant 0 : index
    %71 = vector.load %arg6[%c0_16, %c0_17, %c0_18, %c0_19, %c0_20] : memref<1x1x4x8x16xbf16, #tpu.memory_space<vmem>>, vector<1x1x4x8x16xbf16>
    %72 = vector.shape_cast %71 : vector<1x1x4x8x16xbf16> to vector<4x8x16xbf16>
    %73 = vector.shape_cast %70 : vector<4x8x16xbf16> to vector<1x1x4x8x16xbf16>
    tpu.vector_store %arg6[%c0_16, %c0_17, %c0_18, %c0_19, %c0_20], %73 {strides = array<i32>} : memref<1x1x4x8x16xbf16, #tpu.memory_space<vmem>>, vector<1x1x4x8x16xbf16>,
    return
  }
  func.func @transform_0(%arg0: i32, %arg1: i32) -> (i32, i32, i32, i32, i32) {
    %c2_i32 = arith.constant 2 : i32
    %0 = arith.muli %c2_i32, %arg1 : i32
    %c0_i32 = arith.constant 0 : i32
    %1 = arith.addi %0, %c0_i32 : i32
    %c0_i32_0 = arith.constant 0 : i32
    %c0_i32_1 = arith.constant 0 : i32
    %c0_i32_2 = arith.constant 0 : i32
    %c0_i32_3 = arith.constant 0 : i32
    return %arg0, %1, %c0_i32_0, %c0_i32_1, %c0_i32_2 : i32, i32, i32, i32, i32
  }
  func.func @transform_1(%arg0: i32, %arg1: i32) -> (i32, i32, i32, i32, i32) {
    %c2_i32 = arith.constant 2 : i32
    %0 = arith.muli %c2_i32, %arg1 : i32
    %c1_i32 = arith.constant 1 : i32
    %1 = arith.addi %0, %c1_i32 : i32
    %c0_i32 = arith.constant 0 : i32
    %c0_i32_0 = arith.constant 0 : i32
    %c0_i32_1 = arith.constant 0 : i32
    %c0_i32_2 = arith.constant 0 : i32
    return %arg0, %1, %c0_i32, %c0_i32_0, %c0_i32_1 : i32, i32, i32, i32, i32
  }
  func.func @transform_2(%arg0: i32, %arg1: i32) -> (i32, i32, i32, i32, i32) {
    %c2_i32 = arith.constant 2 : i32
    %0 = arith.muli %c2_i32, %arg1 : i32
    %c2_i32_0 = arith.constant 2 : i32
    %1 = arith.addi %0, %c2_i32_0 : i32
    %c0_i32 = arith.constant 0 : i32
    %c0_i32_1 = arith.constant 0 : i32
    %c0_i32_2 = arith.constant 0 : i32
    %c0_i32_3 = arith.constant 0 : i32
    return %arg0, %1, %c0_i32, %c0_i32_1, %c0_i32_2 : i32, i32, i32, i32, i32
  }
  func.func @transform_3(%arg0: i32, %arg1: i32) -> (i32, i32) {
    %c0_i32 = arith.constant 0 : i32
    %c0_i32_0 = arith.constant 0 : i32
    %c0_i32_1 = arith.constant 0 : i32
    return %c0_i32, %c0_i32_0 : i32, i32
  }
  func.func @transform_4(%arg0: i32, %arg1: i32) -> (i32, i32, i32, i32, i32) {
    %c0_i32 = arith.constant 0 : i32
    %c0_i32_0 = arith.constant 0 : i32
    %c0_i32_1 = arith.constant 0 : i32
    %c0_i32_2 = arith.constant 0 : i32
    return %arg0, %arg1, %c0_i32, %c0_i32_0, %c0_i32_1 : i32, i32, i32, i32, i32
  }
}

</mosaic_0001>

<bundles_post_ra>
// kernel: resblock_forward.3
= control target key start
LH: loop header
LB: loop body
LE: loop exit
PB: predicated region body
PF: predicated region fallthrough
CT: control target
= control target key end

     0   :  { %s2026_s15 = smov 0   ;;  %s2028_s16 = smov 0   ;;  %s2690_s0 = inlined_call_operand.vmem [shape: bf16[2,10,10,10,16], index: 0, kind: input, shape index: {}, may-alias: {0,1,2}]   ;;  %s2691_s1 = inlined_call_operand.vmem [shape: bf16[2,10,10,10,16], index: 1, kind: input, shape index: {}, may-alias: {0,1,2}]   ;;  %s2692_s2 = inlined_call_operand.vmem [shape: bf16[2,10,10,10,16], index: 2, kind: input, shape index: {}, may-alias: {0,1,2}]   ;;  %s2693_s3 = inlined_call_operand.vmem [shape: bf16[432,16], index: 3, kind: input, shape index: {}]   ;;  %s2694_s4 = inlined_call_operand.vmem [shape: bf16[2,4,4,8,16], index: 4, kind: output, shape index: {}]  }
   0x1   :  { %s2030_s17 = smov 0   ;;  %s2032_s18 = smov 0  }
   0x2   :  { %s2034_s19 = smov 0  }
   0x3 LB: > { %s23_s20 = sadd.s32 1, %s1984_s17  ;;  %s26_s21 = sadd.s32 1, %s1988_s18  ;;  %s1992_s19 = sphi %s2034_s19, %s14_s19   ;;  %s1988_s18 = sphi %s2032_s18, %s2698_s18   ;;  %s1984_s17 = sphi %s2030_s17, %s2697_s17   ;;  %s1980_s16 = sphi %s2028_s16, %s2696_s16   ;;  %s1976_s15 = sphi %s2026_s15, %s2695_s15  }
   0x4   : > { %p24_p0 = scmp.ge.s32.totalorder %s23_s20, 4  ;;  %p1749_p1 = scmp.ge.s32.totalorder %s1992_s19, 1 }
   0x5   : > { %p234_p2 = scmp.lt.s32.totalorder %s1992_s19, 9 }
   0x6   : > { %s2700_s20 = smov (%p24_p0, %s23_s20), 0  ;;  %s2702_s21 = smov (!%p24_p0, %s26_s21), %s1988_s18 }
   0x7   : > { %p235_p3 = pnand %p1749_p1, %p234_p2  ;;  %p28_p4 = scmp.ge.s32.totalorder %s2702_s21, 2 }
   0x8   : > { %s2059_s22 = sshll.u32 (!%p235_p3), %s1976_s15, 1  ;;  %p292_p5 = scmp.lt.s32.totalorder (!%p235_p3), %s1980_s16, 1 }
   0x9   : > { %s2704_s21 = smov (%p28_p4, %s2702_s21), 0  ;;  %238 = sbr.rel (%p235_p3) target bundleno = 533 (0x215), region = 36 }
   0xa   : > { %p294_p6 = scmp.lt.s32.totalorder (!%p235_p3), %s2059_s22, 9  ;;  %s1994_s5 = smov (!%p235_p3), 32  }
   0xb   : > { %s303_s6 = sadd.s32 (!%p235_p3), 1, %s2059_s22  ;;  %s1995_s7 = smov (!%p235_p3), 48  }
   0xc   : > { %p306_p7 = scmp.lt.s32.totalorder (!%p235_p3), %s303_s6, 9  ;;  %s1996_s8 = smov (!%p235_p3), 16  }
   0xd   : > { %s316_s9 = sadd.s32 (!%p235_p3), 2, %s2059_s22  ;;  %s1997_s29 = smov (!%p235_p3), 64  }
   0xe   : > { %s2706_s16 = smov (!%p292_p5, %s1980_s16), 1  ;;  %s2708_s6 = smov (!%p306_p7, %s303_s6), 9  ;;  %vm744_vm0 = vcmask 130048   ;;  %vm757_vm1 = vcmask 261120   ;;  %vm766_vm2 = vcmask 392192   ;;  %vm775_vm3 = vcmask 523264  }
   0xf   : > { %s295_s23 = scalar_select %p294_p6, %s2059_s22, 9  ;;  %vm784_vm4 = vcmask 654336   ;;  %vm793_vm5 = vcmask 785408   ;;  %vm802_vm6 = vcmask 916480   ;;  %vm1597_vm7 = vcmask 125952  }
  0x10   : > { %s2066_s24 = smul.u32 200, %s2706_s16  ;;  %p319_p8 = scmp.lt.s32.totalorder %s316_s9, 9 }
  0x11   : > { %s1903_s25 = smul.u32 20, %s295_s23  ;;  %p330_p9 = scmp.lt.s32.totalorder %s1976_s15, 3 }
  0x12   : > { %s1905_s10 = smul.u32 20, %s2708_s6  ;;  %s2710_s9 = smov (!%p319_p8, %s316_s9), 9 }
  0x13   : > { %s298_s26 = sadd.s32 %s2066_s24, %s1903_s25  ;;  %s1906_s12 = smul.u32 20, %s2710_s9 }
  0x14   : > { %s1751_s27 = sshll.u32 %s298_s26, 2  ;;  %s310_s11 = sadd.s32 %s1905_s10, %s2066_s24 }
  0x15   : > { %s2072_s30 = scalar_lea.vmem %s2690_s0, %s1751_s27  ;;  %s1753_s13 = sshll.u32 %s310_s11, 2 }
  0x16   : > { %v2075_v0 = vld [vmem:[%s2072_s30 + $0x30] sm:$0xf]  ;;  %v351_v1 = vld [vmem:[%s2072_s30 + $0x34] sm:$0x1]  ;;  %v2079_v2 = vld [vmem:[%s2072_s30 + $0x20] sm:$0xf]  ;;  %s2158_s23 = scalar_lea.vmem %s2691_s1, %s1753_s13  ;;  %s323_s25 = sadd.s32 %s1906_s12, %s2066_s24 }
  0x17   : > { %v2082_v3 = vunpack.c.l.b16 %v2075_v0  ;;  %v407_v4 = vunpack.c.l.b16 %v351_v1  ;;  %v347_v5 = vld [vmem:[%s2072_s30 + $0x24] sm:$0x1]  ;;  %v2086_v6 = vunpack.c.l.b16 %v2079_v2  ;;  %v1761_v7 = vld [vmem:[%s2072_s30] sm:$0xf]  ;;  %v2091_v11 = vld [vmem:[%s2072_s30 + $0x10] sm:$0xf] }
  0x18   : > { %v1875_v8 = vld [vmem:[%s2072_s30] sm:$0x10]  ;;  %v405_v9 = vunpack.c.l.b16 %v347_v5  ;;  %v343_v12 = vld [vmem:[%s2072_s30 + $0x14] sm:$0x1]  ;;  %v2098_v14 = vunpack.c.l.b16 %v2091_v11  ;;  %v340_v22 = vld [vmem:[%s2072_s30 + $0x8] sm:$0xf] }
  0x19   : > { %v1762_v10 = vor.u32 %v1875_v8, %v1761_v7  ;;  %v2095_v13 = vpack.c.b16 %v407_v4, %v2082_v3  ;;  %v403_v17 = vunpack.c.l.b16 %v343_v12  ;;  %v464_v28 = vunpack.c.l.b16 %v340_v22  ;;  %v349_v36 = vld [vmem:[%s2072_s30 + $0x2c] sm:$0x1]  ;;  %v345_v39 = vld [vmem:[%s2072_s30 + $0x1c] sm:$0x1]  ;;  %v348_v40 = vld [vmem:[%s2072_s30 + $0x28] sm:$0xf] }
  0x1a   : > { %v2101_v15 = vpack.c.b16 %v405_v9, %v2086_v6  ;;  %v341_v41 = vld [vmem:[%s2072_s30 + $0xc] sm:$0x1]  ;;  %v486_v42 = vunpack.c.l.b16 %v349_v36  ;;  %v344_v43 = vld [vmem:[%s2072_s30 + $0x18] sm:$0xf]  ;;  %v485_v46 = vunpack.c.l.b16 %v345_v39  ;;  %v466_v48 = vunpack.c.l.b16 %v348_v40  ;;  %v353_v56 = vld [vmem:[%s2072_s30 + $0x3c] sm:$0x1] }
  0x1b   : > { %v415_v16 = vshll.u32 %v1762_v10, 16  ;;  %v448_v18 = vrot.slane %v1762_v10, 1  ;;  %v451_v19 = vrot.slane %v2095_v13, 1  ;;  %v413_v25 = vshrl.u32 %v1762_v10, 16  ;;  %v352_v51 = vld [vmem:[%s2072_s30 + $0x38] sm:$0xf] }
  0x1c   : > { %v450_v20 = vrot.slane %v2101_v15, 1  ;;  %v429_v21 = vshll.u32 %v2101_v15, 16  ;;  %v427_v23 = vshrl.u32 %v2101_v15, 16  ;;  %v2116_v27 = vpack.c.b16 %v403_v17, %v2098_v14  ;;  %v360_v8 = vld [vmem:[%s2158_s23 + $0x10] sm:$0xf]  ;;  %s1755_s26 = sshll.u32 %s323_s25, 2 }
  0x1d   : > { %452 = vrot.lane.b32.xlu2 %v448_v18, %s1994_s5  ;;  %458 = vrot.lane.b32.xlu1 %v451_v19, %s1994_s5  ;;  %v417_v26 = vrot.slane %v415_v16, 1  ;;  %v436_v30 = vshll.u32 %v2095_v13, 16  ;;  %v468_v31 = vpack.c.b16 %v464_v28, %v464_v28  ;;  %v434_v34 = vshrl.u32 %v2095_v13, 16  ;;  %v361_v9 = vld [vmem:[%s2158_s23 + $0x14] sm:$0x1]  ;;  %s2170_s24 = scalar_lea.vmem %s2692_s2, %s1755_s26  ;;  %s1998_s6 = smov 80  }
  0x1e   : > { %456 = vrot.lane.b32.xlu0 %v450_v20, %s1994_s5  ;;  %v431_v24 = vrot.slane %v429_v21, 1  ;;  %v422_v33 = vshll.u32 %v2116_v27, 16  ;;  %v420_v37 = vshrl.u32 %v2116_v27, 16  ;;  %v449_v44 = vrot.slane %v2116_v27, 1  ;;  %s1999_s9 = smov 112   ;;  %s2000_s10 = smov 96  }
  0x1f   : > { %v418_v32 = vor.u32 %v417_v26, %v413_v25  ;;  %v438_v35 = vrot.slane %v436_v30, 1  ;;  %v484_v49 = vunpack.c.l.b16 %v341_v41  ;;  %v465_v50 = vunpack.c.l.b16 %v344_v43  ;;  %v374_v30 = vld [vmem:[%s2170_s24] sm:$0xf]  ;;  %s2712_s15 = smov (!%p330_p9, %s1976_s15), 3 }
  0x20   : > { %v2119_v29 = vor.u32 %v431_v24, %v427_v23  ;;  %v424_v38 = vrot.slane %v422_v33, 1  ;;  %v2141_v52 = vpack.c.b16 %v486_v42, %v466_v48  ;;  %v467_v55 = vunpack.c.l.b16 %v352_v51  ;;  %v378_v33 = vld [vmem:[%s2170_s24 + $0x10] sm:$0xf] }
  0x21   : > { %v2136_v45 = vor.u32 %v438_v35, %v434_v34  ;;  %v489_v53 = vpack.c.b16 %v485_v46, %v465_v50  ;;  %v488_v54 = vpack.c.b16 %v484_v49, %v464_v28  ;;  %v470_v59 = vpack.c.b16 %v466_v48, %v466_v48 }
  0x22   : > { %v2138_v47 = vor.u32 %v424_v38, %v420_v37  ;;  %v471_v57 = vpack.c.b16 %v467_v55, %v467_v55  ;;  %v509_v58 = vshll.u32 %v2141_v52, 16  ;;  %v469_v61 = vpack.c.b16 %v465_v50, %v465_v50  ;;  %v375_v50 = vld [vmem:[%s2170_s24 + $0x4] sm:$0x1] }
  0x23   : > { %v502_v60 = vshll.u32 %v489_v53, 16  ;;  %v495_v62 = vshll.u32 %v488_v54, 16  ;;  %v487_v63 = vunpack.c.l.b16 %v353_v56  ;;  %v507_v1 = vshrl.u32 %v2141_v52, 16 }
  0x24   : > { %v511_v4 = vrot.slane %v509_v58, 1  ;;  %v500_v5 = vshrl.u32 %v489_v53, 16  ;;  %v493_v10 = vshrl.u32 %v488_v54, 16  ;;  %v2165_v18 = vunpack.c.l.b16 %v360_v8 }
  0x25   : > { %472 = vrot.lane.b32.xlu2 %v468_v31, %s1995_s7  ;;  %444 = vrot.lane.b32.xlu1 %v2119_v29, %s1996_s8  ;;  %v504_v7 = vrot.slane %v502_v60, 1  ;;  %v497_v12 = vrot.slane %v495_v62, 1  ;;  %v491_v16 = vpack.c.b16 %v487_v63, %v467_v55  ;;  %v598_v21 = vunpack.c.l.b16 %v361_v9  ;;  %v364_v31 = vld [vmem:[%s2158_s23 + $0x20] sm:$0xf] }
  0x26   : > { %440 = vrot.lane.b32.xlu0 %v418_v32, %s1996_s8  ;;  %v512_v17 = vor.u32 %v511_v4, %v507_v1  ;;  %v365_v32 = vld [vmem:[%s2158_s23 + $0x24] sm:$0x1]  ;;  %v529_v34 = vrot.slane %v489_v53, 1  ;;  %v528_v36 = vrot.slane %v488_v54, 1  ;;  %v893_v37 = vunpack.c.l.b16 %v374_v30 }
  0x27   : > { %v505_v22 = vor.u32 %v504_v7, %v500_v5  ;;  %v498_v23 = vor.u32 %v497_v12, %v493_v10  ;;  %v516_v24 = vshll.u32 %v491_v16, 16  ;;  %v2174_v25 = vpack.c.b16 %v598_v21, %v2165_v18  ;;  %v380_v5 = vld [vmem:[%s2170_s24 + $0x18] sm:$0xf]  ;;  %v379_v10 = vld [vmem:[%s2170_s24 + $0x14] sm:$0x1] }
  0x28   : > { %v514_v26 = vshrl.u32 %v491_v16, 16  ;;  %v2183_v39 = vunpack.c.l.b16 %v364_v31  ;;  %v599_v40 = vunpack.c.l.b16 %v365_v32  ;;  %v894_v41 = vunpack.c.l.b16 %v378_v33 }
  0x29   : > { %v518_v28 = vrot.slane %v516_v24, 1  ;;  %v615_v35 = vshll.u32 %v2174_v25, 16  ;;  %v613_v42 = vshrl.u32 %v2174_v25, 16  ;;  %v897_v48 = vpack.c.b16 %v893_v37, %v893_v37 }
  0x2a   : > { %v898_v46 = vpack.c.b16 %v894_v41, %v894_v41  ;;  %v2190_v49 = vpack.c.b16 %v599_v40, %v2183_v39  ;;  %v531_v54 = vrot.slane %v491_v16, 1  ;;  %v530_v56 = vrot.slane %v2141_v52, 1  ;;  %v376_v52 = vld [vmem:[%s2170_s24 + $0x8] sm:$0xf] }
  0x2b   : > { %v519_v38 = vor.u32 %v518_v28, %v514_v26  ;;  %v617_v43 = vrot.slane %v615_v35, 1  ;;  %v902_v55 = vshrl.u32 %v897_v48, 16  ;;  %v941_v58 = vunpack.c.l.b16 %v375_v50  ;;  %v377_v28 = vld [vmem:[%s2170_s24 + $0xc] sm:$0x1] }
  0x2c   : > { %v909_v53 = vshrl.u32 %v898_v46, 16  ;;  %v912_v60 = vshll.u32 %v898_v46, 16  ;;  %v905_v62 = vshll.u32 %v897_v48, 16  ;;  %v620_v63 = vshrl.u32 %v2190_v49, 16 }
  0x2d   : > { %454 = vrot.lane.b32.xlu2 %v449_v44, %s1994_s5  ;;  %446 = vrot.lane.b32.xlu1 %v2136_v45, %s1996_s8  ;;  %v2193_v51 = vor.u32 %v617_v43, %v613_v42  ;;  %v945_v4 = vpack.c.b16 %v941_v58, %v893_v37  ;;  %v997_v12 = vunpack.c.l.b16 %v376_v52  ;;  %v942_v21 = vunpack.c.l.b16 %v379_v10  ;;  %v382_v58 = vld [vmem:[%s2170_s24 + $0x20] sm:$0xf] }
  0x2e   : > { %442 = vrot.lane.b32.xlu0 %v2138_v47, %s1996_s8  ;;  %v1045_v35 = vunpack.c.l.b16 %v377_v28 }
  0x2f   : > { %v960_v8 = vshll.u32 %v945_v4, 16  ;;  %v1001_v26 = vpack.c.b16 %v997_v12, %v997_v12  ;;  %v946_v30 = vpack.c.b16 %v942_v21, %v894_v41 }
  0x30   : > { %v1049_v43 = vpack.c.b16 %v1045_v35, %v997_v12 }
  0x31   : > { %v1006_v33 = vshrl.u32 %v1001_v26, 16  ;;  %v1009_v40 = vshll.u32 %v1001_v26, 16  ;;  %v965_v42 = vshrl.u32 %v946_v30, 16 }
  0x32   : > { %v1064_v48 = vshll.u32 %v1049_v43, 16 }
  0x35   : > { %478 = vrot.lane.b32.xlu2 %v471_v57, %s1995_s7  ;;  %476 = vrot.lane.b32.xlu1 %v470_v59, %s1995_s7  ;;  %v622_v57 = vshll.u32 %v2190_v49, 16  ;;  %v911_v59 = vrot.slane %v909_v53, 7  ;;  %v381_v53 = vld [vmem:[%s2170_s24 + $0x1c] sm:$0x1] }
  0x36   : > { %474 = vrot.lane.b32.xlu0 %v469_v61, %s1995_s7  ;;  %v904_v61 = vrot.slane %v902_v55, 7  ;;  %v1046_v55 = vunpack.c.l.b16 %v381_v53 }
  0x37   : > { %v624_v1 = vrot.slane %v622_v57, 1  ;;  %v2204_v7 = vor.u32 %v912_v60, %v911_v59  ;;  %v1066_v57 = vrot.slane %v1064_v48, 1  ;;  %v383_v59 = vld [vmem:[%s2170_s24 + $0x24] sm:$0x1] }
  0x38   : > { %v907_v9 = vor.u32 %v905_v62, %v904_v61  ;;  %v2224_v62 = vunpack.c.l.b16 %v382_v58 }
  0x39   : > { %v2207_v16 = vor.u32 %v624_v1, %v620_v63  ;;  %v943_v63 = vunpack.c.l.b16 %v383_v59 }
  0x3d   : > { %524 = vrot.lane.b32.xlu2 %v512_v17, %s1997_s29  ;;  %522 = vrot.lane.b32.xlu1 %v505_v22, %s1997_s29  ;;  %v998_v17 = vunpack.c.l.b16 %v380_v5  ;;  %v958_v22 = vshrl.u32 %v945_v4, 16 }
  0x3e   : > { %520 = vrot.lane.b32.xlu0 %v498_v23, %s1997_s29  ;;  %v962_v23 = vrot.slane %v960_v8, 1  ;;  %v356_v8 = vld [vmem:[%s2158_s23] sm:$0xf] }
  0x3f   : > { %v1002_v24 = vpack.c.b16 %v998_v17, %v998_v17  ;;  %v1050_v60 = vpack.c.b16 %v1046_v55, %v998_v17  ;;  %v577_v12 = vunpack.c.l.b16 %v356_v8 }
  0x40   : > { %v963_v31 = vor.u32 %v962_v23, %v958_v22 }
  0x41   : > { %v1013_v32 = vshrl.u32 %v1002_v24, 16  ;;  %v1016_v37 = vshll.u32 %v1002_v24, 16  ;;  %v1071_v1 = vshll.u32 %v1050_v60, 16  ;;  %v1069_v52 = vshrl.u32 %v1050_v60, 16 }
  0x42   : > { %v581_v28 = vpack.c.b16 %v577_v12, %v577_v12 }
  0x43   : > { %v1073_v5 = vrot.slane %v1071_v1, 1 }
  0x45   : > { %534 = vrot.lane.b32.xlu2 %v529_v34, %s1998_s6  ;;  %532 = vrot.lane.b32.xlu1 %v528_v36, %s1998_s6  ;;  %v967_v34 = vshll.u32 %v946_v30, 16  ;;  %v1015_v36 = vrot.slane %v1013_v32, 7  ;;  %v1074_v21 = vor.u32 %v1073_v5, %v1069_v52 }
  0x46   : > { %526 = vrot.lane.b32.xlu0 %v519_v38, %s1997_s29  ;;  %v1008_v38 = vrot.slane %v1006_v33, 7 }
  0x47   : > { %v969_v41 = vrot.slane %v967_v34, 1  ;;  %v1018_v46 = vor.u32 %v1016_v37, %v1015_v36  ;;  %v363_v34 = vld [vmem:[%s2158_s23 + $0x1c] sm:$0x1]  ;;  %v358_v36 = vld [vmem:[%s2158_s23 + $0x8] sm:$0xf] }
  0x48   : > { %v1011_v50 = vor.u32 %v1009_v40, %v1008_v38  ;;  %v359_v37 = vld [vmem:[%s2158_s23 + $0xc] sm:$0x1]  ;;  %v362_v38 = vld [vmem:[%s2158_s23 + $0x18] sm:$0xf]  ;;  %v678_v40 = vunpack.c.l.b16 %v363_v34  ;;  %v543_v34 = vpack.c.b16 %v2086_v6, %v2086_v6 }
  0x49   : > { %v658_v48 = vunpack.c.l.b16 %v362_v38 }
  0x4d   : > { %881 = vrot.lane.b32.xlu2 %v2193_v51, %s1996_s8  ;;  %538 = vrot.lane.b32.xlu1 %v531_v54, %s1998_s6  ;;  %v970_v54 = vor.u32 %v969_v41, %v965_v42  ;;  %v657_v41 = vunpack.c.l.b16 %v358_v36 }
  0x4e   : > { %536 = vrot.lane.b32.xlu0 %v530_v56, %s1998_s6  ;;  %v1062_v56 = vshrl.u32 %v1049_v43, 16 }
  0x4f   : > { %v661_v55 = vpack.c.b16 %v657_v41, %v657_v41 }
  0x50   : > { %v1067_v61 = vor.u32 %v1066_v57, %v1062_v56  ;;  %v642_v57 = vrot.slane %v2174_v25, 1 }
  0x55   : > { %931 = vrot.lane.b32.xlu2 %v2204_v7, %s1994_s5  ;;  %929 = vrot.lane.b32.xlu1 %v907_v9, %s1994_s5  ;;  %v357_v9 = vld [vmem:[%s2158_s23 + $0x4] sm:$0x1] }
  0x56   : > { %883 = vrot.lane.b32.xlu0 %v2207_v16, %s1996_s8  ;;  %v597_v17 = vunpack.c.l.b16 %v357_v9  ;;  %v662_v9 = vpack.c.b16 %v658_v48, %v658_v48 }
  0x58   : > { %v601_v24 = vpack.c.b16 %v597_v17, %v577_v12  ;;  %v369_v12 = vld [vmem:[%s2158_s23 + $0x34] sm:$0x1]  ;;  %v338_v17 = vld [vmem:[%s2072_s30] sm:$0xf] }
  0x5a   : > { %v608_v32 = vshll.u32 %v601_v24, 16  ;;  %v641_v58 = vrot.slane %v601_v24, 1 }
  0x5c   : > { %v610_v33 = vrot.slane %v608_v32, 1 }
  0x5d   : > { %985 = vrot.lane.b32.xlu2 %v963_v31, %s1997_s29  ;;  %951 = vrot.lane.b32.xlu1 %v946_v30, %s1995_s7 }
  0x5e   : > { %949 = vrot.lane.b32.xlu0 %v945_v4, %s1995_s7  ;;  %v2229_v4 = vpack.c.b16 %v943_v63, %v2224_v62 }
  0x60   : > { %v974_v10 = vshll.u32 %v2229_v4, 16  ;;  %v972_v22 = vshrl.u32 %v2229_v4, 16 }
  0x62   : > { %v976_v23 = vrot.slane %v974_v10, 1  ;;  %v368_v10 = vld [vmem:[%s2158_s23 + $0x30] sm:$0xf] }
  0x63   : > { %v2277_v32 = vunpack.c.l.b16 %v368_v10 }
  0x64   : > { %v2242_v31 = vor.u32 %v976_v23, %v972_v22 }
  0x65   : > { %1035 = vrot.lane.b32.xlu2 %v1018_v46, %s1998_s6  ;;  %1033 = vrot.lane.b32.xlu1 %v1011_v50, %s1998_s6  ;;  %v2254_v46 = vpack.c.b16 %v2165_v18, %v2165_v18  ;;  %v2256_v50 = vpack.c.b16 %v678_v40, %v658_v48  ;;  %v386_v48 = vld [vmem:[%s2170_s24 + $0x30] sm:$0xf] }
  0x66   : > { %987 = vrot.lane.b32.xlu0 %v970_v54, %s1997_s29 }
  0x67   : > { %v695_v56 = vshll.u32 %v2256_v50, 16  ;;  %v693_v59 = vshrl.u32 %v2256_v50, 16 }
  0x6d   : > { %1089 = vrot.lane.b32.xlu2 %v1067_v61, %s1999_s9  ;;  %1055 = vrot.lane.b32.xlu1 %v1050_v60, %s2000_s10 }
  0x6e   : > { %1053 = vrot.lane.b32.xlu0 %v1049_v43, %s2000_s10  ;;  %v677_v43 = vunpack.c.l.b16 %v359_v37 }
  0x70   : > { %v681_v53 = vpack.c.b16 %v677_v43, %v657_v41  ;;  %v373_v43 = vld [vmem:[%s2158_s23 + $0x44] sm:$0x1] }
  0x72   : > { %v688_v18 = vshll.u32 %v681_v53, 16  ;;  %v686_v60 = vshrl.u32 %v681_v53, 16 }
  0x74   : > { %v690_v61 = vrot.slane %v688_v18, 1 }
  0x75   : > { %1112 = vrot.lane.b32.xlu2 %v2229_v4, %s1996_s8  ;;  %1110 = vrot.lane.b32.xlu1 %v946_v30, %s1996_s8  ;;  %v606_v30 = vshrl.u32 %v601_v24, 16 }
  0x76   : > { %1091 = vrot.lane.b32.xlu0 %v1074_v21, %s1999_s9  ;;  %v691_v8 = vor.u32 %v690_v61, %v686_v60 }
  0x77   : > { %v2240_v26 = vpop.permute.xlu2 %452  ;;  %v611_v42 = vor.u32 %v610_v33, %v606_v30  ;;  %v600_v30 = vunpack.c.l.b16 %v369_v12 }
  0x79   : > { %v2290_v40 = vpack.c.b16 %v600_v30, %v2277_v32 }
  0x7d   : > { %585 = vrot.lane.b32.xlu2 %v581_v28, %s1996_s8  ;;  %1127 = vrot.lane.b32.xlu1 %v2242_v31, %s1994_s5  ;;  %v721_v28 = vrot.slane %v681_v53, 1 }
  0x7e   : > { %1125 = vrot.lane.b32.xlu0 %v970_v54, %s1994_s5 }
  0x7f   : > { %v473_v35 = vpop.permute.xlu2 %472 }
  0x85   : > { %635 = vrot.lane.b32.xlu2 %v2193_v51, %s1994_s5  ;;  %633 = vrot.lane.b32.xlu1 %v611_v42, %s1994_s5  ;;  %v697_v51 = vrot.slane %v695_v56, 1  ;;  %v372_v42 = vld [vmem:[%s2158_s23 + $0x40] sm:$0xf]  ;;  %v722_v56 = vrot.slane %v2256_v50, 1  ;;  %v899_v50 = vpack.c.b16 %v2224_v62, %v2224_v62 }
  0x86   : > { %587 = vrot.lane.b32.xlu0 %v2254_v46, %s1996_s8 }
  0x87   : > { %v455_v54 = vpop.permute.xlu2 %454  ;;  %v698_v5 = vor.u32 %v697_v51, %v693_v59  ;;  %v872_v59 = vunpack.c.l.b16 %v373_v43  ;;  %v896_v51 = vunpack.c.l.b16 %v386_v48  ;;  %v1899_v48 = vld [vmem:[%s2693_s3 + $0xb8] sm:$0xff] }
  0x88   : > { %1555 = vmatpush.bf16.msra.mxu2 %v1899_v48 }
  0x8d   : > { %665 = vrot.lane.b32.xlu2 %v661_v55, %s1997_s29  ;;  %647 = vrot.lane.b32.xlu1 %v642_v57, %s1995_s7  ;;  %v2304_v57 = vunpack.c.l.b16 %v372_v42 }
  0x8e   : > { %645 = vrot.lane.b32.xlu0 %v641_v58, %s1995_s7 }
  0x8f   : > { %v479_v63 = vpop.permute.xlu2 %478  ;;  %v459_v1 = vpop.permute.xlu1 %458 }
  0x90   : > { %v457_v52 = vpop.permute.xlu0 %456 }
  0x95   : > { %715 = vrot.lane.b32.xlu2 %v698_v5, %s1998_s6  ;;  %713 = vrot.lane.b32.xlu1 %v691_v8, %s1998_s6  ;;  %v2332_v8 = vpack.c.b16 %v2183_v39, %v2183_v39 }
  0x96   : > { %667 = vrot.lane.b32.xlu0 %v662_v9, %s1997_s29  ;;  %v916_v9 = vshrl.u32 %v899_v50, 16 }
  0x97   : > { %v525_v21 = vpop.permute.xlu2 %524  ;;  %v445_v22 = vpop.permute.xlu1 %444 }
  0x98   : > { %v753_v23 = vsel %vm744_vm0, %v2079_v2, %v445_v22  ;;  %v441_v24 = vpop.permute.xlu0 %440  ;;  %v542_v2 = vpack.c.b16 %v2098_v14, %v2098_v14  ;;  %v918_v22 = vrot.slane %v916_v9, 7 }
  0x99   : > { %v747_v33 = vsel %vm744_vm0, %v338_v17, %v441_v24  ;;  %v763_v36 = vsel %vm757_vm1, %v753_v23, %v457_v52 }
  0x9a   : > { %v759_v37 = vsel %vm757_vm1, %v747_v33, %v2240_v26  ;;  %v388_v33 = vld [vmem:[%s2170_s24 + $0x38] sm:$0xf] }
  0x9b   : > { %v768_v38 = vsel %vm766_vm2, %v759_v37, %v473_v35  ;;  %v629_v35 = vshll.u32 %v2290_v40, 16 }
  0x9d   : > { %725 = vrot.lane.b32.xlu2 %v721_v28, %s2000_s10  ;;  %548 = vrot.lane.b32.xlu1 %v543_v34, %s2000_s10  ;;  %v631_v60 = vrot.slane %v629_v35, 1  ;;  %v384_v28 = vld [vmem:[%s2170_s24 + $0x28] sm:$0xf] }
  0x9e   : > { %546 = vrot.lane.b32.xlu0 %v542_v2, %s2000_s10  ;;  %v999_v43 = vunpack.c.l.b16 %v384_v28 }
  0x9f   : > { %v535_v6 = vpop.permute.xlu2 %534  ;;  %v447_v41 = vpop.permute.xlu1 %446 }
  0xa0   : > { %v756_v26 = vsel %vm744_vm0, %v2075_v0, %v447_v41  ;;  %v443_v14 = vpop.permute.xlu0 %442  ;;  %v627_v0 = vshrl.u32 %v2290_v40, 16  ;;  %v387_v41 = vld [vmem:[%s2170_s24 + $0x34] sm:$0x1] }
  0xa1   : > { %v750_v53 = vsel %vm744_vm0, %v2091_v11, %v443_v14  ;;  %v765_v55 = vsel %vm757_vm1, %v756_v26, %v459_v1  ;;  %v900_v11 = vpack.c.b16 %v896_v51, %v896_v51  ;;  %v1000_v14 = vunpack.c.l.b16 %v388_v33 }
  0xa2   : > { %v2307_v18 = vsel %vm766_vm2, %v765_v55, %v479_v63  ;;  %v761_v58 = vsel %vm757_vm1, %v750_v53, %v455_v54  ;;  %v2319_v54 = vpack.c.b16 %v872_v59, %v2304_v57  ;;  %v2324_v52 = vor.u32 %v631_v60, %v627_v0 }
  0xa3   : > { %v923_v5 = vshrl.u32 %v900_v11, 16  ;;  %v926_v17 = vshll.u32 %v900_v11, 16  ;;  %v944_v35 = vunpack.c.l.b16 %v387_v41 }
  0xa4   : > { %v877_v10 = vshll.u32 %v2319_v54, 16  ;;  %v875_v39 = vshrl.u32 %v2319_v54, 16 }
  0xa5   : > { %566 = vrot.lane.b32.xlu2 %v2119_v29, %s1999_s9  ;;  %564 = vrot.lane.b32.xlu1 %v2138_v47, %s1999_s9  ;;  %v925_v12 = vrot.slane %v923_v5, 7  ;;  %v2373_v60 = vpack.c.b16 %v944_v35, %v896_v51  ;;  %v391_v35 = vld [vmem:[%s2170_s24 + $0x44] sm:$0x1] }
  0xa6   : > { %727 = vrot.lane.b32.xlu0 %v722_v56, %s2000_s10  ;;  %v879_v23 = vrot.slane %v877_v10, 1  ;;  %v385_v56 = vld [vmem:[%s2170_s24 + $0x2c] sm:$0x1] }
  0xa7   : > { %v2321_v61 = vpop.permute.xlu2 %881  ;;  %v477_v63 = vpop.permute.xlu1 %476  ;;  %v2347_v37 = vor.u32 %v926_v17, %v925_v12  ;;  %v1047_v5 = vunpack.c.l.b16 %v385_v56  ;;  %v979_v10 = vshrl.u32 %v2373_v60, 16 }
  0xa8   : > { %v772_v29 = vsel %vm766_vm2, %v763_v36, %v477_v63  ;;  %v475_v1 = vpop.permute.xlu0 %474  ;;  %v880_v26 = vor.u32 %v879_v23, %v875_v39 }
  0xa9   : > { %v770_v47 = vsel %vm766_vm2, %v761_v58, %v475_v1  ;;  %v2328_v62 = vsel %vm775_vm3, %v772_v29, %v525_v21  ;;  %v919_v21 = vshll.u32 %v899_v50, 16  ;;  %v1898_v58 = vld [vmem:[%s2693_s3 + $0xb0] sm:$0xff]  ;;  %v1897_v29 = vld [vmem:[%s2693_s3 + $0xa8] sm:$0xff]  ;;  %v981_v1 = vshll.u32 %v2373_v60, 16 }
  0xaa   : > { %1556 = vmatpush.bf16.msra.mxu2 %v1898_v58  ;;  %v1051_v17 = vpack.c.b16 %v1047_v5, %v999_v43 }
  0xab   : > { %v983_v12 = vrot.slane %v981_v1, 1 }
  0xad   : > { %885 = vrot.lane.b32.xlu2 %v2324_v52, %s1996_s8  ;;  %738 = vrot.lane.b32.xlu1 %v2332_v8, %s1999_s9 }
  0xae   : > { %736 = vrot.lane.b32.xlu0 %v2254_v46, %s1999_s9  ;;  %v2353_v46 = vor.u32 %v919_v21, %v918_v22  ;;  %1557 = vmatpush.bf16.msra.mxu2 %v1897_v29 }
  0xaf   : > { %v2342_v24 = vpop.permute.xlu2 %931  ;;  %v523_v30 = vpop.permute.xlu1 %522 }
  0xb0   : > { %v779_v34 = vsel %vm775_vm3, %v770_v47, %v523_v30  ;;  %v521_v36 = vpop.permute.xlu0 %520  ;;  %v1078_v30 = vshll.u32 %v1051_v17, 16 }
  0xb1   : > { %v777_v2 = vsel %vm775_vm3, %v768_v38, %v521_v36  ;;  %v2351_v42 = vsel %vm784_vm4, %v779_v34, %v535_v6  ;;  %v1004_v38 = vpack.c.b16 %v1000_v14, %v1000_v14  ;;  %v1003_v6 = vpack.c.b16 %v999_v43, %v999_v43  ;;  %v389_v34 = vld [vmem:[%s2170_s24 + $0x3c] sm:$0x1] }
  0xb2   : > { %v984_v36 = vor.u32 %v983_v12, %v979_v10  ;;  %v1048_v41 = vunpack.c.l.b16 %v389_v34  ;;  %v1076_v43 = vshrl.u32 %v1051_v17, 16  ;;  %v1080_v48 = vrot.slane %v1078_v30, 1  ;;  %v1900_v30 = vld [vmem:[%s2693_s3 + $0xc0] sm:$0xff] }
  0xb3   : > { %v1027_v11 = vshrl.u32 %v1004_v38, 16  ;;  %v1020_v63 = vshrl.u32 %v1003_v6, 16  ;;  %v1030_v9 = vshll.u32 %v1004_v38, 16 }
  0xb4   : > { %v1052_v56 = vpack.c.b16 %v1048_v41, %v1000_v14  ;;  %v1081_v58 = vor.u32 %v1080_v48, %v1076_v43  ;;  %v371_v43 = vld [vmem:[%s2158_s23 + $0x3c] sm:$0x1] }
  0xb5   : > { %935 = vrot.lane.b32.xlu2 %v2347_v37, %s1994_s5  ;;  %933 = vrot.lane.b32.xlu1 %v2353_v46, %s1994_s5  ;;  %v1029_v47 = vrot.slane %v1027_v11, 7  ;;  %v1022_v51 = vrot.slane %v1020_v63, 7  ;;  %v1108_v11 = vunpack.c.l.b16 %v391_v35  ;;  %v1893_v63 = vld [vmem:[%s2693_s3 + $0x88] sm:$0xff]  ;;  %v1883_v48 = vld [vmem:[%s2693_s3 + $0x38] sm:$0xff] }
  0xb6   : > { %887 = vrot.lane.b32.xlu0 %v880_v26, %s1996_s8  ;;  %v390_v26 = vld [vmem:[%s2170_s24 + $0x40] sm:$0xf]  ;;  %v1083_v14 = vshrl.u32 %v1052_v56, 16  ;;  %v370_v35 = vld [vmem:[%s2158_s23 + $0x38] sm:$0xf]  ;;  %1517 = vmatpush.bf16.msra.mxu0 %v1883_v48 }
  0xb7   : > { %v2364_v53 = vpop.permute.xlu2 %985  ;;  %v533_v55 = vpop.permute.xlu1 %532  ;;  %v1032_v28 = vor.u32 %v1030_v9, %v1029_v47  ;;  %v1892_v9 = vld [vmem:[%s2693_s3 + $0x80] sm:$0xff] }
  0xb8   : > { %v2371_v59 = vsel %vm784_vm4, %v777_v2, %v533_v55  ;;  %v527_v0 = vpop.permute.xlu0 %526  ;;  %v1895_v2 = vld [vmem:[%s2693_s3 + $0x98] sm:$0xff] }
  0xb9   : > { %v783_v50 = vsel %vm775_vm3, %v2307_v18, %v527_v0  ;;  %v1023_v18 = vshll.u32 %v1003_v6, 16  ;;  %v1894_v6 = vld [vmem:[%s2693_s3 + $0x90] sm:$0xff]  ;;  %v2414_v0 = vunpack.c.l.b16 %v390_v26  ;;  %v367_v26 = vld [vmem:[%s2158_s23 + $0x2c] sm:$0x1] }
  0xbb   : > { %v1025_v33 = vor.u32 %v1023_v18, %v1022_v51  ;;  %v1109_v29 = vpack.c.b16 %v1108_v11, %v2414_v0  ;;  %v1902_v51 = vld [vmem:[%s2693_s3 + $0xd0] sm:$0xff] }
  0xbc   : > { %1579 = vmatpush.bf16.msra.mxu3 %v1902_v51 }
  0xbd   : > { %989 = vrot.lane.b32.xlu2 %v2242_v31, %s1997_s29  ;;  %955 = vrot.lane.b32.xlu1 %v2373_v60, %s1995_s7  ;;  %v1896_v31 = vld [vmem:[%s2693_s3 + $0xa0] sm:$0xff]  ;;  %v1121_v10 = vshll.u32 %v1109_v29, 16 }
  0xbe   : > { %953 = vrot.lane.b32.xlu0 %v2229_v4, %s1995_s7  ;;  %1558 = vmatpush.bf16.msra.mxu2 %v1896_v31 }
  0xbf   : > { %v2388_v22 = vpop.permute.xlu2 %1035  ;;  %v539_v21 = vpop.permute.xlu1 %538  ;;  %v1123_v31 = vrot.slane %v1121_v10, 1 }
  0xc0   : > { %v2394_v39 = vsel %vm784_vm4, %v783_v50, %v539_v21  ;;  %v537_v23 = vpop.permute.xlu0 %536  ;;  %v1085_v50 = vshll.u32 %v1052_v56, 16  ;;  %v1119_v21 = vshrl.u32 %v1109_v29, 16 }
  0xc1   : > { %v2398_v4 = vsel %vm784_vm4, %v2328_v62, %v537_v23 }
  0xc2   : > { %1559 = vmatpush.bf16.msra.mxu2 %v1895_v2  ;;  %v1087_v1 = vrot.slane %v1085_v50, 1  ;;  %v1124_v34 = vor.u32 %v1123_v31, %v1119_v21 }
  0xc4   : > { %v1088_v12 = vor.u32 %v1087_v1, %v1083_v14  ;;  %v2478_v1 = vpack.c.b16 %v2277_v32, %v2277_v32  ;;  %v1881_v32 = vld [vmem:[%s2693_s3 + $0x28] sm:$0xff] }
  0xc5   : > { %1039 = vrot.lane.b32.xlu2 %v1032_v28, %s1998_s6  ;;  %1037 = vrot.lane.b32.xlu1 %v1025_v33, %s1998_s6  ;;  %v1134_v33 = vsel %vm744_vm0, %v2174_v25, %v2321_v61  ;;  %v366_v61 = vld [vmem:[%s2158_s23 + $0x28] sm:$0xf] }
  0xc6   : > { %991 = vrot.lane.b32.xlu0 %v984_v36, %s1997_s29  ;;  %1560 = vmatpush.bf16.msra.mxu2 %v1894_v6  ;;  %v659_v50 = vunpack.c.l.b16 %v366_v61 }
  0xc7   : > { %v2407_v62 = vpop.permute.xlu2 %1089  ;;  %v930_v38 = vpop.permute.xlu1 %929 }
  0xc8   : > { %v884_v55 = vpop.permute.xlu0 %883  ;;  %v1142_v2 = vsel %vm757_vm1, %v1134_v33, %v930_v38  ;;  %v644_v33 = vrot.slane %v2290_v40, 1 }
  0xc9   : > { %v1136_v38 = vsel %vm744_vm0, %v2190_v49, %v884_v55  ;;  %v1882_v55 = vld [vmem:[%s2693_s3 + $0x30] sm:$0xff] }
  0xca   : > { %1561 = vmatpush.bf16.msra.mxu2 %v1893_v63  ;;  %v679_v63 = vunpack.c.l.b16 %v367_v26  ;;  %1518 = vmatpush.bf16.msra.mxu0 %v1882_v55 }
  0xcd   : > { %1093 = vrot.lane.b32.xlu2 %v1081_v58, %s1999_s9  ;;  %1059 = vrot.lane.b32.xlu1 %v1052_v56, %s2000_s10  ;;  %v680_v56 = vunpack.c.l.b16 %v371_v43  ;;  %v643_v43 = vrot.slane %v2190_v49, 1 }
  0xce   : > { %1057 = vrot.lane.b32.xlu0 %v1051_v17, %s2000_s10  ;;  %1562 = vmatpush.bf16.msra.mxu2 %v1892_v9  ;;  %v1901_v17 = vld [vmem:[%s2693_s3 + $0xc8] sm:$0xff] }
  0xcf   : > { %v2423_v5 = vpop.permute.xlu2 %1112  ;;  %v952_v47 = vpop.permute.xlu1 %951  ;;  %1580 = vmatpush.bf16.msra.mxu3 %v1901_v17  ;;  %1519 = vmatpush.bf16.msra.mxu0 %v1881_v32 }
  0xd0   : > { %v950_v18 = vpop.permute.xlu0 %949 }
  0xd1   : > { %v1150_v41 = vsel %vm766_vm2, %v1142_v2, %v950_v18 }
  0xd3   : > { %1581 = vmatpush.bf16.msra.mxu3 %v1900_v30 }
  0xd5   : > { %1116 = vrot.lane.b32.xlu2 %v1109_v29, %s1996_s8  ;;  %1114 = vrot.lane.b32.xlu1 %v2373_v60, %s1996_s8  ;;  %v2467_v29 = vunpack.c.l.b16 %v370_v35 }
  0xd6   : > { %1095 = vrot.lane.b32.xlu0 %v1088_v12, %s1999_s9 }
  0xd7   : > { %v2438_v23 = vpop.permute.xlu2 %585  ;;  %v1034_v28 = vpop.permute.xlu1 %1033  ;;  %v2482_v51 = vpack.c.b16 %v680_v56, %v2467_v29 }
  0xd8   : > { %v988_v60 = vpop.permute.xlu0 %987 }
  0xd9   : > { %v707_v48 = vshrl.u32 %v2482_v51, 16 }
  0xdd   : > { %589 = vrot.lane.b32.xlu2 %v2332_v8, %s1996_s8  ;;  %1131 = vrot.lane.b32.xlu1 %v1124_v34, %s1994_s5  ;;  %v1158_v8 = vsel %vm775_vm3, %v1150_v41, %v2364_v53  ;;  %v1144_v53 = vsel %vm757_vm1, %v1136_v38, %v2342_v24  ;;  %v2489_v24 = vpack.c.b16 %v679_v63, %v659_v50  ;;  %v1890_v34 = vld [vmem:[%s2693_s3 + $0x70] sm:$0xff] }
  0xde   : > { %1129 = vrot.lane.b32.xlu0 %v984_v36, %s1994_s5  ;;  %v1166_v58 = vsel %vm784_vm4, %v1158_v8, %v1034_v28  ;;  %v1152_v9 = vsel %vm766_vm2, %v1144_v53, %v952_v47  ;;  %v663_v28 = vpack.c.b16 %v659_v50, %v659_v50  ;;  %v355_v8 = vld [vmem:[%s2072_s30 + $0x44] sm:$0x1] }
  0xdf   : > { %v2456_v25 = vpop.permute.xlu2 %635  ;;  %v1056_v6 = vpop.permute.xlu1 %1055  ;;  %v1160_v18 = vsel %vm775_vm3, %v1152_v9, %v988_v60  ;;  %v702_v60 = vshll.u32 %v2489_v24, 16  ;;  %v700_v49 = vshrl.u32 %v2489_v24, 16 }
  0xe0   : > { %v1054_v11 = vpop.permute.xlu0 %1053 }
  0xe1   : > { %v1174_v36 = vsel %vm793_vm5, %v1166_v58, %v1054_v11  ;;  %v704_v56 = vrot.slane %v702_v60, 1  ;;  %v1879_v58 = vld [vmem:[%s2693_s3 + $0x18] sm:$0xff]  ;;  %v1889_v11 = vld [vmem:[%s2693_s3 + $0x68] sm:$0xff] }
  0xe2   : > { %v1182_v14 = vsel %vm802_vm6, %v1174_v36, %v2407_v62  ;;  %v1891_v62 = vld [vmem:[%s2693_s3 + $0x78] sm:$0xff] }
  0xe3   : > { %v1211_v10 = vshll.u32 %v1182_v14, 16  ;;  %1536 = vmatpush.bf16.msra.mxu1 %v1891_v62  ;;  %v1209_v2 = vshrl.u32 %v1182_v14, 16  ;;  %v1887_v60 = vld [vmem:[%s2693_s3 + $0x58] sm:$0xff] }
  0xe5   : > { %639 = vrot.lane.b32.xlu2 %v2324_v52, %s1994_s5  ;;  %637 = vrot.lane.b32.xlu1 %v2207_v16, %s1994_s5  ;;  %v1168_v52 = vsel %vm784_vm4, %v1160_v18, %v2388_v22  ;;  %v709_v16 = vshll.u32 %v2482_v51, 16  ;;  %v1213_v21 = vrot.slane %v1211_v10, 1  ;;  %v1880_v22 = vld [vmem:[%s2693_s3 + $0x20] sm:$0xff] }
  0xe6   : > { %591 = vrot.lane.b32.xlu0 %v2478_v1, %s1996_s8  ;;  %v1176_v17 = vsel %vm793_vm5, %v1168_v52, %v1056_v6  ;;  %1520 = vmatpush.bf16.msra.mxu0 %v1880_v22  ;;  %v1194_v6 = vsel %vm744_vm0, %v2353_v46, %v2423_v5  ;;  %v354_v46 = vld [vmem:[%s2072_s30 + $0x40] sm:$0xf]  ;;  %v555_v5 = vunpack.c.l.b16 %v355_v8  ;;  %v705_v52 = vor.u32 %v704_v56, %v700_v49  ;;  %v1886_v56 = vld [vmem:[%s2693_s3 + $0x50] sm:$0xff] }
  0xe7   : > { %v2499_v47 = vpop.permute.xlu2 %665  ;;  %v1111_v12 = vpop.permute.xlu1 %1110  ;;  %v711_v61 = vrot.slane %v709_v16, 1  ;;  %1537 = vmatpush.bf16.msra.mxu1 %v1890_v34  ;;  %v1214_v38 = vor.u32 %v1213_v21, %v1209_v2  ;;  %v1878_v16 = vld [vmem:[%s2693_s3 + $0x10] sm:$0xff]  ;;  %v1876_v49 = vld [vmem:[%s2693_s3] sm:$0xff] }
  0xe8   : > { %v1092_v31 = vpop.permute.xlu0 %1091  ;;  %v1191_v53 = vsel %vm744_vm0, %v2204_v7, %v1111_v12  ;;  %v664_v7 = vpack.c.b16 %v2467_v29, %v2467_v29  ;;  %v541_v12 = vunpack.c.l.b16 %v354_v46 }
  0xe9   : > { %v1184_v30 = vsel %vm802_vm6, %v1176_v17, %v1092_v31  ;;  %v712_v55 = vor.u32 %v711_v61, %v707_v48  ;;  %v1267_v18 = vunpack.c.l.b16 %v1214_v38  ;;  %v1888_v17 = vld [vmem:[%s2693_s3 + $0x60] sm:$0xff]  ;;  %v723_v38 = vrot.slane %v2489_v24, 1 }
  0xea   : > { %v1223_v41 = vshll.u32 %v1184_v30, 16  ;;  %v1221_v26 = vshrl.u32 %v1184_v30, 16  ;;  %1521 = vmatpush.bf16.msra.mxu0 %v1879_v58  ;;  %v2551_v2 = vpack.c.b16 %v555_v5, %v541_v12 }
  0xeb   : > { %1538 = vmatpush.bf16.msra.mxu1 %v1889_v11  ;;  %v544_v11 = vpack.c.b16 %v2082_v3, %v2082_v3 }
  0xec   : > { %v1225_v35 = vrot.slane %v1223_v41, 1  ;;  %v560_v8 = vshll.u32 %v2551_v2, 16  ;;  %v558_v24 = vshrl.u32 %v2551_v2, 16 }
  0xed   : > { %669 = vrot.lane.b32.xlu2 %v663_v28, %s1997_s29  ;;  %651 = vrot.lane.b32.xlu1 %v644_v33, %s1995_s7  ;;  %v1877_v33 = vld [vmem:[%s2693_s3 + $0x8] sm:$0xff] }
  0xee   : > { %649 = vrot.lane.b32.xlu0 %v643_v43, %s1995_s7  ;;  %v1226_v36 = vor.u32 %v1225_v35, %v1221_v26  ;;  %1522 = vmatpush.bf16.msra.mxu0 %v1878_v16 }
  0xef   : > { %v2530_v50 = vpop.permute.xlu2 %715  ;;  %v1128_v63 = vpop.permute.xlu1 %1127  ;;  %1539 = vmatpush.bf16.msra.mxu1 %v1888_v17 }
  0xf0   : > { %v1204_v14 = vsel %vm757_vm1, %v1194_v6, %v1128_v63  ;;  %v1126_v9 = vpop.permute.xlu0 %1125  ;;  %v1271_v10 = vunpack.c.l.b16 %v1226_v36  ;;  %v545_v6 = vpack.c.b16 %v541_v12, %v541_v12  ;;  %v562_v36 = vrot.slane %v560_v8, 1  ;;  %v1885_v63 = vld [vmem:[%s2693_s3 + $0x48] sm:$0xff] }
  0xf1   : > { %v1229_v32 = vshll.u32 %v1204_v14, 16  ;;  %v1202_v62 = vsel %vm757_vm1, %v1191_v53, %v1126_v9  ;;  %v1227_v28 = vshrl.u32 %v1204_v14, 16  ;;  %v1884_v53 = vld [vmem:[%s2693_s3 + $0x40] sm:$0xff]  ;;  %v724_v14 = vrot.slane %v2482_v51, 1 }
  0xf2   : > { %v1217_v21 = vshll.u32 %v1202_v62, 16  ;;  %v1337_v31 = vpack.c.b16 %v1271_v10, %v1267_v18  ;;  %v1215_v22 = vshrl.u32 %v1202_v62, 16  ;;  %1523 = vmatpush.bf16.msra.mxu0 %v1877_v33 }
  0xf3   : > { %v1231_v30 = vrot.slane %v1229_v32, 1  ;;  %1540 = vmatpush.bf16.msra.mxu1 %v1887_v60  ;;  %v735_v32 = vpack.c.b16 %v2304_v57, %v2304_v57 }
  0xf4   : > { %v1219_v34 = vrot.slane %v1217_v21, 1  ;;  %1563 = vmatmul.bf16.vlgmr.msra.gmra.mxu2 %v1337_v31 }
  0xf5   : > { %719 = vrot.lane.b32.xlu2 %v712_v55, %s1998_s6  ;;  %v1232_v29 = vor.u32 %v1231_v30, %v1227_v28  ;;  %717 = vrot.lane.b32.xlu1 %v705_v52, %s1998_s6  ;;  %v563_v55 = vor.u32 %v562_v36, %v558_v24 }
  0xf6   : > { %v1220_v41 = vor.u32 %v1219_v34, %v1215_v22  ;;  %671 = vrot.lane.b32.xlu0 %v664_v7, %s1997_s29  ;;  %1524 = vmatpush.bf16.msra.mxu0 %v1876_v49 }
  0xf7   : > { %v2556_v43 = vpop.permute.xlu2 %725  ;;  %v1272_v48 = vunpack.c.l.b16 %v1232_v29  ;;  %v634_v61 = vpop.permute.xlu1 %633  ;;  %1541 = vmatpush.bf16.msra.mxu1 %v1886_v56 }
  0xf8   : > { %v1268_v26 = vunpack.c.l.b16 %v1220_v41  ;;  %v588_v35 = vpop.permute.xlu0 %587 }
  0xf9   : > { %v816_v57 = vsel %vm744_vm0, %v450_v20, %v588_v35 }
  0xfa   : > { %v1338_v58 = vpack.c.b16 %v1272_v48, %v1268_v26  ;;  %v826_v27 = vsel %vm757_vm1, %v816_v57, %v2456_v25 }
  0xfb   : > { %1542 = vmatpush.bf16.msra.mxu1 %v1885_v63  ;;  %v1099_v63 = vpack.c.b16 %v2414_v0, %v2414_v0 }
  0xfc   : > { %1871 = vmatmul.msk.bf16.vlgmr.msra.gmra.mxu3 %vm766_vm2, %v1338_v58 }
  0xfd   : > { %729 = vrot.lane.b32.xlu2 %v723_v38, %s2000_s10  ;;  %552 = vrot.lane.b32.xlu1 %v545_v6, %s2000_s10 }
  0xfe   : > { %550 = vrot.lane.b32.xlu0 %v544_v11, %s2000_s10 }
  0xff   : > { %v567_v46 = vpop.permute.xlu2 %566  ;;  %v648_v5 = vpop.permute.xlu1 %647  ;;  %1543 = vmatpush.bf16.msra.mxu1 %v1884_v53 }
 0x100   : > { %v646_v3 = vpop.permute.xlu0 %645  ;;  %v834_v20 = vsel %vm766_vm2, %v826_v27, %v648_v5 }
 0x105   : > { %570 = vrot.lane.b32.xlu2 %v563_v55, %s1999_s9  ;;  %568 = vrot.lane.b32.xlu1 %v2136_v45, %s1999_s9  ;;  %v813_v45 = vsel %vm744_vm0, %v449_v44, %v2438_v23 }
 0x106   : > { %731 = vrot.lane.b32.xlu0 %v724_v14, %s2000_s10  ;;  %v824_v31 = vsel %vm757_vm1, %v813_v45, %v634_v61  ;;  %s1757_s10 = sshll.u32 %s2706_s16, 4 }
 0x107   : > { %v886_v9 = vpop.permute.xlu2 %885  ;;  %v714_v18 = vpop.permute.xlu1 %713  ;;  %v832_v44 = vsel %vm766_vm2, %v824_v31, %v646_v3 }
 0x108   : > { %v668_v10 = vpop.permute.xlu0 %667 }
 0x109   : > { %v842_v28 = vsel %vm775_vm3, %v834_v20, %v668_v10 }
 0x10a   : > { %v850_v60 = vsel %vm784_vm4, %v842_v28, %v2530_v50 }
 0x10d   : > { %742 = vrot.lane.b32.xlu1 %v735_v32, %s1999_s9 }
 0x10e   : > { %740 = vrot.lane.b32.xlu0 %v2478_v1, %s1999_s9  ;;  %s1756_s9 = sshll.u32 %s2712_s15, 2 }
 0x10f   : > { %v549_v51 = vpop.permute.xlu1 %548  ;;  %v936_v62 = vpop.permute.xlu2 %935  ;;  %s334_s23 = sadd.s32 %s1757_s10, %s1756_s9 }
 0x110   : > { %v547_v52 = vpop.permute.xlu0 %546  ;;  %v797_v16 = vsel %vm793_vm5, %v2351_v42, %v549_v51  ;;  %s1758_s7 = sshll.u32 %s334_s23, 2 }
 0x111   : > { %v806_v17 = vsel %vm802_vm6, %v797_v16, %v567_v46  ;;  %v795_v1 = vsel %vm793_vm5, %v2371_v59, %v547_v52  ;;  %v840_v59 = vsel %vm775_vm3, %v832_v44, %v2499_v47  ;;  %v1104_v52 = vshll.u32 %v1099_v63, 16  ;;  %s336_s25 = scalar_lea.vmem %s2694_s4, %s1758_s7 }
 0x112   : > { %v1269_v23 = vunpack.c.l.b16 %v806_v17  ;;  %v848_v33 = vsel %vm784_vm4, %v840_v59, %v714_v18 }
 0x113   : > { %v856_v34 = vsel %vm793_vm5, %v848_v33, %v2556_v43  ;;  %v1138_v43 = vsel %vm744_vm0, %v2290_v40, %v886_v9  ;;  %v1101_v40 = vshrl.u32 %v1099_v63, 16 }
 0x117   : > { %v565_v21 = vpop.permute.xlu1 %564  ;;  %v990_v12 = vpop.permute.xlu2 %989 }
 0x118   : > { %v804_v7 = vsel %vm802_vm6, %v795_v1, %v565_v21  ;;  %v728_v42 = vpop.permute.xlu0 %727 }
 0x119   : > { %v1265_v15 = vunpack.c.l.b16 %v804_v7  ;;  %v858_v25 = vsel %vm793_vm5, %v850_v60, %v728_v42 }
 0x11b   : > { %v1335_v30 = vpack.c.b16 %v1269_v23, %v1265_v15 }
 0x11d   : > { %1525 = vmatmul.bf16.vlgmr.msra.gmra.mxu0 %v1335_v30 }
 0x11f   : > { %v739_v22 = vpop.permute.xlu1 %738  ;;  %v1040_v47 = vpop.permute.xlu2 %1039 }
 0x120   : > { %v866_v29 = vsel %vm802_vm6, %v858_v25, %v739_v22  ;;  %v737_v41 = vpop.permute.xlu0 %736 }
 0x121   : > { %v1270_v48 = vunpack.c.l.b16 %v866_v29  ;;  %v864_v61 = vsel %vm802_vm6, %v856_v34, %v737_v41 }
 0x122   : > { %v1266_v26 = vunpack.c.l.b16 %v864_v61 }
 0x124   : > { %v1336_v35 = vpack.c.b16 %v1270_v48, %v1266_v26 }
 0x126   : > { %1544 = vmatmul.bf16.vlgmr.msra.gmra.mxu1 %v1336_v35 }
 0x127   : > { %v934_v38 = vpop.permute.xlu1 %933  ;;  %v1094_v6 = vpop.permute.xlu2 %1093 }
 0x128   : > { %v888_v8 = vpop.permute.xlu0 %887  ;;  %v1146_v24 = vsel %vm757_vm1, %v1138_v43, %v934_v38 }
 0x129   : > { %v1140_v46 = vsel %vm744_vm0, %v2319_v54, %v888_v8  ;;  %v1103_v54 = vrot.slane %v1101_v40, 7 }
 0x12a   : > { %v1148_v18 = vsel %vm757_vm1, %v1140_v46, %v936_v62 }
 0x12b   : > { %v1106_v21 = vor.u32 %v1104_v52, %v1103_v54 }
 0x12f   : > { %v956_v50 = vpop.permute.xlu1 %955  ;;  %v1117_v58 = vpop.permute.xlu2 %1116 }
 0x130   : > { %v954_v49 = vpop.permute.xlu0 %953  ;;  %v1156_v32 = vsel %vm766_vm2, %v1148_v18, %v956_v50  ;;  %v1200_v15 = vsel %vm744_vm0, %v1106_v21, %v1117_v58 }
 0x131   : > { %v1154_v36 = vsel %vm766_vm2, %v1146_v24, %v954_v49 }
 0x132   : > { %v1162_v5 = vsel %vm775_vm3, %v1154_v36, %v990_v12 }
 0x137   : > { %v1038_v56 = vpop.permute.xlu1 %1037  ;;  %v590_v9 = vpop.permute.xlu2 %589 }
 0x138   : > { %v992_v11 = vpop.permute.xlu0 %991  ;;  %v1170_v55 = vsel %vm784_vm4, %v1162_v5, %v1038_v56  ;;  %v572_v5 = vrot.slane %v2551_v2, 1 }
 0x139   : > { %v1164_v0 = vsel %vm775_vm3, %v1156_v32, %v992_v11 }
 0x13a   : > { %v1172_v16 = vsel %vm784_vm4, %v1164_v0, %v1040_v47 }
 0x13f   : > { %v1060_v3 = vpop.permute.xlu1 %1059  ;;  %v640_v42 = vpop.permute.xlu2 %639 }
 0x140   : > { %v1058_v53 = vpop.permute.xlu0 %1057  ;;  %v1180_v57 = vsel %vm793_vm5, %v1172_v16, %v1060_v3 }
 0x141   : > { %v1178_v14 = vsel %vm793_vm5, %v1170_v55, %v1058_v53  ;;  %v819_v53 = vsel %vm744_vm0, %v451_v19, %v590_v9 }
 0x142   : > { %v1186_v10 = vsel %vm802_vm6, %v1178_v14, %v1094_v6 }
 0x143   : > { %v1235_v51 = vshll.u32 %v1186_v10, 16  ;;  %v1233_v62 = vshrl.u32 %v1186_v10, 16 }
 0x145   : > { %v1237_v17 = vrot.slane %v1235_v51, 1 }
 0x147   : > { %v1115_v45 = vpop.permute.xlu1 %1114  ;;  %v1238_v23 = vor.u32 %v1237_v17, %v1233_v62  ;;  %v670_v35 = vpop.permute.xlu2 %669 }
 0x148   : > { %v1096_v1 = vpop.permute.xlu0 %1095  ;;  %v1197_v28 = vsel %vm744_vm0, %v2347_v37, %v1115_v45 }
 0x149   : > { %v1188_v31 = vsel %vm802_vm6, %v1180_v57, %v1096_v1  ;;  %v1275_v33 = vunpack.c.l.b16 %v1238_v23 }
 0x14a   : > { %v1247_v7 = vshll.u32 %v1188_v31, 16  ;;  %v1245_v27 = vshrl.u32 %v1188_v31, 16 }
 0x14c   : > { %v1249_v44 = vrot.slane %v1247_v7, 1 }
 0x14e   : > { %v1250_v12 = vor.u32 %v1249_v44, %v1245_v27 }
 0x14f   : > { %v1132_v20 = vpop.permute.xlu1 %1131  ;;  %v720_v58 = vpop.permute.xlu2 %719 }
 0x150   : > { %v1208_v30 = vsel %vm757_vm1, %v1200_v15, %v1132_v20  ;;  %v1130_v59 = vpop.permute.xlu0 %1129  ;;  %v1279_v60 = vunpack.c.l.b16 %v1250_v12 }
 0x151   : > { %v1253_v25 = vshll.u32 %v1208_v30, 16  ;;  %v1206_v22 = vsel %vm757_vm1, %v1197_v28, %v1130_v59  ;;  %v1251_v41 = vshrl.u32 %v1208_v30, 16 }
 0x152   : > { %v1241_v34 = vshll.u32 %v1206_v22, 16  ;;  %v1341_v29 = vpack.c.b16 %v1279_v60, %v1275_v33  ;;  %v1239_v61 = vshrl.u32 %v1206_v22, 16 }
 0x153   : > { %v1255_v48 = vrot.slane %v1253_v25, 1 }
 0x154   : > { %v1243_v26 = vrot.slane %v1241_v34, 1  ;;  %1568 = vmatmul.bf16.gmra.mxu2 %v1341_v29 }
 0x155   : > { %v1256_v47 = vor.u32 %v1255_v48, %v1251_v41 }
 0x156   : > { %v1244_v38 = vor.u32 %v1243_v26, %v1239_v61 }
 0x157   : > { %v1280_v8 = vunpack.c.l.b16 %v1256_v47  ;;  %v638_v37 = vpop.permute.xlu1 %637  ;;  %v730_v36 = vpop.permute.xlu2 %729 }
 0x158   : > { %v1276_v6 = vunpack.c.l.b16 %v1244_v38  ;;  %v592_v50 = vpop.permute.xlu0 %591  ;;  %v828_v32 = vsel %vm757_vm1, %v819_v53, %v638_v37 }
 0x159   : > { %v822_v40 = vsel %vm744_vm0, %v572_v5, %v592_v50 }
 0x15a   : > { %v1342_v49 = vpack.c.b16 %v1280_v8, %v1276_v6  ;;  %v830_v13 = vsel %vm757_vm1, %v822_v40, %v640_v42 }
 0x15c   : > { %1872 = vmatmul.msk.bf16.gmra.mxu3 %vm766_vm2, %v1342_v49 }
 0x15f   : > { %v652_v56 = vpop.permute.xlu1 %651  ;;  %v571_v55 = vpop.permute.xlu2 %570 }
 0x160   : > { %v650_v43 = vpop.permute.xlu0 %649  ;;  %v838_v19 = vsel %vm766_vm2, %v830_v13, %v652_v56 }
 0x167   : > { %v718_v11 = vpop.permute.xlu1 %717 }
 0x168   : > { %v672_v24 = vpop.permute.xlu0 %671 }
 0x16f   : > { %v553_v63 = vpop.permute.xlu1 %552 }
 0x170   : > { %v551_v46 = vpop.permute.xlu0 %550  ;;  %v801_v3 = vsel %vm793_vm5, %v2394_v39, %v553_v63  ;;  %v836_v39 = vsel %vm766_vm2, %v828_v32, %v650_v43 }
 0x171   : > { %v810_v14 = vsel %vm802_vm6, %v801_v3, %v571_v55  ;;  %v799_v18 = vsel %vm793_vm5, %v2398_v4, %v551_v46  ;;  %v844_v52 = vsel %vm775_vm3, %v836_v39, %v670_v35  ;;  %v846_v4 = vsel %vm775_vm3, %v838_v19, %v672_v24 }
 0x172   : > { %v1277_v51 = vunpack.c.l.b16 %v810_v14  ;;  %v852_v16 = vsel %vm784_vm4, %v844_v52, %v718_v11  ;;  %v854_v45 = vsel %vm784_vm4, %v846_v4, %v720_v58 }
 0x173   : > { %v860_v57 = vsel %vm793_vm5, %v852_v16, %v730_v36 }
 0x177   : > { %v569_v10 = vpop.permute.xlu1 %568  ;;  %v1564_v23 = vpop.f32.mrf.mxu2 }
 0x178   : > { %v808_v2 = vsel %vm802_vm6, %v799_v18, %v569_v10  ;;  %v732_v0 = vpop.permute.xlu0 %731 }
 0x179   : > { %v1273_v54 = vunpack.c.l.b16 %v808_v2  ;;  %v862_v17 = vsel %vm793_vm5, %v854_v45, %v732_v0 }
 0x17b   : > { %v1339_v9 = vpack.c.b16 %v1277_v51, %v1273_v54 }
 0x17d   : > { %1530 = vmatmul.bf16.gmra.mxu0 %v1339_v9 }
 0x17f   : > { %v743_v1 = vpop.permute.xlu1 %742  ;;  %v1583_v20 = vpop.f32.mrf.mxu3 }
 0x180   : > { %v741_v21 = vpop.permute.xlu0 %740  ;;  %v870_v31 = vsel %vm802_vm6, %v862_v17, %v743_v1  ;;  %v1566_v22 = vpop.f32.mrf.mxu2 }
 0x181   : > { %v868_v62 = vsel %vm802_vm6, %v860_v57, %v741_v21  ;;  %v1278_v7 = vunpack.c.l.b16 %v870_v31 }
 0x182   : > { %v1274_v42 = vunpack.c.l.b16 %v868_v62 }
 0x184   : > { %v1340_v27 = vpack.c.b16 %v1278_v7, %v1274_v42 }
 0x186   : > { %1549 = vmatmul.bf16.gmra.mxu1 %v1340_v27 }
 0x187   : > { %v1585_v29 = vpop.f32.mrf.mxu3 }
 0x19a   : > { %v1526_v44 = vpop.f32.mrf.mxu0 }
 0x1a2   : > { %v1528_v33 = vpop.f32.mrf.mxu0 }
 0x1a3   : > { %v1545_v15 = vpop.f32.mrf.mxu1 }
 0x1a4   : > { %v1546_v12 = vadd.f32 %v1545_v15, %v1526_v44 }
 0x1a6   : > { %v1565_v28 = vadd.f32 %v1564_v23, %v1546_v12 }
 0x1a8   : > { %v1584_v30 = vadd.f32 %v1583_v20, %v1565_v28 }
 0x1aa   : > { %v1593_v59 = vpack.c.bf16 %v1584_v30, %v1584_v30 }
 0x1ab   : > { %v1547_v60 = vpop.f32.mrf.mxu1 }
 0x1ac   : > { %1598 = vst.msk [vmem:[%s336_s25] sm:$0xf] %vm1597_vm7, %v1593_v59  ;;  %v1548_v25 = vadd.f32 %v1547_v60, %v1528_v33 }
 0x1ae   : > { %v1567_v34 = vadd.f32 %v1566_v22, %v1548_v25 }
 0x1b0   : > { %v1586_v41 = vadd.f32 %v1585_v29, %v1567_v34 }
 0x1b2   : > { %v1594_v48 = vpack.c.bf16 %v1586_v41, %v1586_v41 }
 0x1b4   : > { %1599 = vst.msk [vmem:[%s336_s25 + $0x4] sm:$0xf] %vm1597_vm7, %v1594_v48 }
 0x1d7   : > { %v1569_v26 = vpop.f32.mrf.mxu2 }
 0x1df   : > { %v1588_v38 = vpop.f32.mrf.mxu3  ;;  %v1571_v58 = vpop.f32.mrf.mxu2 }
 0x1e7   : > { %v1590_v11 = vpop.f32.mrf.mxu3 }
 0x1fa   : > { %v1531_v61 = vpop.f32.mrf.mxu0 }
 0x202   : > { %v1533_v50 = vpop.f32.mrf.mxu0 }
 0x203   : > { %v1550_v47 = vpop.f32.mrf.mxu1 }
 0x204   : > { %v1551_v35 = vadd.f32 %v1550_v47, %v1531_v61 }
 0x206   : > { %v1570_v8 = vadd.f32 %v1569_v26, %v1551_v35 }
 0x208   : > { %v1589_v37 = vadd.f32 %v1588_v38, %v1570_v8 }
 0x20a   : > { %v1595_v6 = vpack.c.bf16 %v1589_v37, %v1589_v37 }
 0x20b   : > { %v1552_v49 = vpop.f32.mrf.mxu1 }
 0x20c   : > { %1600 = vst.msk [vmem:[%s336_s25 + $0x8] sm:$0xf] %vm1597_vm7, %v1595_v6  ;;  %v1553_v56 = vadd.f32 %v1552_v49, %v1533_v50 }
 0x20e   : > { %v1572_v43 = vadd.f32 %v1571_v58, %v1553_v56 }
 0x210   : > { %v1591_v24 = vadd.f32 %v1590_v11, %v1572_v43 }
 0x212   : > { %v1596_v36 = vpack.c.bf16 %v1591_v24, %v1591_v24 }
 0x214   : > { %1601 = vst.msk [vmem:[%s336_s25 + $0xc] sm:$0xf] %vm1597_vm7, %v1596_v36 }
 0x215 PF: > { %s14_s19 = sadd.s32 1, %s1992_s19   ;;  %s2695_s15 = smov %s1984_s17 }
 0x216   : > { %p11_p10 = scmp.ge.s32.totalorder %s14_s19, 10   ;;  %s2696_s16 = smov %s1988_s18 }
 0x217   : > { %s2697_s17 = smov %s2700_s20  ;;  %s2698_s18 = smov %s2704_s21 }
 0x218   :  { %13 = sbr.rel (!%p11_p10) target bundleno = 3 (0x3), region = 72 }

// kernel: resblock_forward.2
= control target key start
LH: loop header
LB: loop body
LE: loop exit
PB: predicated region body
PF: predicated region fallthrough
CT: control target
= control target key end

     0   :  { %s6659_s24 = smov 0   ;;  %s6661_s25 = smov 0   ;;  %s9870_s0 = inlined_call_operand.vmem [shape: bf16[2,10,10,10,8], index: 0, kind: input, shape index: {}, may-alias: {0,1,2}]   ;;  %s9871_s1 = inlined_call_operand.vmem [shape: bf16[2,10,10,10,8], index: 1, kind: input, shape index: {}, may-alias: {0,1,2}]   ;;  %s9872_s2 = inlined_call_operand.vmem [shape: bf16[2,10,10,10,8], index: 2, kind: input, shape index: {}, may-alias: {0,1,2}]   ;;  %s9873_s3 = inlined_call_operand.vmem [shape: bf16[72,16], index: 3, kind: input, shape index: {}]   ;;  %s9874_s4 = inlined_call_operand.vmem [shape: bf16[144,16], index: 4, kind: input, shape index: {}]   ;;  %s9875_s5 = inlined_call_operand.vmem [shape: bf16[72,16], index: 5, kind: input, shape index: {}]   ;;  %s9876_s6 = inlined_call_operand.vmem [shape: bf16[144,16], index: 6, kind: input, shape index: {}]   ;;  %s9877_s7 = inlined_call_operand.vmem [shape: bf16[2,10,10,10,16], index: 7, kind: output, shape index: {}]  }
   0x1   :  { %10015 = sst [smem:[#allocation83_spill]] %s9870_s0  ;;  %s6663_s26 = smov 0  }
   0x2   :  { %s6665_s27 = smov 0   ;;  %s6667_s28 = smov 0  }
   0x3 LB: > { %s26_s29 = sadd.s32 1, %s6596_s26  ;;  %s29_s30 = sadd.s32 1, %s6600_s27  ;;  %s6604_s28 = sphi %s6667_s28, %s17_s28   ;;  %s6600_s27 = sphi %s6665_s27, %s10327_s27   ;;  %s6596_s26 = sphi %s6663_s26, %s10326_s26   ;;  %s6592_s25 = sphi %s6661_s25, %s10325_s25   ;;  %s6588_s24 = sphi %s6659_s24, %s10324_s24  }
   0x4   : > { %p27_p0 = scmp.ge.s32.totalorder %s26_s29, 10  ;;  %p6071_p1 = scmp.ge.s32.totalorder %s6604_s28, 1 }
   0x5   : > { %p345_p2 = scmp.lt.s32.totalorder %s6604_s28, 21 }
   0x6   : > { %s10329_s29 = smov (%p27_p0, %s26_s29), 0  ;;  %s10331_s30 = smov (!%p27_p0, %s29_s30), %s6600_s27 }
   0x7   : > { %10016 = sst [smem:[#allocation4_spill]] %s10329_s29  ;;  %p346_p3 = pnand %p6071_p1, %p345_p2 }
   0x8   : > { %p31_p4 = scmp.ge.s32.totalorder %s10331_s30, 2  ;;  %s417_s8 = sadd.s32 (!%p346_p3), 4294967295, %s6588_s24 }
   0x9   : > { %349 = sbr.rel (%p346_p3) target bundleno = 1765 (0x6e5), region = 48  ;;  %p422_p5 = scmp.lt.s32.totalorder (!%p346_p3), %s6592_s25, 1 }
   0xa   : > { %s10333_s30 = smov (%p31_p4, %s10331_s30), 0  ;;  %p418_p6 = scmp.gt.s32.totalorder (!%p346_p3), %s417_s8, 0 }
   0xb   : > { %10017 = sst [smem:[#allocation5_spill]] %s10333_s30  ;;  %p6072_p7 = scmp.lt.s32.totalorder (!%p346_p3), %s417_s8, 9 }
   0xc   : > { %p436_p8 = scmp.gt.s32.totalorder (!%p346_p3), %s6588_s24, 0  ;;  %p6078_p10 = scmp.lt.s32.totalorder (!%p346_p3), %s6588_s24, 9 }
   0xd   : > { %s453_s11 = sadd.s32 (!%p346_p3), 1, %s6588_s24  ;;  %p482_p11 = scmp.eq.s32.totalorder (!%p346_p3), %s6588_s24, 0 }
   0xe   : > { %s10335_s25 = smov (!%p422_p5, %s6592_s25), 1  ;;  %s10337_s8 = smov (!%p418_p6, %s417_s8), 0 }
   0xf   : > { %s10339_s8 = smov (!%p6072_p7, %s10337_s8), 9  ;;  %s6484_s10 = smul.u32 200, %s10335_s25 }
  0x10   : > { %s437_s9 = scalar_select %p436_p8, %s6588_s24, 0 }
  0x11   : > { %p424_p9 = scmp.lt.s32.totalorder %s10339_s8, 9  ;;  %p454_p13 = scmp.gt.s32.totalorder %s453_s11, 0 }
  0x12   : > { %s10343_s9 = smov (!%p6078_p10, %s437_s9), 9  ;;  %p483_p0 = scmp.eq.s32.totalorder %s6588_s24, 9 }
  0x13   : > { %s10341_s8 = smov (!%p424_p9, %s10339_s8), 9  ;;  %p442_p12 = scmp.lt.s32.totalorder %s10343_s9, 9 }
  0x14   : > { %s6483_s12 = smul.u32 20, %s10341_s8  ;;  %p6084_p1 = scmp.lt.s32.totalorder %s453_s11, 9 }
  0x15   : > { %s10018_s0 = sld [smem:[#allocation83_spill]]  ;;  %p6705_p2 = por %p483_p0, %p482_p11 }
  0x16   : > { %s428_s13 = sadd.s32 %s6484_s10, %s6483_s12  ;;  %s10345_s9 = smov (!%p442_p12, %s10343_s9), 9  ;;  %vm488_vm0 = vcmask (%p6705_p2), 125952   ;;  %v6606_v0 = vmov (%p6705_p2), 0   ;;  %vm490_vm1 = vcmask (%p6705_p2), 122880  }
  0x17   : > { %s6077_s14 = sshll.u32 %s428_s13, 2  ;;  %s10347_s11 = smov (!%p454_p13, %s453_s11), 0 }
  0x18   : > { %s6485_s19 = smul.u32 20, %s10345_s9  ;;  %s10349_s11 = smov (!%p6084_p1, %s10347_s11), 9 }
  0x19   : > { %p460_p3 = scmp.lt.s32.totalorder %s10349_s11, 9 }
  0x1a   : > { %s446_s20 = sadd.s32 %s6485_s19, %s6484_s10 }
  0x1b   : > { %s6703_s17 = scalar_lea.vmem %s10018_s0, %s6077_s14  ;;  %s6083_s21 = sshll.u32 %s446_s20, 2 }
  0x1c   : > { %s6712_s25 = scalar_lea.vmem %s9871_s1, %s6083_s21  ;;  %s10351_s11 = smov (!%p460_p3, %s10349_s11), 9 }
  0x1d   : > { %s475_s8 = scalar_select %p6078_p10, %s6588_s24, 9 }
  0x1e   : > { %s6486_s12 = smul.u32 20, %s10351_s11 }
  0x1f   : > { %s6487_s13 = smul.u32 20, %s475_s8 }
  0x20   : > { %s464_s14 = sadd.s32 %s6486_s12, %s6484_s10  ;;  %487 = sbr.rel (!%p6705_p2) target bundleno = 56 (0x38), region = 52 }
  0x21   : > { %s6089_s15 = sshll.u32 %s464_s14, 2  ;;  %s478_s16 = sadd.s32 %s6487_s13, %s6484_s10 }
  0x22   : > { %s6720_s9 = scalar_lea.vmem %s9872_s2, %s6089_s15  ;;  %s6090_s19 = sshll.u32 %s478_s16, 2 }
  0x23   : > { %s6725_s22 = scalar_lea.vmem %s9877_s7, %s6090_s19 }
  0x24   : > { %489 = vst.msk [vmem:[%s6725_s22] sm:$0xf] (%p6705_p2), %vm488_vm0, %v6606_v0 }
  0x25   : > { %492 = vst.msk [vmem:[%s6725_s22 + $0x8] sm:$0xf] %vm488_vm0, %v6606_v0 }
  0x26   : > { %494 = vst.msk [vmem:[%s6725_s22 + $0x10] sm:$0xf] %vm488_vm0, %v6606_v0 }
  0x27   : > { %496 = vst.msk [vmem:[%s6725_s22 + $0x18] sm:$0xf] %vm488_vm0, %v6606_v0 }
  0x28   : > { %498 = vst.msk [vmem:[%s6725_s22 + $0x20] sm:$0xf] %vm488_vm0, %v6606_v0 }
  0x29   : > { %500 = vst.msk [vmem:[%s6725_s22 + $0x28] sm:$0xf] %vm488_vm0, %v6606_v0 }
  0x2a   : > { %502 = vst.msk [vmem:[%s6725_s22 + $0x30] sm:$0xf] %vm488_vm0, %v6606_v0 }
  0x2b   : > { %504 = vst.msk [vmem:[%s6725_s22 + $0x38] sm:$0xf] %vm488_vm0, %v6606_v0 }
  0x2c   : > { %506 = vst.msk [vmem:[%s6725_s22 + $0x40] sm:$0xf] %vm488_vm0, %v6606_v0 }
  0x2d   : > { %508 = vst.msk [vmem:[%s6725_s22 + $0x48] sm:$0xf] %vm488_vm0, %v6606_v0 }
  0x2e   : > { %491 = vst.msk [vmem:[%s6725_s22 + $0x4] sm:$0x1] %vm490_vm1, %v6606_v0 }
  0x2f   : > { %493 = vst.msk [vmem:[%s6725_s22 + $0xc] sm:$0x1] %vm490_vm1, %v6606_v0 }
  0x30   : > { %495 = vst.msk [vmem:[%s6725_s22 + $0x14] sm:$0x1] %vm490_vm1, %v6606_v0 }
  0x31   : > { %497 = vst.msk [vmem:[%s6725_s22 + $0x1c] sm:$0x1] %vm490_vm1, %v6606_v0 }
  0x32   : > { %499 = vst.msk [vmem:[%s6725_s22 + $0x24] sm:$0x1] %vm490_vm1, %v6606_v0 }
  0x33   : > { %501 = vst.msk [vmem:[%s6725_s22 + $0x2c] sm:$0x1] %vm490_vm1, %v6606_v0 }
  0x34   : > { %503 = vst.msk [vmem:[%s6725_s22 + $0x34] sm:$0x1] %vm490_vm1, %v6606_v0 }
  0x35   : > { %505 = vst.msk [vmem:[%s6725_s22 + $0x3c] sm:$0x1] %vm490_vm1, %v6606_v0 }
  0x36   : > { %507 = vst.msk [vmem:[%s6725_s22 + $0x44] sm:$0x1] %vm490_vm1, %v6606_v0 }
  0x37   : > { %509 = vst.msk [vmem:[%s6725_s22 + $0x4c] sm:$0x1] %vm490_vm1, %v6606_v0 }
  0x38 PF: > { %p510_p4 = scmp.ge.s32.totalorder %s6588_s24, 1  ;;  %p511_p5 = scmp.le.s32.totalorder %s6588_s24, 8 }
  0x3a   : > { %p512_p6 = pnand %p511_p5, %p510_p4 }
  0x3c   : > { %515 = sbr.rel (%p512_p6) target bundleno = 1765 (0x6e5), region = 56 }
  0x41   : > { %v6752_v1 = vld [vmem:[%s6703_s17 + $0x18] sm:$0xf]  ;;  %v6755_v2 = vld [vmem:[%s6703_s17 + $0x1c] sm:$0x1]  ;;  %v6762_v5 = vld [vmem:[%s6703_s17 + $0x8] sm:$0xf] }
  0x42   : > { %v6758_v3 = vunpack.c.l.b16 %v6752_v1  ;;  %v759_v4 = vunpack.c.l.b16 %v6755_v2  ;;  %v6765_v6 = vld [vmem:[%s6703_s17 + $0xc] sm:$0x1]  ;;  %v6768_v7 = vld [vmem:[%s6703_s17 + $0x20] sm:$0xf]  ;;  %v6771_v8 = vunpack.c.l.b16 %v6762_v5  ;;  %v6775_v10 = vld [vmem:[%s6703_s17 + $0x24] sm:$0x1] }
  0x43   : > { %v755_v9 = vunpack.c.l.b16 %v6765_v6  ;;  %v6778_v11 = vunpack.c.l.b16 %v6768_v7  ;;  %v6781_v12 = vld [vmem:[%s6703_s17 + $0x10] sm:$0xf]  ;;  %v6784_v13 = vld [vmem:[%s6703_s17 + $0x14] sm:$0x1]  ;;  %v761_v15 = vunpack.c.l.b16 %v6775_v10  ;;  %v6795_v18 = vld [vmem:[%s6703_s17 + $0x28] sm:$0xf] }
  0x44   : > { %10020 = vst [vmem:[#allocation6_spill] sm:$0xff] %v6758_v3  ;;  %v772_v14 = vpack.c.b16 %v759_v4, %v6758_v3  ;;  %v6791_v16 = vunpack.c.l.b16 %v6781_v12  ;;  %v757_v17 = vunpack.c.l.b16 %v6784_v13  ;;  %v6798_v19 = vld [vmem:[%s6703_s17 + $0x2c] sm:$0x1]  ;;  %v6804_v21 = vunpack.c.l.b16 %v6795_v18  ;;  %v6098_v23 = vld [vmem:[%s6703_s17 + $0x40] sm:$0xf]  ;;  %s6607_s0 = smov 8  }
  0x45   : > { %10021 = vst [vmem:[#allocation7_spill] sm:$0xff] %v6771_v8  ;;  %v770_v20 = vpack.c.b16 %v755_v9, %v6771_v8  ;;  %v763_v22 = vunpack.c.l.b16 %v6798_v19  ;;  %v6809_v24 = vld [vmem:[%s6703_s17 + $0x44] sm:$0x1]  ;;  %v773_v27 = vpack.c.b16 %v761_v15, %v6778_v11  ;;  %v6097_v32 = vld [vmem:[%s6703_s17 + $0x38] sm:$0xf]  ;;  %v6821_v35 = vunpack.c.l.b16 %v6098_v23  ;;  %s6608_s24 = smov 16  }
  0x46   : > { %10022 = vst [vmem:[#allocation8_spill] sm:$0xff] %v6778_v11  ;;  %v793_v25 = vshrl.u32 %v772_v14, 16  ;;  %v795_v26 = vshll.u32 %v772_v14, 16  ;;  %v771_v28 = vpack.c.b16 %v757_v17, %v6791_v16  ;;  %v769_v36 = vunpack.c.l.b16 %v6809_v24  ;;  %v6825_v37 = vld [vmem:[%s6703_s17 + $0x3c] sm:$0x1]  ;;  %s6609_s29 = smov 24  }
  0x47   : > { %10023 = vst [vmem:[#allocation9_spill] sm:$0xff] %v6791_v16  ;;  %v779_v29 = vshrl.u32 %v770_v20, 16  ;;  %v781_v30 = vshll.u32 %v770_v20, 16  ;;  %v774_v31 = vpack.c.b16 %v763_v22, %v6804_v21  ;;  %v802_v34 = vshll.u32 %v773_v27, 16  ;;  %v6828_v42 = vld [vmem:[%s6703_s17 + $0x30] sm:$0xf] }
  0x48   : > { %10024 = vst [vmem:[#allocation10_spill] sm:$0xff] %v6804_v21  ;;  %v797_v33 = vrot.slane %v795_v26, 1  ;;  %v788_v39 = vshll.u32 %v771_v28, 16  ;;  %v6832_v44 = vunpack.c.l.b16 %v6097_v32  ;;  %v6835_v45 = vld [vmem:[%s6703_s17 + $0x34] sm:$0x1]  ;;  %v800_v47 = vshrl.u32 %v773_v27, 16 }
  0x49   : > { %10025 = vst [vmem:[#allocation11_spill] sm:$0xff] %v6821_v35  ;;  %v783_v38 = vrot.slane %v781_v30, 1  ;;  %v807_v40 = vshrl.u32 %v774_v31, 16  ;;  %v809_v41 = vshll.u32 %v774_v31, 16  ;;  %v767_v49 = vunpack.c.l.b16 %v6825_v37  ;;  %v6107_v61 = vld [vmem:[%s6703_s17 + $0x8] sm:$0xe] }
  0x4a   : > { %v6830_v43 = vor.u32 %v797_v33, %v793_v25  ;;  %10027 = vst [vmem:[#allocation13_spill] sm:$0xff] %v6832_v44  ;;  %v804_v50 = vrot.slane %v802_v34, 1  ;;  %v786_v51 = vshrl.u32 %v771_v28, 16  ;;  %v777_v52 = vpack.c.b16 %v769_v36, %v6821_v35  ;;  %v6109_v30 = vld [vmem:[%s6703_s17 + $0x18] sm:$0xe]  ;;  %s6610_s30 = smov 32  }
  0x4b   : > { %v6837_v46 = vor.u32 %v783_v38, %v779_v29  ;;  %v811_v48 = vrot.slane %v809_v41, 1  ;;  %v6846_v53 = vunpack.c.l.b16 %v6828_v42  ;;  %v790_v54 = vrot.slane %v788_v39, 1  ;;  %v6108_v31 = vld [vmem:[%s6703_s17 + $0x10] sm:$0xe]  ;;  %v6110_v38 = vld [vmem:[%s6703_s17 + $0x20] sm:$0xe] }
  0x4c   : > { %10026 = vst [vmem:[#allocation12_spill] sm:$0xff] %v6830_v43  ;;  %838 = vrot.lane.b32.xlu1 %v6830_v43, %s6607_s0  ;;  %v776_v56 = vpack.c.b16 %v767_v49, %v6832_v44  ;;  %v765_v57 = vunpack.c.l.b16 %v6835_v45  ;;  %v6859_v59 = vor.u32 %v804_v50, %v800_v47  ;;  %v830_v60 = vshll.u32 %v777_v52, 16  ;;  %s6611_s10 = smov 40   ;;  %s6612_s11 = smov 48  }
  0x4d   : > { %10028 = vst [vmem:[#allocation14_spill] sm:$0xff] %v6837_v46  ;;  %834 = vrot.lane.b32.xlu0 %v6837_v46, %s6607_s0  ;;  %v6850_v55 = vor.u32 %v811_v48, %v807_v40  ;;  %v6862_v62 = vor.u32 %v790_v54, %v786_v51  ;;  %v858_v23 = vunpack.c.l.b16 %v6107_v61  ;;  %v828_v25 = vshrl.u32 %v777_v52, 16  ;;  %v6111_v48 = vld [vmem:[%s6703_s17 + $0x28] sm:$0xe]  ;;  %v6113_v51 = vld [vmem:[%s6703_s17 + $0x38] sm:$0xe] }
  0x4e   : > { %10029 = vst [vmem:[#allocation15_spill] sm:$0xff] %v6846_v53  ;;  %v775_v58 = vpack.c.b16 %v765_v57, %v6846_v53  ;;  %v823_v63 = vshll.u32 %v776_v56, 16  ;;  %v832_v26 = vrot.slane %v830_v60, 1  ;;  %v821_v27 = vshrl.u32 %v776_v56, 16  ;;  %v6139_v61 = vld [vmem:[%s6712_s25 + $0x8] sm:$0xf] }
  0x4f   : > { %10030 = vst [vmem:[#allocation16_spill] sm:$0xff] %v6850_v55  ;;  %842 = vrot.lane.b32.xlu2 %v6850_v55, %s6607_s0  ;;  %v6876_v32 = vpack.c.b16 %v755_v9, %v858_v23  ;;  %v860_v34 = vunpack.c.l.b16 %v6109_v30  ;;  %v859_v40 = vunpack.c.l.b16 %v6108_v31  ;;  %v861_v45 = vunpack.c.l.b16 %v6110_v38  ;;  %v6112_v9 = vld [vmem:[%s6703_s17 + $0x30] sm:$0xe]  ;;  %v6142_v23 = vld [vmem:[%s6712_s25 + $0x20] sm:$0xf]  ;;  %s6613_s18 = smov 56  }
  0x50   : > { %10031 = vst [vmem:[#allocation17_spill] sm:$0xff] %v6859_v59  ;;  %v814_v0 = vshrl.u32 %v775_v58, 16  ;;  %v816_v14 = vshll.u32 %v775_v58, 16  ;;  %v825_v28 = vrot.slane %v823_v63, 1  ;;  %v6878_v33 = vor.u32 %v832_v26, %v828_v25  ;;  %v6141_v25 = vld [vmem:[%s6712_s25 + $0x18] sm:$0xf] }
  0x51   : > { %10032 = vst [vmem:[#allocation18_spill] sm:$0xff] %v6862_v62  ;;  %v9884_v41 = vrot.slane %v6876_v32, 1  ;;  %v6888_v47 = vpack.c.b16 %v759_v4, %v860_v34  ;;  %v6894_v6 = vpack.c.b16 %v757_v17, %v859_v40  ;;  %v6903_v2 = vpack.c.b16 %v761_v15, %v861_v45  ;;  %v6114_v15 = vld [vmem:[%s6703_s17 + $0x40] sm:$0xe]  ;;  %v6959_v30 = vld [vmem:[%s6712_s25 + $0xc] sm:$0x1] }
  0x52   : > { %v818_v20 = vrot.slane %v816_v14, 1  ;;  %10034 = vst [vmem:[#allocation20_spill] sm:$0xff] %v6876_v32  ;;  %v6881_v39 = vor.u32 %v825_v28, %v821_v27  ;;  %v863_v50 = vunpack.c.l.b16 %v6112_v9  ;;  %v862_v17 = vunpack.c.l.b16 %v6111_v48  ;;  %v6956_v28 = vld [vmem:[%s6712_s25 + $0x14] sm:$0x1]  ;;  %v6964_v40 = vld [vmem:[%s6712_s25 + $0x1c] sm:$0x1] }
  0x53   : > { %10035 = vst [vmem:[#allocation21_spill] sm:$0xff] %v6878_v33  ;;  %v9881_v4 = vrot.slane %v6888_v47, 1  ;;  %v9885_v13 = vrot.slane %v6894_v6, 1  ;;  %v9882_v52 = vrot.slane %v6903_v2, 1  ;;  %v864_v54 = vunpack.c.l.b16 %v6113_v51  ;;  %v6145_v9 = vld [vmem:[%s6712_s25 + $0x38] sm:$0xf] }
  0x54   : > { %840 = vrot.lane.b32.xlu1 %v6859_v59, %s6607_s0  ;;  %v6868_v29 = vor.u32 %v818_v20, %v814_v0  ;;  %10036 = vst [vmem:[#allocation22_spill] sm:$0xff] %v6881_v39  ;;  %v6912_v56 = vpack.c.b16 %v765_v57, %v863_v50  ;;  %v6919_v10 = vpack.c.b16 %v763_v22, %v862_v17  ;;  %v865_v63 = vunpack.c.l.b16 %v6114_v15  ;;  %v6140_v0 = vld [vmem:[%s6712_s25 + $0x10] sm:$0xf]  ;;  %s6614_s21 = smov 64   ;;  %s6616_s8 = smov 96  }
  0x55   : > { %836 = vrot.lane.b32.xlu0 %v6862_v62, %s6607_s0  ;;  %10037 = vst [vmem:[#allocation23_spill] sm:$0xff] %v6888_v47  ;;  %v6927_v58 = vpack.c.b16 %v767_v49, %v864_v54  ;;  %v906_v22 = vunpack.c.l.b16 %v6139_v61  ;;  %v907_v49 = vunpack.c.l.b16 %v6140_v0  ;;  %v909_v24 = vunpack.c.l.b16 %v6142_v23  ;;  %v6144_v50 = vld [vmem:[%s6712_s25 + $0x30] sm:$0xf]  ;;  %v6146_v61 = vld [vmem:[%s6712_s25 + $0x40] sm:$0xf]  ;;  %v6452_v62 = vld [vmem:[%s9873_s3 + $0x18] sm:$0xff] }
  0x56   : > { %10033 = vst [vmem:[#allocation19_spill] sm:$0xff] %v6868_v29  ;;  %v9878_v57 = vrot.slane %v6912_v56, 1  ;;  %v9883_v60 = vrot.slane %v6919_v10, 1  ;;  %v6942_v37 = vpack.c.b16 %v769_v36, %v865_v63  ;;  %v6143_v36 = vld [vmem:[%s6712_s25 + $0x28] sm:$0xf]  ;;  %v908_v27 = vunpack.c.l.b16 %v6141_v25  ;;  %s6617_s12 = smov 112  }
  0x57   : > { %844 = vrot.lane.b32.xlu2 %v6868_v29, %s6607_s0  ;;  %10038 = vst [vmem:[#allocation24_spill] sm:$0xff] %v6894_v6  ;;  %v9879_v19 = vrot.slane %v6927_v58, 1  ;;  %v914_v14 = vpack.c.b16 %v906_v22, %v906_v22  ;;  %v915_v26 = vpack.c.b16 %v907_v49, %v907_v49  ;;  %v910_v31 = vunpack.c.l.b16 %v6143_v36  ;;  %v6981_v23 = vld [vmem:[%s6712_s25 + $0x24] sm:$0x1]  ;;  %s6618_s15 = smov 80  }
  0x58   : > { %10039 = vst [vmem:[#allocation25_spill] sm:$0xff] %v6903_v2  ;;  %v9880_v20 = vrot.slane %v6942_v37, 1  ;;  %v917_v34 = vpack.c.b16 %v909_v24, %v909_v24  ;;  %v9886_v38 = vunpack.c.l.b16 %v6956_v28  ;;  %v916_v45 = vpack.c.b16 %v908_v27, %v908_v27 }
  0x59   : > { %10040 = vst [vmem:[#allocation26_spill] sm:$0xff] %v6912_v56  ;;  %v946_v48 = vunpack.c.l.b16 %v6959_v30  ;;  %v918_v51 = vpack.c.b16 %v910_v31, %v910_v31  ;;  %v948_v17 = vunpack.c.l.b16 %v6964_v40  ;;  %v912_v54 = vunpack.c.l.b16 %v6145_v9  ;;  %v6160_v30 = vld [vmem:[%s6712_s25 + $0x30] sm:$0xe] }
  0x5a   : > { %10041 = vst [vmem:[#allocation27_spill] sm:$0xff] %v6919_v10  ;;  %v955_v15 = vpack.c.b16 %v9886_v38, %v907_v49  ;;  %v911_v63 = vunpack.c.l.b16 %v6144_v50  ;;  %v913_v25 = vunpack.c.l.b16 %v6146_v61  ;;  %v9888_v50 = vunpack.c.l.b16 %v6981_v23 }
  0x5b   : > { %10042 = vst [vmem:[#allocation28_spill] sm:$0xff] %v6927_v58  ;;  %v954_v0 = vpack.c.b16 %v946_v48, %v906_v22  ;;  %v920_v36 = vpack.c.b16 %v912_v54, %v912_v54  ;;  %v7134_v58 = vld [vmem:[%s6720_s9 + $0x44] sm:$0x1]  ;;  %vm1479_vm2 = vcmask 1043456   ;;  %vm1266_vm3 = vcmask 64512  }
  0x5c   : > { %848 = vrot.lane.b32.xlu1 %v6878_v33, %s6607_s0  ;;  %10043 = vst [vmem:[#allocation29_spill] sm:$0xff] %v6942_v37  ;;  %v919_v9 = vpack.c.b16 %v911_v63, %v911_v63  ;;  %v970_v61 = vshrl.u32 %v955_v15, 16  ;;  %v1418_v33 = vld [vmem:[%s9873_s3 + $0x20] sm:$0xf]  ;;  %vm1291_vm4 = vcmask 130048   ;;  %vm1308_vm5 = vcmask 195584  }
  0x5d   : > { %846 = vrot.lane.b32.xlu0 %v6881_v39, %s6607_s0  ;;  %v965_v22 = vshll.u32 %v954_v0, 16  ;;  %v1456_v32 = vunpack.c.l.b16 %v1418_v33  ;;  %v6451_v33 = vld [vmem:[%s9873_s3 + $0x10] sm:$0xff]  ;;  %vm1325_vm6 = vcmask 261120   ;;  %vm1342_vm7 = vcmask 326656  }
  0x5e   : > { %vm1359_vm8 = vcmask 392192   ;;  %vm1376_vm9 = vcmask 457728   ;;  %vm1393_vm10 = vcmask 523264   ;;  %vm10014_vm11 = vcmask 588800  }
  0x5f   : > { %882 = vrot.lane.b32.xlu2 %v9884_v41, %s6608_s24  ;;  %v6999_v41 = vld [vmem:[%s6712_s25 + $0x44] sm:$0x1]  ;;  %v1461_v29 = vpack.c.b16 %v1456_v32, %v1456_v32  ;;  %vm1536_vm12 = vcmask 125952   ;;  %vm1538_vm13 = vcmask 122880   ;;  %vm9953_vm14 = vsmask.f32 256 }
  0x60   : > { %vm9982_vm15 = vsmask.f32 7938  ;;  %vm7454_vm0 = vmand %vm1538_vm13, %vm9953_vm14 }
  0x61   : > { %v1481_v39 = vsel %vm1479_vm2, %v1461_v29, 0  ;;  %v6450_v29 = vld [vmem:[%s9873_s3 + $0x8] sm:$0xff]  ;;  %vm7464_vm1 = vmand %vm1538_vm13, %vm9982_vm15 }
  0x62   : > { %1486 = vmatpush.bf16.msra.mxu0 %v1481_v39  ;;  %vm7635_vm14 = vmand %vm1536_vm12, %vm9982_vm15  ;;  %vm10011_vm15 = vcmask 916480  }
  0x64   : > { %886 = vrot.lane.b32.xlu1 %v9881_v4, %s6608_s24  ;;  %v963_v4 = vshrl.u32 %v954_v0, 16 }
  0x65   : > { %884 = vrot.lane.b32.xlu0 %v9885_v13, %s6608_s24  ;;  %v7002_v13 = vld [vmem:[%s6712_s25 + $0x3c] sm:$0x1] }
  0x66   : > { %1487 = vmatpush.bf16.msra.mxu0 %v6452_v62  ;;  %v6449_v62 = vld [vmem:[%s9873_s3] sm:$0xff] }
  0x67   : > { %888 = vrot.lane.b32.xlu2 %v9882_v52, %s6608_s24  ;;  %v967_v52 = vrot.slane %v965_v22, 1 }
  0x69   : > { %v968_v0 = vor.u32 %v967_v52, %v963_v4 }
  0x6a   : > { %1488 = vmatpush.bf16.msra.mxu0 %v6451_v33 }
  0x6c   : > { %892 = vrot.lane.b32.xlu1 %v9878_v57, %s6608_s24  ;;  %v921_v57 = vpack.c.b16 %v913_v25, %v913_v25 }
  0x6d   : > { %890 = vrot.lane.b32.xlu0 %v9883_v60, %s6608_s24  ;;  %v957_v60 = vpack.c.b16 %v9888_v50, %v909_v24 }
  0x6e   : > { %1489 = vmatpush.bf16.msra.mxu0 %v6450_v29 }
  0x6f   : > { %894 = vrot.lane.b32.xlu2 %v9879_v19, %s6608_s24  ;;  %v986_v22 = vshll.u32 %v957_v60, 16 }
  0x72   : > { %1490 = vmatpush.bf16.msra.mxu0 %v6449_v62 }
  0x74   : > { %922 = vrot.lane.b32.xlu1 %v914_v14, %s6609_s29  ;;  %v6978_v14 = vld [vmem:[%s6712_s25 + $0x2c] sm:$0x1] }
  0x75   : > { %896 = vrot.lane.b32.xlu0 %v9880_v20, %s6608_s24  ;;  %v9887_v49 = vunpack.c.l.b16 %v6978_v14 }
  0x77   : > { %924 = vrot.lane.b32.xlu2 %v915_v26, %s6609_s29  ;;  %v956_v26 = vpack.c.b16 %v948_v17, %v908_v27  ;;  %v958_v20 = vpack.c.b16 %v9887_v49, %v910_v31  ;;  %v952_v49 = vunpack.c.l.b16 %v7002_v13 }
  0x79   : > { %v979_v19 = vshll.u32 %v956_v26, 16  ;;  %v977_v38 = vshrl.u32 %v956_v26, 16  ;;  %v993_v31 = vshll.u32 %v958_v20, 16 }
  0x7b   : > { %v995_v26 = vrot.slane %v993_v31, 1 }
  0x7c   : > { %928 = vrot.lane.b32.xlu1 %v917_v34, %s6609_s29  ;;  %v972_v34 = vshll.u32 %v955_v15, 16 }
  0x7d   : > { %926 = vrot.lane.b32.xlu0 %v916_v45, %s6609_s29  ;;  %v6988_v45 = vld [vmem:[%s6712_s25 + $0x34] sm:$0x1] }
  0x7e   : > { %v974_v27 = vrot.slane %v972_v34, 1 }
  0x7f   : > { %930 = vrot.lane.b32.xlu2 %v918_v51, %s6609_s29  ;;  %v9889_v51 = vunpack.c.l.b16 %v6988_v45 }
  0x80   : > { %v975_v34 = vor.u32 %v974_v27, %v970_v61  ;;  %v988_v61 = vrot.slane %v986_v22, 1  ;;  %v960_v27 = vpack.c.b16 %v952_v49, %v912_v54 }
  0x81   : > { %v959_v15 = vpack.c.b16 %v9889_v51, %v911_v63  ;;  %v984_v63 = vshrl.u32 %v957_v60, 16 }
  0x82   : > { %v1005_v54 = vshrl.u32 %v960_v27, 16 }
  0x83   : > { %v1000_v50 = vshll.u32 %v959_v15, 16  ;;  %v998_v4 = vshrl.u32 %v959_v15, 16  ;;  %v6157_v15 = vld [vmem:[%s6712_s25 + $0x18] sm:$0xe] }
  0x84   : > { %934 = vrot.lane.b32.xlu1 %v920_v36, %s6609_s29  ;;  %v981_v36 = vrot.slane %v979_v19, 1 }
  0x85   : > { %932 = vrot.lane.b32.xlu0 %v919_v9, %s6609_s29  ;;  %v953_v9 = vunpack.c.l.b16 %v6999_v41  ;;  %v1002_v13 = vrot.slane %v1000_v50, 1  ;;  %v6156_v50 = vld [vmem:[%s6712_s25 + $0x10] sm:$0xe] }
  0x86   : > { %v982_v24 = vor.u32 %v981_v36, %v977_v38  ;;  %v6155_v36 = vld [vmem:[%s6712_s25 + $0x8] sm:$0xe] }
  0x87   : > { %936 = vrot.lane.b32.xlu2 %v921_v57, %s6609_s29  ;;  %v991_v57 = vshrl.u32 %v958_v20, 16  ;;  %v961_v19 = vpack.c.b16 %v953_v9, %v913_v25  ;;  %v1007_v20 = vshll.u32 %v960_v27, 16  ;;  %v1003_v31 = vor.u32 %v1002_v13, %v998_v4 }
  0x88   : > { %v1042_v51 = vunpack.c.l.b16 %v6155_v36  ;;  %v10044_v13 = vunpack.c.l.b16 %v6956_v28  ;;  %v10046_v28 = vunpack.c.l.b16 %v6988_v45 }
  0x89   : > { %v996_v52 = vor.u32 %v995_v26, %v991_v57  ;;  %v1014_v38 = vshll.u32 %v961_v19, 16  ;;  %v1012_v25 = vshrl.u32 %v961_v19, 16  ;;  %v1044_v57 = vunpack.c.l.b16 %v6157_v15  ;;  %v6158_v26 = vld [vmem:[%s6712_s25 + $0x20] sm:$0xe] }
  0x8a   : > { %v1050_v22 = vpack.c.b16 %v946_v48, %v1042_v51  ;;  %v1043_v19 = vunpack.c.l.b16 %v6156_v50  ;;  %v1045_v4 = vunpack.c.l.b16 %v6158_v26  ;;  %v6159_v48 = vld [vmem:[%s6712_s25 + $0x28] sm:$0xe]  ;;  %v10045_v51 = vunpack.c.l.b16 %v6981_v23 }
  0x8b   : > { %v1016_v60 = vrot.slane %v1014_v38, 1  ;;  %v1052_v27 = vpack.c.b16 %v948_v17, %v1044_v57  ;;  %v1046_v17 = vunpack.c.l.b16 %v6159_v48  ;;  %v6187_v57 = vld [vmem:[%s6720_s9 + $0x8] sm:$0xf] }
  0x8c   : > { %1020 = vrot.lane.b32.xlu1 %v975_v34, %s6610_s30  ;;  %v989_v34 = vor.u32 %v988_v61, %v984_v63  ;;  %v1058_v61 = vrot.slane %v1050_v22, 1  ;;  %v1053_v38 = vpack.c.b16 %v10045_v51, %v1045_v4  ;;  %v1090_v45 = vunpack.c.l.b16 %v6187_v57  ;;  %v7065_v51 = vld [vmem:[%s6720_s9 + $0x14] sm:$0x1] }
  0x8d   : > { %1018 = vrot.lane.b32.xlu0 %v968_v0, %s6610_s30  ;;  %v1009_v0 = vrot.slane %v1007_v20, 1  ;;  %v1060_v36 = vrot.slane %v1052_v27, 1  ;;  %v6161_v20 = vld [vmem:[%s6712_s25 + $0x38] sm:$0xe] }
  0x8f   : > { %1022 = vrot.lane.b32.xlu2 %v982_v24, %s6610_s30  ;;  %v1017_v24 = vor.u32 %v1016_v60, %v1012_v25  ;;  %v1010_v63 = vor.u32 %v1009_v0, %v1005_v54  ;;  %v1048_v25 = vunpack.c.l.b16 %v6161_v20  ;;  %v10047_v54 = vunpack.c.l.b16 %v6978_v14  ;;  %v6162_v0 = vld [vmem:[%s6712_s25 + $0x40] sm:$0xe] }
  0x90   : > { %v1049_v26 = vunpack.c.l.b16 %v6162_v0  ;;  %v9890_v20 = vunpack.c.l.b16 %v7065_v51 }
  0x91   : > { %v1054_v23 = vpack.c.b16 %v10047_v54, %v1046_v17  ;;  %v1056_v15 = vpack.c.b16 %v952_v49, %v1048_v25  ;;  %v6193_v25 = vld [vmem:[%s6720_s9 + $0x38] sm:$0xf] }
  0x92   : > { %v1057_v14 = vpack.c.b16 %v953_v9, %v1049_v26  ;;  %v6191_v9 = vld [vmem:[%s6720_s9 + $0x28] sm:$0xf]  ;;  %v1096_v0 = vunpack.c.l.b16 %v6193_v25  ;;  %v7098_v26 = vld [vmem:[%s6720_s9 + $0x2c] sm:$0x1] }
  0x93   : > { %v1062_v22 = vrot.slane %v1054_v23, 1 }
  0x94   : > { %1026 = vrot.lane.b32.xlu1 %v996_v52, %s6610_s30  ;;  %v1051_v52 = vpack.c.b16 %v10044_v13, %v1043_v19  ;;  %v6188_v19 = vld [vmem:[%s6720_s9 + $0x10] sm:$0xf]  ;;  %v1065_v4 = vrot.slane %v1057_v14, 1  ;;  %v6190_v13 = vld [vmem:[%s6720_s9 + $0x20] sm:$0xf] }
  0x95   : > { %1024 = vrot.lane.b32.xlu0 %v989_v34, %s6610_s30  ;;  %v1047_v34 = vunpack.c.l.b16 %v6160_v30  ;;  %v1091_v49 = vunpack.c.l.b16 %v6188_v19  ;;  %v1093_v41 = vunpack.c.l.b16 %v6190_v13  ;;  %v7103_v19 = vld [vmem:[%s6720_s9 + $0x24] sm:$0x1]  ;;  %v7111_v13 = vpack.c.b16 %v1096_v0, %v1096_v0 }
  0x96   : > { %v1059_v40 = vrot.slane %v1051_v52, 1  ;;  %v6189_v52 = vld [vmem:[%s6720_s9 + $0x18] sm:$0xf] }
  0x97   : > { %1028 = vrot.lane.b32.xlu2 %v1003_v31, %s6610_s30  ;;  %v1061_v31 = vrot.slane %v1053_v38, 1  ;;  %v1055_v60 = vpack.c.b16 %v10046_v28, %v1047_v34  ;;  %v7058_v30 = vpack.c.b16 %v1091_v49, %v1091_v49  ;;  %v1092_v48 = vunpack.c.l.b16 %v6189_v52  ;;  %v7068_v38 = vld [vmem:[%s6720_s9 + $0xc] sm:$0x1]  ;;  %10053 = vst [vmem:[#allocation35_spill] sm:$0xff] %v7111_v13 }
  0x98   : > { %v7072_v34 = vpack.c.b16 %v1093_v41, %v1093_v41  ;;  %v9891_v28 = vunpack.c.l.b16 %v7068_v38 }
  0x99   : > { %v1063_v50 = vrot.slane %v1055_v60, 1  ;;  %10049 = vst [vmem:[#allocation31_spill] sm:$0xff] %v7058_v30  ;;  %v7078_v17 = vpack.c.b16 %v1092_v48, %v1092_v48  ;;  %v6192_v60 = vld [vmem:[%s6720_s9 + $0x30] sm:$0xf] }
  0x9a   : > { %10050 = vst [vmem:[#allocation32_spill] sm:$0xff] %v7072_v34  ;;  %v1138_v57 = vpack.c.b16 %v9891_v28, %v1090_v45  ;;  %v9902_v28 = vunpack.c.l.b16 %v7103_v19 }
  0x9b   : > { %10051 = vst [vmem:[#allocation33_spill] sm:$0xff] %v7078_v17 }
  0x9c   : > { %1032 = vrot.lane.b32.xlu1 %v1017_v24, %s6610_s30  ;;  %v1141_v56 = vpack.c.b16 %v9902_v28, %v1093_v41  ;;  %v9908_v41 = vunpack.c.l.b16 %v7134_v58 }
  0x9d   : > { %1030 = vrot.lane.b32.xlu0 %v1010_v63, %s6610_s30  ;;  %v1064_v63 = vrot.slane %v1056_v15, 1  ;;  %v1139_v15 = vpack.c.b16 %v9890_v20, %v1091_v49  ;;  %v1149_v20 = vshll.u32 %v1138_v57, 16 }
  0x9e   : > { %v1170_v47 = vshll.u32 %v1141_v56, 16 }
  0x9f   : > { %1066 = vrot.lane.b32.xlu2 %v1058_v61, %s6611_s10  ;;  %v7052_v61 = vpack.c.b16 %v1090_v45, %v1090_v45  ;;  %v1156_v52 = vshll.u32 %v1139_v15, 16 }
  0xa1   : > { %10048 = vst [vmem:[#allocation30_spill] sm:$0xff] %v7052_v61  ;;  %v1158_v45 = vrot.slane %v1156_v52, 1 }
  0xa4   : > { %1070 = vrot.lane.b32.xlu1 %v1060_v36, %s6611_s10  ;;  %v1094_v36 = vunpack.c.l.b16 %v6191_v9  ;;  %v7115_v9 = vld [vmem:[%s6720_s9 + $0x34] sm:$0x1] }
  0xa5   : > { %1068 = vrot.lane.b32.xlu0 %v1059_v40, %s6611_s10  ;;  %v7076_v40 = vld [vmem:[%s6720_s9 + $0x1c] sm:$0x1] }
  0xa6   : > { %v7085_v54 = vpack.c.b16 %v1094_v36, %v1094_v36  ;;  %v9893_v23 = vunpack.c.l.b16 %v7076_v40 }
  0xa7   : > { %1072 = vrot.lane.b32.xlu2 %v1061_v31, %s6611_s10 }
  0xa8   : > { %10052 = vst [vmem:[#allocation34_spill] sm:$0xff] %v7085_v54 }
  0xa9   : > { %v7043_v24 = vpop.permute.xlu2 %842 }
  0xac   : > { %1076 = vrot.lane.b32.xlu1 %v1063_v50, %s6611_s10  ;;  %v6194_v50 = vld [vmem:[%s6720_s9 + $0x40] sm:$0xf] }
  0xad   : > { %1074 = vrot.lane.b32.xlu0 %v1062_v22, %s6611_s10  ;;  %v1095_v22 = vunpack.c.l.b16 %v6192_v60  ;;  %v1097_v49 = vunpack.c.l.b16 %v6194_v50 }
  0xaf   : > { %1078 = vrot.lane.b32.xlu2 %v1064_v63, %s6611_s10  ;;  %v7117_v25 = vpack.c.b16 %v1095_v22, %v1095_v22  ;;  %v7122_v50 = vpack.c.b16 %v1097_v49, %v1097_v49 }
  0xb1   : > { %v7054_v27 = vpop.permute.xlu2 %844  ;;  %10054 = vst [vmem:[#allocation36_spill] sm:$0xff] %v7117_v25 }
  0xb2   : > { %10055 = vst [vmem:[#allocation37_spill] sm:$0xff] %v7122_v50 }
  0xb4   : > { %1106 = vrot.lane.b32.xlu1 %v7052_v61, %s6612_s11  ;;  %v1151_v61 = vrot.slane %v1149_v20, 1 }
  0xb5   : > { %1080 = vrot.lane.b32.xlu0 %v1065_v4, %s6611_s10  ;;  %v1140_v4 = vpack.c.b16 %v9893_v23, %v1092_v48  ;;  %v1154_v23 = vshrl.u32 %v1139_v15, 16  ;;  %v7139_v48 = vld [vmem:[%s6720_s9 + $0x3c] sm:$0x1]  ;;  %v10057_v15 = vunpack.c.l.b16 %v7115_v9 }
  0xb6   : > { %v9909_v2 = vunpack.c.l.b16 %v7139_v48 }
  0xb7   : > { %1108 = vrot.lane.b32.xlu2 %v7058_v30, %s6612_s11  ;;  %v1147_v30 = vshrl.u32 %v1138_v57, 16  ;;  %v1143_v57 = vpack.c.b16 %v10057_v15, %v1095_v22  ;;  %v7147_v20 = vor.u32 %v1158_v45, %v1154_v23  ;;  %v1145_v22 = vpack.c.b16 %v9908_v41, %v1097_v49 }
  0xb9   : > { %v7080_v31 = vpop.permute.xlu2 %882  ;;  %10058 = vst [vmem:[#allocation38_spill] sm:$0xff] %v7147_v20  ;;  %v7150_v28 = vor.u32 %v1151_v61, %v1147_v30  ;;  %v1168_v61 = vshrl.u32 %v1141_v56, 16  ;;  %v1172_v30 = vrot.slane %v1170_v47, 1  ;;  %v1198_v49 = vshll.u32 %v1145_v22, 16 }
  0xbb   : > { %10059 = vst [vmem:[#allocation39_spill] sm:$0xff] %v7150_v28  ;;  %v7174_v56 = vor.u32 %v1172_v30, %v1168_v61  ;;  %v6204_v30 = vld [vmem:[%s6720_s9 + $0x10] sm:$0xe] }
  0xbc   : > { %1112 = vrot.lane.b32.xlu1 %v7072_v34, %s6612_s11  ;;  %v10056_v34 = vunpack.c.l.b16 %v7098_v26 }
  0xbd   : > { %1110 = vrot.lane.b32.xlu0 %v7078_v17, %s6612_s11  ;;  %10062 = vst [vmem:[#allocation42_spill] sm:$0xff] %v7174_v56 }
  0xbe   : > { %v7100_v63 = vpop.permute.xlu1 %838  ;;  %v1142_v17 = vpack.c.b16 %v10056_v34, %v1094_v36  ;;  %v1161_v36 = vshrl.u32 %v1140_v4, 16 }
  0xbf   : > { %v7105_v14 = vpop.permute.xlu0 %834  ;;  %1114 = vrot.lane.b32.xlu2 %v7085_v54, %s6612_s11  ;;  %v1163_v54 = vshll.u32 %v1140_v4, 16  ;;  %v1144_v4 = vpack.c.b16 %v9909_v2, %v1096_v0 }
  0xc0   : > { %v1177_v52 = vshll.u32 %v1142_v17, 16  ;;  %v1269_v53 = vsel %vm1266_vm3, %v6762_v5, %v7105_v14 }
  0xc1   : > { %v7119_v60 = vpop.permute.xlu2 %888  ;;  %v1165_v34 = vrot.slane %v1163_v54, 1  ;;  %v1175_v54 = vshrl.u32 %v1142_v17, 16  ;;  %v1182_v17 = vshrl.u32 %v1143_v57, 16  ;;  %v1191_v0 = vshll.u32 %v1144_v4, 16 }
  0xc2   : > { %v1179_v23 = vrot.slane %v1177_v52, 1  ;;  %v6203_v52 = vld [vmem:[%s6720_s9 + $0x8] sm:$0xe]  ;;  %v1293_v8 = vsel %vm1291_vm4, %v1269_v53, %v7080_v31 }
  0xc3   : > { %v7155_v10 = vor.u32 %v1165_v34, %v1161_v36  ;;  %v1226_v2 = vunpack.c.l.b16 %v6203_v52 }
  0xc4   : > { %1118 = vrot.lane.b32.xlu1 %v7111_v13, %s6612_s11  ;;  %v7171_v15 = vor.u32 %v1179_v23, %v1175_v54  ;;  %v1193_v54 = vrot.slane %v1191_v0, 1  ;;  %v6205_v23 = vld [vmem:[%s6720_s9 + $0x18] sm:$0xe]  ;;  %v1227_v0 = vunpack.c.l.b16 %v6204_v30 }
  0xc5   : > { %1116 = vrot.lane.b32.xlu0 %v7117_v25, %s6612_s11  ;;  %10060 = vst [vmem:[#allocation40_spill] sm:$0xff] %v7155_v10 }
  0xc6   : > { %v7136_v37 = vpop.permute.xlu1 %840  ;;  %10061 = vst [vmem:[#allocation41_spill] sm:$0xff] %v7171_v15 }
  0xc7   : > { %v7141_v13 = vpop.permute.xlu0 %836  ;;  %1120 = vrot.lane.b32.xlu2 %v7122_v50, %s6612_s11  ;;  %v1184_v50 = vshll.u32 %v1143_v57, 16  ;;  %v1196_v57 = vshrl.u32 %v1145_v22, 16 }
  0xc8   : > { %v1272_v62 = vsel %vm1266_vm3, %v6781_v12, %v7141_v13 }
  0xc9   : > { %v7152_v25 = vpop.permute.xlu2 %894  ;;  %v1186_v34 = vrot.slane %v1184_v50, 1  ;;  %v1189_v50 = vshrl.u32 %v1144_v4, 16  ;;  %v6206_v4 = vld [vmem:[%s6720_s9 + $0x20] sm:$0xe] }
  0xcb   : > { %v7178_v41 = vor.u32 %v1186_v34, %v1182_v17  ;;  %v10065_v17 = vunpack.c.l.b16 %v7068_v38  ;;  %v7199_v52 = vor.u32 %v1193_v54, %v1189_v50  ;;  %v10070_v38 = vunpack.c.l.b16 %v7076_v40  ;;  %v6208_v50 = vld [vmem:[%s6720_s9 + $0x30] sm:$0xe] }
  0xcc   : > { %1204 = vrot.lane.b32.xlu1 %v7147_v20, %s6613_s18  ;;  %v1229_v20 = vunpack.c.l.b16 %v6206_v4  ;;  %v10074_v40 = vunpack.c.l.b16 %v7103_v19  ;;  %v6209_v4 = vld [vmem:[%s6720_s9 + $0x38] sm:$0xe] }
  0xcd   : > { %1202 = vrot.lane.b32.xlu0 %v7150_v28, %s6613_s18  ;;  %10064 = vst [vmem:[#allocation44_spill] sm:$0xff] %v7178_v41  ;;  %v7194_v22 = vpack.c.b16 %v10065_v17, %v1226_v2 }
  0xce   : > { %v7165_v45 = vpop.permute.xlu1 %848  ;;  %10068 = vst [vmem:[#allocation47_spill] sm:$0xff] %v7199_v52  ;;  %v7227_v17 = vpack.c.b16 %v10074_v40, %v1229_v20  ;;  %v10079_v20 = vunpack.c.l.b16 %v7098_v26  ;;  %v6210_v40 = vld [vmem:[%s6720_s9 + $0x40] sm:$0xe] }
  0xcf   : > { %v7167_v36 = vpop.permute.xlu0 %846  ;;  %1206 = vrot.lane.b32.xlu2 %v7155_v10, %s6613_s18  ;;  %v1200_v10 = vrot.slane %v1198_v49, 1  ;;  %10066 = vst [vmem:[#allocation45_spill] sm:$0xff] %v7194_v22  ;;  %v1228_v49 = vunpack.c.l.b16 %v6205_v23  ;;  %v6207_v23 = vld [vmem:[%s6720_s9 + $0x28] sm:$0xe]  ;;  %v1233_v26 = vunpack.c.l.b16 %v6210_v40 }
  0xd0   : > { %10075 = vst [vmem:[#allocation51_spill] sm:$0xff] %v7227_v17 }
  0xd1   : > { %v7176_v47 = vpop.permute.xlu2 %924  ;;  %v7196_v34 = vor.u32 %v1200_v10, %v1196_v57  ;;  %v7208_v2 = vpack.c.b16 %v10070_v38, %v1228_v49  ;;  %v10072_v10 = vunpack.c.l.b16 %v7065_v51  ;;  %v1231_v49 = vunpack.c.l.b16 %v6208_v50 }
  0xd2   : > { %10063 = vst [vmem:[#allocation43_spill] sm:$0xff] %v7176_v47  ;;  %v1230_v38 = vunpack.c.l.b16 %v6207_v23 }
  0xd3   : > { %10067 = vst [vmem:[#allocation46_spill] sm:$0xff] %v7196_v34  ;;  %v7214_v57 = vpack.c.b16 %v10072_v10, %v1227_v0  ;;  %v9918_v51 = vrot.slane %v7208_v2, 1  ;;  %v9919_v10 = vrot.slane %v7227_v17, 1 }
  0xd4   : > { %1210 = vrot.lane.b32.xlu1 %v7171_v15, %s6613_s18  ;;  %10071 = vst [vmem:[#allocation49_spill] sm:$0xff] %v7208_v2  ;;  %v7247_v50 = vpack.c.b16 %v10079_v20, %v1230_v38  ;;  %v10084_v20 = vunpack.c.l.b16 %v7134_v58 }
  0xd5   : > { %1208 = vrot.lane.b32.xlu0 %v7174_v56, %s6613_s18  ;;  %v9916_v56 = vrot.slane %v7194_v22, 1  ;;  %10073 = vst [vmem:[#allocation50_spill] sm:$0xff] %v7214_v57  ;;  %v9922_v0 = vrot.slane %v7214_v57, 1 }
  0xd6   : > { %v7185_v61 = vpop.permute.xlu1 %886  ;;  %10080 = vst [vmem:[#allocation54_spill] sm:$0xff] %v7247_v50 }
  0xd7   : > { %v7188_v28 = vpop.permute.xlu0 %884  ;;  %1212 = vrot.lane.b32.xlu2 %v7178_v41, %s6613_s18 }
  0xd8   : > { %v1295_v5 = vsel %vm1291_vm4, %v1272_v62, %v7188_v28 }
  0xd9   : > { %v7201_v15 = vpop.permute.xlu2 %930  ;;  %v1312_v53 = vsel %vm1308_vm5, %v1295_v5, %v7176_v47 }
  0xda   : > { %10069 = vst [vmem:[#allocation48_spill] sm:$0xff] %v7201_v15 }
  0xdc   : > { %1216 = vrot.lane.b32.xlu1 %v7196_v34, %s6613_s18 }
  0xdd   : > { %1214 = vrot.lane.b32.xlu0 %v7199_v52, %s6613_s18  ;;  %v1232_v52 = vunpack.c.l.b16 %v6209_v4 }
  0xde   : > { %v7217_v54 = vpop.permute.xlu1 %892 }
  0xdf   : > { %v7220_v30 = vpop.permute.xlu0 %890  ;;  %1250 = vrot.lane.b32.xlu2 %v9916_v56, %s6614_s21  ;;  %v10076_v56 = vunpack.c.l.b16 %v7115_v9  ;;  %v10082_v9 = vunpack.c.l.b16 %v7139_v48  ;;  %v7272_v48 = vpack.c.b16 %v10084_v20, %v1233_v26 }
  0xe1   : > { %v7238_v34 = vpack.c.b16 %v10076_v56, %v1231_v49  ;;  %v7243_v19 = vpop.permute.xlu2 %936  ;;  %v7259_v56 = vpack.c.b16 %v10082_v9, %v1232_v52  ;;  %10085 = vst [vmem:[#allocation57_spill] sm:$0xff] %v7272_v48  ;;  %v9927_v40 = vrot.slane %v7272_v48, 1 }
  0xe2   : > { %10078 = vst [vmem:[#allocation53_spill] sm:$0xff] %v7243_v19 }
  0xe3   : > { %10077 = vst [vmem:[#allocation52_spill] sm:$0xff] %v7238_v34  ;;  %v9921_v49 = vrot.slane %v7238_v34, 1  ;;  %v9924_v38 = vrot.slane %v7259_v56, 1 }
  0xe4   : > { %1254 = vrot.lane.b32.xlu1 %v9918_v51, %s6614_s21  ;;  %10083 = vst [vmem:[#allocation56_spill] sm:$0xff] %v7259_v56  ;;  %v9920_v51 = vrot.slane %v7247_v50, 1 }
  0xe5   : > { %1252 = vrot.lane.b32.xlu0 %v9922_v0, %s6614_s21 }
  0xe6   : > { %v7249_v23 = vpop.permute.xlu1 %922 }
  0xe7   : > { %10081 = vst [vmem:[#allocation55_spill] sm:$0xff] %v7249_v23  ;;  %v7252_v4 = vpop.permute.xlu0 %896  ;;  %1256 = vrot.lane.b32.xlu2 %v9919_v10, %s6614_s21  ;;  %v1310_v16 = vsel %vm1308_vm5, %v1293_v8, %v7249_v23 }
  0xe9   : > { %v7278_v10 = vpop.permute.xlu2 %1022 }
  0xea   : > { %10088 = vst [vmem:[#allocation60_spill] sm:$0xff] %v7278_v10 }
  0xec   : > { %1260 = vrot.lane.b32.xlu1 %v9921_v49, %s6614_s21 }
  0xed   : > { %1258 = vrot.lane.b32.xlu0 %v9920_v51, %s6614_s21 }
  0xee   : > { %v7274_v52 = vpop.permute.xlu1 %928 }
  0xef   : > { %10086 = vst [vmem:[#allocation58_spill] sm:$0xff] %v7274_v52  ;;  %v7276_v9 = vpop.permute.xlu0 %926  ;;  %1262 = vrot.lane.b32.xlu2 %v9924_v38, %s6614_s21 }
  0xf0   : > { %10087 = vst [vmem:[#allocation59_spill] sm:$0xff] %v7276_v9 }
  0xf1   : > { %v7291_v26 = vpop.permute.xlu2 %1028 }
  0xf2   : > { %10091 = vst [vmem:[#allocation63_spill] sm:$0xff] %v7291_v26 }
  0xf5   : > { %1264 = vrot.lane.b32.xlu0 %v9927_v40, %s6614_s21 }
  0xf6   : > { %v7287_v51 = vpop.permute.xlu1 %934 }
  0xf7   : > { %10089 = vst [vmem:[#allocation61_spill] sm:$0xff] %v7287_v51  ;;  %v7289_v58 = vpop.permute.xlu0 %932 }
  0xf8   : > { %10090 = vst [vmem:[#allocation62_spill] sm:$0xff] %v7289_v58 }
  0xf9   : > { %v7297_v0 = vpop.permute.xlu2 %1066 }
  0xfa   : > { %10094 = vst [vmem:[#allocation66_spill] sm:$0xff] %v7297_v0 }
  0xfe   : > { %v7293_v20 = vpop.permute.xlu1 %1020 }
  0xff   : > { %10092 = vst [vmem:[#allocation64_spill] sm:$0xff] %v7293_v20  ;;  %v7295_v49 = vpop.permute.xlu0 %1018  ;;  %v1329_v8 = vsel %vm1325_vm6, %v1312_v53, %v7293_v20 }
 0x100   : > { %10093 = vst [vmem:[#allocation65_spill] sm:$0xff] %v7295_v49  ;;  %v1327_v14 = vsel %vm1325_vm6, %v1310_v16, %v7295_v49 }
 0x101   : > { %v7303_v41 = vpop.permute.xlu2 %1072  ;;  %v1344_v12 = vsel %vm1342_vm7, %v1327_v14, %v7297_v0  ;;  %v1275_v14 = vsel %vm1266_vm3, %v6752_v1, %v7100_v63 }
 0x102   : > { %10097 = vst [vmem:[#allocation69_spill] sm:$0xff] %v7303_v41 }
 0x106   : > { %v7299_v56 = vpop.permute.xlu1 %1026 }
 0x107   : > { %10095 = vst [vmem:[#allocation67_spill] sm:$0xff] %v7299_v56  ;;  %v7301_v38 = vpop.permute.xlu0 %1024 }
 0x108   : > { %10096 = vst [vmem:[#allocation68_spill] sm:$0xff] %v7301_v38 }
 0x109   : > { %v7311_v34 = vpop.permute.xlu2 %1078 }
 0x10a   : > { %10101 = vst [vmem:[#allocation73_spill] sm:$0xff] %v7311_v34 }
 0x10e   : > { %v7305_v48 = vpop.permute.xlu1 %1032 }
 0x10f   : > { %10098 = vst [vmem:[#allocation70_spill] sm:$0xff] %v7305_v48  ;;  %v7307_v40 = vpop.permute.xlu0 %1030 }
 0x110   : > { %10099 = vst [vmem:[#allocation71_spill] sm:$0xff] %v7307_v40 }
 0x111   : > { %v1109_v57 = vpop.permute.xlu2 %1108 }
 0x116   : > { %v7309_v50 = vpop.permute.xlu1 %1070 }
 0x117   : > { %10100 = vst [vmem:[#allocation72_spill] sm:$0xff] %v7309_v50  ;;  %v7313_v2 = vpop.permute.xlu0 %1068 }
 0x118   : > { %10102 = vst [vmem:[#allocation74_spill] sm:$0xff] %v7313_v2  ;;  %v1346_v28 = vsel %vm1342_vm7, %v1329_v8, %v7313_v2 }
 0x119   : > { %v7328_v43 = vpop.permute.xlu2 %1114  ;;  %v1363_v62 = vsel %vm1359_vm8, %v1346_v28, %v1109_v57  ;;  %v1297_v57 = vsel %vm1291_vm4, %v1275_v14, %v7185_v61 }
 0x11a   : > { %v1314_v1 = vsel %vm1308_vm5, %v1297_v57, %v7276_v9 }
 0x11e   : > { %v7315_v17 = vpop.permute.xlu1 %1076 }
 0x11f   : > { %10103 = vst [vmem:[#allocation75_spill] sm:$0xff] %v7315_v17  ;;  %v7317_v22 = vpop.permute.xlu0 %1074 }
 0x120   : > { %10104 = vst [vmem:[#allocation76_spill] sm:$0xff] %v7317_v22 }
 0x121   : > { %v7338_v32 = vpop.permute.xlu2 %1120 }
 0x126   : > { %v1107_v6 = vpop.permute.xlu1 %1106 }
 0x127   : > { %v7322_v55 = vpop.permute.xlu0 %1080  ;;  %v1361_v31 = vsel %vm1359_vm8, %v1344_v12, %v1107_v6 }
 0x128   : > { %10105 = vst [vmem:[#allocation77_spill] sm:$0xff] %v7322_v55 }
 0x129   : > { %v1207_v46 = vpop.permute.xlu2 %1206 }
 0x12e   : > { %v7330_v59 = vpop.permute.xlu1 %1112 }
 0x12f   : > { %v1111_v44 = vpop.permute.xlu0 %1110 }
 0x131   : > { %v7350_v29 = vpop.permute.xlu2 %1212 }
 0x136   : > { %v7345_v35 = vpop.permute.xlu1 %1118 }
 0x137   : > { %v7340_v39 = vpop.permute.xlu0 %1116  ;;  %10106 = vst [vmem:[#allocation78_spill] sm:$0xff] %v7345_v35 }
 0x139   : > { %v1251_v13 = vpop.permute.xlu2 %1250 }
 0x13e   : > { %v1205_v21 = vpop.permute.xlu1 %1204 }
 0x13f   : > { %v1203_v11 = vpop.permute.xlu0 %1202  ;;  %v1380_v53 = vsel %vm1376_vm9, %v1363_v62, %v1205_v21 }
 0x140   : > { %v1378_v16 = vsel %vm1376_vm9, %v1361_v31, %v1203_v11  ;;  %v1278_v11 = vsel %vm1266_vm3, %v6768_v7, %v7136_v37  ;;  %v1331_v7 = vsel %vm1325_vm6, %v1314_v1, %v7278_v10 }
 0x141   : > { %v1395_v5 = vsel %vm1393_vm10, %v1378_v16, %v1251_v13  ;;  %v1299_v21 = vsel %vm1291_vm4, %v1278_v11, %v7119_v60  ;;  %v1348_v61 = vsel %vm1342_vm7, %v1331_v7, %v7309_v50 }
 0x142   : > { %v1427_v8 = vunpack.c.l.b16 %v1395_v5  ;;  %v1316_v28 = vsel %vm1308_vm5, %v1299_v21, %v7274_v52  ;;  %v1365_v16 = vsel %vm1359_vm8, %v1348_v61, %v1111_v44  ;;  %v1281_v44 = vsel %vm1266_vm3, %v6795_v18, %v7043_v24 }
 0x143   : > { %v1333_v37 = vsel %vm1325_vm6, %v1316_v28, %v7301_v38  ;;  %v1382_v5 = vsel %vm1376_vm9, %v1365_v16, %v1207_v46  ;;  %v6615_v24 = vmov 0  }
 0x144   : > { %v1350_v13 = vsel %vm1342_vm7, %v1333_v37, %v7303_v41  ;;  %1537 = vst.msk [vmem:[#allocation2] sm:$0xf] %vm1536_vm12, %v6615_v24  ;;  %v10107_v37 = vmov 0 }
 0x145   : > { %v1367_v62 = vsel %vm1359_vm8, %v1350_v13, %v7330_v59  ;;  %v1301_v59 = vsel %vm1291_vm4, %v1281_v44, %v7220_v30  ;;  %1539 = vst.msk [vmem:[#allocation2 + $0x4] sm:$0x1] %vm1538_vm13, %v6615_v24  ;;  %v10108_v37 = vsel %vm7454_vm0, 4294967295, %v10107_v37 }
 0x146   : > { %v7359_v3 = vpop.permute.xlu1 %1210  ;;  %v1318_v1 = vsel %vm1308_vm5, %v1301_v59, %v7201_v15  ;;  %5698 = vst.msk [vmem:[%s6725_s22] sm:$0xf] %vm1536_vm12, %v6615_v24  ;;  %v517_v59 = vld [vmem:[%s6703_s17 + $0x8] sm:$0xf] }
 0x147   : > { %v1209_v33 = vpop.permute.xlu0 %1208  ;;  %5699 = vst.msk [vmem:[%s6725_s22 + $0x4] sm:$0x1] %vm1538_vm13, %v6615_v24 }
 0x148   : > { %v1384_v14 = vsel %vm1376_vm9, %v1367_v62, %v1209_v33  ;;  %6395 = vst.msk [vmem:[%s6725_s22 + $0x48] sm:$0xf] %vm1536_vm12, %v6615_v24 }
 0x149   : > { %10109 = vst [vmem:[#allocation79_spill] sm:$0xff] %v10108_v37 }
 0x14a   : > { %6396 = vst.msk [vmem:[%s6725_s22 + $0x4c] sm:$0x1] %vm1538_vm13, %v6615_v24 }
 0x14b   : > { %1541 = vst.msk [vmem:[#allocation2 + $0x48] sm:$0xf] %vm1536_vm12, %v6615_v24  ;;  %v1546_v13 = vld [vmem:[#allocation2] sm:$0x1] }
 0x14c   : > { %1542 = vst.msk [vmem:[#allocation2 + $0x4c] sm:$0x1] %vm1538_vm13, %v6615_v24  ;;  %v1578_v62 = vld [vmem:[#allocation2 + $0x4] sm:$0x1] }
 0x14e   : > { %v7383_v0 = vpop.permute.xlu1 %1216 }
 0x14f   : > { %v7365_v35 = vpop.permute.xlu0 %1214 }
 0x156   : > { %v1255_v60 = vpop.permute.xlu1 %1254 }
 0x157   : > { %v1253_v6 = vpop.permute.xlu0 %1252 }
 0x158   : > { %v1397_v12 = vsel %vm1393_vm10, %v1380_v53, %v1253_v6  ;;  %v1257_v53 = vpop.permute.xlu2 %1256  ;;  %v1399_v6 = vsel %vm1393_vm10, %v1382_v5, %v1255_v60  ;;  %v1547_v60 = vsel %vm7454_vm0, 0, %v1546_v13  ;;  %v6542_v5 = vld [vmem:[%s6703_s17 + $0x38] sm:$0xf] }
 0x159   : > { %v1428_v31 = vunpack.c.l.b16 %v1397_v12  ;;  %v1401_v12 = vsel %vm1393_vm10, %v1384_v14, %v1257_v53  ;;  %v1429_v11 = vunpack.c.l.b16 %v1399_v6  ;;  %v1287_v14 = vsel %vm1266_vm3, %v6542_v5, %v7167_v36  ;;  %1548 = vst [vmem:[#allocation2] sm:$0x1] %v1547_v60  ;;  %v5730_v36 = vld [vmem:[%s6725_s22 + $0x48] sm:$0x1] }
 0x15b   : > { %v1435_v63 = vpack.c.b16 %v1428_v31, %v1427_v8  ;;  %v1284_v8 = vsel %vm1266_vm3, %v6828_v42, %v7054_v27  ;;  %v1430_v31 = vunpack.c.l.b16 %v1401_v12  ;;  %v1335_v42 = vsel %vm1325_vm6, %v1318_v1, %v7299_v56  ;;  %v5703_v12 = vld [vmem:[%s6725_s22] sm:$0x1]  ;;  %v5760_v1 = vld [vmem:[%s6725_s22 + $0x4c] sm:$0x1] }
 0x15c   : > { %v1303_v46 = vsel %vm1291_vm4, %v1284_v8, %v7217_v54  ;;  %v1352_v54 = vsel %vm1342_vm7, %v1335_v42, %v7317_v22  ;;  %v5704_v44 = vsel %vm7454_vm0, 0, %v5703_v12  ;;  %v5733_v8 = vld [vmem:[%s6725_s22 + $0x4] sm:$0x1] }
 0x15d   : > { %6251 = vmatmul.msk.bf16.vlgmr.msra.gmra.mxu0 %vm10014_vm11, %v1435_v63  ;;  %v1320_v33 = vsel %vm1308_vm5, %v1303_v46, %v7289_v58  ;;  %v1436_v57 = vpack.c.b16 %v1430_v31, %v1429_v11  ;;  %v1369_v28 = vsel %vm1359_vm8, %v1352_v54, %v7328_v43  ;;  %v1763_v31 = vld [vmem:[#allocation2] sm:$0xe]  ;;  %5705 = vst [vmem:[%s6725_s22] sm:$0x1] %v5704_v44  ;;  %v5734_v46 = vsel %vm7464_vm1, 0, %v5733_v8  ;;  %v1573_v54 = vld [vmem:[#allocation2 + $0x48] sm:$0x1] }
 0x15e   : > { %v1337_v18 = vsel %vm1325_vm6, %v1320_v33, %v7291_v26  ;;  %v1261_v63 = vpop.permute.xlu1 %1260  ;;  %v7492_v33 = vld [vmem:[%s6703_s17 + $0xc] sm:$0x1]  ;;  %5735 = vst [vmem:[%s6725_s22 + $0x4] sm:$0x1] %v5734_v46 }
 0x15f   : > { %v1354_v27 = vsel %vm1342_vm7, %v1337_v18, %v7315_v17  ;;  %v1259_v21 = vpop.permute.xlu0 %1258 }
 0x160   : > { %v1371_v30 = vsel %vm1359_vm8, %v1354_v27, %v7340_v39  ;;  %v1386_v39 = vsel %vm1376_vm9, %v1369_v28, %v7359_v3  ;;  %v6541_v3 = vld [vmem:[%s6703_s17 + $0x40] sm:$0xf]  ;;  %v5761_v27 = vsel %vm7464_vm1, 0, %v5760_v1 }
 0x161   : > { %v1388_v7 = vsel %vm1376_vm9, %v1371_v30, %v7350_v29  ;;  %v1403_v43 = vsel %vm1393_vm10, %v1386_v39, %v1259_v21  ;;  %v10110_v29 = vmov 0  ;;  %v1290_v16 = vsel %vm1266_vm3, %v6541_v3, %v7165_v45  ;;  %5762 = vst [vmem:[%s6725_s22 + $0x4c] sm:$0x1] %v5761_v27  ;;  %v516_v28 = vld [vmem:[%s6703_s17] sm:$0xf] }
 0x162   : > { %v1405_v61 = vsel %vm1393_vm10, %v1388_v7, %v1261_v63  ;;  %v10111_v29 = vsel %vm7464_vm1, 4294967295, %v10110_v29  ;;  %v1431_v6 = vunpack.c.l.b16 %v1403_v43  ;;  %v1579_v45 = vsel %vm7464_vm1, 0, %v1578_v62  ;;  %v7519_v7 = vld [vmem:[%s6703_s17 + $0x4] sm:$0x1]  ;;  %v6543_v50 = vld [vmem:[#allocation2] sm:$0xf] }
 0x163   : > { %10112 = vst [vmem:[#allocation80_spill] sm:$0xff] %v10111_v29  ;;  %v1432_v53 = vunpack.c.l.b16 %v1405_v61  ;;  %v1307_v11 = vsel %vm1291_vm4, %v1290_v16, %v7252_v4  ;;  %v5731_v4 = vsel %vm7454_vm0, 0, %v5730_v36  ;;  %v1574_v63 = vsel %vm7454_vm0, 0, %v1573_v54  ;;  %v1747_v61 = vld [vmem:[#allocation2] sm:$0xf]  ;;  %v1263_v36 = vpop.permute.xlu2 %1262 }
 0x164   : > { %1580 = vst [vmem:[#allocation2 + $0x4] sm:$0x1] %v1579_v45  ;;  %v1324_v18 = vsel %vm1308_vm5, %v1307_v11, %v7243_v19  ;;  %v1940_v39 = vunpack.c.l.b16 %v1763_v31  ;;  %v2726_v43 = vunpack.c.l.b16 %v517_v59  ;;  %v2727_v3 = vunpack.c.l.b16 %v7492_v33  ;;  %v1605_v16 = vld [vmem:[#allocation2 + $0x4c] sm:$0x1]  ;;  %v10113_v11 = vld [vmem:[#allocation78_spill] sm:$0xff] }
 0x165   : > { %v1437_v24 = vpack.c.b16 %v1432_v53, %v1431_v6  ;;  %5732 = vst [vmem:[%s6725_s22 + $0x48] sm:$0x1] %v5731_v4  ;;  %v1836_v62 = vunpack.c.l.b16 %v1747_v61  ;;  %v1606_v5 = vsel %vm7464_vm1, 0, %v1605_v16  ;;  %v2724_v45 = vunpack.c.l.b16 %v516_v28  ;;  %v7539_v4 = vld [vmem:[%s6703_s17 + $0x24] sm:$0x1] }
 0x166   : > { %1575 = vst [vmem:[#allocation2 + $0x48] sm:$0x1] %v1574_v63  ;;  %v2725_v12 = vunpack.c.l.b16 %v7519_v7  ;;  %v2741_v59 = vpack.c.b16 %v2727_v3, %v2726_v43  ;;  %v7548_v63 = vld [vmem:[%s6703_s17 + $0x1c] sm:$0x1]  ;;  %v518_v61 = vld [vmem:[%s6703_s17 + $0x10] sm:$0xf] }
 0x167   : > { %v1265_v53 = vpop.permute.xlu0 %1264  ;;  %1607 = vst [vmem:[#allocation2 + $0x4c] sm:$0x1] %v1606_v5  ;;  %v7553_v43 = vld [vmem:[%s6703_s17 + $0x14] sm:$0x1] }
 0x16b   : > { %v1755_v60 = vld [vmem:[#allocation2 + $0x4] sm:$0x1] }
 0x16c   : > { %v1837_v6 = vunpack.c.l.b16 %v1755_v60  ;;  %v2728_v60 = vunpack.c.l.b16 %v518_v61 }
 0x16d   : > { %6252 = vmatmul.msk.bf16.gmra.mxu0 %vm10014_vm11, %v1436_v57  ;;  %v1305_v57 = vsel %vm1291_vm4, %v1287_v14, %v7152_v25  ;;  %v1341_v25 = vsel %vm1325_vm6, %v1324_v18, %v7305_v48 }
 0x16e   : > { %v1322_v42 = vsel %vm1308_vm5, %v1305_v57, %v7287_v51  ;;  %v1358_v21 = vsel %vm1342_vm7, %v1341_v25, %v7322_v55  ;;  %v1948_v46 = vpack.c.b16 %v1837_v6, %v1940_v39  ;;  %v520_v57 = vld [vmem:[%s6703_s17 + $0x20] sm:$0xf]  ;;  %v9957_v25 = vunpack.c.l.b16 %v7539_v4 }
 0x16f   : > { %v1339_v30 = vsel %vm1325_vm6, %v1322_v42, %v7307_v40  ;;  %v1375_v14 = vsel %vm1359_vm8, %v1358_v21, %v7338_v32  ;;  %v1852_v32 = vpack.c.b16 %v1837_v6, %v1836_v62  ;;  %v2732_v54 = vunpack.c.l.b16 %v520_v57  ;;  %v7567_v57 = vld [vmem:[%s6703_s17 + $0x3c] sm:$0x1] }
 0x170   : > { %v1356_v13 = vsel %vm1342_vm7, %v1339_v30, %v7311_v34  ;;  %v1392_v8 = vsel %vm1376_vm9, %v1375_v14, %v7383_v0  ;;  %v1956_v18 = vrot.slane %v1948_v46, 1  ;;  %v519_v30 = vld [vmem:[%s6703_s17 + $0x18] sm:$0xf]  ;;  %v2758_v39 = vshll.u32 %v2741_v59, 16 }
 0x171   : > { %v1373_v44 = vsel %vm1359_vm8, %v1356_v13, %v10113_v11  ;;  %v1409_v1 = vsel %vm1393_vm10, %v1392_v8, %v1265_v53  ;;  %v1861_v0 = vshrl.u32 %v1852_v32, 16  ;;  %v1863_v42 = vshll.u32 %v1852_v32, 16  ;;  %v7555_v13 = vld [vmem:[#allocation2 + $0x4c] sm:$0x1]  ;;  %v523_v32 = vld [vmem:[%s6703_s17 + $0x38] sm:$0xf] }
 0x172   : > { %v1390_v31 = vsel %vm1376_vm9, %v1373_v44, %v7365_v35  ;;  %v2740_v35 = vpack.c.b16 %v2725_v12, %v2724_v45  ;;  %1964 = vrot.lane.b32.xlu0 %v1956_v18, %s6610_s30  ;;  %v1434_v16 = vunpack.c.l.b16 %v1409_v1  ;;  %v9958_v53 = vunpack.c.l.b16 %v7555_v13 }
 0x173   : > { %v1407_v27 = vsel %vm1393_vm10, %v1390_v31, %v1263_v36  ;;  %v1865_v21 = vrot.slane %v1863_v42, 1  ;;  %v2744_v6 = vpack.c.b16 %v9957_v25, %v2732_v54  ;;  %v2730_v45 = vunpack.c.l.b16 %v519_v30 }
 0x174   : > { %v1433_v62 = vunpack.c.l.b16 %v1407_v27  ;;  %v2751_v14 = vshll.u32 %v2740_v35, 16  ;;  %v2731_v11 = vunpack.c.l.b16 %v7548_v63  ;;  %v2729_v44 = vunpack.c.l.b16 %v7553_v43  ;;  %v522_v43 = vld [vmem:[%s6703_s17 + $0x30] sm:$0xf] }
 0x175   : > { %v1866_v5 = vor.u32 %v1865_v21, %v1861_v0  ;;  %v2756_v31 = vshrl.u32 %v2741_v59, 16  ;;  %v2760_v36 = vrot.slane %v2758_v39, 1  ;;  %v2749_v0 = vshrl.u32 %v2740_v35, 16  ;;  %v7576_v35 = vld [vmem:[%s6703_s17 + $0x34] sm:$0x1] }
 0x176   : > { %v1438_v1 = vpack.c.b16 %v1434_v16, %v1433_v62  ;;  %v2742_v18 = vpack.c.b16 %v2729_v44, %v2728_v60  ;;  %v2753_v42 = vrot.slane %v2751_v14, 1  ;;  %v2779_v54 = vshll.u32 %v2744_v6, 16 }
 0x177   : > { %1916 = vrot.lane.b32.xlu1 %v1866_v5, %s6608_s24  ;;  %v2743_v59 = vpack.c.b16 %v2731_v11, %v2730_v45  ;;  %v2738_v30 = vunpack.c.l.b16 %v523_v32  ;;  %v9956_v21 = vunpack.c.l.b16 %v7567_v57  ;;  %v2777_v62 = vshrl.u32 %v2744_v6, 16 }
 0x178   : > { %v2765_v61 = vshll.u32 %v2742_v18, 16  ;;  %v2754_v16 = vor.u32 %v2753_v42, %v2749_v0  ;;  %v2781_v5 = vrot.slane %v2779_v54, 1 }
 0x179   : > { %v2772_v14 = vshll.u32 %v2743_v59, 16  ;;  %v2747_v45 = vpack.c.b16 %v9956_v21, %v2738_v30 }
 0x17a   : > { %v2782_v32 = vor.u32 %v2781_v5, %v2777_v62 }
 0x17b   : > { %v2774_v6 = vrot.slane %v2772_v14, 1  ;;  %v2800_v0 = vshll.u32 %v2747_v45, 16  ;;  %v2798_v54 = vshrl.u32 %v2747_v45, 16 }
 0x17d   : > { %6253 = vmatmul.msk.bf16.gmra.mxu0 %vm10014_vm11, %v1437_v24  ;;  %v1803_v24 = vld [vmem:[#allocation2 + $0x48] sm:$0xf]  ;;  %v2802_v30 = vrot.slane %v2800_v0, 1 }
 0x17e   : > { %v2179_v28 = vunpack.c.l.b16 %v1803_v24 }
 0x180   : > { %v2187_v8 = vpack.c.b16 %v2179_v28, %v2179_v28  ;;  %v2227_v46 = vpack.c.b16 %v9958_v53, %v2179_v28  ;;  %v2761_v28 = vor.u32 %v2760_v36, %v2756_v31  ;;  %v9955_v31 = vunpack.c.l.b16 %v7576_v35 }
 0x181   : > { %v2763_v36 = vshrl.u32 %v2742_v18, 16  ;;  %v534_v18 = vld [vmem:[%s6703_s17 + $0x10] sm:$0xe] }
 0x182   : > { %v2278_v24 = vshrl.u32 %v2227_v46, 16  ;;  %v2280_v27 = vshll.u32 %v2227_v46, 16  ;;  %2202 = vrot.lane.b32.xlu0 %v2187_v8, %s6616_s8  ;;  %2806 = vrot.lane.b32.xlu1 %v2761_v28, %s6607_s0  ;;  %v2736_v8 = vunpack.c.l.b16 %v522_v43  ;;  %v2767_v46 = vrot.slane %v2765_v61, 1 }
 0x183   : > { %v2830_v43 = vunpack.c.l.b16 %v534_v18 }
 0x184   : > { %v2282_v39 = vrot.slane %v2280_v27, 1  ;;  %v2746_v42 = vpack.c.b16 %v9955_v31, %v2736_v8 }
 0x185   : > { %v2838_v62 = vpack.c.b16 %v2729_v44, %v2830_v43 }
 0x186   : > { %v2283_v60 = vor.u32 %v2282_v39, %v2278_v24  ;;  %v2768_v24 = vor.u32 %v2767_v46, %v2763_v36  ;;  %v2793_v28 = vshll.u32 %v2746_v42, 16  ;;  %v2791_v39 = vshrl.u32 %v2746_v42, 16  ;;  %v521_v36 = vld [vmem:[%s6703_s17 + $0x28] sm:$0xf]  ;;  %v7599_v46 = vld [vmem:[%s6703_s17 + $0x2c] sm:$0x1] }
 0x187   : > { %v2846_v14 = vrot.slane %v2838_v62, 1 }
 0x188   : > { %2298 = vrot.lane.b32.xlu2 %v2283_v60, %s6617_s12  ;;  %v2795_v61 = vrot.slane %v2793_v28, 1 }
 0x18a   : > { %2804 = vrot.lane.b32.xlu0 %v2754_v16, %s6607_s0  ;;  %2812 = vrot.lane.b32.xlu1 %v2782_v32, %s6607_s0  ;;  %v533_v16 = vld [vmem:[%s6703_s17 + $0x8] sm:$0xe]  ;;  %v2796_v60 = vor.u32 %v2795_v61, %v2791_v39  ;;  %v2734_v32 = vunpack.c.l.b16 %v521_v36  ;;  %v1552_v39 = vld [vmem:[#allocation2 + $0x10] sm:$0x1]  ;;  %v1584_v61 = vld [vmem:[#allocation2 + $0x14] sm:$0x1] }
 0x18b   : > { %v2829_v5 = vunpack.c.l.b16 %v533_v16  ;;  %v1553_v43 = vsel %vm7454_vm0, 0, %v1552_v39  ;;  %v1585_v16 = vsel %vm7464_vm1, 0, %v1584_v61  ;;  %v1558_v36 = vld [vmem:[#allocation2 + $0x20] sm:$0x1]  ;;  %v10114_v39 = vmov 0 }
 0x18c   : > { %1554 = vst [vmem:[#allocation2 + $0x10] sm:$0x1] %v1553_v43  ;;  %v10115_v39 = vsel %vm7635_vm14, 4294967295, %v10114_v39 }
 0x18d   : > { %6254 = vmatmul.msk.bf16.gmra.mxu0 %vm10014_vm11, %v1438_v1  ;;  %v2770_v1 = vshrl.u32 %v2743_v59, 16  ;;  %v2803_v59 = vor.u32 %v2802_v30, %v2798_v54  ;;  %v2837_v45 = vpack.c.b16 %v2727_v3, %v2829_v5  ;;  %v1549_v3 = vld [vmem:[#allocation2 + $0x8] sm:$0x1]  ;;  %v532_v30 = vld [vmem:[%s6703_s17] sm:$0xe]  ;;  %10116 = vst [vmem:[#allocation78_spill] sm:$0xff] %v10115_v39 }
 0x18e   : > { %v2828_v28 = vunpack.c.l.b16 %v532_v30  ;;  %1586 = vst [vmem:[#allocation2 + $0x14] sm:$0x1] %v1585_v16 }
 0x18f   : > { %v2775_v27 = vor.u32 %v2774_v6, %v2770_v1  ;;  %v2845_v8 = vrot.slane %v2837_v45, 1  ;;  %v9954_v1 = vunpack.c.l.b16 %v7599_v46 }
 0x190   : > { %2808 = vrot.lane.b32.xlu2 %v2768_v24, %s6607_s0  ;;  %v1581_v24 = vld [vmem:[#allocation2 + $0xc] sm:$0x1]  ;;  %v2836_v18 = vpack.c.b16 %v2725_v12, %v2828_v28  ;;  %v1555_v12 = vld [vmem:[#allocation2 + $0x18] sm:$0x1] }
 0x191   : > { %v2745_v44 = vpack.c.b16 %v9954_v1, %v2734_v32  ;;  %v1582_v54 = vsel %vm7464_vm1, 0, %v1581_v24  ;;  %v1556_v45 = vsel %vm7454_vm0, 0, %v1555_v12  ;;  %v1590_v32 = vld [vmem:[#allocation2 + $0x24] sm:$0x1] }
 0x192   : > { %2810 = vrot.lane.b32.xlu0 %v2775_v27, %s6607_s0  ;;  %2818 = vrot.lane.b32.xlu1 %v2803_v59, %s6607_s0  ;;  %v1550_v27 = vsel %vm7454_vm0, 0, %v1549_v3  ;;  %1583 = vst [vmem:[#allocation2 + $0xc] sm:$0x1] %v1582_v54  ;;  %v2844_v59 = vrot.slane %v2836_v18, 1  ;;  %v1591_v63 = vsel %vm7464_vm1, 0, %v1590_v32 }
 0x193   : > { %v2786_v6 = vshll.u32 %v2745_v44, 16  ;;  %v2784_v0 = vshrl.u32 %v2745_v44, 16  ;;  %1551 = vst [vmem:[#allocation2 + $0x8] sm:$0x1] %v1550_v27  ;;  %v1559_v44 = vsel %vm7454_vm0, 0, %v1558_v36  ;;  %v6461_v36 = vld [vmem:[%s9874_s4 + $0x40] sm:$0xff] }
 0x194   : > { %1557 = vst [vmem:[#allocation2 + $0x18] sm:$0x1] %v1556_v45  ;;  %v1705_v32 = vld [vmem:[#allocation2 + $0x10] sm:$0xf]  ;;  %2611 = vmatpush.bf16.msra.mxu2 %v6461_v36 }
 0x195   : > { %v2788_v42 = vrot.slane %v2786_v6, 1  ;;  %1560 = vst [vmem:[#allocation2 + $0x20] sm:$0x1] %v1559_v44  ;;  %v1596_v44 = vld [vmem:[#allocation2 + $0x34] sm:$0x1] }
 0x196   : > { %1592 = vst [vmem:[#allocation2 + $0x24] sm:$0x1] %v1591_v63 }
 0x197   : > { %v2789_v33 = vor.u32 %v2788_v42, %v2784_v0  ;;  %v1561_v42 = vld [vmem:[#allocation2 + $0x28] sm:$0x1] }
 0x198   : > { %v1562_v24 = vsel %vm7454_vm0, 0, %v1561_v42  ;;  %v1597_v42 = vsel %vm7464_vm1, 0, %v1596_v44  ;;  %v1567_v44 = vld [vmem:[#allocation2 + $0x38] sm:$0x1] }
 0x199   : > { %2814 = vrot.lane.b32.xlu2 %v2789_v33, %s6607_s0  ;;  %v1593_v33 = vld [vmem:[#allocation2 + $0x2c] sm:$0x1]  ;;  %1563 = vst [vmem:[#allocation2 + $0x28] sm:$0x1] %v1562_v24 }
 0x19a   : > { %2816 = vrot.lane.b32.xlu0 %v2796_v60, %s6607_s0  ;;  %2856 = vrot.lane.b32.xlu1 %v2846_v14, %s6608_s24  ;;  %v535_v60 = vld [vmem:[%s6703_s17 + $0x18] sm:$0xe]  ;;  %v1587_v14 = vld [vmem:[#allocation2 + $0x1c] sm:$0x1]  ;;  %v1594_v27 = vsel %vm7464_vm1, 0, %v1593_v33 }
 0x19b   : > { %v2831_v62 = vunpack.c.l.b16 %v535_v60  ;;  %1595 = vst [vmem:[#allocation2 + $0x2c] sm:$0x1] %v1594_v27  ;;  %v1699_v18 = vld [vmem:[#allocation2 + $0x8] sm:$0xf]  ;;  %v1702_v61 = vld [vmem:[#allocation2 + $0xc] sm:$0x1] }
 0x19c   : > { %1598 = vst [vmem:[#allocation2 + $0x34] sm:$0x1] %v1597_v42 }
 0x19d   : > { %v2839_v5 = vpack.c.b16 %v2731_v11, %v2831_v62 }
 0x19f   : > { %v2847_v7 = vrot.slane %v2839_v5, 1 }
 0x1a1   : > { %2852 = vrot.lane.b32.xlu2 %v2844_v59, %s6608_s24 }
 0x1a2   : > { %2854 = vrot.lane.b32.xlu0 %v2845_v8, %s6608_s24  ;;  %v1588_v8 = vsel %vm7464_vm1, 0, %v1587_v14  ;;  %v1564_v14 = vld [vmem:[#allocation2 + $0x30] sm:$0x1] }
 0x1a3   : > { %1589 = vst [vmem:[#allocation2 + $0x1c] sm:$0x1] %v1588_v8  ;;  %v1565_v8 = vsel %vm7454_vm0, 0, %v1564_v14 }
 0x1a4   : > { %1566 = vst [vmem:[#allocation2 + $0x30] sm:$0x1] %v1565_v8 }
 0x1a9   : > { %2858 = vrot.lane.b32.xlu2 %v2847_v7, %s6608_s24 }
 0x1da   : > { %v1492_v11 = vpop.f32.mrf.mxu0 }
 0x1db   : > { %vm1512_vm13 = vcmp.gt.f32.partialorder %v1492_v11, 0.0  ;;  %v1520_v6 = vmul.f32 0.01, %v1492_v11 }
 0x1dd   : > { %v1528_v0 = vsel %vm1512_vm13, %v1492_v11, %v1520_v6  ;;  %v1708_v6 = vld [vmem:[#allocation2 + $0x14] sm:$0x1] }
 0x1de   : > { %v1608_v3 = vpack.c.bf16 %v1528_v0, %v1528_v0 }
 0x1e0   : > { %v1617_v54 = vshrl.u32 %v1608_v3, 16  ;;  %v1620_v28 = vshll.u32 %v1608_v3, 16 }
 0x1e2   : > { %v1619_v30 = vrot.slane %v1617_v54, 7  ;;  %v1494_v59 = vpop.f32.mrf.mxu0 }
 0x1e3   : > { %vm1513_vm13 = vcmp.gt.f32.partialorder %v1494_v59, 0.0  ;;  %v1521_v43 = vmul.f32 0.01, %v1494_v59 }
 0x1e4   : > { %v1622_v16 = vor.u32 %v1620_v28, %v1619_v30  ;;  %v1623_v60 = vrot.slane %v1619_v30, 4 }
 0x1e5   : > { %v1529_v62 = vsel %vm1513_vm13, %v1494_v59, %v1521_v43 }
 0x1e6   : > { %v1700_v5 = vsel %vm7635_vm14, %v1622_v16, %v1699_v18  ;;  %v1703_v7 = vsel %vm7454_vm0, %v1623_v60, %v1702_v61  ;;  %v1609_v12 = vpack.c.bf16 %v1529_v62, %v1529_v62 }
 0x1e7   : > { %1701 = vst [vmem:[#allocation2 + $0x8] sm:$0xf] %v1700_v5 }
 0x1e8   : > { %1704 = vst [vmem:[#allocation2 + $0xc] sm:$0x1] %v1703_v7  ;;  %v1625_v45 = vshrl.u32 %v1609_v12, 16  ;;  %v1628_v11 = vshll.u32 %v1609_v12, 16 }
 0x1ea   : > { %v1627_v63 = vrot.slane %v1625_v45, 7  ;;  %v1497_v0 = vpop.f32.mrf.mxu0 }
 0x1eb   : > { %vm1514_vm12 = vcmp.gt.f32.partialorder %v1497_v0, 0.0  ;;  %v1522_v33 = vmul.f32 0.01, %v1497_v0 }
 0x1ec   : > { %v1630_v3 = vor.u32 %v1628_v11, %v1627_v63  ;;  %v1631_v24 = vrot.slane %v1627_v63, 4  ;;  %v1711_v11 = vld [vmem:[#allocation2 + $0x18] sm:$0xf] }
 0x1ed   : > { %v1530_v27 = vsel %vm1514_vm12, %v1497_v0, %v1522_v33 }
 0x1ee   : > { %v1706_v54 = vsel %vm7635_vm14, %v1630_v3, %v1705_v32  ;;  %v1709_v30 = vsel %vm7454_vm0, %v1631_v24, %v1708_v6  ;;  %v1610_v28 = vpack.c.bf16 %v1530_v27, %v1530_v27  ;;  %v1771_v18 = vld [vmem:[#allocation2 + $0x8] sm:$0xf]  ;;  %v1714_v6 = vld [vmem:[#allocation2 + $0x1c] sm:$0x1] }
 0x1ef   : > { %v1764_v59 = vld [vmem:[#allocation2 + $0x8] sm:$0xe]  ;;  %1707 = vst [vmem:[#allocation2 + $0x10] sm:$0xf] %v1706_v54  ;;  %v1988_v43 = vunpack.c.l.b16 %v1771_v18  ;;  %v1756_v16 = vld [vmem:[#allocation2 + $0xc] sm:$0x1] }
 0x1f0   : > { %v1787_v61 = vld [vmem:[#allocation2 + $0x8] sm:$0xe]  ;;  %v1941_v60 = vunpack.c.l.b16 %v1764_v59  ;;  %v1779_v62 = vld [vmem:[#allocation2 + $0xc] sm:$0x1]  ;;  %1710 = vst [vmem:[#allocation2 + $0x14] sm:$0x1] %v1709_v30  ;;  %v1839_v12 = vunpack.c.l.b16 %v1756_v16 }
 0x1f1   : > { %v2124_v5 = vunpack.c.l.b16 %v1787_v61  ;;  %v1633_v7 = vshrl.u32 %v1610_v28, 16  ;;  %v2028_v14 = vunpack.c.l.b16 %v1779_v62  ;;  %v1748_v45 = vld [vmem:[#allocation2 + $0x8] sm:$0xf]  ;;  %v1636_v8 = vshll.u32 %v1610_v28, 16  ;;  %v1599_v30 = vld [vmem:[#allocation2 + $0x3c] sm:$0x1] }
 0x1f2   : > { %v1996_v36 = vpack.c.b16 %v1988_v43, %v1988_v43  ;;  %v1838_v32 = vunpack.c.l.b16 %v1748_v45  ;;  %v1499_v0 = vpop.f32.mrf.mxu0  ;;  %v1949_v42 = vpack.c.b16 %v1839_v12, %v1941_v60  ;;  %v1568_v54 = vsel %vm7454_vm0, 0, %v1567_v44 }
 0x1f3   : > { %v1635_v63 = vrot.slane %v1633_v7, 7  ;;  %v2132_v33 = vpack.c.b16 %v2028_v14, %v2124_v5  ;;  %v2036_v3 = vpack.c.b16 %v2028_v14, %v1988_v43  ;;  %vm1515_vm13 = vcmp.gt.f32.partialorder %v1499_v0, 0.0  ;;  %1569 = vst [vmem:[#allocation2 + $0x38] sm:$0x1] %v1568_v54 }
 0x1f4   : > { %v1523_v24 = vmul.f32 0.01, %v1499_v0  ;;  %2004 = vrot.lane.b32.xlu2 %v1996_v36, %s6612_s11  ;;  %v1853_v27 = vpack.c.b16 %v1839_v12, %v1838_v32  ;;  %v1957_v59 = vrot.slane %v1949_v42, 1 }
 0x1f5   : > { %v1638_v28 = vor.u32 %v1636_v8, %v1635_v63  ;;  %v1639_v18 = vrot.slane %v1635_v63, 4  ;;  %v2140_v61 = vrot.slane %v2132_v33, 1  ;;  %v2045_v60 = vshrl.u32 %v2036_v3, 16  ;;  %v1717_v33 = vld [vmem:[#allocation2 + $0x20] sm:$0xf] }
 0x1f6   : > { %v1531_v16 = vsel %vm1515_vm13, %v1499_v0, %v1523_v24  ;;  %v1868_v62 = vshrl.u32 %v1853_v27, 16  ;;  %v1870_v7 = vshll.u32 %v1853_v27, 16  ;;  %1966 = vrot.lane.b32.xlu1 %v1957_v59, %s6610_s30  ;;  %v2047_v14 = vshll.u32 %v2036_v3, 16  ;;  %v1772_v45 = vld [vmem:[#allocation2 + $0x10] sm:$0xf] }
 0x1f7   : > { %v1712_v43 = vsel %vm7635_vm14, %v1638_v28, %v1711_v11  ;;  %v1715_v5 = vsel %vm7454_vm0, %v1639_v18, %v1714_v6  ;;  %v1611_v12 = vpack.c.bf16 %v1531_v16, %v1531_v16  ;;  %2148 = vrot.lane.b32.xlu0 %v2140_v61, %s6618_s15  ;;  %v1796_v8 = vld [vmem:[#allocation2 + $0x10] sm:$0xf]  ;;  %v7663_v32 = vunpack.c.l.b16 %v1772_v45  ;;  %v7665_v44 = vld [vmem:[#allocation2 + $0x14] sm:$0x1]  ;;  %v1720_v24 = vld [vmem:[#allocation2 + $0x24] sm:$0x1] }
 0x1f8   : > { %1713 = vst [vmem:[#allocation2 + $0x18] sm:$0xf] %v1712_v43  ;;  %v1872_v36 = vrot.slane %v1870_v7, 1  ;;  %v1600_v63 = vsel %vm7464_vm1, 0, %v1599_v30  ;;  %v2049_v0 = vrot.slane %v2047_v14, 1  ;;  %v2029_v42 = vunpack.c.l.b16 %v7665_v44 }
 0x1f9   : > { %1716 = vst [vmem:[#allocation2 + $0x1c] sm:$0x1] %v1715_v5  ;;  %v1641_v11 = vshrl.u32 %v1611_v12, 16  ;;  %v1644_v6 = vshll.u32 %v1611_v12, 16  ;;  %v1997_v27 = vpack.c.b16 %v7663_v32, %v7663_v32  ;;  %v2172_v54 = vunpack.c.l.b16 %v1796_v8  ;;  %v1788_v28 = vld [vmem:[#allocation2 + $0x10] sm:$0xe] }
 0x1fa   : > { %v1873_v3 = vor.u32 %v1872_v36, %v1868_v62  ;;  %v1749_v18 = vld [vmem:[#allocation2 + $0x10] sm:$0xf]  ;;  %v1757_v59 = vld [vmem:[#allocation2 + $0x14] sm:$0x1]  ;;  %v1502_v16 = vpop.f32.mrf.mxu0  ;;  %v2050_v7 = vor.u32 %v2049_v0, %v2045_v60  ;;  %v2125_v30 = vunpack.c.l.b16 %v1788_v28  ;;  %1601 = vst [vmem:[#allocation2 + $0x3c] sm:$0x1] %v1600_v63 }
 0x1fb   : > { %v1643_v61 = vrot.slane %v1641_v11, 7  ;;  %v1840_v43 = vunpack.c.l.b16 %v1749_v18  ;;  %v1804_v5 = vld [vmem:[#allocation2 + $0x14] sm:$0x1]  ;;  %v1812_v12 = vld [vmem:[#allocation2 + $0x10] sm:$0xe]  ;;  %vm1516_vm12 = vcmp.gt.f32.partialorder %v1502_v16, 0.0  ;;  %v1841_v45 = vunpack.c.l.b16 %v1757_v59 }
 0x1fc   : > { %v1524_v14 = vmul.f32 0.01, %v1502_v16  ;;  %1918 = vrot.lane.b32.xlu2 %v1873_v3, %s6608_s24  ;;  %v2212_v62 = vunpack.c.l.b16 %v1804_v5  ;;  %v2133_v8 = vpack.c.b16 %v2029_v42, %v2125_v30  ;;  %v2308_v31 = vunpack.c.l.b16 %v1812_v12  ;;  %v1765_v11 = vld [vmem:[#allocation2 + $0x10] sm:$0xe] }
 0x1fd   : > { %v1646_v36 = vor.u32 %v1644_v6, %v1643_v61  ;;  %v1647_v1 = vrot.slane %v1643_v61, 4  ;;  %v1854_v60 = vpack.c.b16 %v1841_v45, %v1840_v43  ;;  %v1942_v0 = vunpack.c.l.b16 %v1765_v11  ;;  %v1570_v11 = vld [vmem:[#allocation2 + $0x40] sm:$0x1] }
 0x1fe   : > { %v1532_v21 = vsel %vm1516_vm12, %v1502_v16, %v1524_v14  ;;  %v7675_v28 = vpack.c.b16 %v2212_v62, %v2172_v54  ;;  %2100 = vrot.lane.b32.xlu1 %v2050_v7, %s6614_s21  ;;  %v2180_v6 = vpack.c.b16 %v2172_v54, %v2172_v54  ;;  %v2316_v43 = vpack.c.b16 %v2212_v62, %v2308_v31 }
 0x1ff   : > { %v1718_v18 = vsel %vm7635_vm14, %v1646_v36, %v1717_v33  ;;  %v1721_v3 = vsel %vm7454_vm0, %v1647_v1, %v1720_v24  ;;  %v1612_v59 = vpack.c.bf16 %v1532_v21, %v1532_v21  ;;  %2006 = vrot.lane.b32.xlu0 %v1997_v27, %s6612_s11  ;;  %v1813_v63 = vld [vmem:[#allocation2 + $0x18] sm:$0xe]  ;;  %v1877_v61 = vshll.u32 %v1854_v60, 16  ;;  %v1723_v24 = vld [vmem:[#allocation2 + $0x28] sm:$0xf] }
 0x200   : > { %1719 = vst [vmem:[#allocation2 + $0x20] sm:$0xf] %v1718_v18  ;;  %v7683_v16 = vld [vmem:[#allocation2 + $0x1c] sm:$0x1]  ;;  %v2309_v30 = vunpack.c.l.b16 %v1813_v63  ;;  %v2141_v12 = vrot.slane %v2133_v8, 1  ;;  %v7686_v14 = vpack.c.b16 %v1841_v45, %v1942_v0  ;;  %v1875_v7 = vshrl.u32 %v1854_v60, 16 }
 0x201   : > { %1722 = vst [vmem:[#allocation2 + $0x24] sm:$0x1] %v1721_v3  ;;  %v1649_v5 = vshrl.u32 %v1612_v59, 16  ;;  %v9959_v33 = vunpack.c.l.b16 %v7683_v16  ;;  %v1797_v21 = vld [vmem:[#allocation2 + $0x18] sm:$0xf]  ;;  %v1652_v1 = vshll.u32 %v1612_v59, 16 }
 0x202   : > { %v1879_v27 = vrot.slane %v1877_v61, 1  ;;  %v2324_v36 = vrot.slane %v2316_v43, 1  ;;  %v1504_v18 = vpop.f32.mrf.mxu0  ;;  %v2229_v31 = vshrl.u32 %v7675_v28, 16  ;;  %v2231_v62 = vshll.u32 %v7675_v28, 16  ;;  %v1602_v8 = vld [vmem:[#allocation2 + $0x44] sm:$0x1] }
 0x203   : > { %v1651_v54 = vrot.slane %v1649_v5, 7  ;;  %v2317_v63 = vpack.c.b16 %v9959_v33, %v2309_v30  ;;  %v1726_v3 = vld [vmem:[#allocation2 + $0x2c] sm:$0x1]  ;;  %vm1517_vm13 = vcmp.gt.f32.partialorder %v1504_v18, 0.0  ;;  %v1525_v45 = vmul.f32 0.01, %v1504_v18 }
 0x204   : > { %2188 = vrot.lane.b32.xlu2 %v2180_v6, %s6616_s8  ;;  %v1958_v60 = vrot.slane %v7686_v14, 1  ;;  %v7694_v0 = vunpack.c.l.b16 %v1797_v21  ;;  %v1880_v43 = vor.u32 %v1879_v27, %v1875_v7  ;;  %v2464_v30 = vunpack.c.l.b16 %v2324_v36  ;;  %v1758_v7 = vld [vmem:[#allocation2 + $0x1c] sm:$0x1]  ;;  %v1766_v27 = vld [vmem:[#allocation2 + $0x18] sm:$0xe] }
 0x205   : > { %v1654_v59 = vor.u32 %v1652_v1, %v1651_v54  ;;  %v1655_v61 = vrot.slane %v1651_v54, 4  ;;  %v2325_v5 = vrot.slane %v2317_v63, 1  ;;  %v1533_v25 = vsel %vm1517_vm13, %v1504_v18, %v1525_v45  ;;  %v1773_v1 = vld [vmem:[#allocation2 + $0x18] sm:$0xf]  ;;  %v1781_v63 = vld [vmem:[#allocation2 + $0x1c] sm:$0x1] }
 0x206   : > { %v1571_v53 = vsel %vm7454_vm0, 0, %v1570_v11  ;;  %v1603_v28 = vsel %vm7464_vm1, 0, %v1602_v8  ;;  %v1613_v14 = vpack.c.bf16 %v1533_v25, %v1533_v25  ;;  %2150 = vrot.lane.b32.xlu1 %v2141_v12, %s6618_s15  ;;  %v2037_v36 = vpack.c.b16 %v2029_v42, %v7663_v32  ;;  %v1729_v12 = vld [vmem:[#allocation2 + $0x30] sm:$0xf] }
 0x207   : > { %v1724_v33 = vsel %vm7635_vm14, %v1654_v59, %v1723_v24  ;;  %v1727_v6 = vsel %vm7454_vm0, %v1655_v61, %v1726_v3  ;;  %1920 = vrot.lane.b32.xlu0 %v1880_v43, %s6608_s24  ;;  %v2466_v21 = vunpack.c.l.b16 %v2325_v5  ;;  %v1814_v24 = vld [vmem:[#allocation2 + $0x20] sm:$0xe]  ;;  %v2233_v25 = vrot.slane %v2231_v62, 1  ;;  %1572 = vst [vmem:[#allocation2 + $0x40] sm:$0x1] %v1571_v53 }
 0x208   : > { %1725 = vst [vmem:[#allocation2 + $0x28] sm:$0xf] %v1724_v33  ;;  %v7709_v11 = vld [vmem:[#allocation2 + $0x24] sm:$0x1]  ;;  %v1657_v54 = vshrl.u32 %v1613_v14, 16  ;;  %v2054_v8 = vshll.u32 %v2037_v36, 16  ;;  %v1843_v3 = vunpack.c.l.b16 %v1758_v7  ;;  %v1943_v45 = vunpack.c.l.b16 %v1766_v27 }
 0x209   : > { %1728 = vst [vmem:[#allocation2 + $0x2c] sm:$0x1] %v1727_v6  ;;  %v2498_v18 = vpack.c.b16 %v2466_v21, %v2464_v30  ;;  %v9962_v59 = vunpack.c.l.b16 %v7709_v11  ;;  %v1660_v61 = vshll.u32 %v1613_v14, 16  ;;  %v2181_v44 = vpack.c.b16 %v7694_v0, %v7694_v0  ;;  %v7715_v43 = vld [vmem:[#allocation2 + $0x18] sm:$0xf] }
 0x20a   : > { %v1659_v33 = vrot.slane %v1657_v54, 7  ;;  %v1507_v32 = vpop.f32.mrf.mxu0  ;;  %1604 = vst [vmem:[#allocation2 + $0x44] sm:$0x1] %v1603_v28  ;;  %v2310_v42 = vunpack.c.l.b16 %v1814_v24  ;;  %v1732_v62 = vld [vmem:[#allocation2 + $0x34] sm:$0x1]  ;;  %v1990_v5 = vunpack.c.l.b16 %v1773_v1  ;;  %v2030_v30 = vunpack.c.l.b16 %v1781_v63 }
 0x20b   : > { %6291 = vmatmul.msk.bf16.vlgmr.msra.gmra.mxu2 %vm1291_vm4, %v2498_v18  ;;  %vm1518_vm12 = vcmp.gt.f32.partialorder %v1507_v32, 0.0  ;;  %v1526_v53 = vmul.f32 0.01, %v1507_v32  ;;  %v2234_v14 = vor.u32 %v2233_v25, %v2229_v31  ;;  %v1789_v27 = vld [vmem:[#allocation2 + $0x18] sm:$0xe]  ;;  %v2056_v18 = vrot.slane %v2054_v8, 1 }
 0x20c   : > { %1968 = vrot.lane.b32.xlu2 %v1958_v60, %s6610_s30  ;;  %v1662_v6 = vor.u32 %v1660_v61, %v1659_v33  ;;  %v1663_v21 = vrot.slane %v1659_v33, 4  ;;  %v2318_v7 = vpack.c.b16 %v9962_v59, %v2310_v42  ;;  %v1951_v28 = vpack.c.b16 %v1843_v3, %v1943_v45 }
 0x20d   : > { %v1534_v54 = vsel %vm1518_vm12, %v1507_v32, %v1526_v53  ;;  %v1842_v24 = vunpack.c.l.b16 %v7715_v43  ;;  %v2052_v31 = vshrl.u32 %v2037_v36, 16  ;;  %v2126_v45 = vunpack.c.l.b16 %v1789_v27 }
 0x20e   : > { %v1730_v29 = vsel %vm7635_vm14, %v1662_v6, %v1729_v12  ;;  %v1733_v60 = vsel %vm7454_vm0, %v1663_v21, %v1732_v62  ;;  %v1614_v1 = vpack.c.bf16 %v1534_v54, %v1534_v54  ;;  %2284 = vrot.lane.b32.xlu1 %v2234_v14, %s6617_s12  ;;  %v2038_v61 = vpack.c.b16 %v2030_v30, %v1990_v5 }
 0x20f   : > { %2190 = vrot.lane.b32.xlu0 %v2181_v44, %s6616_s8  ;;  %v1815_v25 = vld [vmem:[#allocation2 + $0x28] sm:$0xe]  ;;  %1731 = vst [vmem:[#allocation2 + $0x30] sm:$0xf] %v1730_v29  ;;  %v1855_v33 = vpack.c.b16 %v1843_v3, %v1842_v24  ;;  %v2326_v42 = vrot.slane %v2318_v7, 1  ;;  %v2057_v62 = vor.u32 %v2056_v18, %v2052_v31  ;;  %v1998_v54 = vpack.c.b16 %v1990_v5, %v1990_v5 }
 0x210   : > { %v7727_v63 = vld [vmem:[#allocation2 + $0x2c] sm:$0x1]  ;;  %v2311_v8 = vunpack.c.l.b16 %v1815_v25  ;;  %1734 = vst [vmem:[#allocation2 + $0x34] sm:$0x1] %v1733_v60  ;;  %v1665_v32 = vshrl.u32 %v1614_v1, 16  ;;  %v2061_v6 = vshll.u32 %v2038_v61, 16  ;;  %v2134_v24 = vpack.c.b16 %v2030_v30, %v2126_v45 }
 0x211   : > { %v9964_v12 = vunpack.c.l.b16 %v7727_v63  ;;  %v1884_v53 = vshll.u32 %v1855_v33, 16  ;;  %v1668_v14 = vshll.u32 %v1614_v1, 16  ;;  %v1735_v44 = vld [vmem:[#allocation2 + $0x38] sm:$0xf]  ;;  %v1738_v25 = vld [vmem:[#allocation2 + $0x3c] sm:$0x1]  ;;  %v2468_v31 = vunpack.c.l.b16 %v2326_v42 }
 0x212   : > { %v1667_v21 = vrot.slane %v1665_v32, 7  ;;  %v1509_v36 = vpop.f32.mrf.mxu0  ;;  %v1959_v27 = vrot.slane %v1951_v28, 1  ;;  %v2063_v1 = vrot.slane %v2061_v6, 1  ;;  %v10117_v5 = vunpack.c.l.b16 %v7683_v16  ;;  %v1798_v28 = vld [vmem:[#allocation2 + $0x20] sm:$0xf] }
 0x213   : > { %v2319_v29 = vpack.c.b16 %v9964_v12, %v2311_v8  ;;  %vm1519_vm13 = vcmp.gt.f32.partialorder %v1509_v36, 0.0  ;;  %v1527_v3 = vmul.f32 0.01, %v1509_v36  ;;  %v1886_v32 = vrot.slane %v1884_v53, 1  ;;  %v1790_v53 = vld [vmem:[#allocation2 + $0x20] sm:$0xe] }
 0x214   : > { %2102 = vrot.lane.b32.xlu2 %v2057_v62, %s6614_s21  ;;  %v1670_v60 = vor.u32 %v1668_v14, %v1667_v21  ;;  %v1671_v7 = vrot.slane %v1667_v21, 4  ;;  %v2221_v55 = vpack.c.b16 %v10117_v5, %v7694_v0  ;;  %v2142_v6 = vrot.slane %v2134_v24, 1 }
 0x215   : > { %v2327_v18 = vrot.slane %v2319_v29, 1  ;;  %v1535_v59 = vsel %vm1519_vm13, %v1509_v36, %v1527_v3  ;;  %v1882_v21 = vshrl.u32 %v1855_v33, 16  ;;  %v2059_v14 = vshrl.u32 %v2038_v61, 16  ;;  %v1782_v36 = vld [vmem:[#allocation2 + $0x24] sm:$0x1] }
 0x216   : > { %v1736_v8 = vsel %vm7635_vm14, %v1670_v60, %v1735_v44  ;;  %v1739_v12 = vsel %vm7454_vm0, %v1671_v7, %v1738_v25  ;;  %v1615_v62 = vpack.c.bf16 %v1535_v59, %v1535_v59  ;;  %2008 = vrot.lane.b32.xlu1 %v1998_v54, %s6612_s11  ;;  %v1816_v42 = vld [vmem:[#allocation2 + $0x30] sm:$0xe]  ;;  %v2238_v44 = vshll.u32 %v2221_v55, 16  ;;  %v1741_v3 = vld [vmem:[#allocation2 + $0x40] sm:$0xf]  ;;  %v7747_v7 = vpop.permute.xlu2 %2298 }
 0x217   : > { %1970 = vrot.lane.b32.xlu0 %v1959_v27, %s6610_s30  ;;  %v2470_v30 = vunpack.c.l.b16 %v2327_v18  ;;  %1737 = vst [vmem:[#allocation2 + $0x38] sm:$0xf] %v1736_v8  ;;  %v7742_v45 = vld [vmem:[#allocation2 + $0x34] sm:$0x1]  ;;  %v2312_v25 = vunpack.c.l.b16 %v1816_v42  ;;  %v1744_v27 = vld [vmem:[#allocation2 + $0x44] sm:$0x1]  ;;  %v2064_v60 = vor.u32 %v2063_v1, %v2059_v14  ;;  %v2174_v24 = vunpack.c.l.b16 %v1798_v28 }
 0x218   : > { %1740 = vst [vmem:[#allocation2 + $0x3c] sm:$0x1] %v1739_v12  ;;  %v1673_v16 = vshrl.u32 %v1615_v62, 16  ;;  %v1676_v29 = vshll.u32 %v1615_v62, 16  ;;  %v9967_v54 = vunpack.c.l.b16 %v7742_v45  ;;  %v1887_v12 = vor.u32 %v1886_v32, %v1882_v21  ;;  %v7757_v28 = vld [vmem:[#allocation2 + $0x20] sm:$0xf] }
 0x219   : > { %v2500_v0 = vpack.c.b16 %v2470_v30, %v2468_v31  ;;  %v2031_v18 = vunpack.c.l.b16 %v1782_v36  ;;  %v2127_v31 = vunpack.c.l.b16 %v1790_v53  ;;  %v2240_v5 = vrot.slane %v2238_v44, 1  ;;  %v1759_v30 = vld [vmem:[#allocation2 + $0x24] sm:$0x1]  ;;  %v1774_v44 = vld [vmem:[#allocation2 + $0x20] sm:$0xf] }
 0x21a   : > { %v1675_v59 = vrot.slane %v1673_v16, 7  ;;  %v2320_v1 = vpack.c.b16 %v9967_v54, %v2312_v25  ;;  %v2236_v42 = vshrl.u32 %v2221_v55, 16  ;;  %v10118_v53 = vunpack.c.l.b16 %v7709_v11  ;;  %v1767_v36 = vld [vmem:[#allocation2 + $0x20] sm:$0xe] }
 0x21b   : > { %6292 = vmatmul.msk.bf16.gmra.mxu2 %vm1291_vm4, %v2500_v0  ;;  %v2135_v21 = vpack.c.b16 %v2031_v18, %v2127_v31  ;;  %v1844_v25 = vunpack.c.l.b16 %v7757_v28  ;;  %vm10013_vm12 = vcmask 654336   ;;  %vm10012_vm13 = vcmask 785408  }
 0x21c   : > { %2152 = vrot.lane.b32.xlu2 %v2142_v6, %s6618_s15  ;;  %v1678_v33 = vor.u32 %v1676_v29, %v1675_v59  ;;  %v1679_v61 = vrot.slane %v1675_v59, 4  ;;  %v2222_v6 = vpack.c.b16 %v10118_v53, %v2174_v24  ;;  %v2241_v59 = vor.u32 %v2240_v5, %v2236_v42 }
 0x21d   : > { %v1845_v29 = vunpack.c.l.b16 %v1759_v30  ;;  %v2328_v55 = vrot.slane %v2320_v1, 1 }
 0x21e   : > { %v1742_v8 = vsel %vm7635_vm14, %v1678_v33, %v1741_v3  ;;  %v1745_v62 = vsel %vm7454_vm0, %v1679_v61, %v1744_v27  ;;  %1922 = vrot.lane.b32.xlu1 %v1887_v12, %s6608_s24  ;;  %v1817_v32 = vld [vmem:[#allocation2 + $0x38] sm:$0xe]  ;;  %v1991_v27 = vunpack.c.l.b16 %v1774_v44  ;;  %v1944_v12 = vunpack.c.l.b16 %v1767_v36  ;;  %v7768_v31 = vpop.permute.xlu2 %2808 }
 0x21f   : > { %2104 = vrot.lane.b32.xlu0 %v2064_v60, %s6614_s21  ;;  %1743 = vst [vmem:[#allocation2 + $0x40] sm:$0xf] %v1742_v8  ;;  %v7759_v16 = vld [vmem:[#allocation2 + $0x3c] sm:$0x1]  ;;  %v2313_v0 = vunpack.c.l.b16 %v1817_v32  ;;  %v2245_v11 = vshll.u32 %v2222_v6, 16  ;;  %v2182_v60 = vpack.c.b16 %v2174_v24, %v2174_v24  ;;  %v2143_v33 = vrot.slane %v2135_v21, 1 }
 0x220   : > { %1746 = vst [vmem:[#allocation2 + $0x44] sm:$0x1] %v1745_v62  ;;  %v9965_v14 = vunpack.c.l.b16 %v7759_v16  ;;  %v1856_v8 = vpack.c.b16 %v1845_v29, %v1844_v25  ;;  %v1819_v62 = vld [vmem:[#allocation2 + $0x48] sm:$0xe]  ;;  %v2472_v5 = vunpack.c.l.b16 %v2328_v55  ;;  %v1952_v1 = vpack.c.b16 %v1845_v29, %v1944_v12  ;;  %v1793_v19 = vld [vmem:[#allocation2 + $0x38] sm:$0xe] }
 0x221   : > { %v2247_v42 = vrot.slane %v2245_v11, 1  ;;  %v2315_v36 = vunpack.c.l.b16 %v1819_v62  ;;  %v2243_v25 = vshrl.u32 %v2222_v6, 16  ;;  %v1775_v12 = vld [vmem:[#allocation2 + $0x28] sm:$0xf] }
 0x222   : > { %v2321_v3 = vpack.c.b16 %v9965_v14, %v2313_v0  ;;  %v2039_v0 = vpack.c.b16 %v2031_v18, %v1991_v27  ;;  %v7775_v14 = vld [vmem:[#allocation2 + $0x28] sm:$0xf]  ;;  %v1960_v29 = vrot.slane %v1952_v1, 1  ;;  %v1992_v1 = vunpack.c.l.b16 %v1775_v12  ;;  %v7793_v12 = vpop.permute.xlu1 %1916 }
 0x223   : > { %v2248_v55 = vor.u32 %v2247_v42, %v2243_v25  ;;  %v1846_v6 = vunpack.c.l.b16 %v7775_v14  ;;  %v1799_v42 = vld [vmem:[#allocation2 + $0x28] sm:$0xf] }
 0x224   : > { %2286 = vrot.lane.b32.xlu2 %v2241_v59, %s6617_s12  ;;  %v2329_v61 = vrot.slane %v2321_v3, 1  ;;  %v1999_v59 = vpack.c.b16 %v1991_v27, %v1991_v27  ;;  %v1891_v3 = vshll.u32 %v1856_v8, 16  ;;  %v2068_v18 = vshll.u32 %v2039_v0, 16 }
 0x226   : > { %2192 = vrot.lane.b32.xlu1 %v2182_v60, %s6616_s8  ;;  %v2474_v32 = vunpack.c.l.b16 %v2329_v61  ;;  %v1818_v30 = vld [vmem:[#allocation2 + $0x40] sm:$0xe]  ;;  %v1760_v60 = vld [vmem:[#allocation2 + $0x2c] sm:$0x1]  ;;  %v1893_v62 = vrot.slane %v1891_v3, 1  ;;  %v2000_v3 = vpack.c.b16 %v1992_v1, %v1992_v1 }
 0x227   : > { %2154 = vrot.lane.b32.xlu0 %v2143_v33, %s6618_s15  ;;  %v7772_v53 = vld [vmem:[#allocation2 + $0x44] sm:$0x1]  ;;  %v2314_v21 = vunpack.c.l.b16 %v1818_v30  ;;  %v10119_v33 = vunpack.c.l.b16 %v7555_v13  ;;  %v1847_v27 = vunpack.c.l.b16 %v1760_v60  ;;  %v7788_v30 = vpop.permute.xlu2 %2814  ;;  %v2066_v60 = vshrl.u32 %v2039_v0, 16 }
 0x228   : > { %v2502_v44 = vpack.c.b16 %v2474_v32, %v2472_v5  ;;  %v9966_v24 = vunpack.c.l.b16 %v7772_v53  ;;  %v7784_v5 = vpop.permute.xlu0 %1964  ;;  %v1889_v32 = vshrl.u32 %v1856_v8, 16 }
 0x229   : > { %v2323_v61 = vpack.c.b16 %v10119_v33, %v2315_v36  ;;  %v1791_v36 = vld [vmem:[#allocation2 + $0x28] sm:$0xe]  ;;  %v1857_v25 = vpack.c.b16 %v1847_v27, %v1846_v6 }
 0x22a   : > { %v2322_v11 = vpack.c.b16 %v9966_v24, %v2314_v21  ;;  %v2070_v21 = vrot.slane %v2068_v18, 1  ;;  %v1894_v33 = vor.u32 %v1893_v62, %v1889_v32  ;;  %v2175_v24 = vunpack.c.l.b16 %v1799_v42  ;;  %v1768_v18 = vld [vmem:[#allocation2 + $0x28] sm:$0xe] }
 0x22b   : > { %6293 = vmatmul.msk.bf16.gmra.mxu2 %vm1291_vm4, %v2502_v44  ;;  %v1783_v44 = vld [vmem:[#allocation2 + $0x2c] sm:$0x1]  ;;  %v2331_v13 = vrot.slane %v2323_v61, 1  ;;  %v2128_v54 = vunpack.c.l.b16 %v1791_v36  ;;  %v1898_v48 = vshll.u32 %v1857_v25, 16  ;;  %v10120_v62 = vunpack.c.l.b16 %v7727_v63  ;;  %v1776_v63 = vld [vmem:[#allocation2 + $0x30] sm:$0xf] }
 0x22c   : > { %2010 = vrot.lane.b32.xlu2 %v1999_v59, %s6612_s11  ;;  %v2330_v59 = vrot.slane %v2322_v11, 1  ;;  %v2183_v42 = vpack.c.b16 %v2175_v24, %v2175_v24 }
 0x22d   : > { %v2478_v34 = vunpack.c.l.b16 %v2331_v13  ;;  %v1900_v6 = vrot.slane %v1898_v48, 1  ;;  %v2223_v32 = vpack.c.b16 %v10120_v62, %v2175_v24  ;;  %v1761_v24 = vld [vmem:[#allocation2 + $0x34] sm:$0x1]  ;;  %v1993_v62 = vunpack.c.l.b16 %v1776_v63 }
 0x22e   : > { %1972 = vrot.lane.b32.xlu1 %v1960_v29, %s6610_s30  ;;  %v2032_v29 = vunpack.c.l.b16 %v1783_v44  ;;  %v2476_v8 = vunpack.c.l.b16 %v2330_v59  ;;  %v1896_v59 = vshrl.u32 %v1857_v25, 16  ;;  %v1784_v25 = vld [vmem:[#allocation2 + $0x34] sm:$0x1] }
 0x22f   : > { %2288 = vrot.lane.b32.xlu0 %v2248_v55, %s6617_s12  ;;  %v2071_v55 = vor.u32 %v2070_v21, %v2066_v60  ;;  %v7799_v44 = vpop.permute.xlu2 %2852  ;;  %v1945_v21 = vunpack.c.l.b16 %v1768_v18  ;;  %v1800_v60 = vld [vmem:[#allocation2 + $0x30] sm:$0xf] }
 0x230   : > { %v7795_v11 = vpop.permute.xlu0 %2202  ;;  %v2504_v0 = vpack.c.b16 %v2478_v34, %v2476_v8  ;;  %v2136_v61 = vpack.c.b16 %v2032_v29, %v2128_v54  ;;  %v1901_v36 = vor.u32 %v1900_v6, %v1896_v59  ;;  %v2040_v34 = vpack.c.b16 %v2032_v29, %v1992_v1 }
 0x231   : > { %v2176_v48 = vunpack.c.l.b16 %v1800_v60  ;;  %v1792_v60 = vld [vmem:[#allocation2 + $0x30] sm:$0xe] }
 0x232   : > { %v2144_v13 = vrot.slane %v2136_v61, 1  ;;  %v2075_v18 = vshll.u32 %v2040_v34, 16  ;;  %v7807_v61 = vpop.permute.xlu1 %2806 }
 0x233   : > { %v2184_v29 = vpack.c.b16 %v2176_v48, %v2176_v48 }
 0x234   : > { %1924 = vrot.lane.b32.xlu2 %v1894_v33, %s6608_s24  ;;  %v2252_v33 = vshll.u32 %v2223_v32, 16 }
 0x236   : > { %2106 = vrot.lane.b32.xlu1 %v2071_v55, %s6614_s21  ;;  %v2254_v54 = vrot.slane %v2252_v33, 1  ;;  %v1769_v55 = vld [vmem:[#allocation2 + $0x30] sm:$0xe]  ;;  %v2077_v33 = vrot.slane %v2075_v18, 1 }
 0x237   : > { %2012 = vrot.lane.b32.xlu0 %v2000_v3, %s6612_s11  ;;  %v1953_v3 = vpack.c.b16 %v1847_v27, %v1945_v21  ;;  %v2250_v27 = vshrl.u32 %v2223_v32, 16  ;;  %v7812_v1 = vpop.permute.xlu2 %2858  ;;  %v1946_v59 = vunpack.c.l.b16 %v1769_v55  ;;  %v6460_v32 = vld [vmem:[%s9874_s4 + $0x38] sm:$0xff]  ;;  %v6459_v55 = vld [vmem:[%s9874_s4 + $0x30] sm:$0xff] }
 0x238   : > { %v7809_v6 = vpop.permute.xlu0 %2804  ;;  %2575 = vmatpush.bf16.msra.mxu1 %v6460_v32 }
 0x239   : > { %v1961_v8 = vrot.slane %v1953_v3, 1  ;;  %v2255_v21 = vor.u32 %v2254_v54, %v2250_v27  ;;  %v2073_v3 = vshrl.u32 %v2040_v34, 16  ;;  %v2001_v27 = vpack.c.b16 %v1993_v62, %v1993_v62 }
 0x23a   : > { %v7824_v18 = vpop.permute.xlu1 %2812 }
 0x23b   : > { %6294 = vmatmul.msk.bf16.gmra.mxu2 %vm1291_vm4, %v2504_v0  ;;  %v7805_v0 = vld [vmem:[#allocation2 + $0x30] sm:$0xf]  ;;  %v2078_v54 = vor.u32 %v2077_v33, %v2073_v3  ;;  %v1801_v3 = vld [vmem:[#allocation2 + $0x38] sm:$0xf] }
 0x23c   : > { %2194 = vrot.lane.b32.xlu2 %v2183_v42, %s6616_s8  ;;  %v1849_v42 = vunpack.c.l.b16 %v1761_v24  ;;  %v2129_v24 = vunpack.c.l.b16 %v1792_v60  ;;  %2576 = vmatpush.bf16.msra.mxu1 %v6459_v55  ;;  %v6458_v60 = vld [vmem:[%s9874_s4 + $0x28] sm:$0xff]  ;;  %v1785_v55 = vld [vmem:[#allocation2 + $0x3c] sm:$0x1] }
 0x23e   : > { %2156 = vrot.lane.b32.xlu1 %v2144_v13, %s6618_s15  ;;  %v2033_v13 = vunpack.c.l.b16 %v1784_v25 }
 0x23f   : > { %1926 = vrot.lane.b32.xlu0 %v1901_v36, %s6608_s24  ;;  %v1848_v36 = vunpack.c.l.b16 %v7805_v0 }
 0x240   : > { %v2041_v63 = vpack.c.b16 %v2033_v13, %v1993_v62  ;;  %v7826_v25 = vpop.permute.xlu0 %2810  ;;  %2577 = vmatpush.bf16.msra.mxu1 %v6458_v60 }
 0x241   : > { %v1858_v40 = vpack.c.b16 %v1849_v42, %v1848_v36  ;;  %v10121_v36 = vunpack.c.l.b16 %v7742_v45  ;;  %v6457_v45 = vld [vmem:[%s9874_s4 + $0x20] sm:$0xff] }
 0x242   : > { %v2082_v34 = vshll.u32 %v2041_v63, 16  ;;  %v7843_v60 = vpop.permute.xlu1 %2818 }
 0x243   : > { %v2224_v33 = vpack.c.b16 %v10121_v36, %v2176_v48  ;;  %v2177_v48 = vunpack.c.l.b16 %v1801_v3  ;;  %v2034_v36 = vunpack.c.l.b16 %v1785_v55  ;;  %10122 = vst [vmem:[#allocation81_spill] sm:$0xff] %v7843_v60  ;;  %v10124_v3 = vunpack.c.l.b16 %v7759_v16  ;;  %v1777_v55 = vld [vmem:[#allocation2 + $0x38] sm:$0xf] }
 0x244   : > { %1974 = vrot.lane.b32.xlu2 %v1961_v8, %s6610_s30  ;;  %v1954_v8 = vpack.c.b16 %v1849_v42, %v1946_v59  ;;  %v2137_v59 = vpack.c.b16 %v2033_v13, %v2129_v24  ;;  %v2084_v62 = vrot.slane %v2082_v34, 1  ;;  %v1903_v13 = vshrl.u32 %v1858_v40, 16  ;;  %2578 = vmatpush.bf16.msra.mxu1 %v6457_v45 }
 0x245   : > { %v2080_v24 = vshrl.u32 %v2041_v63, 16  ;;  %v7849_v63 = vld [vmem:[#allocation2 + $0x38] sm:$0xf] }
 0x246   : > { %2290 = vrot.lane.b32.xlu1 %v2255_v21, %s6617_s12  ;;  %v1905_v21 = vshll.u32 %v1858_v40, 16  ;;  %v1762_v40 = vld [vmem:[#allocation2 + $0x3c] sm:$0x1]  ;;  %v1850_v45 = vunpack.c.l.b16 %v7849_v63 }
 0x247   : > { %2196 = vrot.lane.b32.xlu0 %v2184_v29, %s6616_s8  ;;  %v1962_v29 = vrot.slane %v1954_v8, 1  ;;  %v2145_v8 = vrot.slane %v2137_v59, 1 }
 0x248   : > { %v1907_v32 = vrot.slane %v1905_v21, 1  ;;  %v2130_v21 = vunpack.c.l.b16 %v1793_v19  ;;  %v7845_v51 = vpop.permute.xlu0 %2816  ;;  %v2257_v19 = vshrl.u32 %v2224_v33, 16 }
 0x249   : > { %10123 = vst [vmem:[#allocation82_spill] sm:$0xff] %v7845_v51 }
 0x24c   : > { %2108 = vrot.lane.b32.xlu2 %v2078_v54, %s6614_s21  ;;  %v2259_v54 = vshll.u32 %v2224_v33, 16  ;;  %v1994_v33 = vunpack.c.l.b16 %v1777_v55 }
 0x24e   : > { %v7828_v42 = vpop.permute.xlu2 %2004  ;;  %2014 = vrot.lane.b32.xlu1 %v2001_v27, %s6612_s11  ;;  %v1908_v27 = vor.u32 %v1907_v32, %v1903_v13  ;;  %v2261_v59 = vrot.slane %v2259_v54, 1  ;;  %v6456_v32 = vld [vmem:[%s9874_s4 + $0x18] sm:$0xff] }
 0x24f   : > { %1976 = vrot.lane.b32.xlu0 %v1962_v29, %s6610_s30  ;;  %v2085_v29 = vor.u32 %v2084_v62, %v2080_v24  ;;  %v2138_v62 = vpack.c.b16 %v2034_v36, %v2130_v21  ;;  %2579 = vmatpush.bf16.msra.mxu1 %v6456_v32  ;;  %v1770_v13 = vld [vmem:[#allocation2 + $0x38] sm:$0xe]  ;;  %v1851_v24 = vunpack.c.l.b16 %v1762_v40  ;;  %v6454_v40 = vld [vmem:[%s9874_s4 + $0x8] sm:$0xff]  ;;  %v7868_v32 = vpop.permute.xlu1 %2856 }
 0x250   : > { %v2262_v54 = vor.u32 %v2261_v59, %v2257_v19  ;;  %v1947_v21 = vunpack.c.l.b16 %v1770_v13  ;;  %v7870_v19 = vpop.permute.xlu0 %2854 }
 0x251   : > { %v2146_v22 = vrot.slane %v2138_v62, 1  ;;  %v1859_v59 = vpack.c.b16 %v1851_v24, %v1850_v45 }
 0x253   : > { %v1912_v55 = vshll.u32 %v1859_v59, 16 }
 0x254   : > { %2158 = vrot.lane.b32.xlu2 %v2145_v8, %s6618_s15  ;;  %v2225_v8 = vpack.c.b16 %v10124_v3, %v2177_v48  ;;  %v2042_v3 = vpack.c.b16 %v2034_v36, %v1994_v33  ;;  %v1786_v36 = vld [vmem:[#allocation2 + $0x44] sm:$0x1] }
 0x256   : > { %v7841_v34 = vpop.permute.xlu2 %1918  ;;  %1928 = vrot.lane.b32.xlu1 %v1908_v27, %s6608_s24  ;;  %v6455_v27 = vld [vmem:[%s9874_s4 + $0x10] sm:$0xff]  ;;  %v2266_v56 = vshll.u32 %v2225_v8, 16  ;;  %v2264_v13 = vshrl.u32 %v2225_v8, 16  ;;  %v1910_v8 = vshrl.u32 %v1859_v59, 16 }
 0x257   : > { %2110 = vrot.lane.b32.xlu0 %v2085_v29, %s6614_s21  ;;  %v2185_v29 = vpack.c.b16 %v2177_v48, %v2177_v48  ;;  %2580 = vmatpush.bf16.msra.mxu1 %v6455_v27  ;;  %v1955_v48 = vpack.c.b16 %v1851_v24, %v1947_v21  ;;  %v1914_v24 = vrot.slane %v1912_v55, 1 }
 0x258   : > { %v2268_v62 = vrot.slane %v2266_v56, 1  ;;  %v1778_v56 = vld [vmem:[#allocation2 + $0x40] sm:$0xf] }
 0x259   : > { %v1963_v45 = vrot.slane %v1955_v48, 1  ;;  %v1995_v26 = vunpack.c.l.b16 %v1778_v56  ;;  %v1802_v48 = vld [vmem:[#allocation2 + $0x40] sm:$0xf]  ;;  %v539_v56 = vld [vmem:[%s6703_s17 + $0x38] sm:$0xe] }
 0x25a   : > { %v2269_v27 = vor.u32 %v2268_v62, %v2264_v13  ;;  %v1794_v62 = vld [vmem:[#allocation2 + $0x40] sm:$0xe]  ;;  %v2035_v13 = vunpack.c.l.b16 %v1786_v36  ;;  %v2178_v41 = vunpack.c.l.b16 %v1802_v48 }
 0x25b   : > { %2581 = vmatpush.bf16.msra.mxu1 %v6454_v40 }
 0x25c   : > { %2292 = vrot.lane.b32.xlu2 %v2262_v54, %s6617_s12  ;;  %v2002_v54 = vpack.c.b16 %v1994_v33, %v1994_v33  ;;  %v536_v33 = vld [vmem:[%s6703_s17 + $0x20] sm:$0xe]  ;;  %v2043_v59 = vpack.c.b16 %v2035_v13, %v1995_v26 }
 0x25d   : > { %v2832_v58 = vunpack.c.l.b16 %v536_v33  ;;  %v10126_v33 = vunpack.c.l.b16 %v7772_v53 }
 0x25e   : > { %v7861_v16 = vpop.permute.xlu2 %2188  ;;  %2198 = vrot.lane.b32.xlu1 %v2185_v29, %s6616_s8  ;;  %v2089_v29 = vshll.u32 %v2042_v3, 16  ;;  %v2096_v48 = vshll.u32 %v2043_v59, 16 }
 0x25f   : > { %2160 = vrot.lane.b32.xlu0 %v2146_v22, %s6618_s15  ;;  %v6453_v22 = vld [vmem:[%s9874_s4] sm:$0xff] }
 0x260   : > { %2582 = vmatpush.bf16.msra.mxu1 %v6453_v22  ;;  %v2091_v15 = vrot.slane %v2089_v29, 1  ;;  %v2087_v22 = vshrl.u32 %v2042_v3, 16  ;;  %v10125_v29 = vunpack.c.l.b16 %v7539_v4 }
 0x262   : > { %v2092_v55 = vor.u32 %v2091_v15, %v2087_v22  ;;  %v2226_v15 = vpack.c.b16 %v10126_v33, %v2178_v41 }
 0x264   : > { %2016 = vrot.lane.b32.xlu2 %v2002_v54, %s6612_s11  ;;  %v1915_v54 = vor.u32 %v1914_v24, %v1910_v8  ;;  %v2840_v24 = vpack.c.b16 %v10125_v29, %v2832_v58  ;;  %v2334_v58 = vsel %vm1291_vm4, %v6543_v50, %v7793_v12 }
 0x266   : > { %v7876_v17 = vpop.permute.xlu2 %1968  ;;  %1978 = vrot.lane.b32.xlu1 %v1963_v45, %s6610_s30  ;;  %v2003_v45 = vpack.c.b16 %v1995_v26, %v1995_v26  ;;  %v2835_v26 = vunpack.c.l.b16 %v539_v56  ;;  %v2357_v56 = vsel %vm1325_vm6, %v2334_v58, %v7784_v5 }
 0x267   : > { %2294 = vrot.lane.b32.xlu0 %v2269_v27, %s6617_s12  ;;  %v2131_v27 = vunpack.c.l.b16 %v1794_v62  ;;  %v2848_v62 = vrot.slane %v2840_v24, 1  ;;  %v537_v24 = vld [vmem:[%s6703_s17 + $0x28] sm:$0xe]  ;;  %v2373_v12 = vsel %vm1359_vm8, %v2357_v56, %v7828_v42 }
 0x268   : > { %v1967_v21 = vpop.permute.xlu1 %1966 }
 0x269   : > { %v2149_v40 = vpop.permute.xlu0 %2148  ;;  %v2139_v8 = vpack.c.b16 %v2035_v13, %v2131_v27  ;;  %v2098_v13 = vrot.slane %v2096_v48, 1  ;;  %v2094_v27 = vshrl.u32 %v2043_v59, 16  ;;  %v2271_v48 = vshrl.u32 %v2226_v15, 16 }
 0x26b   : > { %v2147_v22 = vrot.slane %v2139_v8, 1 }
 0x26c   : > { %1930 = vrot.lane.b32.xlu2 %v1915_v54, %s6608_s24  ;;  %v2186_v54 = vpack.c.b16 %v2178_v41, %v2178_v41  ;;  %v10127_v41 = vunpack.c.l.b16 %v7567_v57 }
 0x26e   : > { %v2103_v38 = vpop.permute.xlu2 %2102  ;;  %2112 = vrot.lane.b32.xlu1 %v2092_v55, %s6614_s21  ;;  %v2273_v55 = vshll.u32 %v2226_v15, 16  ;;  %v2843_v53 = vpack.c.b16 %v10127_v41, %v2835_v26 }
 0x26f   : > { %2018 = vrot.lane.b32.xlu0 %v2003_v45, %s6612_s11  ;;  %v538_v45 = vld [vmem:[%s6703_s17 + $0x30] sm:$0xe] }
 0x270   : > { %v2101_v36 = vpop.permute.xlu1 %2100  ;;  %v2834_v29 = vunpack.c.l.b16 %v538_v45  ;;  %v2275_v50 = vrot.slane %v2273_v55, 1  ;;  %v2851_v26 = vrot.slane %v2843_v53, 1  ;;  %v10128_v55 = vunpack.c.l.b16 %v7576_v35 }
 0x271   : > { %v2007_v3 = vpop.permute.xlu0 %2006  ;;  %v2389_v59 = vsel %vm1393_vm10, %v2373_v12, %v2101_v36 }
 0x272   : > { %v2842_v45 = vpack.c.b16 %v10128_v55, %v2834_v29  ;;  %v2276_v58 = vor.u32 %v2275_v50, %v2271_v48  ;;  %v2406_v15 = vsel %vm10013_vm12, %v2389_v59, %v2149_v40  ;;  %v10130_v50 = vld [vmem:[#allocation6_spill] sm:$0xff]  ;;  %v10132_v59 = vld [vmem:[#allocation7_spill] sm:$0xff] }
 0x274   : > { %2200 = vrot.lane.b32.xlu2 %v2186_v54, %s6616_s8  ;;  %v2099_v54 = vor.u32 %v2098_v13, %v2094_v27  ;;  %v2850_v41 = vrot.slane %v2842_v45, 1  ;;  %v10134_v45 = vld [vmem:[#allocation10_spill] sm:$0xff] }
 0x276   : > { %v7893_v4 = vpop.permute.xlu2 %2152  ;;  %2162 = vrot.lane.b32.xlu1 %v2147_v22, %s6618_s15  ;;  %v2833_v22 = vunpack.c.l.b16 %v537_v24 }
 0x277   : > { %2860 = vrot.lane.b32.xlu0 %v2848_v62, %s6608_s24  ;;  %v6544_v62 = vld [vmem:[#allocation2 + $0x8] sm:$0xf] }
 0x278   : > { %v2151_v8 = vpop.permute.xlu1 %2150  ;;  %v2337_v57 = vsel %vm1291_vm4, %v6544_v62, %v7841_v34  ;;  %v10129_v34 = vunpack.c.l.b16 %v7599_v46  ;;  %v2870_v46 = vpack.c.b16 %v10130_v50, %v10130_v50 }
 0x279   : > { %v7902_v33 = vpop.permute.xlu0 %1920  ;;  %v2359_v5 = vsel %vm1325_vm6, %v2337_v57, %v1967_v21 }
 0x27a   : > { %v2375_v42 = vsel %vm1359_vm8, %v2359_v5, %v2007_v3  ;;  %v2841_v21 = vpack.c.b16 %v10129_v34, %v2833_v22  ;;  %v2423_v3 = vsel %vm10012_vm13, %v2406_v15, %v7861_v16  ;;  %v10131_v16 = vld [vmem:[#allocation9_spill] sm:$0xff]  ;;  %v10133_v22 = vld [vmem:[#allocation15_spill] sm:$0xff] }
 0x27b   : > { %v2391_v36 = vsel %vm1393_vm10, %v2375_v42, %v2103_v38  ;;  %v2869_v48 = vpack.c.b16 %v10131_v16, %v10131_v16  ;;  %v2873_v5 = vpack.c.b16 %v10133_v22, %v10133_v22  ;;  %v2872_v42 = vpack.c.b16 %v10134_v45, %v10134_v45  ;;  %v6545_v22 = vld [vmem:[#allocation2 + $0x10] sm:$0xf] }
 0x27c   : > { %2114 = vrot.lane.b32.xlu2 %v2099_v54, %s6614_s21  ;;  %v2408_v35 = vsel %vm10013_vm12, %v2391_v36, %v2151_v8  ;;  %v2849_v56 = vrot.slane %v2841_v21, 1  ;;  %v10136_v36 = vld [vmem:[#allocation14_spill] sm:$0xff] }
 0x27e   : > { %v2287_v13 = vpop.permute.xlu2 %2286  ;;  %2296 = vrot.lane.b32.xlu1 %v2276_v58, %s6617_s12 }
 0x27f   : > { %2866 = vrot.lane.b32.xlu0 %v2851_v26, %s6608_s24  ;;  %v2868_v26 = vpack.c.b16 %v10132_v59, %v10132_v59 }
 0x280   : > { %v2285_v53 = vpop.permute.xlu1 %2284 }
 0x281   : > { %v2191_v40 = vpop.permute.xlu0 %2190  ;;  %v2440_v27 = vsel %vm10011_vm15, %v2423_v3, %v2285_v53 }
 0x282   : > { %v2425_v29 = vsel %vm10012_vm13, %v2408_v35, %v2191_v40  ;;  %v2463_v24 = vunpack.c.l.b16 %v2440_v27  ;;  %v10138_v40 = vld [vmem:[#allocation13_spill] sm:$0xff] }
 0x283   : > { %v2442_v12 = vsel %vm10011_vm15, %v2425_v29, %v2287_v13  ;;  %v10135_v13 = vld [vmem:[#allocation8_spill] sm:$0xff]  ;;  %v2874_v27 = vpack.c.b16 %v10138_v40, %v10138_v40 }
 0x284   : > { %2864 = vrot.lane.b32.xlu2 %v2850_v41, %s6608_s24  ;;  %v2465_v38 = vunpack.c.l.b16 %v2442_v12  ;;  %v2871_v34 = vpack.c.b16 %v10135_v13, %v10135_v13  ;;  %v10137_v41 = vld [vmem:[#allocation11_spill] sm:$0xff]  ;;  %v10144_v13 = vld [vmem:[#allocation16_spill] sm:$0xff] }
 0x285   : > { %v2875_v35 = vpack.c.b16 %v10137_v41, %v10137_v41 }
 0x286   : > { %v2011_v8 = vpop.permute.xlu2 %2010  ;;  %v2497_v54 = vpack.c.b16 %v2465_v38, %v2463_v24  ;;  %2862 = vrot.lane.b32.xlu1 %v2849_v56, %s6608_s24  ;;  %v10139_v24 = vld [vmem:[#allocation17_spill] sm:$0xff]  ;;  %v10141_v38 = vld [vmem:[#allocation18_spill] sm:$0xff] }
 0x287   : > { %2880 = vrot.lane.b32.xlu0 %v2870_v46, %s6609_s29  ;;  %v10140_v46 = vld [vmem:[#allocation12_spill] sm:$0xff] }
 0x288   : > { %2583 = vmatmul.bf16.vlgmr.msra.gmra.mxu1 %v2497_v54  ;;  %v2009_v62 = vpop.permute.xlu1 %2008  ;;  %v10142_v54 = vld [vmem:[#allocation22_spill] sm:$0xff] }
 0x289   : > { %v1971_v57 = vpop.permute.xlu0 %1970 }
 0x28c   : > { %2878 = vrot.lane.b32.xlu2 %v2869_v48, %s6609_s29 }
 0x28e   : > { %v7938_v55 = vpop.permute.xlu2 %1924  ;;  %2876 = vrot.lane.b32.xlu1 %v2868_v26, %s6609_s29  ;;  %v10143_v26 = vld [vmem:[#allocation19_spill] sm:$0xff] }
 0x28f   : > { %2886 = vrot.lane.b32.xlu0 %v2873_v5, %s6609_s29  ;;  %v2340_v5 = vsel %vm1291_vm4, %v6545_v22, %v7902_v33 }
 0x290   : > { %v1923_v58 = vpop.permute.xlu1 %1922 }
 0x291   : > { %v2105_v15 = vpop.permute.xlu0 %2104  ;;  %v2343_v59 = vsel %vm1291_vm4, %v7715_v43, %v1923_v58  ;;  %v2361_v43 = vsel %vm1325_vm6, %v2340_v5, %v7876_v17  ;;  %v10152_v5 = vld [vmem:[#allocation25_spill] sm:$0xff] }
 0x292   : > { %v2377_v33 = vsel %vm1359_vm8, %v2361_v43, %v2009_v62  ;;  %v10156_v43 = vld [vmem:[#allocation29_spill] sm:$0xff] }
 0x294   : > { %2884 = vrot.lane.b32.xlu2 %v2872_v42, %s6609_s29  ;;  %v2363_v42 = vsel %vm1325_vm6, %v2343_v59, %v1971_v57  ;;  %v2393_v57 = vsel %vm1393_vm10, %v2377_v33, %v2105_v15  ;;  %v10150_v15 = vld [vmem:[#allocation27_spill] sm:$0xff]  ;;  %v10157_v33 = vrot.slane %v10156_v43, 1  ;;  %v6118_v43 = vld [vmem:[%s6703_s17 + $0x28] sm:$0xf] }
 0x295   : > { %v2410_v17 = vsel %vm10013_vm12, %v2393_v57, %v7893_v4  ;;  %v8028_v57 = vld [vmem:[%s6703_s17 + $0x14] sm:$0x1] }
 0x296   : > { %v2195_v21 = vpop.permute.xlu2 %2194  ;;  %2882 = vrot.lane.b32.xlu1 %v2871_v34, %s6609_s29  ;;  %v10145_v34 = vld [vmem:[#allocation24_spill] sm:$0xff] }
 0x297   : > { %2892 = vrot.lane.b32.xlu0 %v10136_v36, %s6610_s30  ;;  %v10146_v36 = vrot.slane %v10145_v34, 1 }
 0x298   : > { %v2193_v53 = vpop.permute.xlu1 %2192 }
 0x299   : > { %v2155_v3 = vpop.permute.xlu0 %2154  ;;  %v2427_v62 = vsel %vm10012_vm13, %v2410_v17, %v2193_v53  ;;  %v6115_v17 = vld [vmem:[%s6703_s17 + $0x10] sm:$0xf] }
 0x29c   : > { %2890 = vrot.lane.b32.xlu2 %v2875_v35, %s6609_s29  ;;  %v2379_v35 = vsel %vm1359_vm8, %v2363_v42, %v2011_v8  ;;  %v10149_v8 = vld [vmem:[#allocation21_spill] sm:$0xff]  ;;  %v10153_v42 = vrot.slane %v10152_v5, 1 }
 0x29e   : > { %v7955_v29 = vpop.permute.xlu2 %1974  ;;  %2888 = vrot.lane.b32.xlu1 %v2874_v27, %s6609_s29  ;;  %v10147_v27 = vld [vmem:[#allocation20_spill] sm:$0xff] }
 0x29f   : > { %2898 = vrot.lane.b32.xlu0 %v10139_v24, %s6610_s30  ;;  %v10148_v24 = vrot.slane %v10147_v27, 1 }
 0x2a0   : > { %v7960_v56 = vpop.permute.xlu1 %1972 }
 0x2a1   : > { %v2289_v50 = vpop.permute.xlu0 %2288 }
 0x2a4   : > { %2896 = vrot.lane.b32.xlu2 %v10140_v46, %s6610_s30 }
 0x2a6   : > { %v7964_v12 = vpop.permute.xlu2 %2108  ;;  %2894 = vrot.lane.b32.xlu1 %v10141_v38, %s6610_s30 }
 0x2a7   : > { %2904 = vrot.lane.b32.xlu0 %v10142_v54, %s6610_s30  ;;  %v10151_v54 = vrot.slane %v10150_v15, 1 }
 0x2a8   : > { %v2107_v16 = vpop.permute.xlu1 %2106 }
 0x2a9   : > { %v7970_v48 = vpop.permute.xlu0 %2012  ;;  %v2395_v40 = vsel %vm1393_vm10, %v2379_v35, %v2107_v16  ;;  %v2444_v16 = vsel %vm10011_vm15, %v2427_v62, %v2289_v50  ;;  %v10154_v50 = vld [vmem:[#allocation23_spill] sm:$0xff]  ;;  %v9983_v62 = vunpack.c.l.b16 %v8028_v57 }
 0x2aa   : > { %v2412_v46 = vsel %vm10013_vm12, %v2395_v40, %v2155_v3  ;;  %v2467_v53 = vunpack.c.l.b16 %v2444_v16  ;;  %v6120_v16 = vld [vmem:[%s6703_s17 + $0x38] sm:$0xf] }
 0x2ac   : > { %2902 = vrot.lane.b32.xlu2 %v10143_v26, %s6610_s30  ;;  %v2429_v26 = vsel %vm10012_vm13, %v2412_v46, %v2195_v21  ;;  %v10155_v21 = vrot.slane %v10154_v50, 1 }
 0x2ae   : > { %v7978_v45 = vpop.permute.xlu2 %2158  ;;  %2900 = vrot.lane.b32.xlu1 %v10144_v13, %s6610_s30  ;;  %v6117_v13 = vld [vmem:[%s6703_s17 + $0x20] sm:$0xf] }
 0x2af   : > { %2910 = vrot.lane.b32.xlu0 %v10146_v36, %s6611_s10  ;;  %v2934_v35 = vunpack.c.l.b16 %v6117_v13 }
 0x2b0   : > { %v7988_v58 = vpop.permute.xlu1 %2156 }
 0x2b1   : > { %v7990_v41 = vpop.permute.xlu0 %1926  ;;  %v2942_v46 = vpack.c.b16 %v2934_v35, %v2934_v35 }
 0x2b4   : > { %2908 = vrot.lane.b32.xlu2 %v10148_v24, %s6611_s10  ;;  %v6116_v24 = vld [vmem:[%s6703_s17 + $0x18] sm:$0xf] }
 0x2b6   : > { %v8002_v38 = vpop.permute.xlu2 %2292  ;;  %2906 = vrot.lane.b32.xlu1 %v10149_v8, %s6610_s30  ;;  %v10158_v8 = vld [vmem:[#allocation28_spill] sm:$0xff] }
 0x2b7   : > { %2916 = vrot.lane.b32.xlu0 %v10151_v54, %s6611_s10  ;;  %v10159_v15 = vrot.slane %v10158_v8, 1  ;;  %v8038_v54 = vunpack.c.l.b16 %v6116_v24  ;;  %v2346_v8 = vsel %vm1291_vm4, %v7757_v28, %v7938_v55  ;;  %v2349_v55 = vsel %vm1291_vm4, %v7775_v14, %v7990_v41  ;;  %v6122_v41 = vld [vmem:[%s6703_s17 + $0x48] sm:$0xf] }
 0x2b8   : > { %v2291_v59 = vpop.permute.xlu1 %2290  ;;  %v8110_v10 = vunpack.c.l.b16 %v6122_v41 }
 0x2b9   : > { %v8012_v4 = vpop.permute.xlu0 %2196  ;;  %v2446_v3 = vsel %vm10011_vm15, %v2429_v26, %v2291_v59  ;;  %v2932_v59 = vunpack.c.l.b16 %v6115_v17  ;;  %v2941_v13 = vpack.c.b16 %v8038_v54, %v8038_v54 }
 0x2ba   : > { %v2469_v22 = vunpack.c.l.b16 %v2446_v3  ;;  %v10160_v3 = vld [vmem:[#allocation26_spill] sm:$0xff] }
 0x2bb   : > { %v2980_v5 = vpack.c.b16 %v9983_v62, %v2932_v59  ;;  %v2940_v24 = vpack.c.b16 %v2932_v59, %v2932_v59 }
 0x2bc   : > { %2914 = vrot.lane.b32.xlu2 %v10153_v42, %s6611_s10  ;;  %v2499_v34 = vpack.c.b16 %v2469_v22, %v2467_v53  ;;  %v10161_v53 = vrot.slane %v10160_v3, 1  ;;  %v8047_v22 = vunpack.c.l.b16 %v6120_v16  ;;  %v8052_v42 = vld [vmem:[%s6703_s17 + $0x2c] sm:$0x1]  ;;  %v2935_v16 = vunpack.c.l.b16 %v6118_v43  ;;  %v8089_v43 = vld [vmem:[%s6703_s17 + $0x1c] sm:$0x1] }
 0x2bd   : > { %v2365_v3 = vsel %vm1325_vm6, %v2346_v8, %v7960_v56  ;;  %v2989_v56 = vshrl.u32 %v2980_v5, 16  ;;  %v8092_v8 = vld [vmem:[%s6703_s17 + $0x44] sm:$0x1]  ;;  %v9991_v39 = vunpack.c.l.b16 %v8089_v43 }
 0x2be   : > { %v8019_v36 = vpop.permute.xlu2 %2016  ;;  %2912 = vrot.lane.b32.xlu1 %v10155_v21, %s6611_s10  ;;  %2588 = vmatmul.bf16.gmra.mxu1 %v2499_v34  ;;  %v6119_v21 = vld [vmem:[%s6703_s17 + $0x30] sm:$0xf]  ;;  %v2945_v17 = vpack.c.b16 %v8047_v22, %v8047_v22  ;;  %v2381_v59 = vsel %vm1359_vm8, %v2365_v3, %v7970_v48  ;;  %v2943_v48 = vpack.c.b16 %v2935_v16, %v2935_v16 }
 0x2bf   : > { %2922 = vrot.lane.b32.xlu0 %v10157_v33, %s6611_s10  ;;  %v9984_v33 = vunpack.c.l.b16 %v8052_v42  ;;  %v2397_v3 = vsel %vm1393_vm10, %v2381_v59, %v7964_v12 }
 0x2c0   : > { %v2015_v40 = vpop.permute.xlu1 %2014 }
 0x2c1   : > { %v8030_v27 = vpop.permute.xlu0 %1976  ;;  %v2983_v28 = vpack.c.b16 %v9984_v33, %v2935_v16 }
 0x2c4   : > { %2920 = vrot.lane.b32.xlu2 %v10159_v15, %s6611_s10  ;;  %v8067_v15 = vunpack.c.l.b16 %v6119_v21 }
 0x2c6   : > { %v8041_v26 = vpop.permute.xlu2 %1930  ;;  %2918 = vrot.lane.b32.xlu1 %v10161_v53, %s6611_s10  ;;  %v8072_v53 = vld [vmem:[%s6703_s17 + $0x24] sm:$0x1]  ;;  %v2944_v21 = vpack.c.b16 %v8067_v15, %v8067_v15 }
 0x2c7   : > { %2952 = vrot.lane.b32.xlu0 %v2942_v46, %s6612_s11  ;;  %v2991_v46 = vshll.u32 %v2980_v5, 16  ;;  %v2414_v5 = vsel %vm10013_vm12, %v2397_v3, %v7988_v58  ;;  %v10162_v58 = vunpack.c.l.b16 %v8072_v53  ;;  %v3010_v3 = vshrl.u32 %v2983_v28, 16 }
 0x2c8   : > { %v8056_v34 = vpop.permute.xlu1 %1928  ;;  %v2431_v12 = vsel %vm10012_vm13, %v2414_v5, %v8012_v4 }
 0x2c9   : > { %v2111_v50 = vpop.permute.xlu0 %2110  ;;  %v2448_v4 = vsel %vm10011_vm15, %v2431_v12, %v8002_v38 }
 0x2ca   : > { %v2471_v12 = vunpack.c.l.b16 %v2448_v4 }
 0x2cc   : > { %2950 = vrot.lane.b32.xlu2 %v2941_v13, %s6612_s11  ;;  %v2993_v13 = vrot.slane %v2991_v46, 1  ;;  %v3012_v46 = vshll.u32 %v2983_v28, 16  ;;  %v2947_v28 = vpack.c.b16 %v8110_v10, %v8110_v10 }
 0x2ce   : > { %v8076_v62 = vpop.permute.xlu2 %2200  ;;  %2948 = vrot.lane.b32.xlu1 %v2940_v24, %s6612_s11  ;;  %v2367_v24 = vsel %vm1325_vm6, %v2349_v55, %v7955_v29  ;;  %v2994_v37 = vor.u32 %v2993_v13, %v2989_v56  ;;  %v2982_v29 = vpack.c.b16 %v10162_v58, %v2934_v35  ;;  %v8116_v56 = vld [vmem:[%s6703_s17 + $0x3c] sm:$0x1]  ;;  %v3014_v52 = vrot.slane %v3012_v46, 1 }
 0x2cf   : > { %2958 = vrot.lane.b32.xlu0 %v2945_v17, %s6612_s11  ;;  %v6121_v17 = vld [vmem:[%s6703_s17 + $0x40] sm:$0xf]  ;;  %v2383_v59 = vsel %vm1359_vm8, %v2367_v24, %v2015_v40  ;;  %v2981_v35 = vpack.c.b16 %v9991_v39, %v8038_v54  ;;  %v10163_v40 = vunpack.c.l.b16 %v8092_v8 }
 0x2d0   : > { %v2199_v33 = vpop.permute.xlu1 %2198  ;;  %v2399_v16 = vsel %vm1393_vm10, %v2383_v59, %v2111_v50  ;;  %v2938_v55 = vunpack.c.l.b16 %v6121_v17  ;;  %v3005_v41 = vshll.u32 %v2982_v29, 16  ;;  %v3015_v46 = vor.u32 %v3014_v52, %v3010_v3 }
 0x2d1   : > { %v8096_v14 = vpop.permute.xlu0 %2160  ;;  %v2998_v58 = vshll.u32 %v2981_v35, 16  ;;  %v2996_v52 = vshrl.u32 %v2981_v35, 16 }
 0x2d2   : > { %v2986_v50 = vpack.c.b16 %v10163_v40, %v2938_v55  ;;  %v2946_v17 = vpack.c.b16 %v2938_v55, %v2938_v55  ;;  %v3003_v40 = vshrl.u32 %v2982_v29, 16  ;;  %v3007_v39 = vrot.slane %v3005_v41, 1  ;;  %v8150_v29 = vld [vmem:[%s6703_s17 + $0x4c] sm:$0x1] }
 0x2d3   : > { %v3000_v55 = vrot.slane %v2998_v58, 1  ;;  %v2979_v35 = vunpack.c.l.b16 %v8150_v29 }
 0x2d4   : > { %2956 = vrot.lane.b32.xlu2 %v2944_v21, %s6612_s11  ;;  %v2416_v21 = vsel %vm10013_vm12, %v2399_v16, %v7978_v45  ;;  %v3033_v45 = vshll.u32 %v2986_v50, 16  ;;  %v3031_v3 = vshrl.u32 %v2986_v50, 16  ;;  %v3008_v41 = vor.u32 %v3007_v39, %v3003_v40  ;;  %v6131_v40 = vld [vmem:[%s6703_s17 + $0x10] sm:$0xe] }
 0x2d5   : > { %v2433_v38 = vsel %vm10012_vm13, %v2416_v21, %v2199_v33  ;;  %v2352_v39 = vsel %vm1291_vm4, %v7805_v0, %v8056_v34 }
 0x2d6   : > { %v8118_v13 = vpop.permute.xlu2 %2114  ;;  %2954 = vrot.lane.b32.xlu1 %v2943_v48, %s6612_s11  ;;  %v2977_v48 = vunpack.c.l.b16 %v8116_v56  ;;  %v3035_v4 = vrot.slane %v3033_v45, 1  ;;  %v593_v56 = vld [vmem:[%s6712_s25 + $0x18] sm:$0xf] }
 0x2d7   : > { %3044 = vrot.lane.b32.xlu0 %v2994_v37, %s6613_s18  ;;  %v8135_v37 = vld [vmem:[%s6703_s17 + $0x34] sm:$0x1] }
 0x2d8   : > { %v1979_v5 = vpop.permute.xlu1 %1978  ;;  %v2976_v16 = vunpack.c.l.b16 %v8135_v37  ;;  %v2985_v33 = vpack.c.b16 %v2977_v48, %v8047_v22  ;;  %v6132_v22 = vld [vmem:[%s6703_s17 + $0x18] sm:$0xe] }
 0x2d9   : > { %v2295_v24 = vpop.permute.xlu0 %2294 }
 0x2da   : > { %v2450_v54 = vsel %vm10011_vm15, %v2433_v38, %v2295_v24  ;;  %v3026_v37 = vshll.u32 %v2985_v33, 16  ;;  %v3024_v50 = vshrl.u32 %v2985_v33, 16 }
 0x2db   : > { %v2473_v59 = vunpack.c.l.b16 %v2450_v54 }
 0x2dc   : > { %2962 = vrot.lane.b32.xlu2 %v2947_v28, %s6612_s11  ;;  %v2984_v28 = vpack.c.b16 %v2976_v16, %v8067_v15  ;;  %v2355_v15 = vsel %vm1291_vm4, %v7849_v63, %v8041_v26  ;;  %v3028_v58 = vrot.slane %v3026_v37, 1  ;;  %v6135_v63 = vld [vmem:[%s6703_s17 + $0x30] sm:$0xe]  ;;  %v2369_v26 = vsel %vm1325_vm6, %v2352_v39, %v8030_v27 }
 0x2dd   : > { %v2501_v21 = vpack.c.b16 %v2473_v59, %v2471_v12  ;;  %v3036_v12 = vor.u32 %v3035_v4, %v3031_v3  ;;  %v3069_v59 = vunpack.c.l.b16 %v6132_v22  ;;  %v2371_v45 = vsel %vm1325_vm6, %v2355_v15, %v1979_v5  ;;  %v6134_v15 = vld [vmem:[%s6703_s17 + $0x28] sm:$0xe] }
 0x2de   : > { %v8144_v38 = vpop.permute.xlu2 %2864  ;;  %2960 = vrot.lane.b32.xlu1 %v2946_v17, %s6612_s11  ;;  %v3001_v17 = vor.u32 %v3000_v55, %v2996_v52  ;;  %v2987_v55 = vpack.c.b16 %v2979_v35, %v8110_v10  ;;  %v3017_v0 = vshrl.u32 %v2984_v28, 16  ;;  %v10165_v5 = vunpack.c.l.b16 %v8089_v43 }
 0x2df   : > { %10164 = vst [vmem:[#allocation6_spill] sm:$0xff] %v8144_v38  ;;  %3050 = vrot.lane.b32.xlu0 %v3015_v46, %s6613_s18  ;;  %2593 = vmatmul.bf16.gmra.mxu1 %v2501_v21  ;;  %v3019_v46 = vshll.u32 %v2984_v28, 16  ;;  %v3029_v3 = vor.u32 %v3028_v58, %v3024_v50  ;;  %v3068_v4 = vunpack.c.l.b16 %v6131_v40  ;;  %v3072_v22 = vunpack.c.l.b16 %v6135_v63  ;;  %v8202_v63 = vld [vmem:[%s6712_s25 + $0x14] sm:$0x1] }
 0x2e0   : > { %v2113_v24 = vpop.permute.xlu1 %2112  ;;  %v3077_v33 = vpack.c.b16 %v10165_v5, %v3069_v59  ;;  %v2385_v27 = vsel %vm1359_vm8, %v2369_v26, %v8019_v36  ;;  %v3040_v28 = vshll.u32 %v2987_v55, 16 }
 0x2e1   : > { %v2019_v54 = vpop.permute.xlu0 %2018  ;;  %v3021_v34 = vrot.slane %v3019_v46, 1  ;;  %v2401_v43 = vsel %vm1393_vm10, %v2385_v27, %v2113_v24  ;;  %v10166_v46 = vunpack.c.l.b16 %v8028_v57  ;;  %v3080_v36 = vpack.c.b16 %v2976_v16, %v3072_v22  ;;  %v6133_v57 = vld [vmem:[%s6703_s17 + $0x20] sm:$0xe]  ;;  %v592_v16 = vld [vmem:[%s6712_s25 + $0x10] sm:$0xf] }
 0x2e2   : > { %v2387_v21 = vsel %vm1359_vm8, %v2371_v45, %v2019_v54  ;;  %v2418_v39 = vsel %vm10013_vm12, %v2401_v43, %v8096_v14  ;;  %v3038_v24 = vshrl.u32 %v2987_v55, 16  ;;  %v3042_v58 = vrot.slane %v3040_v28, 1  ;;  %v6138_v45 = vld [vmem:[%s6703_s17 + $0x48] sm:$0xe]  ;;  %v8216_v43 = vld [vmem:[%s6712_s25 + $0xc] sm:$0x1] }
 0x2e3   : > { %v2403_v10 = vsel %vm1393_vm10, %v2387_v21, %v8118_v13  ;;  %v3076_v13 = vpack.c.b16 %v10166_v46, %v3068_v4  ;;  %v2435_v55 = vsel %vm10012_vm13, %v2418_v39, %v8076_v62  ;;  %v10168_v62 = vunpack.c.l.b16 %v8052_v42  ;;  %v591_v28 = vld [vmem:[%s6712_s25 + $0x8] sm:$0xf] }
 0x2e4   : > { %3048 = vrot.lane.b32.xlu2 %v3008_v41, %s6613_s18  ;;  %v3043_v5 = vor.u32 %v3042_v58, %v3038_v24  ;;  %v3522_v58 = vunpack.c.l.b16 %v591_v28 }
 0x2e5   : > { %v3084_v40 = vrot.slane %v3076_v13, 1  ;;  %v6136_v13 = vld [vmem:[%s6703_s17 + $0x38] sm:$0xe] }
 0x2e6   : > { %v8164_v52 = vpop.permute.xlu2 %2878  ;;  %3046 = vrot.lane.b32.xlu1 %v3001_v17, %s6613_s18  ;;  %v3022_v17 = vor.u32 %v3021_v34, %v3017_v0  ;;  %v3088_v0 = vrot.slane %v3080_v36, 1  ;;  %v590_v36 = vld [vmem:[%s6712_s25] sm:$0xf] }
 0x2e7   : > { %3056 = vrot.lane.b32.xlu0 %v3036_v12, %s6613_s18  ;;  %v3085_v12 = vrot.slane %v3077_v33, 1  ;;  %v3070_v33 = vunpack.c.l.b16 %v6133_v57  ;;  %v595_v57 = vld [vmem:[%s6712_s25 + $0x28] sm:$0xf] }
 0x2e8   : > { %v2163_v41 = vpop.permute.xlu1 %2162 }
 0x2e9   : > { %v8178_v37 = vpop.permute.xlu0 %2860  ;;  %v2420_v54 = vsel %vm10013_vm12, %v2403_v10, %v2163_v41  ;;  %v3524_v41 = vunpack.c.l.b16 %v592_v16  ;;  %v9995_v10 = vunpack.c.l.b16 %v8202_v63  ;;  %vm10240_vm12 = vsmask.f32 7938 }
 0x2ea   : > { %v2437_v59 = vsel %vm10012_vm13, %v2420_v54, %v7795_v11  ;;  %v3071_v11 = vunpack.c.l.b16 %v6134_v15  ;;  %v6137_v54 = vld [vmem:[%s6703_s17 + $0x40] sm:$0xe]  ;;  %v8231_v15 = vld [vmem:[%s6712_s25 + $0x4] sm:$0x1] }
 0x2eb   : > { %v2454_v21 = vsel %vm10011_vm15, %v2437_v59, %v7747_v7  ;;  %v3075_v7 = vunpack.c.l.b16 %v6138_v45  ;;  %v3538_v59 = vpack.c.b16 %v9995_v10, %v3524_v41  ;;  %v3074_v24 = vunpack.c.l.b16 %v6137_v54  ;;  %v8236_v45 = vld [vmem:[%s6712_s25 + $0x2c] sm:$0x1] }
 0x2ec   : > { %3054 = vrot.lane.b32.xlu2 %v3029_v3, %s6613_s18  ;;  %v2477_v4 = vunpack.c.l.b16 %v2454_v21  ;;  %v3079_v22 = vpack.c.b16 %v10168_v62, %v3071_v11  ;;  %v3073_v21 = vunpack.c.l.b16 %v6136_v13  ;;  %v3520_v11 = vunpack.c.l.b16 %v590_v36 }
 0x2ed   : > { %v3083_v42 = vpack.c.b16 %v2979_v35, %v3075_v7  ;;  %v3521_v16 = vunpack.c.l.b16 %v8231_v15  ;;  %v608_v15 = vld [vmem:[%s6712_s25 + $0x10] sm:$0xe] }
 0x2ee   : > { %v8192_v50 = vpop.permute.xlu2 %2884  ;;  %3052 = vrot.lane.b32.xlu1 %v3022_v17, %s6613_s18  ;;  %v3087_v39 = vrot.slane %v3079_v22, 1  ;;  %v3081_v62 = vpack.c.b16 %v2977_v48, %v3073_v21  ;;  %v8266_v48 = vld [vmem:[%s6712_s25 + $0x1c] sm:$0x1] }
 0x2ef   : > { %3094 = vrot.lane.b32.xlu0 %v3085_v12, %s6614_s21  ;;  %v10170_v12 = vunpack.c.l.b16 %v8072_v53  ;;  %v9994_v53 = vunpack.c.l.b16 %v8216_v43  ;;  %v3536_v22 = vpack.c.b16 %v3521_v16, %v3520_v11 }
 0x2f0   : > { %v2297_v14 = vpop.permute.xlu1 %2296 }
 0x2f1   : > { %v8206_v26 = vpop.permute.xlu0 %2866  ;;  %v2452_v34 = vsel %vm10011_vm15, %v2435_v55, %v2297_v14  ;;  %v3078_v46 = vpack.c.b16 %v10170_v12, %v3070_v33  ;;  %v3091_v14 = vrot.slane %v3083_v42, 1  ;;  %v3561_v55 = vshll.u32 %v3538_v59, 16 }
 0x2f2   : > { %10167 = vst [vmem:[#allocation9_spill] sm:$0xff] %v8206_v26  ;;  %v2475_v3 = vunpack.c.l.b16 %v2452_v34  ;;  %v9993_v34 = vunpack.c.l.b16 %v8236_v45  ;;  %v3537_v7 = vpack.c.b16 %v9994_v53, %v3522_v58  ;;  %vm10237_vm15 = vsmask.f32 256 }
 0x2f3   : > { %v3086_v35 = vrot.slane %v3078_v46, 1 }
 0x2f4   : > { %3092 = vrot.lane.b32.xlu2 %v3084_v40, %s6614_s21  ;;  %v2503_v27 = vpack.c.b16 %v2477_v4, %v2475_v3  ;;  %v594_v3 = vld [vmem:[%s6712_s25 + $0x20] sm:$0xf]  ;;  %v8251_v4 = vld [vmem:[%s6712_s25 + $0x24] sm:$0x1]  ;;  %v3554_v12 = vshll.u32 %v3537_v7, 16  ;;  %v3552_v21 = vshrl.u32 %v3537_v7, 16 }
 0x2f5   : > { %v3528_v46 = vunpack.c.l.b16 %v594_v3  ;;  %v9992_v13 = vunpack.c.l.b16 %v8251_v4 }
 0x2f6   : > { %v8218_v17 = vpop.permute.xlu2 %2890  ;;  %3058 = vrot.lane.b32.xlu1 %v3043_v5, %s6613_s18  ;;  %2598 = vmatmul.bf16.gmra.mxu1 %v2503_v27  ;;  %v10171_v5 = vunpack.c.l.b16 %v8092_v8  ;;  %v3559_v8 = vshrl.u32 %v3538_v59, 16  ;;  %v3563_v27 = vrot.slane %v3561_v55, 1  ;;  %v3547_v59 = vshll.u32 %v3536_v22, 16  ;;  %v597_v55 = vld [vmem:[%s6712_s25 + $0x38] sm:$0xf] }
 0x2f7   : > { %10169 = vst [vmem:[#allocation7_spill] sm:$0xff] %v8218_v17  ;;  %3100 = vrot.lane.b32.xlu0 %v3088_v0, %s6614_s21  ;;  %v3530_v0 = vunpack.c.l.b16 %v595_v57  ;;  %v3526_v57 = vunpack.c.l.b16 %v593_v56  ;;  %v3556_v11 = vrot.slane %v3554_v12, 1 }
 0x2f8   : > { %v8238_v40 = vpop.permute.xlu1 %2862  ;;  %v3082_v33 = vpack.c.b16 %v10171_v5, %v3074_v24  ;;  %v3564_v24 = vor.u32 %v3563_v27, %v3559_v8  ;;  %v3549_v3 = vrot.slane %v3547_v59, 1  ;;  %v606_v27 = vld [vmem:[%s6712_s25] sm:$0xe] }
 0x2f9   : > { %v8240_v29 = vpop.permute.xlu0 %2880  ;;  %v3541_v54 = vpack.c.b16 %v9993_v34, %v3530_v0  ;;  %v8278_v0 = vld [vmem:[%s6712_s25 + $0x3c] sm:$0x1]  ;;  %v3624_v59 = vunpack.c.l.b16 %v606_v27 }
 0x2fa   : > { %v3090_v28 = vrot.slane %v3082_v33, 1  ;;  %v3545_v33 = vshrl.u32 %v3536_v22, 16  ;;  %v9996_v56 = vunpack.c.l.b16 %v8278_v0 }
 0x2fb   : > { %v3582_v58 = vshll.u32 %v3541_v54, 16 }
 0x2fc   : > { %3098 = vrot.lane.b32.xlu2 %v3087_v39, %s6614_s21  ;;  %v3089_v39 = vrot.slane %v3081_v62, 1  ;;  %v3580_v62 = vshrl.u32 %v3541_v54, 16  ;;  %v3550_v22 = vor.u32 %v3549_v3, %v3545_v33  ;;  %v3632_v3 = vpack.c.b16 %v3521_v16, %v3624_v59 }
 0x2fd   : > { %v3584_v8 = vrot.slane %v3582_v58, 1 }
 0x2fe   : > { %v8253_v41 = vpop.permute.xlu2 %2896  ;;  %3096 = vrot.lane.b32.xlu1 %v3086_v35, %s6614_s21  ;;  %v3527_v35 = vunpack.c.l.b16 %v8266_v48  ;;  %v596_v48 = vld [vmem:[%s6712_s25 + $0x30] sm:$0xf] }
 0x2ff   : > { %3106 = vrot.lane.b32.xlu0 %v3091_v14, %s6614_s21  ;;  %v3540_v14 = vpack.c.b16 %v9992_v13, %v3528_v46  ;;  %v3534_v46 = vunpack.c.l.b16 %v597_v55  ;;  %v604_v13 = vld [vmem:[%s6712_s25 + $0x34] sm:$0x1]  ;;  %v3532_v54 = vunpack.c.l.b16 %v596_v48 }
 0x300   : > { %v8268_v42 = vpop.permute.xlu1 %2876  ;;  %v3539_v7 = vpack.c.b16 %v3527_v35, %v3526_v57 }
 0x301   : > { %v8270_v36 = vpop.permute.xlu0 %2886  ;;  %v3575_v12 = vshll.u32 %v3540_v14, 16  ;;  %v3573_v58 = vshrl.u32 %v3540_v14, 16  ;;  %v609_v14 = vld [vmem:[%s6712_s25 + $0x18] sm:$0xe] }
 0x302   : > { %v3568_v10 = vshll.u32 %v3539_v7, 16  ;;  %v3566_v55 = vshrl.u32 %v3539_v7, 16 }
 0x303   : > { %v3577_v57 = vrot.slane %v3575_v12, 1 }
 0x304   : > { %3104 = vrot.lane.b32.xlu2 %v3090_v28, %s6614_s21  ;;  %v3557_v28 = vor.u32 %v3556_v11, %v3552_v21  ;;  %v3543_v21 = vpack.c.b16 %v9996_v56, %v3534_v46  ;;  %v3570_v33 = vrot.slane %v3568_v10, 1  ;;  %v3640_v46 = vrot.slane %v3632_v3, 1 }
 0x306   : > { %v8280_v5 = vpop.permute.xlu2 %2902  ;;  %3102 = vrot.lane.b32.xlu1 %v3089_v39, %s6614_s21  ;;  %v3585_v39 = vor.u32 %v3584_v8, %v3580_v62  ;;  %v3578_v62 = vor.u32 %v3577_v57, %v3573_v58  ;;  %v3596_v8 = vshll.u32 %v3543_v21, 16  ;;  %v3571_v12 = vor.u32 %v3570_v33, %v3566_v55  ;;  %v607_v55 = vld [vmem:[%s6712_s25 + $0x8] sm:$0xe]  ;;  %v612_v33 = vld [vmem:[%s6712_s25 + $0x30] sm:$0xe] }
 0x307   : > { %3604 = vrot.lane.b32.xlu0 %v3564_v24, %s6607_s0  ;;  %v3533_v24 = vunpack.c.l.b16 %v604_v13  ;;  %v3594_v10 = vshrl.u32 %v3543_v21, 16  ;;  %v3626_v57 = vunpack.c.l.b16 %v608_v15  ;;  %v3630_v56 = vunpack.c.l.b16 %v612_v33 }
 0x308   : > { %v8288_v34 = vpop.permute.xlu1 %2882  ;;  %v3598_v7 = vrot.slane %v3596_v8, 1 }
 0x309   : > { %v8290_v53 = vpop.permute.xlu0 %2892  ;;  %v3542_v13 = vpack.c.b16 %v3533_v24, %v3532_v54 }
 0x30a   : > { %v3599_v58 = vor.u32 %v3598_v7, %v3594_v10  ;;  %v3638_v10 = vpack.c.b16 %v3533_v24, %v3630_v56  ;;  %v10178_v24 = vunpack.c.l.b16 %v8251_v4 }
 0x30b   : > { %v3589_v48 = vshll.u32 %v3542_v13, 16  ;;  %v3587_v59 = vshrl.u32 %v3542_v13, 16 }
 0x30c   : > { %3602 = vrot.lane.b32.xlu2 %v3557_v28, %s6607_s0 }
 0x30e   : > { %v8295_v11 = vpop.permute.xlu2 %2908  ;;  %3600 = vrot.lane.b32.xlu1 %v3550_v22, %s6607_s0  ;;  %v3627_v22 = vunpack.c.l.b16 %v609_v14  ;;  %v3625_v14 = vunpack.c.l.b16 %v607_v55  ;;  %v10177_v55 = vunpack.c.l.b16 %v8236_v45  ;;  %v6163_v45 = vld [vmem:[%s6712_s25 + $0x10] sm:$0xf] }
 0x30f   : > { %3610 = vrot.lane.b32.xlu0 %v3585_v39, %s6607_s0  ;;  %v3591_v39 = vrot.slane %v3589_v48, 1  ;;  %v10176_v48 = vunpack.c.l.b16 %v8216_v43  ;;  %v6164_v43 = vld [vmem:[%s6712_s25 + $0x18] sm:$0xf] }
 0x310   : > { %v8302_v27 = vpop.permute.xlu1 %2888  ;;  %v3635_v54 = vpack.c.b16 %v3527_v35, %v3627_v22 }
 0x311   : > { %10172 = vst [vmem:[#allocation15_spill] sm:$0xff] %v8302_v27  ;;  %v8304_v28 = vpop.permute.xlu0 %2898  ;;  %v3633_v22 = vpack.c.b16 %v10176_v48, %v3625_v14 }
 0x312   : > { %v3643_v8 = vrot.slane %v3635_v54, 1 }
 0x313   : > { %v3641_v54 = vrot.slane %v3633_v22, 1 }
 0x314   : > { %3608 = vrot.lane.b32.xlu2 %v3578_v62, %s6607_s0  ;;  %v3592_v62 = vor.u32 %v3591_v39, %v3587_v59  ;;  %v610_v59 = vld [vmem:[%s6712_s25 + $0x20] sm:$0xe] }
 0x316   : > { %v8308_v16 = vpop.permute.xlu2 %2914  ;;  %3606 = vrot.lane.b32.xlu1 %v3571_v12, %s6607_s0  ;;  %v10174_v12 = vunpack.c.l.b16 %v8202_v63 }
 0x317   : > { %3648 = vrot.lane.b32.xlu0 %v3640_v46, %s6608_s24  ;;  %v611_v46 = vld [vmem:[%s6712_s25 + $0x28] sm:$0xe] }
 0x318   : > { %v8314_v3 = vpop.permute.xlu1 %2894  ;;  %v3634_v13 = vpack.c.b16 %v10174_v12, %v3626_v57  ;;  %v3629_v15 = vunpack.c.l.b16 %v611_v46  ;;  %v3628_v57 = vunpack.c.l.b16 %v610_v59  ;;  %v613_v12 = vld [vmem:[%s6712_s25 + $0x38] sm:$0xe]  ;;  %v10181_v59 = vunpack.c.l.b16 %v8278_v0  ;;  %v3252_v0 = vld [vmem:[%s9875_s5 + $0x20] sm:$0xf] }
 0x319   : > { %v8316_v21 = vpop.permute.xlu0 %2904 }
 0x31a   : > { %10173 = vst [vmem:[#allocation10_spill] sm:$0xff] %v8316_v21  ;;  %v3642_v7 = vrot.slane %v3634_v13, 1  ;;  %v3637_v33 = vpack.c.b16 %v10177_v55, %v3629_v15  ;;  %v6167_v15 = vld [vmem:[%s6712_s25 + $0x30] sm:$0xf] }
 0x31c   : > { %3614 = vrot.lane.b32.xlu2 %v3599_v58, %s6607_s0  ;;  %v3646_v58 = vrot.slane %v3638_v10, 1  ;;  %v3645_v14 = vrot.slane %v3637_v33, 1  ;;  %v3631_v10 = vunpack.c.l.b16 %v613_v12 }
 0x31e   : > { %v8322_v35 = vpop.permute.xlu2 %2920  ;;  %3612 = vrot.lane.b32.xlu1 %v3592_v62, %s6607_s0  ;;  %v3636_v62 = vpack.c.b16 %v10178_v24, %v3628_v57  ;;  %v8360_v57 = vld [vmem:[%s6712_s25 + $0x24] sm:$0x1]  ;;  %v6166_v24 = vld [vmem:[%s6712_s25 + $0x28] sm:$0xf] }
 0x31f   : > { %10175 = vst [vmem:[#allocation8_spill] sm:$0xff] %v8322_v35  ;;  %3654 = vrot.lane.b32.xlu0 %v3643_v8, %s6608_s24  ;;  %v3673_v8 = vunpack.c.l.b16 %v6164_v43  ;;  %v10184_v2 = vunpack.c.l.b16 %v8360_v57 }
 0x320   : > { %v8329_v39 = vpop.permute.xlu1 %2900  ;;  %v3644_v48 = vrot.slane %v3636_v62, 1  ;;  %v6165_v62 = vld [vmem:[%s6712_s25 + $0x20] sm:$0xf] }
 0x321   : > { %v8331_v63 = vpop.permute.xlu0 %2910  ;;  %v3681_v22 = vpack.c.b16 %v3673_v8, %v3673_v8 }
 0x324   : > { %3652 = vrot.lane.b32.xlu2 %v3642_v7, %s6608_s24  ;;  %v3672_v7 = vunpack.c.l.b16 %v6163_v45 }
 0x326   : > { %v8337_v56 = vpop.permute.xlu2 %2950  ;;  %3650 = vrot.lane.b32.xlu1 %v3641_v54, %s6608_s24  ;;  %v3639_v54 = vpack.c.b16 %v10181_v59, %v3631_v10  ;;  %v3680_v55 = vpack.c.b16 %v3672_v7, %v3672_v7  ;;  %v3674_v10 = vunpack.c.l.b16 %v6165_v62  ;;  %v6172_v59 = vld [vmem:[%s6712_s25 + $0x1c] sm:$0x1] }
 0x327   : > { %3660 = vrot.lane.b32.xlu0 %v3646_v58, %s6608_s24  ;;  %v8357_v58 = vunpack.c.l.b16 %v6167_v15  ;;  %v6170_v15 = vld [vmem:[%s6712_s25 + $0x48] sm:$0xf] }
 0x328   : > { %v8344_v13 = vpop.permute.xlu1 %2906  ;;  %v3647_v12 = vrot.slane %v3639_v54, 1  ;;  %v3722_v49 = vpack.c.b16 %v10184_v2, %v3674_v10  ;;  %v8385_v54 = vunpack.c.l.b16 %v6170_v15  ;;  %v6465_v2 = vld [vmem:[%s9875_s5 + $0x18] sm:$0xff]  ;;  %v3682_v20 = vpack.c.b16 %v3674_v10, %v3674_v10 }
 0x329   : > { %10179 = vst [vmem:[#allocation14_spill] sm:$0xff] %v8344_v13  ;;  %v8346_v46 = vpop.permute.xlu0 %2916  ;;  %v3684_v45 = vpack.c.b16 %v8357_v58, %v8357_v58 }
 0x32a   : > { %10185 = vst [vmem:[#allocation12_spill] sm:$0xff] %v8385_v54  ;;  %v3745_v15 = vshll.u32 %v3722_v49, 16  ;;  %v3743_v10 = vshrl.u32 %v3722_v49, 16 }
 0x32c   : > { %3658 = vrot.lane.b32.xlu2 %v3645_v14, %s6608_s24  ;;  %v3747_v21 = vrot.slane %v3745_v15, 1 }
 0x32e   : > { %v8351_v4 = vpop.permute.xlu2 %2956  ;;  %3656 = vrot.lane.b32.xlu1 %v3644_v48, %s6608_s24  ;;  %v3290_v48 = vunpack.c.l.b16 %v3252_v0  ;;  %v8391_v0 = vld [vmem:[%s6712_s25 + $0x14] sm:$0x1] }
 0x32f   : > { %10180 = vst [vmem:[#allocation11_spill] sm:$0xff] %v8351_v4  ;;  %3690 = vrot.lane.b32.xlu0 %v3681_v22, %s6612_s11  ;;  %v8375_v22 = vunpack.c.l.b16 %v6166_v24 }
 0x330   : > { %v8362_v33 = vpop.permute.xlu1 %2912  ;;  %v3295_v9 = vpack.c.b16 %v3290_v48, %v3290_v48 }
 0x331   : > { %v8364_v43 = vpop.permute.xlu0 %2922  ;;  %v3683_v62 = vpack.c.b16 %v8375_v22, %v8375_v22 }
 0x332   : > { %10182 = vst [vmem:[#allocation13_spill] sm:$0xff] %v8364_v43  ;;  %v3313_v24 = vsel %vm1479_vm2, %v3295_v9, 0  ;;  %v3687_v9 = vpack.c.b16 %v8385_v54, %v8385_v54  ;;  %v6180_v43 = vld [vmem:[%s6712_s25 + $0x18] sm:$0xe] }
 0x333   : > { %3318 = vmatpush.bf16.msra.mxu3 %v3313_v24  ;;  %v3712_v24 = vunpack.c.l.b16 %v8391_v0  ;;  %v3809_v15 = vunpack.c.l.b16 %v6180_v43  ;;  %v6179_v43 = vld [vmem:[%s6712_s25 + $0x10] sm:$0xe] }
 0x334   : > { %3688 = vrot.lane.b32.xlu2 %v3680_v55, %s6612_s11  ;;  %v3713_v55 = vunpack.c.l.b16 %v6172_v59  ;;  %v6168_v59 = vld [vmem:[%s6712_s25 + $0x38] sm:$0xf]  ;;  %v3808_v4 = vunpack.c.l.b16 %v6179_v43 }
 0x335   : > { %v3720_v54 = vpack.c.b16 %v3712_v24, %v3672_v7  ;;  %v3748_v7 = vor.u32 %v3747_v21, %v3743_v10  ;;  %v6463_v21 = vld [vmem:[%s9875_s5 + $0x8] sm:$0xff]  ;;  %v8444_v10 = vld [vmem:[%s6720_s9] sm:$0xf] }
 0x336   : > { %v8379_v14 = vpop.permute.xlu2 %2962  ;;  %3662 = vrot.lane.b32.xlu1 %v3647_v12, %s6608_s24  ;;  %v3721_v23 = vpack.c.b16 %v3713_v55, %v3673_v8  ;;  %10190 = vst [vmem:[#allocation24_spill] sm:$0xff] %v8444_v10 }
 0x337   : > { %10183 = vst [vmem:[#allocation17_spill] sm:$0xff] %v8379_v14  ;;  %3696 = vrot.lane.b32.xlu0 %v3684_v45, %s6612_s11  ;;  %v6169_v45 = vld [vmem:[%s6712_s25 + $0x40] sm:$0xf]  ;;  %3319 = vmatpush.bf16.msra.mxu3 %v6465_v2  ;;  %v8410_v14 = vunpack.c.l.b16 %v6168_v59  ;;  %v8424_v2 = vld [vmem:[%s6720_s9 + $0xc] sm:$0x1] }
 0x338   : > { %v8396_v48 = vpop.permute.xlu1 %2918  ;;  %v8406_v47 = vunpack.c.l.b16 %v6169_v45  ;;  %v3738_v8 = vshll.u32 %v3721_v23, 16  ;;  %v8421_v45 = vld [vmem:[%s6720_s9 + $0x8] sm:$0xf]  ;;  %v10007_v38 = vunpack.c.l.b16 %v8424_v2  ;;  %v3736_v17 = vshrl.u32 %v3721_v23, 16 }
 0x339   : > { %v8398_v12 = vpop.permute.xlu0 %2952  ;;  %10187 = vst [vmem:[#allocation22_spill] sm:$0xff] %v8410_v14  ;;  %v4274_v13 = vunpack.c.l.b16 %v8421_v45  ;;  %v3729_v23 = vshrl.u32 %v3720_v54, 16 }
 0x33a   : > { %10186 = vst [vmem:[#allocation18_spill] sm:$0xff] %v8406_v47  ;;  %v3686_v0 = vpack.c.b16 %v8406_v47, %v8406_v47  ;;  %v3731_v47 = vshll.u32 %v3720_v54, 16  ;;  %v3740_v51 = vrot.slane %v3738_v8, 1 }
 0x33b   : > { %10188 = vst [vmem:[#allocation19_spill] sm:$0xff] %v8421_v45  ;;  %v3817_v45 = vpack.c.b16 %v3713_v55, %v3809_v15  ;;  %v4289_v26 = vpack.c.b16 %v10007_v38, %v4274_v13  ;;  %v8461_v55 = vld [vmem:[%s6712_s25 + $0x34] sm:$0x1] }
 0x33c   : > { %3694 = vrot.lane.b32.xlu2 %v3683_v62, %s6612_s11  ;;  %v8418_v62 = vld [vmem:[%s6712_s25 + $0x2c] sm:$0x1]  ;;  %v3733_v8 = vrot.slane %v3731_v47, 1  ;;  %v3741_v60 = vor.u32 %v3740_v51, %v3736_v17  ;;  %v10009_v51 = vunpack.c.l.b16 %v8461_v55  ;;  %v3816_v17 = vpack.c.b16 %v3712_v24, %v3808_v4 }
 0x33d   : > { %v3825_v47 = vrot.slane %v3817_v45, 1  ;;  %v4306_v13 = vshll.u32 %v4289_v26, 16 }
 0x33e   : > { %v8408_v35 = vpop.permute.xlu2 %3048  ;;  %3692 = vrot.lane.b32.xlu1 %v3682_v20, %s6612_s11  ;;  %v3685_v20 = vpack.c.b16 %v8410_v14, %v8410_v14  ;;  %v8447_v14 = vld [vmem:[%s6720_s9 + $0x4] sm:$0x1]  ;;  %v3824_v4 = vrot.slane %v3816_v17, 1 }
 0x33f   : > { %3702 = vrot.lane.b32.xlu0 %v3687_v9, %s6612_s11  ;;  %v6464_v9 = vld [vmem:[%s9875_s5 + $0x10] sm:$0xff] }
 0x340   : > { %v8426_v59 = vpop.permute.xlu1 %2948  ;;  %3320 = vmatpush.bf16.msra.mxu3 %v6464_v9 }
 0x341   : > { %v8428_v49 = vpop.permute.xlu0 %2958 }
 0x342   : > { %10189 = vst [vmem:[#allocation16_spill] sm:$0xff] %v8428_v49  ;;  %v4272_v49 = vunpack.c.l.b16 %v8444_v10 }
 0x344   : > { %3700 = vrot.lane.b32.xlu2 %v3686_v0, %s6612_s11  ;;  %v10192_v0 = vunpack.c.l.b16 %v8418_v62  ;;  %3321 = vmatpush.bf16.msra.mxu3 %v6463_v21 }
 0x346   : > { %v8449_v27 = vpop.permute.xlu2 %3054  ;;  %3698 = vrot.lane.b32.xlu1 %v3685_v20, %s6612_s11  ;;  %v3723_v9 = vpack.c.b16 %v10192_v0, %v8375_v22  ;;  %v6462_v22 = vld [vmem:[%s9875_s5] sm:$0xff] }
 0x347   : > { %10191 = vst [vmem:[#allocation20_spill] sm:$0xff] %v8449_v27  ;;  %3788 = vrot.lane.b32.xlu0 %v3748_v7, %s6613_s18  ;;  %v10008_v27 = vunpack.c.l.b16 %v8447_v14  ;;  %v3734_v7 = vor.u32 %v3733_v8, %v3729_v23  ;;  %v4304_v23 = vshrl.u32 %v4289_v26, 16  ;;  %v4308_v8 = vrot.slane %v4306_v13, 1 }
 0x348   : > { %v8463_v20 = vpop.permute.xlu1 %2954  ;;  %v3752_v15 = vshll.u32 %v3723_v9, 16  ;;  %3322 = vmatpush.bf16.msra.mxu3 %v6462_v22  ;;  %v3750_v0 = vshrl.u32 %v3723_v9, 16 }
 0x349   : > { %v3045_v54 = vpop.permute.xlu0 %3044  ;;  %v4288_v43 = vpack.c.b16 %v10008_v27, %v4272_v49  ;;  %v4309_v22 = vor.u32 %v4308_v8, %v4304_v23  ;;  %v6546_v27 = vld [vmem:[%s6703_s17] sm:$0xf] }
 0x34a   : > { %v3754_v45 = vrot.slane %v3752_v15, 1  ;;  %v681_v15 = vld [vmem:[%s6720_s9 + $0x8] sm:$0xe]  ;;  %v680_v8 = vld [vmem:[%s6720_s9] sm:$0xe] }
 0x34b   : > { %v4299_v24 = vshll.u32 %v4288_v43, 16  ;;  %v4377_v23 = vunpack.c.l.b16 %v681_v15 }
 0x34c   : > { %3786 = vrot.lane.b32.xlu2 %v3741_v60, %s6613_s18  ;;  %v3724_v60 = vpack.c.b16 %v10009_v51, %v8357_v58  ;;  %v3755_v9 = vor.u32 %v3754_v45, %v3750_v0  ;;  %v3110_v58 = vsel %vm1266_vm3, %v6546_v27, %v7809_v6  ;;  %v6547_v51 = vld [vmem:[%s6703_s17 + $0x8] sm:$0xf] }
 0x34d   : > { %v4301_v26 = vrot.slane %v4299_v24, 1  ;;  %v3133_v10 = vsel %vm1291_vm4, %v3110_v58, %v7799_v44 }
 0x34e   : > { %v3093_v21 = vpop.permute.xlu2 %3092  ;;  %3784 = vrot.lane.b32.xlu1 %v3734_v7, %s6613_s18  ;;  %v3759_v7 = vshll.u32 %v3724_v60, 16  ;;  %v3757_v17 = vshrl.u32 %v3724_v60, 16  ;;  %v3149_v6 = vsel %vm1308_vm5, %v3133_v10, %v8268_v42  ;;  %v4376_v60 = vunpack.c.l.b16 %v680_v8 }
 0x34f   : > { %3834 = vrot.lane.b32.xlu0 %v3825_v47, %s6614_s21  ;;  %v4297_v47 = vshrl.u32 %v4288_v43, 16  ;;  %v3113_v43 = vsel %vm1266_vm3, %v6547_v51, %v7807_v61  ;;  %v10193_v61 = vunpack.c.l.b16 %v8424_v2 }
 0x350   : > { %v8477_v38 = vpop.permute.xlu1 %2960  ;;  %v3761_v0 = vrot.slane %v3759_v7, 1 }
 0x351   : > { %v8479_v49 = vpop.permute.xlu0 %3050  ;;  %v4302_v45 = vor.u32 %v4301_v26, %v4297_v47  ;;  %v4385_v51 = vpack.c.b16 %v10193_v61, %v4377_v23  ;;  %v8527_v26 = vld [vmem:[%s6720_s9 + $0x1c] sm:$0x1] }
 0x352   : > { %v3762_v27 = vor.u32 %v3761_v0, %v3757_v17 }
 0x354   : > { %3832 = vrot.lane.b32.xlu2 %v3824_v4, %s6614_s21 }
 0x356   : > { %v8483_v13 = vpop.permute.xlu2 %3098  ;;  %3790 = vrot.lane.b32.xlu1 %v3755_v9, %s6613_s18  ;;  %v3135_v9 = vsel %vm1291_vm4, %v3113_v43, %v7870_v19 }
 0x357   : > { %4354 = vrot.lane.b32.xlu0 %v4309_v22, %s6607_s0  ;;  %v3165_v22 = vsel %vm1325_vm6, %v3149_v6, %v8290_v53  ;;  %v3151_v44 = vsel %vm1308_vm5, %v3135_v9, %v8164_v52  ;;  %v10194_v52 = vld [vmem:[#allocation30_spill] sm:$0xff] }
 0x358   : > { %v3047_v4 = vpop.permute.xlu1 %3046  ;;  %v3181_v42 = vsel %vm1342_vm7, %v3165_v22, %v8295_v11  ;;  %v3167_v10 = vsel %vm1325_vm6, %v3151_v44, %v8314_v3  ;;  %v10195_v11 = vunpack.c.l.b16 %v8447_v14  ;;  %v6212_v3 = vld [vmem:[%s6720_s9 + $0x18] sm:$0xf]  ;;  %v8542_v6 = vld [vmem:[%s6720_s9 + $0x14] sm:$0x1]  ;;  %v6549_v44 = vld [vmem:[%s6703_s17 + $0x10] sm:$0xf] }
 0x359   : > { %v8494_v24 = vpop.permute.xlu0 %3056  ;;  %v3197_v19 = vsel %vm1359_vm8, %v3181_v42, %v8426_v59  ;;  %v3183_v53 = vsel %vm1342_vm7, %v3167_v10, %v8331_v63  ;;  %v8536_v0 = vunpack.c.l.b16 %v6212_v3  ;;  %v10196_v22 = vld [vmem:[#allocation38_spill] sm:$0xff] }
 0x35a   : > { %v3213_v2 = vsel %vm1376_vm9, %v3197_v19, %v3045_v54  ;;  %v4384_v47 = vpack.c.b16 %v10195_v11, %v4376_v60  ;;  %v3199_v59 = vsel %vm1359_vm8, %v3183_v53, %v8337_v56  ;;  %v4393_v54 = vrot.slane %v4385_v51, 1  ;;  %v6211_v56 = vld [vmem:[%s6720_s9 + $0x10] sm:$0xf] }
 0x35b   : > { %v3229_v63 = vsel %vm1393_vm10, %v3213_v2, %v3093_v21  ;;  %v3215_v15 = vsel %vm1376_vm9, %v3199_v59, %v3047_v4  ;;  %v6548_v4 = vld [vmem:[%s6703_s17 + $0x18] sm:$0xf]  ;;  %v4472_v61 = vunpack.c.l.b16 %v6211_v56  ;;  %v4512_v51 = vunpack.c.l.b16 %v8542_v6 }
 0x35c   : > { %4352 = vrot.lane.b32.xlu2 %v4302_v45, %s6607_s0  ;;  %v4513_v45 = vunpack.c.l.b16 %v8527_v26  ;;  %v3261_v23 = vunpack.c.l.b16 %v3229_v63  ;;  %v4392_v43 = vrot.slane %v4384_v47, 1 }
 0x35d   : > { %v4480_v11 = vpack.c.b16 %v4472_v61, %v4472_v61  ;;  %v4520_v3 = vpack.c.b16 %v4512_v51, %v4472_v61 }
 0x35e   : > { %v8515_v7 = vpop.permute.xlu2 %3104  ;;  %3792 = vrot.lane.b32.xlu1 %v3762_v27, %s6613_s18  ;;  %v3119_v27 = vsel %vm1266_vm3, %v6548_v4, %v7826_v25  ;;  %v4521_v9 = vpack.c.b16 %v4513_v45, %v8536_v0  ;;  %v3116_v25 = vsel %vm1266_vm3, %v6549_v44, %v7768_v31 }
 0x35f   : > { %4416 = vrot.lane.b32.xlu0 %v10194_v52, %s6609_s29  ;;  %v3139_v42 = vsel %vm1291_vm4, %v3119_v27, %v7812_v1  ;;  %v3137_v47 = vsel %vm1291_vm4, %v3116_v25, %v7868_v32  ;;  %v10197_v1 = vld [vmem:[#allocation39_spill] sm:$0xff] }
 0x360   : > { %v8533_v58 = vpop.permute.xlu1 %3052  ;;  %v3155_v53 = vsel %vm1308_vm5, %v3139_v42, %v8288_v34  ;;  %v4538_v2 = vshll.u32 %v4521_v9, 16  ;;  %v3153_v34 = vsel %vm1308_vm5, %v3137_v47, %v8240_v29  ;;  %v4536_v63 = vshrl.u32 %v4521_v9, 16  ;;  %v10198_v29 = vld [vmem:[#allocation31_spill] sm:$0xff]  ;;  %v6551_v47 = vld [vmem:[%s6703_s17 + $0x20] sm:$0xf] }
 0x361   : > { %v3095_v17 = vpop.permute.xlu0 %3094  ;;  %v3171_v52 = vsel %vm1325_vm6, %v3155_v53, %v8304_v28  ;;  %v3169_v32 = vsel %vm1325_vm6, %v3153_v34, %v8253_v41  ;;  %v6228_v42 = vld [vmem:[%s6720_s9 + $0x18] sm:$0xe]  ;;  %v666_v53 = vld [vmem:[%s6720_s9 + $0x10] sm:$0xf]  ;;  %v10201_v34 = vld [vmem:[#allocation45_spill] sm:$0xff] }
 0x362   : > { %v3231_v14 = vsel %vm1393_vm10, %v3215_v15, %v3095_v17  ;;  %v3187_v31 = vsel %vm1342_vm7, %v3171_v52, %v8308_v16  ;;  %v3185_v15 = vsel %vm1342_vm7, %v3169_v32, %v8362_v33  ;;  %v6550_v52 = vld [vmem:[%s6703_s17 + $0x28] sm:$0xf]  ;;  %v10203_v32 = vunpack.c.l.b16 %v8360_v57 }
 0x363   : > { %v3262_v8 = vunpack.c.l.b16 %v3231_v14  ;;  %v3203_v28 = vsel %vm1359_vm8, %v3187_v31, %v8463_v20  ;;  %v6181_v20 = vld [vmem:[%s6712_s25 + $0x20] sm:$0xe]  ;;  %v3201_v41 = vsel %vm1359_vm8, %v3185_v15, %v8398_v12  ;;  %v667_v14 = vld [vmem:[%s6720_s9 + $0x18] sm:$0xf]  ;;  %v3122_v31 = vsel %vm1266_vm3, %v6551_v47, %v7824_v18 }
 0x364   : > { %4402 = vrot.lane.b32.xlu2 %v4393_v54, %s6608_s24  ;;  %v3219_v16 = vsel %vm1376_vm9, %v3203_v28, %v8479_v49  ;;  %v4540_v54 = vrot.slane %v4538_v2, 1  ;;  %v4531_v49 = vshll.u32 %v4520_v3, 16  ;;  %v3217_v33 = vsel %vm1376_vm9, %v3201_v41, %v8408_v35  ;;  %v8614_v2 = vld [vmem:[%s6720_s9 + $0x14] sm:$0x1] }
 0x365   : > { %v3269_v21 = vpack.c.b16 %v3262_v8, %v3261_v23  ;;  %v3235_v17 = vsel %vm1393_vm10, %v3219_v16, %v8483_v13  ;;  %v8600_v23 = vld [vmem:[%s6720_s9 + $0x1c] sm:$0x1]  ;;  %v3810_v4 = vunpack.c.l.b16 %v6181_v20  ;;  %v4278_v27 = vunpack.c.l.b16 %v667_v14 }
 0x366   : > { %v8547_v60 = vpop.permute.xlu2 %3602  ;;  %4400 = vrot.lane.b32.xlu1 %v4392_v43, %s6608_s24  ;;  %v3264_v43 = vunpack.c.l.b16 %v3235_v17  ;;  %v4279_v9 = vunpack.c.l.b16 %v8600_v23  ;;  %v4529_v35 = vshrl.u32 %v4520_v3, 16  ;;  %v4533_v44 = vrot.slane %v4531_v49, 1 }
 0x367   : > { %4434 = vrot.lane.b32.xlu0 %v10196_v22, %s6610_s30  ;;  %6311 = vmatmul.msk.bf16.vlgmr.msra.gmra.mxu3 %vm10014_vm11, %v3269_v21  ;;  %v4541_v21 = vor.u32 %v4540_v54, %v4536_v63  ;;  %v10199_v22 = vld [vmem:[#allocation50_spill] sm:$0xff]  ;;  %v10202_v28 = vrot.slane %v10201_v34, 1  ;;  %v3818_v16 = vpack.c.b16 %v10203_v32, %v3810_v4  ;;  %v4609_v63 = vunpack.c.l.b16 %v6228_v42  ;;  %v10206_v4 = vld [vmem:[#allocation20_spill] sm:$0xff]  ;;  %v683_v34 = vld [vmem:[%s6720_s9 + $0x18] sm:$0xe] }
 0x368   : > { %v8562_v10 = vpop.permute.xlu1 %3058  ;;  %v10200_v61 = vrot.slane %v10199_v22, 1  ;;  %v4534_v18 = vor.u32 %v4533_v44, %v4529_v35  ;;  %v6227_v54 = vld [vmem:[%s6720_s9 + $0x10] sm:$0xe]  ;;  %v4276_v15 = vunpack.c.l.b16 %v666_v53  ;;  %v3141_v17 = vsel %vm1291_vm4, %v3122_v31, %v8178_v37 }
 0x369   : > { %v8564_v19 = vpop.permute.xlu0 %3100  ;;  %v3157_v41 = vsel %vm1308_vm5, %v3141_v17, %v8192_v50  ;;  %v4481_v14 = vpack.c.b16 %v8536_v0, %v8536_v0  ;;  %v4617_v50 = vpack.c.b16 %v4513_v45, %v4609_v63  ;;  %v10207_v32 = vunpack.c.l.b16 %v8418_v62  ;;  %v682_v17 = vld [vmem:[%s6720_s9 + $0x10] sm:$0xe] }
 0x36a   : > { %v3173_v37 = vsel %vm1325_vm6, %v3157_v41, %v8329_v39 }
 0x36b   : > { %v3189_v0 = vsel %vm1342_vm7, %v3173_v37, %v8346_v46  ;;  %v4625_v35 = vrot.slane %v4617_v50, 1  ;;  %v10212_v37 = vld [vmem:[#allocation6_spill] sm:$0xff] }
 0x36c   : > { %4432 = vrot.lane.b32.xlu2 %v10197_v1, %s6610_s30  ;;  %v10213_v50 = vld [vmem:[#allocation14_spill] sm:$0xff] }
 0x36e   : > { %v8586_v59 = vpop.permute.xlu2 %3608  ;;  %4418 = vrot.lane.b32.xlu1 %v10198_v29, %s6609_s29 }
 0x36f   : > { %4488 = vrot.lane.b32.xlu0 %v4480_v11, %s6612_s11  ;;  %v3125_v11 = vsel %vm1266_vm3, %v6550_v52, %v7788_v30  ;;  %v4291_v30 = vpack.c.b16 %v4279_v9, %v4278_v27 }
 0x370   : > { %v3097_v13 = vpop.permute.xlu1 %3096  ;;  %v3143_v3 = vsel %vm1291_vm4, %v3125_v11, %v8238_v40  ;;  %v4277_v40 = vunpack.c.l.b16 %v8614_v2 }
 0x371   : > { %v8604_v8 = vpop.permute.xlu0 %3106  ;;  %v3233_v56 = vsel %vm1393_vm10, %v3217_v33, %v3097_v13  ;;  %v3159_v29 = vsel %vm1308_vm5, %v3143_v3, %v8270_v36  ;;  %v3826_v33 = vrot.slane %v3818_v16, 1  ;;  %v4608_v13 = vunpack.c.l.b16 %v6227_v54 }
 0x372   : > { %v3263_v12 = vunpack.c.l.b16 %v3233_v56  ;;  %v3175_v49 = vsel %vm1325_vm6, %v3159_v29, %v8280_v5  ;;  %v4290_v5 = vpack.c.b16 %v4277_v40, %v4276_v15  ;;  %v10204_v56 = vld [vmem:[#allocation16_spill] sm:$0xff]  ;;  %v4318_v45 = vshrl.u32 %v4291_v30, 16  ;;  %v10209_v29 = vld [vmem:[#allocation9_spill] sm:$0xff] }
 0x373   : > { %v3191_v36 = vsel %vm1342_vm7, %v3175_v49, %v8396_v48  ;;  %v4616_v46 = vpack.c.b16 %v4512_v51, %v4608_v13  ;;  %v4379_v15 = vunpack.c.l.b16 %v683_v34  ;;  %v10211_v13 = vld [vmem:[#allocation7_spill] sm:$0xff] }
 0x374   : > { %4450 = vrot.lane.b32.xlu2 %v10200_v61, %s6611_s10  ;;  %v3270_v25 = vpack.c.b16 %v3264_v43, %v3263_v12  ;;  %v4320_v43 = vshll.u32 %v4291_v30, 16  ;;  %v10205_v12 = vld [vmem:[#allocation11_spill] sm:$0xff]  ;;  %v4313_v44 = vshll.u32 %v4290_v5, 16 }
 0x375   : > { %v3205_v39 = vsel %vm1359_vm8, %v3189_v0, %v10205_v12  ;;  %v4624_v6 = vrot.slane %v4616_v46, 1  ;;  %v6552_v30 = vld [vmem:[%s6703_s17 + $0x38] sm:$0xf] }
 0x376   : > { %v8622_v1 = vpop.permute.xlu2 %3614  ;;  %4448 = vrot.lane.b32.xlu1 %v10202_v28, %s6611_s10  ;;  %v4322_v22 = vrot.slane %v4320_v43, 1  ;;  %v3221_v61 = vsel %vm1376_vm9, %v3205_v39, %v8533_v58  ;;  %v4311_v58 = vshrl.u32 %v4290_v5, 16  ;;  %v4315_v3 = vrot.slane %v4313_v44, 1  ;;  %v10215_v39 = vld [vmem:[#allocation13_spill] sm:$0xff] }
 0x377   : > { %4586 = vrot.lane.b32.xlu0 %v4541_v21, %s6613_s18  ;;  %6312 = vmatmul.msk.bf16.gmra.mxu3 %vm10014_vm11, %v3270_v25  ;;  %v3207_v21 = vsel %vm1359_vm8, %v3191_v36, %v10204_v56  ;;  %v6182_v25 = vld [vmem:[%s6712_s25 + $0x28] sm:$0xe]  ;;  %v3237_v42 = vsel %vm1393_vm10, %v3221_v61, %v8564_v19  ;;  %v4378_v56 = vunpack.c.l.b16 %v682_v17  ;;  %v10218_v61 = vld [vmem:[#allocation8_spill] sm:$0xff] }
 0x378   : > { %v3103_v20 = vpop.permute.xlu1 %3102  ;;  %v3223_v48 = vsel %vm1376_vm9, %v3207_v21, %v10206_v4  ;;  %v4323_v51 = vor.u32 %v4322_v22, %v4318_v45  ;;  %v3811_v47 = vunpack.c.l.b16 %v6182_v25  ;;  %v3265_v31 = vunpack.c.l.b16 %v3237_v42  ;;  %v10214_v21 = vld [vmem:[#allocation15_spill] sm:$0xff]  ;;  %v10217_v45 = vld [vmem:[#allocation17_spill] sm:$0xff] }
 0x379   : > { %v8641_v57 = vpop.permute.xlu0 %3604  ;;  %v3239_v26 = vsel %vm1393_vm10, %v3223_v48, %v3103_v20  ;;  %v4316_v54 = vor.u32 %v4315_v3, %v4311_v58  ;;  %v4387_v48 = vpack.c.b16 %v4279_v9, %v4379_v15  ;;  %v10219_v9 = vld [vmem:[#allocation33_spill] sm:$0xff] }
 0x37a   : > { %v3266_v11 = vunpack.c.l.b16 %v3239_v26  ;;  %v3819_v16 = vpack.c.b16 %v10207_v32, %v3811_v47  ;;  %v10216_v26 = vld [vmem:[#allocation10_spill] sm:$0xff]  ;;  %v6213_v32 = vld [vmem:[%s6720_s9 + $0x20] sm:$0xf] }
 0x37b   : > { %v4474_v15 = vunpack.c.l.b16 %v6213_v32 }
 0x37c   : > { %4584 = vrot.lane.b32.xlu2 %v4534_v18, %s6613_s18  ;;  %v3271_v19 = vpack.c.b16 %v3266_v11, %v3265_v31  ;;  %v10208_v18 = vld [vmem:[#allocation81_spill] sm:$0xff]  ;;  %v3827_v0 = vrot.slane %v3819_v16, 1  ;;  %v4386_v11 = vpack.c.b16 %v4277_v40, %v4378_v56  ;;  %v3968_v40 = vld [vmem:[%s9875_s5 + $0x20] sm:$0xf] }
 0x37d   : > { %v3131_v63 = vsel %vm1266_vm3, %v6552_v30, %v10208_v18  ;;  %v10222_v56 = vld [vmem:[#allocation32_spill] sm:$0xff] }
 0x37e   : > { %v8666_v27 = vpop.permute.xlu2 %3652  ;;  %4490 = vrot.lane.b32.xlu1 %v4481_v14, %s6612_s11  ;;  %v3147_v20 = vsel %vm1291_vm4, %v3131_v63, %v10209_v29  ;;  %v6553_v14 = vld [vmem:[%s6703_s17 + $0x30] sm:$0xf]  ;;  %v4394_v34 = vrot.slane %v4386_v11, 1 }
 0x37f   : > { %3836 = vrot.lane.b32.xlu0 %v3826_v33, %s6614_s21  ;;  %v10210_v33 = vld [vmem:[#allocation82_spill] sm:$0xff]  ;;  %v3163_v43 = vsel %vm1308_vm5, %v3147_v20, %v10211_v13  ;;  %v6469_v20 = vld [vmem:[%s9875_s5 + $0x18] sm:$0xff]  ;;  %v4482_v13 = vpack.c.b16 %v4474_v15, %v4474_v15 }
 0x380   : > { %v8678_v53 = vpop.permute.xlu1 %3600  ;;  %v3128_v62 = vsel %vm1266_vm3, %v6553_v14, %v10210_v33  ;;  %v3179_v5 = vsel %vm1325_vm6, %v3163_v43, %v10213_v50  ;;  %v10221_v43 = vld [vmem:[#allocation40_spill] sm:$0xff] }
 0x381   : > { %v8680_v52 = vpop.permute.xlu0 %3610  ;;  %v3145_v36 = vsel %vm1291_vm4, %v3128_v62, %v10212_v37  ;;  %v3195_v4 = vsel %vm1342_vm7, %v3179_v5, %v10215_v39 }
 0x382   : > { %v3161_v12 = vsel %vm1308_vm5, %v3145_v36, %v10214_v21  ;;  %v3211_v22 = vsel %vm1359_vm8, %v3195_v4, %v10217_v45  ;;  %v6468_v36 = vld [vmem:[%s9875_s5 + $0x10] sm:$0xff]  ;;  %v6230_v21 = vld [vmem:[%s6720_s9 + $0x28] sm:$0xe]  ;;  %v668_v4 = vld [vmem:[%s6720_s9 + $0x20] sm:$0xf] }
 0x383   : > { %v3177_v46 = vsel %vm1325_vm6, %v3161_v12, %v10216_v26  ;;  %v3227_v44 = vsel %vm1376_vm9, %v3211_v22, %v8562_v10  ;;  %v8738_v10 = vld [vmem:[%s6720_s9 + $0x2c] sm:$0x1]  ;;  %v6176_v12 = vld [vmem:[%s6712_s25 + $0x3c] sm:$0x1] }
 0x384   : > { %4634 = vrot.lane.b32.xlu2 %v4625_v35, %s6614_s21  ;;  %v3193_v35 = vsel %vm1342_vm7, %v3177_v46, %v10218_v61  ;;  %v3243_v23 = vsel %vm1393_vm10, %v3227_v44, %v8604_v8  ;;  %v4515_v2 = vunpack.c.l.b16 %v8738_v10  ;;  %v6467_v26 = vld [vmem:[%s9875_s5 + $0x8] sm:$0xff]  ;;  %v4611_v61 = vunpack.c.l.b16 %v6230_v21  ;;  %v6229_v10 = vld [vmem:[%s6720_s9 + $0x20] sm:$0xe] }
 0x385   : > { %v3209_v42 = vsel %vm1359_vm8, %v3193_v35, %v8477_v38  ;;  %v4395_v38 = vrot.slane %v4387_v48, 1  ;;  %v3268_v58 = vunpack.c.l.b16 %v3243_v23  ;;  %v8789_v48 = vld [vmem:[%s6720_s9 + $0x24] sm:$0x1]  ;;  %v3717_v35 = vunpack.c.l.b16 %v6176_v12  ;;  %v10223_v23 = vld [vmem:[#allocation51_spill] sm:$0xff]  ;;  %v677_v21 = vld [vmem:[%s6720_s9 + $0x2c] sm:$0x1] }
 0x386   : > { %v8684_v28 = vpop.permute.xlu2 %3658  ;;  %4632 = vrot.lane.b32.xlu1 %v4624_v6, %s6614_s21  ;;  %v6214_v6 = vld [vmem:[%s6720_s9 + $0x28] sm:$0xf]  ;;  %v4280_v44 = vunpack.c.l.b16 %v668_v4 }
 0x387   : > { %4358 = vrot.lane.b32.xlu0 %v4323_v51, %s6607_s0  ;;  %6313 = vmatmul.msk.bf16.gmra.mxu3 %vm10014_vm11, %v3271_v19  ;;  %v3225_v51 = vsel %vm1376_vm9, %v3209_v42, %v8494_v24  ;;  %v8748_v3 = vunpack.c.l.b16 %v6214_v6  ;;  %v4006_v19 = vunpack.c.l.b16 %v3968_v40  ;;  %v4281_v42 = vunpack.c.l.b16 %v8789_v48 }
 0x388   : > { %v8697_v41 = vpop.permute.xlu1 %3606  ;;  %v3241_v8 = vsel %vm1393_vm10, %v3225_v51, %v8515_v7  ;;  %v8757_v7 = vld [vmem:[%s6720_s9 + $0x24] sm:$0x1]  ;;  %v4619_v40 = vpack.c.b16 %v4515_v2, %v4611_v61 }
 0x389   : > { %v8699_v49 = vpop.permute.xlu0 %3648  ;;  %v3267_v24 = vunpack.c.l.b16 %v3241_v8  ;;  %v4011_v16 = vpack.c.b16 %v4006_v19, %v4006_v19  ;;  %v4523_v63 = vpack.c.b16 %v4515_v2, %v8748_v3  ;;  %v4514_v29 = vunpack.c.l.b16 %v8757_v7  ;;  %v10225_v8 = vld [vmem:[#allocation49_spill] sm:$0xff] }
 0x38a   : > { %v4610_v7 = vunpack.c.l.b16 %v6229_v10  ;;  %v684_v10 = vld [vmem:[%s6720_s9 + $0x20] sm:$0xe] }
 0x38b   : > { %v3272_v18 = vpack.c.b16 %v3268_v58, %v3267_v24  ;;  %v4029_v17 = vsel %vm1479_vm2, %v4011_v16, 0  ;;  %v4552_v62 = vshll.u32 %v4523_v63, 16  ;;  %v4522_v37 = vpack.c.b16 %v4514_v29, %v4474_v15 }
 0x38c   : > { %4356 = vrot.lane.b32.xlu2 %v4316_v54, %s6607_s0  ;;  %v10220_v54 = vld [vmem:[#allocation42_spill] sm:$0xff]  ;;  %4034 = vmatpush.bf16.msrb.mxu2 %v4029_v17  ;;  %v4550_v5 = vshrl.u32 %v4523_v63, 16  ;;  %v10226_v58 = vrot.slane %v10225_v8, 1  ;;  %v4292_v24 = vpack.c.b16 %v4281_v42, %v4280_v44  ;;  %v4483_v63 = vpack.c.b16 %v8748_v3, %v8748_v3 }
 0x38d   : > { %v4545_v39 = vshll.u32 %v4522_v37, 16  ;;  %v4543_v11 = vshrl.u32 %v4522_v37, 16  ;;  %v4618_v17 = vpack.c.b16 %v4514_v29, %v4610_v7  ;;  %v6183_v3 = vld [vmem:[%s6712_s25 + $0x30] sm:$0xe]  ;;  %v685_v29 = vld [vmem:[%s6720_s9 + $0x28] sm:$0xe]  ;;  %v4283_v44 = vunpack.c.l.b16 %v677_v21 }
 0x38e   : > { %v8725_v25 = vpop.permute.xlu2 %3688  ;;  %3838 = vrot.lane.b32.xlu1 %v3827_v0, %s6614_s21  ;;  %v4554_v0 = vrot.slane %v4552_v62, 1  ;;  %v4327_v2 = vshll.u32 %v4292_v24, 16  ;;  %v3812_v4 = vunpack.c.l.b16 %v6183_v3  ;;  %v4380_v7 = vunpack.c.l.b16 %v684_v10 }
 0x38f   : > { %4420 = vrot.lane.b32.xlu0 %v10219_v9, %s6609_s29  ;;  %v10224_v9 = vrot.slane %v10223_v23, 1  ;;  %v4547_v6 = vrot.slane %v4545_v39, 1  ;;  %v4381_v23 = vunpack.c.l.b16 %v685_v29 }
 0x390   : > { %v8744_v47 = vpop.permute.xlu1 %3612  ;;  %4035 = vmatpush.bf16.msrb.mxu2 %v6469_v20  ;;  %v4555_v22 = vor.u32 %v4554_v0, %v4550_v5  ;;  %v6184_v20 = vld [vmem:[%s6712_s25 + $0x38] sm:$0xe]  ;;  %v669_v5 = vld [vmem:[%s6720_s9 + $0x28] sm:$0xf]  ;;  %v4626_v0 = vrot.slane %v4618_v17, 1  ;;  %v4388_v3 = vpack.c.b16 %v4281_v42, %v4380_v7 }
 0x391   : > { %v8746_v31 = vpop.permute.xlu0 %3654  ;;  %v4548_v32 = vor.u32 %v4547_v6, %v4543_v11  ;;  %v6554_v11 = vld [vmem:[%s6712_s25 + $0x8] sm:$0xf] }
 0x392   : > { %v3853_v6 = vsel %vm1266_vm3, %v6554_v11, %v8547_v60  ;;  %v10228_v60 = vunpack.c.l.b16 %v8461_v55 }
 0x394   : > { %4406 = vrot.lane.b32.xlu2 %v4395_v38, %s6608_s24  ;;  %4036 = vmatpush.bf16.msrb.mxu2 %v6468_v36  ;;  %v6466_v38 = vld [vmem:[%s9875_s5] sm:$0xff]  ;;  %v4329_v36 = vrot.slane %v4327_v2, 1  ;;  %v10230_v2 = vld [vmem:[#allocation55_spill] sm:$0xff] }
 0x396   : > { %v8759_v30 = vpop.permute.xlu2 %3694  ;;  %4404 = vrot.lane.b32.xlu1 %v4394_v34, %s6608_s24  ;;  %v10227_v34 = vld [vmem:[#allocation22_spill] sm:$0xff] }
 0x397   : > { %4438 = vrot.lane.b32.xlu0 %v10220_v54, %s6610_s30  ;;  %6314 = vmatmul.msk.bf16.gmra.mxu3 %vm10014_vm11, %v3272_v18  ;;  %v3725_v19 = vpack.c.b16 %v3717_v35, %v10227_v34  ;;  %v4627_v54 = vrot.slane %v4619_v40, 1 }
 0x398   : > { %v8771_v14 = vpop.permute.xlu1 %3650  ;;  %4037 = vmatpush.bf16.msrb.mxu2 %v6467_v26  ;;  %v4282_v26 = vunpack.c.l.b16 %v669_v5  ;;  %v10232_v5 = vld [vmem:[#allocation65_spill] sm:$0xff] }
 0x399   : > { %v8773_v33 = vpop.permute.xlu0 %3660  ;;  %v3766_v15 = vshll.u32 %v3725_v19, 16 }
 0x39a   : > { %v4293_v34 = vpack.c.b16 %v4283_v44, %v4282_v26  ;;  %v10233_v26 = vld [vmem:[#allocation74_spill] sm:$0xff] }
 0x39b   : > { %v3768_v37 = vrot.slane %v3766_v15, 1 }
 0x39c   : > { %4436 = vrot.lane.b32.xlu2 %v10221_v43, %s6610_s30  ;;  %4038 = vmatpush.bf16.msrb.mxu2 %v6466_v38  ;;  %v4325_v43 = vshrl.u32 %v4292_v24, 16  ;;  %v6555_v38 = vld [vmem:[%s6712_s25] sm:$0xf]  ;;  %v4389_v24 = vpack.c.b16 %v4283_v44, %v4381_v23  ;;  %v4334_v55 = vshll.u32 %v4293_v34, 16  ;;  %v4332_v29 = vshrl.u32 %v4293_v34, 16 }
 0x39d   : > { %v3850_v8 = vsel %vm1266_vm3, %v6555_v38, %v8678_v53  ;;  %v4792_v53 = vld [vmem:[%s9875_s5 + $0x20] sm:$0xf]  ;;  %v4396_v44 = vrot.slane %v4388_v3, 1  ;;  %v6215_v23 = vld [vmem:[%s6720_s9 + $0x30] sm:$0xf] }
 0x39e   : > { %v8780_v50 = vpop.permute.xlu2 %3700  ;;  %4422 = vrot.lane.b32.xlu1 %v10222_v56, %s6609_s29  ;;  %v3813_v56 = vunpack.c.l.b16 %v6184_v20  ;;  %v4330_v61 = vor.u32 %v4329_v36, %v4325_v43  ;;  %v4830_v15 = vunpack.c.l.b16 %v4792_v53  ;;  %v8911_v53 = vld [vmem:[%s6712_s25 + $0x4c] sm:$0x1] }
 0x39f   : > { %4492 = vrot.lane.b32.xlu0 %v4482_v13, %s6612_s11  ;;  %v3764_v13 = vshrl.u32 %v3725_v19, 16  ;;  %v3873_v19 = vsel %vm1291_vm4, %v3850_v8, %v8699_v49 }
 0x3a0   : > { %v8794_v46 = vpop.permute.xlu1 %3656  ;;  %v3888_v17 = vsel %vm1308_vm5, %v3873_v19, %v10230_v2  ;;  %v4835_v43 = vpack.c.b16 %v4830_v15, %v4830_v15  ;;  %v3719_v2 = vunpack.c.l.b16 %v8911_v53 }
 0x3a1   : > { %v8796_v45 = vpop.permute.xlu0 %3690 }
 0x3a4   : > { %4454 = vrot.lane.b32.xlu2 %v10224_v9, %s6611_s10  ;;  %v3821_v9 = vpack.c.b16 %v3717_v35, %v3813_v56  ;;  %v3820_v35 = vpack.c.b16 %v10228_v60, %v3812_v4  ;;  %v4853_v56 = vsel %vm1479_vm2, %v4835_v43, 0  ;;  %v4336_v4 = vrot.slane %v4334_v55, 1  ;;  %v2684_v55 = vld [vmem:[#allocation3 + $0x4] sm:$0x1]  ;;  %v6177_v43 = vld [vmem:[%s6712_s25 + $0x44] sm:$0x1] }
 0x3a5   : > { %4858 = vmatpush.bf16.msrb.mxu0 %v4853_v56  ;;  %v8894_v60 = vunpack.c.l.b16 %v6215_v23  ;;  %vm2657_vm2 = vcmask 385024   ;;  %v10244_v56 = vld [vmem:[#allocation52_spill] sm:$0xff] }
 0x3a6   : > { %v8803_v51 = vpop.permute.xlu2 %3786  ;;  %4452 = vrot.lane.b32.xlu1 %v10226_v58, %s6611_s10  ;;  %v3875_v58 = vsel %vm1291_vm4, %v3853_v6, %v8771_v14  ;;  %v10229_v14 = vld [vmem:[#allocation43_spill] sm:$0xff]  ;;  %v3828_v20 = vrot.slane %v3820_v35, 1  ;;  %v4337_v34 = vor.u32 %v4336_v4, %v4332_v29  ;;  %vm8921_vm13 = vmand %vm2657_vm2, %vm10237_vm15  ;;  %v10245_v29 = vrot.slane %v10244_v56, 1 }
 0x3a7   : > { %4590 = vrot.lane.b32.xlu0 %v4555_v22, %s6613_s18  ;;  %v3769_v22 = vor.u32 %v3768_v37, %v3764_v13  ;;  %v4397_v13 = vrot.slane %v4389_v24, 1  ;;  %v10231_v37 = vld [vmem:[#allocation64_spill] sm:$0xff] }
 0x3a8   : > { %v8815_v16 = vpop.permute.xlu1 %3662 }
 0x3a9   : > { %v8817_v18 = vpop.permute.xlu0 %3696 }
 0x3ac   : > { %4588 = vrot.lane.b32.xlu2 %v4548_v32, %s6613_s18  ;;  %v3829_v32 = vrot.slane %v3821_v9, 1  ;;  %v8884_v9 = vld [vmem:[%s6720_s9 + $0x34] sm:$0x1] }
 0x3ad   : > { %v4516_v35 = vunpack.c.l.b16 %v8884_v9 }
 0x3ae   : > { %v8823_v62 = vpop.permute.xlu2 %3832  ;;  %4494 = vrot.lane.b32.xlu1 %v4483_v63, %s6612_s11  ;;  %v3889_v63 = vsel %vm1308_vm5, %v3875_v58, %v10229_v14 }
 0x3af   : > { %4638 = vrot.lane.b32.xlu0 %v4627_v54, %s6614_s21  ;;  %v3897_v36 = vsel %vm1325_vm6, %v3889_v63, %v10231_v37  ;;  %v4524_v7 = vpack.c.b16 %v4516_v35, %v8894_v60 }
 0x3b0   : > { %v8831_v12 = vpop.permute.xlu1 %3692 }
 0x3b1   : > { %v8833_v39 = vpop.permute.xlu0 %3702  ;;  %v4559_v15 = vshll.u32 %v4524_v7, 16  ;;  %v4557_v4 = vshrl.u32 %v4524_v7, 16 }
 0x3b4   : > { %4636 = vrot.lane.b32.xlu2 %v4626_v0, %s6614_s21  ;;  %v3896_v0 = vsel %vm1325_vm6, %v3888_v17, %v10232_v5  ;;  %v2659_v17 = vld [vmem:[#allocation3] sm:$0x1] }
 0x3b5   : > { %v2660_v37 = vsel %vm8921_vm13, 0, %v2659_v17 }
 0x3b6   : > { %v8845_v40 = vpop.permute.xlu2 %4352  ;;  %3794 = vrot.lane.b32.xlu1 %v3769_v22, %s6613_s18  ;;  %v3905_v22 = vsel %vm1342_vm7, %v3897_v36, %v10233_v26  ;;  %2661 = vst [vmem:[#allocation3] sm:$0x1] %v2660_v37  ;;  %v4561_v26 = vrot.slane %v4559_v15, 1  ;;  %v6185_v15 = vld [vmem:[%s6712_s25 + $0x40] sm:$0xe] }
 0x3b7   : > { %4360 = vrot.lane.b32.xlu0 %v4330_v61, %s6607_s0  ;;  %v10234_v61 = vld [vmem:[#allocation66_spill] sm:$0xff]  ;;  %v3915_v42 = vsel %vm1359_vm8, %v3905_v22, %v8796_v45  ;;  %v10246_v22 = vld [vmem:[#allocation12_spill] sm:$0xff]  ;;  %v2662_v37 = vld [vmem:[#allocation3 + $0x8] sm:$0x1] }
 0x3b8   : > { %v8858_v54 = vpop.permute.xlu1 %3698  ;;  %v3904_v48 = vsel %vm1342_vm7, %v3896_v0, %v10234_v61  ;;  %v3931_v6 = vsel %vm1376_vm9, %v3915_v42, %v8803_v51  ;;  %v6473_v51 = vld [vmem:[%s9875_s5 + $0x18] sm:$0xff]  ;;  %v10243_v0 = vld [vmem:[#allocation34_spill] sm:$0xff]  ;;  %v3727_v61 = vpack.c.b16 %v3719_v2, %v10246_v22  ;;  %v2663_v56 = vsel %vm8921_vm13, 0, %v2662_v37  ;;  %v2665_v37 = vld [vmem:[#allocation3 + $0x10] sm:$0x1] }
 0x3b9   : > { %v8860_v49 = vpop.permute.xlu0 %3788  ;;  %v3913_v11 = vsel %vm1359_vm8, %v3904_v48, %v8725_v25  ;;  %4859 = vmatpush.bf16.msrb.mxu0 %v6473_v51  ;;  %v3718_v48 = vunpack.c.l.b16 %v6177_v43  ;;  %v8946_v42 = vld [vmem:[%s6720_s9 + $0x3c] sm:$0x1]  ;;  %v10250_v51 = vld [vmem:[#allocation44_spill] sm:$0xff]  ;;  %2664 = vst [vmem:[#allocation3 + $0x8] sm:$0x1] %v2663_v56  ;;  %v2666_v56 = vsel %vm8921_vm13, 0, %v2665_v37 }
 0x3ba   : > { %2667 = vst [vmem:[#allocation3 + $0x10] sm:$0x1] %v2666_v56  ;;  %v2668_v56 = vld [vmem:[#allocation3 + $0x18] sm:$0x1]  ;;  %v6233_v36 = vld [vmem:[%s6720_s9 + $0x40] sm:$0xe] }
 0x3bc   : > { %3842 = vrot.lane.b32.xlu2 %v3829_v32, %s6614_s21 }
 0x3be   : > { %v8872_v21 = vpop.permute.xlu2 %4402  ;;  %3840 = vrot.lane.b32.xlu1 %v3828_v20, %s6614_s21  ;;  %v10236_v20 = vld [vmem:[#allocation36_spill] sm:$0xff] }
 0x3bf   : > { %4410 = vrot.lane.b32.xlu0 %v4397_v13, %s6608_s24 }
 0x3c0   : > { %v3785_v10 = vpop.permute.xlu1 %3784 }
 0x3c1   : > { %v3835_v38 = vpop.permute.xlu0 %3834  ;;  %v3929_v8 = vsel %vm1376_vm9, %v3913_v11, %v3785_v10  ;;  %v6216_v11 = vld [vmem:[%s6720_s9 + $0x38] sm:$0xf]  ;;  %v3780_v10 = vshll.u32 %v3727_v61, 16 }
 0x3c2   : > { %v3947_v58 = vsel %vm1393_vm10, %v3931_v6, %v3835_v38  ;;  %v3945_v45 = vsel %vm1393_vm10, %v3929_v8, %v8823_v62  ;;  %v10235_v62 = vld [vmem:[#allocation41_spill] sm:$0xff]  ;;  %v4562_v6 = vor.u32 %v4561_v26, %v4557_v4  ;;  %v4517_v38 = vunpack.c.l.b16 %v8946_v42  ;;  %v10247_v8 = vld [vmem:[#allocation54_spill] sm:$0xff] }
 0x3c3   : > { %v3978_v19 = vunpack.c.l.b16 %v3947_v58  ;;  %v3977_v25 = vunpack.c.l.b16 %v3945_v45  ;;  %v10248_v58 = vrot.slane %v10247_v8, 1  ;;  %v10249_v45 = vld [vmem:[#allocation18_spill] sm:$0xff]  ;;  %v4484_v4 = vpack.c.b16 %v8894_v60, %v8894_v60 }
 0x3c4   : > { %4408 = vrot.lane.b32.xlu2 %v4396_v44, %s6608_s24 }
 0x3c5   : > { %v3985_v24 = vpack.c.b16 %v3978_v19, %v3977_v25  ;;  %v3726_v19 = vpack.c.b16 %v3718_v48, %v10249_v45 }
 0x3c6   : > { %v8901_v32 = vpop.permute.xlu2 %4432  ;;  %4362 = vrot.lane.b32.xlu1 %v4337_v34, %s6607_s0  ;;  %v4477_v34 = vunpack.c.l.b16 %v6216_v11 }
 0x3c7   : > { %4440 = vrot.lane.b32.xlu0 %v10235_v62, %s6610_s30  ;;  %6331 = vmatmul.msk.bf16.vlgmr.msrb.gmra.mxu2 %vm10014_vm11, %v3985_v24  ;;  %vm8929_vm11 = vmand %vm2657_vm2, %vm10240_vm12  ;;  %v3778_v24 = vshrl.u32 %v3727_v61, 16  ;;  %v3782_v62 = vrot.slane %v3780_v10, 1  ;;  %v3771_v61 = vshrl.u32 %v3726_v19, 16 }
 0x3c8   : > { %v8913_v14 = vpop.permute.xlu1 %3790  ;;  %v2685_v5 = vsel %vm8929_vm11, 0, %v2684_v55  ;;  %v4525_v7 = vpack.c.b16 %v4517_v38, %v4477_v34  ;;  %v4485_v17 = vpack.c.b16 %v4477_v34, %v4477_v34  ;;  %v3773_v55 = vshll.u32 %v3726_v19, 16  ;;  %v6231_v34 = vld [vmem:[%s6720_s9 + $0x30] sm:$0xe] }
 0x3c9   : > { %v8915_v63 = vpop.permute.xlu0 %4354  ;;  %2686 = vst [vmem:[#allocation3 + $0x4] sm:$0x1] %v2685_v5  ;;  %v2687_v5 = vld [vmem:[#allocation3 + $0xc] sm:$0x1]  ;;  %v3783_v26 = vor.u32 %v3782_v62, %v3778_v24  ;;  %v6472_v19 = vld [vmem:[%s9875_s5 + $0x10] sm:$0xff] }
 0x3ca   : > { %v4566_v22 = vshll.u32 %v4525_v7, 16  ;;  %v3775_v11 = vrot.slane %v3773_v55, 1  ;;  %v4564_v8 = vshrl.u32 %v4525_v7, 16  ;;  %v8986_v62 = vld [vmem:[%s6720_s9 + $0x38] sm:$0xf]  ;;  %4860 = vmatpush.bf16.msrb.mxu0 %v6472_v19  ;;  %v10252_v19 = vld [vmem:[#allocation24_spill] sm:$0xff] }
 0x3cb   : > { %v4286_v7 = vunpack.c.l.b16 %v8986_v62 }
 0x3cc   : > { %4426 = vrot.lane.b32.xlu2 %v10236_v20, %s6609_s29  ;;  %v3776_v60 = vor.u32 %v3775_v11, %v3771_v61  ;;  %v10251_v61 = vld [vmem:[#allocation19_spill] sm:$0xff] }
 0x3cd   : > { %v4653_v11 = vsel %vm1266_vm3, %v10251_v61, %v8915_v63  ;;  %v4650_v63 = vsel %vm1266_vm3, %v10252_v19, %v8845_v40  ;;  %v686_v19 = vld [vmem:[%s6720_s9 + $0x30] sm:$0xe] }
 0x3ce   : > { %v8933_v3 = vpop.permute.xlu2 %4450  ;;  %4424 = vrot.lane.b32.xlu1 %v10243_v0, %s6609_s29  ;;  %v3814_v0 = vunpack.c.l.b16 %v6185_v15 }
 0x3cf   : > { %4458 = vrot.lane.b32.xlu0 %v10245_v29, %s6611_s10  ;;  %v2688_v29 = vsel %vm8929_vm11, 0, %v2687_v5  ;;  %v2690_v5 = vld [vmem:[#allocation3 + $0x14] sm:$0x1] }
 0x3d0   : > { %v8948_v44 = vpop.permute.xlu1 %3792  ;;  %2689 = vst [vmem:[#allocation3 + $0xc] sm:$0x1] %v2688_v29  ;;  %v3822_v10 = vpack.c.b16 %v3718_v48, %v3814_v0  ;;  %v8989_v48 = vld [vmem:[%s6720_s9 + $0x3c] sm:$0x1]  ;;  %v6471_v0 = vld [vmem:[%s9875_s5 + $0x8] sm:$0xff]  ;;  %v2691_v29 = vsel %vm8929_vm11, 0, %v2690_v5 }
 0x3d1   : > { %v8950_v23 = vpop.permute.xlu0 %4416  ;;  %v4287_v55 = vunpack.c.l.b16 %v8989_v48  ;;  %2692 = vst [vmem:[#allocation3 + $0x14] sm:$0x1] %v2691_v29  ;;  %4861 = vmatpush.bf16.msrb.mxu0 %v6471_v0  ;;  %v2693_v29 = vld [vmem:[#allocation3 + $0x1c] sm:$0x1] }
 0x3d2   : > { %v3830_v24 = vrot.slane %v3822_v10, 1 }
 0x3d4   : > { %4456 = vrot.lane.b32.xlu2 %v10248_v58, %s6611_s10  ;;  %v4568_v58 = vrot.slane %v4566_v22, 1  ;;  %v4295_v22 = vpack.c.b16 %v4287_v55, %v4286_v7 }
 0x3d6   : > { %v8958_v25 = vpop.permute.xlu2 %4584  ;;  %4442 = vrot.lane.b32.xlu1 %v10250_v51, %s6610_s30  ;;  %v4569_v15 = vor.u32 %v4568_v58, %v4564_v8  ;;  %v6186_v8 = vld [vmem:[%s6712_s25 + $0x48] sm:$0xe]  ;;  %v4346_v58 = vshrl.u32 %v4295_v22, 16 }
 0x3d7   : > { %4592 = vrot.lane.b32.xlu0 %v4562_v6, %s6613_s18  ;;  %v3815_v5 = vunpack.c.l.b16 %v6186_v8 }
 0x3d8   : > { %v4401_v20 = vpop.permute.xlu1 %4400 }
 0x3d9   : > { %v8966_v43 = vpop.permute.xlu0 %4434  ;;  %v4673_v7 = vsel %vm1291_vm4, %v4650_v63, %v4401_v20  ;;  %v3823_v8 = vpack.c.b16 %v3719_v2, %v3815_v5  ;;  %v6557_v63 = vld [vmem:[%s6712_s25 + $0x18] sm:$0xf] }
 0x3da   : > { %v4689_v61 = vsel %vm1308_vm5, %v4673_v7, %v8950_v23  ;;  %v678_v23 = vld [vmem:[%s6720_s9 + $0x34] sm:$0x1] }
 0x3dc   : > { %4498 = vrot.lane.b32.xlu2 %v4485_v17, %s6612_s11  ;;  %v4612_v17 = vunpack.c.l.b16 %v6231_v34 }
 0x3de   : > { %v8975_v6 = vpop.permute.xlu2 %4634  ;;  %4496 = vrot.lane.b32.xlu1 %v4484_v4, %s6612_s11  ;;  %v6556_v4 = vld [vmem:[%s6712_s25 + $0x10] sm:$0xf] }
 0x3df   : > { %3798 = vrot.lane.b32.xlu0 %v3783_v26, %s6613_s18  ;;  %v3856_v26 = vsel %vm1266_vm3, %v6556_v4, %v8641_v57  ;;  %v4620_v57 = vpack.c.b16 %v4516_v35, %v4612_v17  ;;  %v6470_v35 = vld [vmem:[%s9875_s5] sm:$0xff]  ;;  %v6232_v17 = vld [vmem:[%s6720_s9 + $0x38] sm:$0xe] }
 0x3e0   : > { %v4419_v45 = vpop.permute.xlu1 %4418  ;;  %v3877_v34 = vsel %vm1291_vm4, %v3856_v26, %v8666_v27  ;;  %v4613_v4 = vunpack.c.l.b16 %v6232_v17  ;;  %v10253_v26 = vld [vmem:[#allocation59_spill] sm:$0xff]  ;;  %4862 = vmatpush.bf16.msrb.mxu0 %v6470_v35  ;;  %v4285_v17 = vunpack.c.l.b16 %v678_v23 }
 0x3e1   : > { %v8980_v51 = vpop.permute.xlu0 %4488  ;;  %v4628_v0 = vrot.slane %v4620_v57, 1 }
 0x3e2   : > { %v4621_v57 = vpack.c.b16 %v4517_v38, %v4613_v4  ;;  %v10254_v38 = vld [vmem:[#allocation60_spill] sm:$0xff]  ;;  %v2696_v4 = vld [vmem:[#allocation3 + $0x24] sm:$0x1] }
 0x3e4   : > { %3796 = vrot.lane.b32.xlu2 %v3776_v60, %s6613_s18  ;;  %v4348_v60 = vshll.u32 %v4295_v22, 16  ;;  %v3890_v22 = vsel %vm1308_vm5, %v3877_v34, %v10253_v26  ;;  %v4629_v2 = vrot.slane %v4621_v57, 1 }
 0x3e5   : > { %v3898_v7 = vsel %vm1325_vm6, %v3890_v22, %v10254_v38 }
 0x3e6   : > { %v9009_v10 = vpop.permute.xlu2 %4356  ;;  %4594 = vrot.lane.b32.xlu1 %v4569_v15, %s6613_s18  ;;  %v4675_v15 = vsel %vm1291_vm4, %v4653_v11, %v8872_v21  ;;  %v4350_v9 = vrot.slane %v4348_v60, 1  ;;  %v2669_v21 = vsel %vm8921_vm13, 0, %v2668_v56  ;;  %v4382_v56 = vunpack.c.l.b16 %v686_v19 }
 0x3e7   : > { %3844 = vrot.lane.b32.xlu0 %v3830_v24, %s6614_s21  ;;  %v4691_v27 = vsel %vm1308_vm5, %v4675_v15, %v4419_v45  ;;  %2670 = vst [vmem:[#allocation3 + $0x18] sm:$0x1] %v2669_v21  ;;  %v4705_v15 = vsel %vm1325_vm6, %v4689_v61, %v8901_v32 }
 0x3e8   : > { %v4449_v37 = vpop.permute.xlu1 %4448  ;;  %v4351_v20 = vor.u32 %v4350_v9, %v4346_v58  ;;  %v4707_v11 = vsel %vm1325_vm6, %v4691_v27, %v8966_v43  ;;  %v2694_v58 = vsel %vm8929_vm11, 0, %v2693_v29  ;;  %v3859_v43 = vsel %vm1266_vm3, %v6557_v63, %v8697_v41  ;;  %v9064_v29 = vld [vmem:[%s6720_s9 + $0x30] sm:$0xf] }
 0x3e9   : > { %v4587_v24 = vpop.permute.xlu0 %4586  ;;  %2695 = vst [vmem:[#allocation3 + $0x1c] sm:$0x1] %v2694_v58  ;;  %v3879_v42 = vsel %vm1291_vm4, %v3859_v43, %v8746_v31  ;;  %v4723_v5 = vsel %vm1342_vm7, %v4707_v11, %v8933_v3  ;;  %v3831_v27 = vrot.slane %v3823_v8, 1  ;;  %v2671_v31 = vld [vmem:[#allocation3 + $0x20] sm:$0x1]  ;;  %v4390_v63 = vpack.c.b16 %v4285_v17, %v4382_v56 }
 0x3ea   : > { %v3324_v40 = vpop.f32.mrf.mxu3  ;;  %v2672_v3 = vsel %vm8921_vm13, 0, %v2671_v31  ;;  %v10255_v11 = vld [vmem:[#allocation58_spill] sm:$0xff]  ;;  %v10260_v31 = vld [vmem:[#allocation68_spill] sm:$0xff] }
 0x3eb   : > { %vm3344_vm15 = vcmp.gt.f32.partialorder %v3324_v40, 0.0  ;;  %v3352_v45 = vmul.f32 0.01, %v3324_v40  ;;  %2673 = vst [vmem:[#allocation3 + $0x20] sm:$0x1] %v2672_v3 }
 0x3ec   : > { %4642 = vrot.lane.b32.xlu2 %v4629_v2, %s6614_s21  ;;  %v3459_v8 = vld [vmem:[#allocation3 + $0x4] sm:$0x1] }
 0x3ed   : > { %v3360_v60 = vsel %vm3344_vm15, %v3324_v40, %v3352_v45  ;;  %v4721_v40 = vsel %vm1342_vm7, %v4705_v15, %v4449_v37  ;;  %v2697_v45 = vsel %vm8929_vm11, 0, %v2696_v4  ;;  %v3891_v37 = vsel %vm1308_vm5, %v3879_v42, %v10255_v11 }
 0x3ee   : > { %v9043_v34 = vpop.permute.xlu2 %4406  ;;  %v3368_v53 = vpack.c.bf16 %v3360_v60, %v3360_v60  ;;  %4640 = vrot.lane.b32.xlu1 %v4628_v0, %s6614_s21  ;;  %v3456_v0 = vld [vmem:[#allocation3] sm:$0xf]  ;;  %v4737_v60 = vsel %vm1359_vm8, %v4721_v40, %v8980_v51  ;;  %2698 = vst [vmem:[#allocation3 + $0x24] sm:$0x1] %v2697_v45  ;;  %v10258_v51 = vld [vmem:[#allocation35_spill] sm:$0xff]  ;;  %v3899_v40 = vsel %vm1325_vm6, %v3891_v37, %v10260_v31  ;;  %vm10262_vm15 = vcmask 588800  }
 0x3ef   : > { %4366 = vrot.lane.b32.xlu0 %v4351_v20, %s6607_s0  ;;  %v4284_v20 = vunpack.c.l.b16 %v9064_v29  ;;  %v3462_v37 = vld [vmem:[#allocation3 + $0x8] sm:$0xf] }
 0x3f0   : > { %v3377_v41 = vshrl.u32 %v3368_v53, 16  ;;  %v4491_v9 = vpop.permute.xlu1 %4490  ;;  %v3380_v26 = vshll.u32 %v3368_v53, 16 }
 0x3f1   : > { %v9060_v35 = vpop.permute.xlu0 %3836  ;;  %v4739_v32 = vsel %vm1359_vm8, %v4723_v5, %v4491_v9  ;;  %v4294_v58 = vpack.c.b16 %v4285_v17, %v4284_v20  ;;  %v10259_v17 = vld [vmem:[#allocation72_spill] sm:$0xff] }
 0x3f2   : > { %v3379_v21 = vrot.slane %v3377_v41, 7  ;;  %v4755_v22 = vsel %vm1376_vm9, %v4739_v32, %v4587_v24  ;;  %v3326_v61 = vpop.f32.mrf.mxu3  ;;  %v3906_v56 = vsel %vm1342_vm7, %v3898_v7, %v10259_v17  ;;  %v4398_v7 = vrot.slane %v4390_v63, 1  ;;  %v2699_v63 = vld [vmem:[#allocation3 + $0x2c] sm:$0x1] }
 0x3f3   : > { %vm3345_vm12 = vcmp.gt.f32.partialorder %v3326_v61, 0.0  ;;  %v3353_v57 = vmul.f32 0.01, %v3326_v61  ;;  %v4771_v53 = vsel %vm1393_vm10, %v4755_v22, %v8975_v6  ;;  %v4339_v2 = vshrl.u32 %v4294_v58, 16  ;;  %v687_v22 = vld [vmem:[%s6720_s9 + $0x38] sm:$0xe] }
 0x3f4   : > { %v3382_v23 = vor.u32 %v3380_v26, %v3379_v21  ;;  %v3383_v19 = vrot.slane %v3379_v21, 4  ;;  %v4341_v38 = vshll.u32 %v4294_v58, 16  ;;  %v4802_v21 = vunpack.c.l.b16 %v4771_v53 }
 0x3f5   : > { %v3361_v24 = vsel %vm3345_vm12, %v3326_v61, %v3353_v57  ;;  %v2674_v61 = vld [vmem:[#allocation3 + $0x28] sm:$0x1]  ;;  %v4383_v58 = vunpack.c.l.b16 %v687_v22  ;;  %v2700_v48 = vsel %vm8929_vm11, 0, %v2699_v63 }
 0x3f6   : > { %v9078_v43 = vpop.permute.xlu2 %4436  ;;  %v3457_v15 = vsel %vm7635_vm14, %v3382_v23, %v3456_v0  ;;  %v3460_v41 = vsel %vm7454_vm0, %v3383_v19, %v3459_v8  ;;  %v3369_v9 = vpack.c.bf16 %v3361_v24, %v3361_v24  ;;  %3846 = vrot.lane.b32.xlu1 %v3831_v27, %s6614_s21  ;;  %v4343_v6 = vrot.slane %v4341_v38, 1  ;;  %v9101_v23 = vpop.f32.mrf.mxu2  ;;  %v6217_v38 = vld [vmem:[%s6720_s9 + $0x40] sm:$0xf]  ;;  %2701 = vst [vmem:[#allocation3 + $0x2c] sm:$0x1] %v2700_v48 }
 0x3f7   : > { %4428 = vrot.lane.b32.xlu0 %v10258_v51, %s6609_s29  ;;  %3458 = vst [vmem:[#allocation3] sm:$0xf] %v3457_v15  ;;  %v3917_v0 = vsel %vm1359_vm8, %v3906_v56, %v8831_v12  ;;  %v4753_v27 = vsel %vm1376_vm9, %v4737_v60, %v8958_v25  ;;  %v3465_v12 = vld [vmem:[#allocation3 + $0xc] sm:$0x1]  ;;  %v2675_v19 = vsel %vm8921_vm13, 0, %v2674_v61  ;;  %v4391_v15 = vpack.c.b16 %v4287_v55, %v4383_v58 }
 0x3f8   : > { %3461 = vst [vmem:[#allocation3 + $0x4] sm:$0x1] %v3460_v41  ;;  %v3385_v32 = vshrl.u32 %v3369_v9, 16  ;;  %v4633_v20 = vpop.permute.xlu1 %4632  ;;  %v4344_v26 = vor.u32 %v4343_v6, %v4339_v2  ;;  %v3388_v11 = vshll.u32 %v3369_v9, 16  ;;  %v3933_v25 = vsel %vm1376_vm9, %v3917_v0, %v8860_v49  ;;  %v10261_v41 = vld [vmem:[#allocation69_spill] sm:$0xff] }
 0x3f9   : > { %v9097_v3 = vpop.permute.xlu0 %4358  ;;  %v4769_v4 = vsel %vm1393_vm10, %v4753_v27, %v4633_v20  ;;  %2676 = vst [vmem:[#allocation3 + $0x28] sm:$0x1] %v2675_v19  ;;  %v3907_v9 = vsel %vm1342_vm7, %v3899_v40, %v10261_v41  ;;  %v3949_v49 = vsel %vm1393_vm10, %v3933_v25, %v9060_v35  ;;  %v10263_v35 = vld [vmem:[#allocation46_spill] sm:$0xff]  ;;  %v9129_v40 = vunpack.c.l.b16 %v6217_v38  ;;  %v9140_v61 = vld [vmem:[%s6720_s9 + $0x4c] sm:$0x1] }
 0x3fa   : > { %v3387_v45 = vrot.slane %v3385_v32, 7  ;;  %v4801_v8 = vunpack.c.l.b16 %v4769_v4  ;;  %v3329_v57 = vpop.f32.mrf.mxu3  ;;  %4364 = vrot.lane.b32.xlu2 %v4344_v26, %s6607_s0  ;;  %v3919_v55 = vsel %vm1359_vm8, %v3907_v9, %v8759_v30  ;;  %v4399_v0 = vrot.slane %v4391_v15, 1  ;;  %v2702_v58 = vld [vmem:[#allocation3 + $0x34] sm:$0x1] }
 0x3fb   : > { %vm3346_vm2 = vcmp.gt.f32.partialorder %v3329_v57, 0.0  ;;  %v3354_v60 = vmul.f32 0.01, %v3329_v57  ;;  %v3935_v32 = vsel %vm1376_vm9, %v3919_v55, %v8913_v14  ;;  %v3979_v26 = vunpack.c.l.b16 %v3949_v49  ;;  %v3471_v25 = vld [vmem:[#allocation3 + $0x14] sm:$0x1] }
 0x3fc   : > { %v3390_v24 = vor.u32 %v3388_v11, %v3387_v45  ;;  %v3391_v53 = vrot.slane %v3387_v45, 4  ;;  %v4809_v2 = vpack.c.b16 %v4802_v21, %v4801_v8  ;;  %v2677_v45 = vld [vmem:[#allocation3 + $0x30] sm:$0x1]  ;;  %v4519_v8 = vunpack.c.l.b16 %v9140_v61 }
 0x3fd   : > { %v3362_v51 = vsel %vm3346_vm2, %v3329_v57, %v3354_v60  ;;  %v2678_v57 = vsel %vm8921_vm13, 0, %v2677_v45  ;;  %v4486_v19 = vpack.c.b16 %v9129_v40, %v9129_v40  ;;  %v2703_v63 = vsel %vm8929_vm11, 0, %v2702_v58  ;;  %vm10265_vm2 = vmmov %vm10262_vm15  ;;  %v2705_v45 = vld [vmem:[#allocation3 + $0x3c] sm:$0x1] }
 0x3fe   : > { %v9115_v17 = vpop.permute.xlu2 %4454  ;;  %v3463_v56 = vsel %vm7635_vm14, %v3390_v24, %v3462_v37  ;;  %v3466_v6 = vsel %vm7454_vm0, %v3391_v53, %v3465_v12  ;;  %v3370_v31 = vpack.c.bf16 %v3362_v51, %v3362_v51  ;;  %4412 = vrot.lane.b32.xlu1 %v4398_v7, %s6608_s24  ;;  %6351 = vmatmul.msk.bf16.vlgmr.msrb.gmra.mxu0 %vm10262_vm15, %v4809_v2  ;;  %v6218_v7 = vld [vmem:[%s6720_s9 + $0x48] sm:$0xf]  ;;  %v3468_v37 = vld [vmem:[#allocation3 + $0x10] sm:$0xf]  ;;  %v9153_v15 = vpop.f32.mrf.mxu2 }
 0x3ff   : > { %3464 = vst [vmem:[#allocation3 + $0x8] sm:$0xf] %v3463_v56  ;;  %4446 = vrot.lane.b32.xlu0 %v10263_v35, %s6610_s30  ;;  %v9137_v22 = vunpack.c.l.b16 %v6218_v7 }
 0x400   : > { %3467 = vst [vmem:[#allocation3 + $0xc] sm:$0x1] %v3466_v6  ;;  %v3393_v20 = vshrl.u32 %v3370_v31, 16  ;;  %v3396_v27 = vshll.u32 %v3370_v31, 16  ;;  %v3839_v4 = vpop.permute.xlu1 %3838  ;;  %v10264_v6 = vld [vmem:[#allocation37_spill] sm:$0xff] }
 0x401   : > { %v9133_v21 = vpop.permute.xlu0 %4420  ;;  %v3951_v30 = vsel %vm1393_vm10, %v3935_v32, %v3839_v4  ;;  %v4527_v38 = vpack.c.b16 %v4519_v8, %v9137_v22  ;;  %2679 = vst [vmem:[#allocation3 + $0x30] sm:$0x1] %v2678_v57  ;;  %v3474_v32 = vld [vmem:[#allocation3 + $0x18] sm:$0xf] }
 0x402   : > { %v3395_v11 = vrot.slane %v3393_v20, 7  ;;  %v3980_v12 = vunpack.c.l.b16 %v3951_v30  ;;  %v3331_v14 = vpop.f32.mrf.mxu3  ;;  %4414 = vrot.lane.b32.xlu2 %v4399_v0, %s6608_s24  ;;  %2704 = vst [vmem:[#allocation3 + $0x34] sm:$0x1] %v2703_v63  ;;  %v3477_v20 = vld [vmem:[#allocation3 + $0x1c] sm:$0x1]  ;;  %v2706_v63 = vsel %vm8929_vm11, 0, %v2705_v45 }
 0x403   : > { %vm3347_vm12 = vcmp.gt.f32.partialorder %v3331_v14, 0.0  ;;  %v3355_v60 = vmul.f32 0.01, %v3331_v14  ;;  %v4578_v31 = vshrl.u32 %v4527_v38, 16  ;;  %v4580_v48 = vshll.u32 %v4527_v38, 16  ;;  %v10267_v38 = vld [vmem:[#allocation56_spill] sm:$0xff] }
 0x404   : > { %v3398_v24 = vor.u32 %v3396_v27, %v3395_v11  ;;  %v3399_v53 = vrot.slane %v3395_v11, 4  ;;  %v3986_v2 = vpack.c.b16 %v3980_v12, %v3979_v26  ;;  %v2680_v30 = vld [vmem:[#allocation3 + $0x38] sm:$0x1]  ;;  %v10266_v12 = vld [vmem:[#allocation47_spill] sm:$0xff]  ;;  %2707 = vst [vmem:[#allocation3 + $0x3c] sm:$0x1] %v2706_v63 }
 0x405   : > { %v3363_v41 = vsel %vm3347_vm12, %v3331_v14, %v3355_v60  ;;  %v4582_v27 = vrot.slane %v4580_v48, 1  ;;  %v6225_v14 = vld [vmem:[%s6720_s9 + $0x44] sm:$0x1] }
 0x406   : > { %v9155_v9 = vpop.permute.xlu2 %4588  ;;  %v3469_v49 = vsel %vm7635_vm14, %v3398_v24, %v3468_v37  ;;  %v3472_v51 = vsel %vm7454_vm0, %v3399_v53, %v3471_v25  ;;  %v3371_v56 = vpack.c.bf16 %v3363_v41, %v3363_v41  ;;  %4430 = vrot.lane.b32.xlu1 %v10264_v6, %s6609_s29  ;;  %6332 = vmatmul.msk.bf16.gmra.mxu2 %vm10265_vm2, %v3986_v2  ;;  %v2681_v25 = vsel %vm8921_vm13, 0, %v2680_v30 }
 0x407   : > { %3470 = vst [vmem:[#allocation3 + $0x10] sm:$0xf] %v3469_v49  ;;  %4500 = vrot.lane.b32.xlu0 %v4486_v19, %s6612_s11  ;;  %v4583_v37 = vor.u32 %v4582_v27, %v4578_v31  ;;  %v10268_v41 = vrot.slane %v10267_v38, 1  ;;  %v4518_v13 = vunpack.c.l.b16 %v6225_v14  ;;  %v9183_v49 = vpop.f32.mrf.mxu2  ;;  %v4614_v30 = vunpack.c.l.b16 %v6233_v36 }
 0x408   : > { %3473 = vst [vmem:[#allocation3 + $0x14] sm:$0x1] %v3472_v51  ;;  %v3401_v55 = vshrl.u32 %v3371_v56, 16  ;;  %v4405_v35 = vpop.permute.xlu1 %4404  ;;  %v3404_v7 = vshll.u32 %v3371_v56, 16  ;;  %v6558_v51 = vld [vmem:[%s6720_s9 + $0x10] sm:$0xf] }
 0x409   : > { %v9165_v0 = vpop.permute.xlu0 %4438  ;;  %2682 = vst [vmem:[#allocation3 + $0x38] sm:$0x1] %v2681_v25  ;;  %v4656_v56 = vsel %vm1266_vm3, %v6558_v51, %v9009_v10  ;;  %v3483_v10 = vld [vmem:[#allocation3 + $0x24] sm:$0x1] }
 0x40a   : > { %v3403_v4 = vrot.slane %v3401_v55, 7  ;;  %v3334_v26 = vpop.f32.mrf.mxu3  ;;  %4444 = vrot.lane.b32.xlu2 %v10266_v12, %s6610_s30  ;;  %v4526_v55 = vpack.c.b16 %v4518_v13, %v9129_v40 }
 0x40b   : > { %vm3348_vm15 = vcmp.gt.f32.partialorder %v3334_v26, 0.0  ;;  %v3356_v11 = vmul.f32 0.01, %v3334_v26 }
 0x40c   : > { %v3406_v57 = vor.u32 %v3404_v7, %v3403_v4  ;;  %v3407_v58 = vrot.slane %v3403_v4, 4  ;;  %v3480_v7 = vld [vmem:[#allocation3 + $0x20] sm:$0xf]  ;;  %v4573_v45 = vshll.u32 %v4526_v55, 16  ;;  %v4571_v40 = vshrl.u32 %v4526_v55, 16 }
 0x40d   : > { %v3364_v60 = vsel %vm3348_vm15, %v3334_v26, %v3356_v11  ;;  %vm10277_vm15 = vmmov %vm10265_vm2 }
 0x40e   : > { %v9172_v19 = vpop.permute.xlu2 %4636  ;;  %v3475_v24 = vsel %vm7635_vm14, %v3406_v57, %v3474_v32  ;;  %v3478_v53 = vsel %vm7454_vm0, %v3407_v58, %v3477_v20  ;;  %v3372_v2 = vpack.c.bf16 %v3364_v60, %v3364_v60  ;;  %4460 = vrot.lane.b32.xlu1 %v10268_v41, %s6611_s10  ;;  %v4677_v32 = vsel %vm1291_vm4, %v4656_v56, %v4405_v35  ;;  %v6234_v58 = vld [vmem:[%s6720_s9 + $0x48] sm:$0xe] }
 0x40f   : > { %3476 = vst [vmem:[#allocation3 + $0x18] sm:$0xf] %v3475_v24  ;;  %4598 = vrot.lane.b32.xlu0 %v4583_v37, %s6613_s18  ;;  %v4487_v20 = vpack.c.b16 %v9137_v22, %v9137_v22  ;;  %v10269_v37 = vld [vmem:[#allocation57_spill] sm:$0xff]  ;;  %v4575_v57 = vrot.slane %v4573_v45, 1  ;;  %v6559_v22 = vld [vmem:[%s6720_s9 + $0x18] sm:$0xf]  ;;  %v4693_v60 = vsel %vm1308_vm5, %v4677_v32, %v9133_v21  ;;  %v4622_v41 = vpack.c.b16 %v4518_v13, %v4614_v30  ;;  %v9212_v55 = vpop.f32.mrf.mxu2 }
 0x410   : > { %3479 = vst [vmem:[#allocation3 + $0x1c] sm:$0x1] %v3478_v53  ;;  %v3409_v6 = vshrl.u32 %v3372_v2, 16  ;;  %v4423_v31 = vpop.permute.xlu1 %4422  ;;  %v3412_v4 = vshll.u32 %v3372_v2, 16  ;;  %v10270_v12 = vrot.slane %v10269_v37, 1  ;;  %v4659_v25 = vsel %vm1266_vm3, %v6559_v22, %v9097_v3 }
 0x411   : > { %v4493_v48 = vpop.permute.xlu0 %4492  ;;  %v4576_v36 = vor.u32 %v4575_v57, %v4571_v40  ;;  %v4615_v51 = vunpack.c.l.b16 %v6234_v58  ;;  %v4709_v21 = vsel %vm1325_vm6, %v4693_v60, %v9078_v43  ;;  %v4679_v32 = vsel %vm1291_vm4, %v4659_v25, %v9043_v34  ;;  %v3489_v45 = vld [vmem:[#allocation3 + $0x2c] sm:$0x1] }
 0x412   : > { %v3411_v27 = vrot.slane %v3409_v6, 7  ;;  %v3336_v26 = vpop.f32.mrf.mxu3  ;;  %4462 = vrot.lane.b32.xlu2 %v10270_v12, %s6611_s10  ;;  %v4695_v13 = vsel %vm1308_vm5, %v4679_v32, %v4423_v31  ;;  %v4630_v30 = vrot.slane %v4622_v41, 1  ;;  %v6560_v12 = vld [vmem:[%s6712_s25 + $0x28] sm:$0xf] }
 0x413   : > { %vm3349_vm11 = vcmp.gt.f32.partialorder %v3336_v26, 0.0  ;;  %v3357_v11 = vmul.f32 0.01, %v3336_v26  ;;  %v4623_v34 = vpack.c.b16 %v4519_v8, %v4615_v51  ;;  %v3865_v31 = vsel %vm1266_vm3, %v6560_v12, %v8680_v52 }
 0x414   : > { %v3414_v35 = vor.u32 %v3412_v4, %v3411_v27  ;;  %v3415_v14 = vrot.slane %v3411_v27, 4  ;;  %v4711_v40 = vsel %vm1325_vm6, %v4695_v13, %v9165_v0  ;;  %v3883_v0 = vsel %vm1291_vm4, %v3865_v31, %v8684_v28 }
 0x415   : > { %v3365_v63 = vsel %vm3349_vm11, %v3336_v26, %v3357_v11  ;;  %v4631_v52 = vrot.slane %v4623_v34, 1  ;;  %v4727_v25 = vsel %vm1342_vm7, %v4711_v40, %v9115_v17  ;;  %v10273_v34 = vld [vmem:[#allocation48_spill] sm:$0xff]  ;;  %v10274_v40 = vld [vmem:[#allocation75_spill] sm:$0xff] }
 0x416   : > { %v9203_v24 = vpop.permute.xlu2 %3842  ;;  %v3481_v53 = vsel %vm7635_vm14, %v3414_v35, %v3480_v7  ;;  %v3484_v2 = vsel %vm7454_vm0, %v3415_v14, %v3483_v10  ;;  %v3373_v38 = vpack.c.bf16 %v3365_v63, %v3365_v63  ;;  %4502 = vrot.lane.b32.xlu1 %v4487_v20, %s6612_s11  ;;  %v3486_v7 = vld [vmem:[#allocation3 + $0x28] sm:$0xf] }
 0x417   : > { %3482 = vst [vmem:[#allocation3 + $0x20] sm:$0xf] %v3481_v53  ;;  %v6561_v53 = vld [vmem:[%s6712_s25 + $0x20] sm:$0xf] }
 0x418   : > { %3485 = vst [vmem:[#allocation3 + $0x24] sm:$0x1] %v3484_v2  ;;  %v3417_v3 = vshrl.u32 %v3373_v38, 16  ;;  %v4453_v56 = vpop.permute.xlu1 %4452  ;;  %v3420_v4 = vshll.u32 %v3373_v38, 16  ;;  %v3862_v2 = vsel %vm1266_vm3, %v6561_v53, %v8586_v59 }
 0x419   : > { %v4591_v6 = vpop.permute.xlu0 %4590  ;;  %v4725_v27 = vsel %vm1342_vm7, %v4709_v21, %v4453_v56  ;;  %v10271_v56 = vld [vmem:[#allocation62_spill] sm:$0xff]  ;;  %v3495_v21 = vld [vmem:[#allocation3 + $0x34] sm:$0x1] }
 0x41a   : > { %v3419_v20 = vrot.slane %v3417_v3, 7  ;;  %v3339_v26 = vpop.f32.mrf.mxu3  ;;  %v4741_v10 = vsel %vm1359_vm8, %v4725_v27, %v4493_v48  ;;  %4596 = vrot.lane.b32.xlu2 %v4576_v36, %s6613_s18  ;;  %v3492_v36 = vld [vmem:[#allocation3 + $0x30] sm:$0xf]  ;;  %v9247_v3 = vpop.f32.mrf.mxu2  ;;  %v3893_v17 = vsel %vm1308_vm5, %v3883_v0, %v10271_v56  ;;  %v3498_v0 = vld [vmem:[#allocation3 + $0x38] sm:$0xf] }
 0x41b   : > { %vm3350_vm13 = vcmp.gt.f32.partialorder %v3339_v26, 0.0  ;;  %v3358_v43 = vmul.f32 0.01, %v3339_v26  ;;  %v4757_v61 = vsel %vm1376_vm9, %v4741_v10, %v9155_v9  ;;  %v10272_v10 = vld [vmem:[#allocation63_spill] sm:$0xff] }
 0x41c   : > { %v3422_v11 = vor.u32 %v3420_v4, %v3419_v20  ;;  %v3423_v37 = vrot.slane %v3419_v20, 4  ;;  %v4773_v9 = vsel %vm1393_vm10, %v4757_v61, %v9172_v19  ;;  %v10275_v61 = vld [vmem:[#allocation67_spill] sm:$0xff] }
 0x41d   : > { %v3366_v35 = vsel %vm3350_vm13, %v3339_v26, %v3358_v43  ;;  %v4803_v20 = vunpack.c.l.b16 %v4773_v9  ;;  %v3901_v43 = vsel %vm1325_vm6, %v3893_v17, %v10272_v10  ;;  %v10276_v9 = vld [vmem:[#allocation76_spill] sm:$0xff]  ;;  %v6562_v10 = vld [vmem:[%s6720_s9 + $0x28] sm:$0xf] }
 0x41e   : > { %v3487_v48 = vsel %vm7635_vm14, %v3422_v11, %v3486_v7  ;;  %v3490_v14 = vsel %vm7454_vm0, %v3423_v37, %v3489_v45  ;;  %v3374_v8 = vpack.c.bf16 %v3366_v35, %v3366_v35  ;;  %4644 = vrot.lane.b32.xlu1 %v4630_v30, %s6614_s21  ;;  %v9234_v57 = vpop.permute.xlu2 %4408  ;;  %v3909_v35 = vsel %vm1342_vm7, %v3901_v43, %v10274_v40 }
 0x41f   : > { %3488 = vst [vmem:[#allocation3 + $0x28] sm:$0xf] %v3487_v48 }
 0x420   : > { %3491 = vst [vmem:[#allocation3 + $0x2c] sm:$0x1] %v3490_v14  ;;  %v3425_v58 = vshrl.u32 %v3374_v8, 16  ;;  %v4495_v22 = vpop.permute.xlu1 %4494  ;;  %v3428_v41 = vshll.u32 %v3374_v8, 16 }
 0x421   : > { %v4639_v60 = vpop.permute.xlu0 %4638  ;;  %v4743_v63 = vsel %vm1359_vm8, %v4727_v25, %v4495_v22 }
 0x422   : > { %v3427_v38 = vrot.slane %v3425_v58, 7  ;;  %v4759_v28 = vsel %vm1376_vm9, %v4743_v63, %v4591_v6  ;;  %v3341_v51 = vpop.f32.mrf.mxu3  ;;  %4646 = vrot.lane.b32.xlu2 %v4631_v52, %s6614_s21  ;;  %v3881_v6 = vsel %vm1291_vm4, %v3862_v2, %v8794_v46  ;;  %v3923_v52 = vsel %vm1359_vm8, %v3909_v35, %v8858_v54  ;;  %v3501_v58 = vld [vmem:[#allocation3 + $0x3c] sm:$0x1]  ;;  %v9271_v63 = vpop.f32.mrf.mxu2 }
 0x423   : > { %v4775_v32 = vsel %vm1393_vm10, %v4759_v28, %v4639_v60  ;;  %vm3351_vm12 = vcmp.gt.f32.partialorder %v3341_v51, 0.0  ;;  %v3359_v19 = vmul.f32 0.01, %v3341_v51  ;;  %v3892_v11 = vsel %vm1308_vm5, %v3881_v6, %v10273_v34 }
 0x424   : > { %v3430_v27 = vor.u32 %v3428_v41, %v3427_v38  ;;  %v3431_v59 = vrot.slane %v3427_v38, 4  ;;  %v4804_v13 = vunpack.c.l.b16 %v4775_v32  ;;  %v3900_v8 = vsel %vm1325_vm6, %v3892_v11, %v10275_v61 }
 0x425   : > { %v3367_v4 = vsel %vm3351_vm12, %v3341_v51, %v3359_v19  ;;  %v3908_v53 = vsel %vm1342_vm7, %v3900_v8, %v10276_v9  ;;  %vm10284_vm12 = vmmov %vm10265_vm2 }
 0x426   : > { %v3493_v7 = vsel %vm7635_vm14, %v3430_v27, %v3492_v36  ;;  %v3496_v26 = vsel %vm7454_vm0, %v3431_v59, %v3495_v21  ;;  %v3375_v30 = vpack.c.bf16 %v3367_v4, %v3367_v4  ;;  %v4810_v45 = vpack.c.b16 %v4804_v13, %v4803_v20  ;;  %v4427_v31 = vpop.permute.xlu2 %4426 }
 0x427   : > { %3494 = vst [vmem:[#allocation3 + $0x30] sm:$0xf] %v3493_v7  ;;  %v3921_v54 = vsel %vm1359_vm8, %v3908_v53, %v8817_v18 }
 0x428   : > { %3497 = vst [vmem:[#allocation3 + $0x34] sm:$0x1] %v3496_v26  ;;  %v3433_v37 = vshrl.u32 %v3375_v30, 16  ;;  %v3795_v12 = vpop.permute.xlu1 %3794  ;;  %6352 = vmatmul.msk.bf16.gmra.mxu0 %vm10265_vm2, %v4810_v45  ;;  %v3436_v14 = vshll.u32 %v3375_v30, 16  ;;  %v3937_v36 = vsel %vm1376_vm9, %v3921_v54, %v8948_v44 }
 0x429   : > { %v4361_v46 = vpop.permute.xlu0 %4360  ;;  %v3939_v60 = vsel %vm1376_vm9, %v3923_v52, %v3795_v12 }
 0x42a   : > { %v3435_v48 = vrot.slane %v3433_v37, 7  ;;  %v3955_v41 = vsel %vm1393_vm10, %v3939_v60, %v9203_v24  ;;  %v9287_v18 = vpop.f32.mrf.mxu2 }
 0x42b   : > { %v3982_v17 = vunpack.c.l.b16 %v3955_v41 }
 0x42c   : > { %v3438_v22 = vor.u32 %v3436_v14, %v3435_v48  ;;  %v3439_v25 = vrot.slane %v3435_v48, 4  ;;  %v6563_v48 = vld [vmem:[%s6720_s9 + $0x20] sm:$0xf] }
 0x42d   : > { %v4662_v14 = vsel %vm1266_vm3, %v6563_v48, %v4361_v46 }
 0x42e   : > { %v3499_v2 = vsel %vm7635_vm14, %v3438_v22, %v3498_v0  ;;  %v3502_v38 = vsel %vm7454_vm0, %v3439_v25, %v3501_v58  ;;  %v4457_v32 = vpop.permute.xlu2 %4456  ;;  %v4681_v60 = vsel %vm1291_vm4, %v4662_v14, %v9234_v57  ;;  %v10281_v14 = vld [vmem:[#allocation70_spill] sm:$0xff] }
 0x42f   : > { %3500 = vst [vmem:[#allocation3 + $0x38] sm:$0xf] %v3499_v2 }
 0x430   : > { %3503 = vst [vmem:[#allocation3 + $0x3c] sm:$0x1] %v3502_v38  ;;  %v3841_v28 = vpop.permute.xlu1 %3840 }
 0x431   : > { %v4411_v51 = vpop.permute.xlu0 %4410  ;;  %v3953_v56 = vsel %vm1393_vm10, %v3937_v36, %v3841_v28  ;;  %v6564_v28 = vld [vmem:[%s6712_s25 + $0x30] sm:$0xf] }
 0x432   : > { %v3981_v21 = vunpack.c.l.b16 %v3953_v56  ;;  %v9289_v44 = vpop.f32.mrf.mxu2  ;;  %v3868_v57 = vsel %vm1266_vm3, %v6564_v28, %v8744_v47 }
 0x434   : > { %v3987_v19 = vpack.c.b16 %v3982_v17, %v3981_v21  ;;  %v6565_v21 = vld [vmem:[%s6712_s25 + $0x38] sm:$0xf] }
 0x436   : > { %6333 = vmatmul.msk.bf16.gmra.mxu2 %vm10277_vm15, %v3987_v19  ;;  %v4499_v24 = vpop.permute.xlu2 %4498  ;;  %v3871_v19 = vsel %vm1266_vm3, %v6565_v21, %v8622_v1 }
 0x437   : > { %v3887_v47 = vsel %vm1291_vm4, %v3871_v19, %v8815_v16 }
 0x438   : > { %v4363_v27 = vpop.permute.xlu1 %4362 }
 0x439   : > { %v4441_v59 = vpop.permute.xlu0 %4440  ;;  %v4665_v43 = vsel %vm1266_vm3, %v6562_v10, %v4363_v27  ;;  %v3885_v27 = vsel %vm1291_vm4, %v3868_v57, %v8773_v33  ;;  %v10279_v33 = vld [vmem:[#allocation53_spill] sm:$0xff] }
 0x43a   : > { %v4683_v35 = vsel %vm1291_vm4, %v4665_v43, %v4411_v51 }
 0x43b   : > { %v4699_v58 = vsel %vm1308_vm5, %v4683_v35, %v4427_v31 }
 0x43e   : > { %v9291_v6 = vpop.permute.xlu2 %3796 }
 0x440   : > { %v4425_v13 = vpop.permute.xlu1 %4424 }
 0x441   : > { %v4459_v20 = vpop.permute.xlu0 %4458  ;;  %v4697_v2 = vsel %vm1308_vm5, %v4681_v60, %v4425_v13 }
 0x442   : > { %v4713_v41 = vsel %vm1325_vm6, %v4697_v2, %v4441_v59 }
 0x446   : > { %v4643_v11 = vpop.permute.xlu2 %4642 }
 0x448   : > { %v4443_v4 = vpop.permute.xlu1 %4442 }
 0x449   : > { %v4593_v7 = vpop.permute.xlu0 %4592  ;;  %v4715_v9 = vsel %vm1325_vm6, %v4699_v58, %v4443_v4 }
 0x44a   : > { %v4040_v26 = vpop.f32.mrf.mxu2  ;;  %v4731_v38 = vsel %vm1342_vm7, %v4715_v9, %v4459_v20  ;;  %v4729_v20 = vsel %vm1342_vm7, %v4713_v41, %v4457_v32  ;;  %v3895_v32 = vsel %vm1308_vm5, %v3887_v47, %v10279_v33 }
 0x44b   : > { %vm4060_vm11 = vcmp.gt.f32.partialorder %v4040_v26, 0.0  ;;  %v4068_v30 = vmul.f32 0.01, %v4040_v26  ;;  %v4747_v13 = vsel %vm1359_vm8, %v4731_v38, %v4499_v24 }
 0x44d   : > { %v4076_v45 = vsel %vm4060_vm11, %v4040_v26, %v4068_v30 }
 0x44e   : > { %v4084_v34 = vpack.c.bf16 %v4076_v45, %v4076_v45  ;;  %v10278_v45 = vld [vmem:[#allocation61_spill] sm:$0xff] }
 0x44f   : > { %v3894_v10 = vsel %vm1308_vm5, %v3885_v27, %v10278_v45 }
 0x450   : > { %v4093_v37 = vshrl.u32 %v4084_v34, 16  ;;  %v4497_v12 = vpop.permute.xlu1 %4496  ;;  %v4096_v8 = vshll.u32 %v4084_v34, 16  ;;  %v10280_v34 = vld [vmem:[#allocation71_spill] sm:$0xff] }
 0x451   : > { %v3799_v40 = vpop.permute.xlu0 %3798  ;;  %v4745_v30 = vsel %vm1359_vm8, %v4729_v20, %v4497_v12  ;;  %v3902_v16 = vsel %vm1325_vm6, %v3894_v10, %v10280_v34 }
 0x452   : > { %v4095_v61 = vrot.slane %v4093_v37, 7  ;;  %v4042_v52 = vpop.f32.mrf.mxu2  ;;  %v4761_v43 = vsel %vm1376_vm9, %v4745_v30, %v4593_v7  ;;  %v10283_v7 = vld [vmem:[#allocation77_spill] sm:$0xff] }
 0x453   : > { %vm4061_vm13 = vcmp.gt.f32.partialorder %v4042_v52, 0.0  ;;  %v4069_v0 = vmul.f32 0.01, %v4042_v52 }
 0x454   : > { %v4099_v22 = vrot.slane %v4095_v61, 4  ;;  %v4098_v25 = vor.u32 %v4096_v8, %v4095_v61  ;;  %v4365_v17 = vpop.permute.xlu2 %4364  ;;  %v3903_v61 = vsel %vm1325_vm6, %v3895_v32, %v10281_v14  ;;  %v10282_v8 = vld [vmem:[#allocation73_spill] sm:$0xff] }
 0x455   : > { %v4077_v53 = vsel %vm4061_vm13, %v4042_v52, %v4069_v0 }
 0x456   : > { %v4085_v46 = vpack.c.bf16 %v4077_v53, %v4077_v53  ;;  %4158 = vrot.lane.b32.xlu1 %v4099_v22, %s6608_s24  ;;  %4156 = vrot.lane.b32.xlu0 %v4098_v25, %s6608_s24  ;;  %v3911_v22 = vsel %vm1342_vm7, %v3903_v61, %v10283_v7 }
 0x457   : > { %v3927_v60 = vsel %vm1359_vm8, %v3911_v22, %v8833_v39 }
 0x458   : > { %v4101_v54 = vshrl.u32 %v4085_v46, 16  ;;  %v4595_v31 = vpop.permute.xlu1 %4594  ;;  %v4104_v56 = vshll.u32 %v4085_v46, 16  ;;  %v3943_v53 = vsel %vm1376_vm9, %v3927_v60, %v3799_v40 }
 0x459   : > { %v3845_v36 = vpop.permute.xlu0 %3844  ;;  %v4763_v59 = vsel %vm1376_vm9, %v4747_v13, %v4595_v31 }
 0x45a   : > { %v4103_v51 = vrot.slane %v4101_v54, 7  ;;  %v4779_v1 = vsel %vm1393_vm10, %v4763_v59, %v4643_v11  ;;  %v3910_v11 = vsel %vm1342_vm7, %v3902_v16, %v10282_v8  ;;  %v4668_v59 = vsel %vm1266_vm3, %v9064_v29, %v4365_v17 }
 0x45b   : > { %v4806_v35 = vunpack.c.l.b16 %v4779_v1  ;;  %v3925_v58 = vsel %vm1359_vm8, %v3910_v11, %v8780_v50 }
 0x45c   : > { %v4107_v4 = vrot.slane %v4103_v51, 4  ;;  %v4106_v26 = vor.u32 %v4104_v56, %v4103_v51  ;;  %v4415_v0 = vpop.permute.xlu2 %4414  ;;  %v3941_v25 = vsel %vm1376_vm9, %v3925_v58, %v9291_v6 }
 0x45d   : > { %v3957_v9 = vsel %vm1393_vm10, %v3941_v25, %v3845_v36 }
 0x45e   : > { %4162 = vrot.lane.b32.xlu0 %v4107_v4, %s6608_s24  ;;  %4160 = vrot.lane.b32.xlu2 %v4106_v26, %s6608_s24  ;;  %v3983_v38 = vunpack.c.l.b16 %v3957_v9 }
 0x460   : > { %v4641_v24 = vpop.permute.xlu1 %4640 }
 0x461   : > { %v4777_v37 = vsel %vm1393_vm10, %v4761_v43, %v4641_v24  ;;  %v4367_v12 = vpop.permute.xlu0 %4366 }
 0x462   : > { %v4805_v48 = vunpack.c.l.b16 %v4777_v37  ;;  %v4671_v40 = vsel %vm1266_vm3, %v8986_v62, %v4367_v12 }
 0x463   : > { %v4687_v13 = vsel %vm1291_vm4, %v4671_v40, %v4415_v0 }
 0x464   : > { %v4811_v52 = vpack.c.b16 %v4806_v35, %v4805_v48  ;;  %v4445_v41 = vpop.permute.xlu2 %4444 }
 0x466   : > { %6353 = vmatmul.msk.bf16.gmra.mxu0 %vm10284_vm12, %v4811_v52  ;;  %vm4204_vm12 = vcmask 257152  }
 0x468   : > { %v3847_v2 = vpop.permute.xlu1 %3846 }
 0x469   : > { %v3959_v46 = vsel %vm1393_vm10, %v3943_v53, %v3847_v2  ;;  %v4429_v54 = vpop.permute.xlu0 %4428 }
 0x46a   : > { %v3984_v50 = vunpack.c.l.b16 %v3959_v46 }
 0x46c   : > { %v3988_v31 = vpack.c.b16 %v3984_v50, %v3983_v38  ;;  %v4463_v51 = vpop.permute.xlu2 %4462 }
 0x46e   : > { %6334 = vmatmul.msk.bf16.gmra.mxu2 %vm10265_vm2, %v3988_v31 }
 0x470   : > { %v4413_v6 = vpop.permute.xlu1 %4412 }
 0x471   : > { %v4447_v28 = vpop.permute.xlu0 %4446  ;;  %v4685_v47 = vsel %vm1291_vm4, %v4668_v59, %v4413_v6 }
 0x472   : > { %v4701_v24 = vsel %vm1308_vm5, %v4685_v47, %v4429_v54 }
 0x473   : > { %v4717_v16 = vsel %vm1325_vm6, %v4701_v24, %v4445_v41 }
 0x474   : > { %v4597_v26 = vpop.permute.xlu2 %4596 }
 0x478   : > { %v4431_v57 = vpop.permute.xlu1 %4430 }
 0x479   : > { %v4501_v19 = vpop.permute.xlu0 %4500  ;;  %v4703_v4 = vsel %vm1308_vm5, %v4687_v13, %v4431_v57 }
 0x47a   : > { %v4719_v1 = vsel %vm1325_vm6, %v4703_v4, %v4447_v28 }
 0x47b   : > { %v4864_v56 = vpop.f32.mrf.mxu0  ;;  %v4735_v29 = vsel %vm1342_vm7, %v4719_v1, %v4463_v51 }
 0x47c   : > { %vm4884_vm15 = vcmp.gt.f32.partialorder %v4864_v56, 0.0  ;;  %v4892_v39 = vmul.f32 0.01, %v4864_v56  ;;  %v4647_v58 = vpop.permute.xlu2 %4646 }
 0x47e   : > { %v4900_v36 = vsel %vm4884_vm15, %v4864_v56, %v4892_v39 }
 0x47f   : > { %v4908_v21 = vpack.c.bf16 %v4900_v36, %v4900_v36 }
 0x480   : > { %v4461_v27 = vpop.permute.xlu1 %4460 }
 0x481   : > { %v4917_v20 = vshrl.u32 %v4908_v21, 16  ;;  %v4920_v45 = vshll.u32 %v4908_v21, 16  ;;  %v4599_v48 = vpop.permute.xlu0 %4598  ;;  %v4733_v14 = vsel %vm1342_vm7, %v4717_v16, %v4461_v27  ;;  %vm10285_vm7 = vmmov %vm10265_vm2  ;;  %vm10286_vm2 = vsmask.f32 7938 }
 0x482   : > { %v4749_v7 = vsel %vm1359_vm8, %v4733_v14, %v4501_v19  ;;  %vm9379_vm15 = vmand %vm4204_vm12, %vm10286_vm2 }
 0x483   : > { %v4919_v30 = vrot.slane %v4917_v20, 7  ;;  %v4866_v10 = vpop.f32.mrf.mxu0  ;;  %v4765_v2 = vsel %vm1376_vm9, %v4749_v7, %v4597_v26 }
 0x484   : > { %vm4885_vm11 = vcmp.gt.f32.partialorder %v4866_v10, 0.0  ;;  %v4893_v62 = vmul.f32 0.01, %v4866_v10 }
 0x485   : > { %v4923_v33 = vrot.slane %v4919_v30, 4  ;;  %v4922_v32 = vor.u32 %v4920_v45, %v4919_v30 }
 0x486   : > { %v4901_v43 = vsel %vm4885_vm11, %v4866_v10, %v4893_v62 }
 0x487   : > { %v4909_v34 = vpack.c.bf16 %v4901_v43, %v4901_v43  ;;  %4982 = vrot.lane.b32.xlu2 %v4923_v33, %s6610_s30  ;;  %4980 = vrot.lane.b32.xlu1 %v4922_v32, %s6610_s30 }
 0x488   : > { %v4503_v17 = vpop.permute.xlu1 %4502 }
 0x489   : > { %v4925_v37 = vshrl.u32 %v4909_v34, 16  ;;  %v4751_v12 = vsel %vm1359_vm8, %v4735_v29, %v4503_v17  ;;  %v4045_v35 = vpop.f32.mrf.mxu2  ;;  %v4928_v11 = vshll.u32 %v4909_v34, 16  ;;  %v4253_v17 = vld [vmem:[#allocation3 + $0x3c] sm:$0x1] }
 0x48a   : > { %vm4062_vm3 = vcmp.gt.f32.partialorder %v4045_v35, 0.0  ;;  %v4070_v61 = vmul.f32 0.01, %v4045_v35  ;;  %v4767_v0 = vsel %vm1376_vm9, %v4751_v12, %v4599_v48  ;;  %v4214_v12 = vld [vmem:[#allocation3 + $0x8] sm:$0xf] }
 0x48b   : > { %v4927_v8 = vrot.slane %v4925_v37, 7  ;;  %v4783_v53 = vsel %vm1393_vm10, %v4767_v0, %v4647_v58 }
 0x48c   : > { %v4078_v52 = vsel %vm4062_vm3, %v4045_v35, %v4070_v61  ;;  %v4808_v41 = vunpack.c.l.b16 %v4783_v53 }
 0x48d   : > { %v4086_v22 = vpack.c.bf16 %v4078_v52, %v4078_v52  ;;  %v4931_v25 = vrot.slane %v4927_v8, 4  ;;  %v4930_v60 = vor.u32 %v4928_v11, %v4927_v8 }
 0x48f   : > { %v4109_v9 = vshrl.u32 %v4086_v22, 16  ;;  %4986 = vrot.lane.b32.xlu1 %v4931_v25, %s6610_s30  ;;  %4984 = vrot.lane.b32.xlu0 %v4930_v60, %s6610_s30  ;;  %v4112_v50 = vshll.u32 %v4086_v22, 16 }
 0x490   : > { %v4645_v46 = vpop.permute.xlu1 %4644 }
 0x491   : > { %v4111_v38 = vrot.slane %v4109_v9, 7  ;;  %v4781_v54 = vsel %vm1393_vm10, %v4765_v2, %v4645_v46  ;;  %v4047_v31 = vpop.f32.mrf.mxu2 }
 0x492   : > { %v4807_v6 = vunpack.c.l.b16 %v4781_v54  ;;  %vm4063_vm5 = vcmp.gt.f32.partialorder %v4047_v31, 0.0  ;;  %v4071_v28 = vmul.f32 0.01, %v4047_v31  ;;  %v4206_v54 = vld [vmem:[#allocation3] sm:$0xf] }
 0x493   : > { %v4114_v57 = vor.u32 %v4112_v50, %v4111_v38  ;;  %v4115_v40 = vrot.slane %v4111_v38, 4  ;;  %v4211_v38 = vld [vmem:[#allocation3 + $0x4] sm:$0x1] }
 0x494   : > { %v4079_v51 = vsel %vm4063_vm5, %v4047_v31, %v4071_v28  ;;  %v4812_v56 = vpack.c.b16 %v4808_v41, %v4807_v6  ;;  %vm4209_vm5 = vcmask 254080  }
 0x495   : > { %v4087_v39 = vpack.c.bf16 %v4079_v51, %v4079_v51  ;;  %4164 = vrot.lane.b32.xlu2 %v4114_v57, %s6608_s24 }
 0x496   : > { %6354 = vmatmul.msk.bf16.gmra.mxu0 %vm10285_vm7, %v4812_v56  ;;  %vm10289_vm7 = vsmask.f32 256 }
 0x497   : > { %v4117_v36 = vshrl.u32 %v4087_v39, 16  ;;  %4166 = vrot.lane.b32.xlu0 %v4115_v40, %s6608_s24  ;;  %v4120_v19 = vshll.u32 %v4087_v39, 16  ;;  %v4217_v39 = vld [vmem:[#allocation3 + $0xc] sm:$0x1]  ;;  %vm10292_vm12 = vmmov %vm10289_vm7 }
 0x499   : > { %v4119_v21 = vrot.slane %v4117_v36, 7 }
 0x49b   : > { %v4123_v27 = vrot.slane %v4119_v21, 4  ;;  %v4122_v13 = vor.u32 %v4120_v19, %v4119_v21 }
 0x49d   : > { %4170 = vrot.lane.b32.xlu2 %v4123_v27, %s6608_s24  ;;  %4168 = vrot.lane.b32.xlu1 %v4122_v13, %s6608_s24 }
 0x4a5   : > { %v4869_v20 = vpop.f32.mrf.mxu0 }
 0x4a6   : > { %vm4886_vm9 = vcmp.gt.f32.partialorder %v4869_v20, 0.0  ;;  %v4894_v59 = vmul.f32 0.01, %v4869_v20 }
 0x4a8   : > { %v4902_v4 = vsel %vm4886_vm9, %v4869_v20, %v4894_v59  ;;  %vm9390_vm9 = vmand %vm4209_vm5, %vm10289_vm7  ;;  %vm5028_vm7 = vcmask 388352  }
 0x4a9   : > { %v4910_v26 = vpack.c.bf16 %v4902_v4, %v4902_v4 }
 0x4ab   : > { %v4933_v47 = vshrl.u32 %v4910_v26, 16  ;;  %v4936_v45 = vshll.u32 %v4910_v26, 16 }
 0x4ad   : > { %v4935_v30 = vrot.slane %v4933_v47, 7  ;;  %v4871_v10 = vpop.f32.mrf.mxu0 }
 0x4ae   : > { %vm4887_vm13 = vcmp.gt.f32.partialorder %v4871_v10, 0.0  ;;  %v4895_v62 = vmul.f32 0.01, %v4871_v10 }
 0x4af   : > { %v4939_v1 = vrot.slane %v4935_v30, 4  ;;  %v4938_v33 = vor.u32 %v4936_v45, %v4935_v30 }
 0x4b0   : > { %v4903_v32 = vsel %vm4887_vm13, %v4871_v10, %v4895_v62  ;;  %vm5033_vm13 = vcmask 385280  }
 0x4b1   : > { %v4911_v24 = vpack.c.bf16 %v4903_v32, %v4903_v32  ;;  %4990 = vrot.lane.b32.xlu1 %v4939_v1, %s6610_s30  ;;  %4988 = vrot.lane.b32.xlu0 %v4938_v33, %s6610_s30  ;;  %vm9403_vm2 = vmand %vm5033_vm13, %vm10292_vm12  ;;  %vm10295_vm13 = vsmask.f32 7938 }
 0x4b2   : > { %vm9416_vm12 = vmand %vm5028_vm7, %vm10295_vm13  ;;  %vm10301_vm7 = vcmask 916480  }
 0x4b3   : > { %v4941_v43 = vshrl.u32 %v4911_v24, 16  ;;  %v4944_v29 = vshll.u32 %v4911_v24, 16 }
 0x4b5   : > { %v4943_v34 = vrot.slane %v4941_v43, 7  ;;  %v4220_v43 = vld [vmem:[#allocation3 + $0x10] sm:$0xf] }
 0x4b7   : > { %v4947_v16 = vrot.slane %v4943_v34, 4  ;;  %v4946_v37 = vor.u32 %v4944_v29, %v4943_v34 }
 0x4b8   : > { %v4161_v35 = vpop.permute.xlu2 %4160 }
 0x4b9   : > { %v4215_v48 = vsel %vm9379_vm15, %v4161_v35, %v4214_v12  ;;  %v4050_v14 = vpop.f32.mrf.mxu2  ;;  %4994 = vrot.lane.b32.xlu0 %v4947_v16, %s6610_s30  ;;  %4992 = vrot.lane.b32.xlu2 %v4946_v37, %s6610_s30 }
 0x4ba   : > { %4216 = vst [vmem:[#allocation3 + $0x8] sm:$0xf] %v4215_v48  ;;  %vm4064_vm11 = vcmp.gt.f32.partialorder %v4050_v14, 0.0  ;;  %v4072_v61 = vmul.f32 0.01, %v4050_v14 }
 0x4bc   : > { %v4080_v8 = vsel %vm4064_vm11, %v4050_v14, %v4072_v61 }
 0x4bd   : > { %v4088_v11 = vpack.c.bf16 %v4080_v8, %v4080_v8 }
 0x4bf   : > { %v4125_v52 = vshrl.u32 %v4088_v11, 16  ;;  %v4128_v58 = vshll.u32 %v4088_v11, 16 }
 0x4c1   : > { %v4127_v0 = vrot.slane %v4125_v52, 7  ;;  %v4052_v7 = vpop.f32.mrf.mxu2 }
 0x4c2   : > { %vm4065_vm3 = vcmp.gt.f32.partialorder %v4052_v7, 0.0  ;;  %v4073_v22 = vmul.f32 0.01, %v4052_v7 }
 0x4c3   : > { %v4130_v25 = vor.u32 %v4128_v58, %v4127_v0  ;;  %v4131_v60 = vrot.slane %v4127_v0, 4  ;;  %v4229_v0 = vld [vmem:[#allocation3 + $0x1c] sm:$0x1] }
 0x4c4   : > { %v4081_v9 = vsel %vm4065_vm3, %v4052_v7, %v4073_v22  ;;  %v6475_v7 = vld [vmem:[%s9876_s6 + $0x8] sm:$0xff] }
 0x4c5   : > { %v4089_v53 = vpack.c.bf16 %v4081_v9, %v4081_v9  ;;  %4172 = vrot.lane.b32.xlu1 %v4130_v25, %s6608_s24  ;;  %4174 = vrot.lane.b32.xlu2 %v4131_v60, %s6608_s24 }
 0x4c7   : > { %v4133_v46 = vshrl.u32 %v4089_v53, 16  ;;  %v4136_v6 = vshll.u32 %v4089_v53, 16 }
 0x4c8   : > { %v4159_v50 = vpop.permute.xlu1 %4158  ;;  %v4157_v31 = vpop.permute.xlu0 %4156 }
 0x4c9   : > { %v4135_v41 = vrot.slane %v4133_v46, 7  ;;  %v4212_v28 = vsel %vm9390_vm9, %v4159_v50, %v4211_v38  ;;  %v4207_v57 = vsel %vm9379_vm15, %v4157_v31, %v4206_v54 }
 0x4ca   : > { %4213 = vst [vmem:[#allocation3 + $0x4] sm:$0x1] %v4212_v28 }
 0x4cb   : > { %4208 = vst [vmem:[#allocation3] sm:$0xf] %v4207_v57  ;;  %v4139_v51 = vrot.slane %v4135_v41, 4  ;;  %v4138_v56 = vor.u32 %v4136_v6, %v4135_v41 }
 0x4cd   : > { %4178 = vrot.lane.b32.xlu1 %v4139_v51, %s6608_s24  ;;  %4176 = vrot.lane.b32.xlu0 %v4138_v56, %s6608_s24 }
 0x4d0   : > { %v4163_v40 = vpop.permute.xlu0 %4162 }
 0x4d1   : > { %v4218_v36 = vsel %vm9390_vm9, %v4163_v40, %v4217_v39  ;;  %v5035_v19 = vld [vmem:[#allocation3 + $0x4] sm:$0x1]  ;;  %v5038_v40 = vld [vmem:[#allocation3 + $0x8] sm:$0xf] }
 0x4d2   : > { %4219 = vst [vmem:[#allocation3 + $0xc] sm:$0x1] %v4218_v36  ;;  %v5030_v53 = vld [vmem:[#allocation3] sm:$0xf] }
 0x4d9   : > { %v5041_v39 = vld [vmem:[#allocation3 + $0xc] sm:$0x1] }
 0x4e1   : > { %v4983_v27 = vpop.permute.xlu2 %4982 }
 0x4e2   : > { %v5036_v13 = vsel %vm9403_vm2, %v4983_v27, %v5035_v19 }
 0x4e3   : > { %5037 = vst [vmem:[#allocation3 + $0x4] sm:$0x1] %v5036_v13  ;;  %v4874_v20 = vpop.f32.mrf.mxu0 }
 0x4e4   : > { %vm4888_vm11 = vcmp.gt.f32.partialorder %v4874_v20, 0.0  ;;  %v4896_v59 = vmul.f32 0.01, %v4874_v20 }
 0x4e6   : > { %v4904_v4 = vsel %vm4888_vm11, %v4874_v20, %v4896_v59  ;;  %v4223_v59 = vld [vmem:[#allocation3 + $0x14] sm:$0x1] }
 0x4e7   : > { %v4912_v26 = vpack.c.bf16 %v4904_v4, %v4904_v4 }
 0x4e9   : > { %v4949_v47 = vshrl.u32 %v4912_v26, 16  ;;  %v4952_v45 = vshll.u32 %v4912_v26, 16 }
 0x4eb   : > { %v4951_v30 = vrot.slane %v4949_v47, 7  ;;  %v4876_v10 = vpop.f32.mrf.mxu0  ;;  %v4226_v47 = vld [vmem:[#allocation3 + $0x18] sm:$0xf] }
 0x4ec   : > { %vm4889_vm3 = vcmp.gt.f32.partialorder %v4876_v10, 0.0  ;;  %v4897_v62 = vmul.f32 0.01, %v4876_v10 }
 0x4ed   : > { %v4955_v1 = vrot.slane %v4951_v30, 4  ;;  %v4954_v33 = vor.u32 %v4952_v45, %v4951_v30 }
 0x4ee   : > { %v4905_v32 = vsel %vm4889_vm3, %v4876_v10, %v4897_v62 }
 0x4ef   : > { %v4913_v24 = vpack.c.bf16 %v4905_v32, %v4905_v32  ;;  %v4165_v34 = vpop.permute.xlu2 %4164  ;;  %4998 = vrot.lane.b32.xlu0 %v4955_v1, %s6610_s30  ;;  %4996 = vrot.lane.b32.xlu2 %v4954_v33, %s6610_s30  ;;  %v5088_v33 = vld [vmem:[#allocation3 + $0x4] sm:$0x1] }
 0x4f0   : > { %v4221_v29 = vsel %vm9379_vm15, %v4165_v34, %v4220_v43 }
 0x4f1   : > { %v4957_v16 = vshrl.u32 %v4913_v24, 16  ;;  %4222 = vst [vmem:[#allocation3 + $0x10] sm:$0xf] %v4221_v29  ;;  %v4055_v37 = vpop.f32.mrf.mxu2  ;;  %v4960_v48 = vshll.u32 %v4913_v24, 16 }
 0x4f2   : > { %vm4066_vm5 = vcmp.gt.f32.partialorder %v4055_v37, 0.0  ;;  %v4074_v12 = vmul.f32 0.01, %v4055_v37 }
 0x4f3   : > { %v4959_v35 = vrot.slane %v4957_v16, 7  ;;  %v5121_v16 = vunpack.c.l.b16 %v5088_v33 }
 0x4f4   : > { %v4082_v14 = vsel %vm4066_vm5, %v4055_v37, %v4074_v12 }
 0x4f5   : > { %v4090_v61 = vpack.c.bf16 %v4082_v14, %v4082_v14  ;;  %v4963_v8 = vrot.slane %v4959_v35, 4  ;;  %v4962_v11 = vor.u32 %v4960_v48, %v4959_v35 }
 0x4f7   : > { %v4141_v52 = vshrl.u32 %v4090_v61, 16  ;;  %v4171_v58 = vpop.permute.xlu2 %4170  ;;  %5002 = vrot.lane.b32.xlu2 %v4963_v8, %s6610_s30  ;;  %5000 = vrot.lane.b32.xlu1 %v4962_v11, %s6610_s30  ;;  %v4144_v60 = vshll.u32 %v4090_v61, 16 }
 0x4f8   : > { %v4230_v22 = vsel %vm9390_vm9, %v4171_v58, %v4229_v0 }
 0x4f9   : > { %v4143_v25 = vrot.slane %v4141_v52, 7  ;;  %4231 = vst [vmem:[#allocation3 + $0x1c] sm:$0x1] %v4230_v22  ;;  %v4981_v9 = vpop.permute.xlu1 %4980  ;;  %v4057_v46 = vpop.f32.mrf.mxu2 }
 0x4fa   : > { %v5031_v38 = vsel %vm9416_vm12, %v4981_v9, %v5030_v53  ;;  %vm4067_vm11 = vcmp.gt.f32.partialorder %v4057_v46, 0.0  ;;  %v4075_v50 = vmul.f32 0.01, %v4057_v46 }
 0x4fb   : > { %5032 = vst [vmem:[#allocation3] sm:$0xf] %v5031_v38  ;;  %v4146_v54 = vor.u32 %v4144_v60, %v4143_v25  ;;  %v4147_v6 = vrot.slane %v4143_v25, 4 }
 0x4fc   : > { %v4083_v31 = vsel %vm4067_vm11, %v4057_v46, %v4075_v50  ;;  %v4235_v46 = vld [vmem:[#allocation3 + $0x24] sm:$0x1] }
 0x4fd   : > { %v4091_v41 = vpack.c.bf16 %v4083_v31, %v4083_v31  ;;  %4180 = vrot.lane.b32.xlu0 %v4146_v54, %s6608_s24 }
 0x4ff   : > { %v4149_v28 = vshrl.u32 %v4091_v41, 16  ;;  %4182 = vrot.lane.b32.xlu1 %v4147_v6, %s6608_s24  ;;  %v4152_v51 = vshll.u32 %v4091_v41, 16  ;;  %v5044_v41 = vld [vmem:[#allocation3 + $0x10] sm:$0xf] }
 0x500   : > { %v5053_v33 = vld [vmem:[#allocation3 + $0x1c] sm:$0x1] }
 0x501   : > { %v4151_v57 = vrot.slane %v4149_v28, 7  ;;  %v4987_v56 = vpop.permute.xlu1 %4986  ;;  %v4985_v36 = vpop.permute.xlu0 %4984 }
 0x502   : > { %v5042_v19 = vsel %vm9403_vm2, %v4987_v56, %v5041_v39  ;;  %v5039_v27 = vsel %vm9416_vm12, %v4985_v36, %v5038_v40  ;;  %v9436_v62 = vld [vmem:[#allocation3] sm:$0xf] }
 0x503   : > { %v4154_v13 = vor.u32 %v4152_v51, %v4151_v57  ;;  %v4155_v20 = vrot.slane %v4151_v57, 4  ;;  %5043 = vst [vmem:[#allocation3 + $0xc] sm:$0x1] %v5042_v19  ;;  %v9439_v24 = vunpack.c.l.b16 %v9436_v62  ;;  %v5096_v28 = vld [vmem:[#allocation3] sm:$0xe] }
 0x504   : > { %5040 = vst [vmem:[#allocation3 + $0x8] sm:$0xf] %v5039_v27 }
 0x505   : > { %4186 = vrot.lane.b32.xlu0 %v4155_v20, %s6608_s24  ;;  %4184 = vrot.lane.b32.xlu2 %v4154_v13, %s6608_s24  ;;  %v5136_v35 = vpack.c.b16 %v5121_v16, %v9439_v24 }
 0x507   : > { %v5147_v9 = vshll.u32 %v5136_v35, 16  ;;  %v5145_v13 = vshrl.u32 %v5136_v35, 16 }
 0x509   : > { %v4167_v4 = vpop.permute.xlu0 %4166  ;;  %v5149_v6 = vrot.slane %v5147_v9, 1 }
 0x50a   : > { %v4224_v26 = vsel %vm9390_vm9, %v4167_v4, %v4223_v59  ;;  %v5089_v48 = vld [vmem:[#allocation3 + $0xc] sm:$0x1]  ;;  %v5224_v4 = vunpack.c.l.b16 %v5096_v28 }
 0x50b   : > { %4225 = vst [vmem:[#allocation3 + $0x14] sm:$0x1] %v4224_v26  ;;  %v9444_v14 = vld [vmem:[#allocation3 + $0x8] sm:$0xf]  ;;  %v5123_v22 = vunpack.c.l.b16 %v5089_v48  ;;  %v4232_v48 = vld [vmem:[#allocation3 + $0x20] sm:$0xf] }
 0x50c   : > { %v5122_v25 = vunpack.c.l.b16 %v9444_v14  ;;  %v5097_v36 = vld [vmem:[#allocation3 + $0x8] sm:$0xe] }
 0x50e   : > { %v5137_v31 = vpack.c.b16 %v5123_v22, %v5122_v25  ;;  %v5265_v35 = vpack.c.b16 %v5122_v25, %v5122_v25 }
 0x50f   : > { %v4169_v30 = vpop.permute.xlu1 %4168 }
 0x510   : > { %v4227_v45 = vsel %vm9379_vm15, %v4169_v30, %v4226_v47  ;;  %v5154_v26 = vshll.u32 %v5137_v31, 16  ;;  %v5150_v47 = vor.u32 %v5149_v6, %v5145_v13  ;;  %v5225_v30 = vunpack.c.l.b16 %v5097_v36 }
 0x511   : > { %4228 = vst [vmem:[#allocation3 + $0x18] sm:$0xf] %v4227_v45  ;;  %v5232_v45 = vpack.c.b16 %v5121_v16, %v5224_v4  ;;  %v5264_v16 = vpack.c.b16 %v9439_v24, %v9439_v24 }
 0x512   : > { %v5047_v39 = vld [vmem:[#allocation3 + $0x14] sm:$0x1] }
 0x513   : > { %v4879_v10 = vpop.f32.mrf.mxu0  ;;  %v4993_v43 = vpop.permute.xlu2 %4992 }
 0x514   : > { %vm4890_vm3 = vcmp.gt.f32.partialorder %v4879_v10, 0.0  ;;  %v4898_v1 = vmul.f32 0.01, %v4879_v10 }
 0x516   : > { %v4906_v32 = vsel %vm4890_vm3, %v4879_v10, %v4898_v1  ;;  %v5156_v10 = vrot.slane %v5154_v26, 1  ;;  %v5233_v1 = vpack.c.b16 %v5123_v22, %v5225_v30 }
 0x517   : > { %v4914_v34 = vpack.c.bf16 %v4906_v32, %v4906_v32 }
 0x518   : > { %v5050_v29 = vld [vmem:[#allocation3 + $0x18] sm:$0xf] }
 0x519   : > { %v5051_v37 = vsel %vm9416_vm12, %v4993_v43, %v5050_v29  ;;  %v4965_v12 = vshrl.u32 %v4914_v34, 16  ;;  %v4968_v8 = vshll.u32 %v4914_v34, 16  ;;  %v5152_v43 = vshrl.u32 %v5137_v31, 16 }
 0x51a   : > { %5052 = vst [vmem:[#allocation3 + $0x18] sm:$0xf] %v5051_v37  ;;  %v5240_v29 = vrot.slane %v5232_v45, 1 }
 0x51b   : > { %v4967_v61 = vrot.slane %v4965_v12, 7  ;;  %v4881_v11 = vpop.f32.mrf.mxu0  ;;  %v5157_v37 = vor.u32 %v5156_v10, %v5152_v43  ;;  %v5241_v12 = vrot.slane %v5233_v1, 1 }
 0x51c   : > { %vm4891_vm5 = vcmp.gt.f32.partialorder %v4881_v11, 0.0  ;;  %v4899_v52 = vmul.f32 0.01, %v4881_v11 }
 0x51d   : > { %v4971_v0 = vrot.slane %v4967_v61, 4  ;;  %v4970_v58 = vor.u32 %v4968_v8, %v4967_v61 }
 0x51e   : > { %v4907_v60 = vsel %vm4891_vm5, %v4881_v11, %v4899_v52  ;;  %v4241_v11 = vld [vmem:[#allocation3 + $0x2c] sm:$0x1] }
 0x51f   : > { %v4915_v53 = vpack.c.bf16 %v4907_v60, %v4907_v60  ;;  %v4175_v38 = vpop.permute.xlu2 %4174  ;;  %5006 = vrot.lane.b32.xlu2 %v4971_v0, %s6610_s30  ;;  %5004 = vrot.lane.b32.xlu1 %v4970_v58, %s6610_s30  ;;  %v4238_v0 = vld [vmem:[#allocation3 + $0x28] sm:$0xf] }
 0x520   : > { %v4236_v50 = vsel %vm9390_vm9, %v4175_v38, %v4235_v46 }
 0x521   : > { %v4973_v54 = vshrl.u32 %v4915_v53, 16  ;;  %4237 = vst [vmem:[#allocation3 + $0x24] sm:$0x1] %v4236_v50  ;;  %v4976_v51 = vshll.u32 %v4915_v53, 16  ;;  %v9479_v53 = vld [vmem:[#allocation3 + $0x18] sm:$0xf] }
 0x523   : > { %v4975_v57 = vrot.slane %v4973_v54, 7  ;;  %v4991_v56 = vpop.permute.xlu1 %4990  ;;  %v4989_v40 = vpop.permute.xlu0 %4988  ;;  %v5126_v54 = vunpack.c.l.b16 %v9479_v53 }
 0x524   : > { %v5048_v19 = vsel %vm9403_vm2, %v4991_v56, %v5047_v39  ;;  %v5045_v27 = vsel %vm9416_vm12, %v4989_v40, %v5044_v41 }
 0x525   : > { %v4978_v20 = vor.u32 %v4976_v51, %v4975_v57  ;;  %v4979_v59 = vrot.slane %v4975_v57, 4  ;;  %5049 = vst [vmem:[#allocation3 + $0x14] sm:$0x1] %v5048_v19 }
 0x526   : > { %5046 = vst [vmem:[#allocation3 + $0x10] sm:$0xf] %v5045_v27 }
 0x527   : > { %5010 = vrot.lane.b32.xlu1 %v4979_v59, %s6610_s30  ;;  %5008 = vrot.lane.b32.xlu0 %v4978_v20, %s6610_s30 }
 0x528   : > { %5200 = vrot.lane.b32.xlu2 %v5150_v47, %s6608_s24 }
 0x52b   : > { %v4995_v32 = vpop.permute.xlu0 %4994 }
 0x52c   : > { %v5054_v34 = vsel %vm9403_vm2, %v4995_v32, %v5053_v33  ;;  %v5090_v25 = vld [vmem:[#allocation3 + $0x14] sm:$0x1] }
 0x52d   : > { %5055 = vst [vmem:[#allocation3 + $0x1c] sm:$0x1] %v5054_v34  ;;  %v9477_v60 = vld [vmem:[#allocation3 + $0x10] sm:$0xf]  ;;  %v5125_v46 = vunpack.c.l.b16 %v5090_v25  ;;  %v5267_v34 = vpack.c.b16 %v5126_v54, %v5126_v54 }
 0x52e   : > { %v5124_v38 = vunpack.c.l.b16 %v9477_v60  ;;  %v5098_v51 = vld [vmem:[#allocation3 + $0x10] sm:$0xe] }
 0x52f   : > { %5248 = vrot.lane.b32.xlu1 %v5240_v29, %s6610_s30  ;;  %5202 = vrot.lane.b32.xlu0 %v5157_v37, %s6608_s24  ;;  %v5226_v40 = vunpack.c.l.b16 %v5098_v51 }
 0x530   : > { %5250 = vrot.lane.b32.xlu2 %v5241_v12, %s6610_s30  ;;  %v5138_v6 = vpack.c.b16 %v5125_v46, %v5124_v38  ;;  %v5266_v43 = vpack.c.b16 %v5124_v38, %v5124_v38  ;;  %v4247_v38 = vld [vmem:[#allocation3 + $0x34] sm:$0x1] }
 0x531   : > { %v5234_v59 = vpack.c.b16 %v5125_v46, %v5226_v40 }
 0x532   : > { %v5161_v56 = vshll.u32 %v5138_v6, 16  ;;  %v5159_v4 = vshrl.u32 %v5138_v6, 16 }
 0x533   : > { %v5242_v10 = vrot.slane %v5234_v59, 1 }
 0x534   : > { %v5091_v9 = vld [vmem:[#allocation3 + $0x1c] sm:$0x1]  ;;  %v5163_v27 = vrot.slane %v5161_v56, 1 }
 0x535   : > { %v5127_v50 = vunpack.c.l.b16 %v5091_v9 }
 0x536   : > { %v5164_v30 = vor.u32 %v5163_v27, %v5159_v4 }
 0x537   : > { %v4173_v61 = vpop.permute.xlu1 %4172  ;;  %5274 = vrot.lane.b32.xlu1 %v5265_v35, %s6610_s30  ;;  %5272 = vrot.lane.b32.xlu0 %v5264_v16, %s6610_s30  ;;  %v5139_v28 = vpack.c.b16 %v5127_v50, %v5126_v54 }
 0x538   : > { %v4233_v8 = vsel %vm9379_vm15, %v4173_v61, %v4232_v48  ;;  %5288 = vrot.lane.b32.xlu2 %v5150_v47, %s6612_s11 }
 0x539   : > { %4234 = vst [vmem:[#allocation3 + $0x20] sm:$0xf] %v4233_v8  ;;  %v5168_v39 = vshll.u32 %v5139_v28, 16  ;;  %v5166_v26 = vshrl.u32 %v5139_v28, 16 }
 0x53b   : > { %v5170_v13 = vrot.slane %v5168_v39, 1 }
 0x53d   : > { %v5171_v45 = vor.u32 %v5170_v13, %v5166_v26 }
 0x53f   : > { %v4179_v52 = vpop.permute.xlu1 %4178  ;;  %5304 = vrot.lane.b32.xlu1 %v5240_v29, %s6614_s21  ;;  %5290 = vrot.lane.b32.xlu0 %v5157_v37, %s6612_s11  ;;  %v4177_v24 = vpop.permute.xlu0 %4176 }
 0x540   : > { %v4242_v58 = vsel %vm9390_vm9, %v4179_v52, %v4241_v11  ;;  %5306 = vrot.lane.b32.xlu2 %v5241_v12, %s6614_s21  ;;  %v4239_v22 = vsel %vm9379_vm15, %v4177_v24, %v4238_v0  ;;  %v5056_v31 = vld [vmem:[#allocation3 + $0x20] sm:$0xf] }
 0x541   : > { %4243 = vst [vmem:[#allocation3 + $0x2c] sm:$0x1] %v4242_v58  ;;  %v4244_v58 = vld [vmem:[#allocation3 + $0x30] sm:$0xf] }
 0x542   : > { %4240 = vst [vmem:[#allocation3 + $0x28] sm:$0xf] %v4239_v22 }
 0x547   : > { %5322 = vrot.lane.b32.xlu1 %v5265_v35, %s6614_s21  ;;  %5320 = vrot.lane.b32.xlu0 %v5264_v16, %s6614_s21  ;;  %v5059_v35 = vld [vmem:[#allocation3 + $0x24] sm:$0x1] }
 0x548   : > { %5336 = vrot.lane.b32.xlu2 %v5150_v47, %s6618_s15  ;;  %v5065_v36 = vld [vmem:[#allocation3 + $0x2c] sm:$0x1]  ;;  %v5099_v47 = vld [vmem:[#allocation3 + $0x18] sm:$0xe] }
 0x549   : > { %v4997_v41 = vpop.permute.xlu2 %4996  ;;  %v5227_v1 = vunpack.c.l.b16 %v5099_v47  ;;  %v5062_v8 = vld [vmem:[#allocation3 + $0x28] sm:$0xf] }
 0x54a   : > { %v5057_v57 = vsel %vm9416_vm12, %v4997_v41, %v5056_v31 }
 0x54b   : > { %5058 = vst [vmem:[#allocation3 + $0x20] sm:$0xf] %v5057_v57  ;;  %v5235_v33 = vpack.c.b16 %v5127_v50, %v5227_v1 }
 0x54d   : > { %v9496_v32 = vrot.slane %v5235_v33, 1 }
 0x54f   : > { %5352 = vrot.lane.b32.xlu1 %v5240_v29, %s6616_s8  ;;  %5338 = vrot.lane.b32.xlu0 %v5157_v37, %s6618_s15  ;;  %v4250_v29 = vld [vmem:[#allocation3 + $0x38] sm:$0xf] }
 0x550   : > { %5354 = vrot.lane.b32.xlu2 %v5241_v12, %s6616_s8 }
 0x551   : > { %v5003_v19 = vpop.permute.xlu2 %5002 }
 0x552   : > { %v5066_v20 = vsel %vm9403_vm2, %v5003_v19, %v5065_v36  ;;  %v9511_v0 = vld [vmem:[#allocation3 + $0x20] sm:$0xf] }
 0x553   : > { %5067 = vst [vmem:[#allocation3 + $0x2c] sm:$0x1] %v5066_v20  ;;  %v5128_v25 = vunpack.c.l.b16 %v9511_v0  ;;  %v5100_v47 = vld [vmem:[#allocation3 + $0x20] sm:$0xe] }
 0x554   : > { %v5228_v2 = vunpack.c.l.b16 %v5100_v47  ;;  %v6482_v47 = vld [vmem:[%s9876_s6 + $0x40] sm:$0xff] }
 0x555   : > { %5644 = vmatpush.bf16.msrb.mxu1 %v6482_v47 }
 0x557   : > { %5204 = vrot.lane.b32.xlu0 %v5164_v30, %s6608_s24  ;;  %5206 = vrot.lane.b32.xlu1 %v5171_v45, %s6608_s24 }
 0x558   : > { %5252 = vrot.lane.b32.xlu2 %v5242_v10, %s6610_s30 }
 0x55a   : > { %v5093_v46 = vld [vmem:[#allocation3 + $0x2c] sm:$0x1] }
 0x55b   : > { %v5131_v28 = vunpack.c.l.b16 %v5093_v46 }
 0x55f   : > { %v4185_v37 = vpop.permute.xlu2 %4184  ;;  %5254 = vrot.lane.b32.xlu0 %v9496_v32, %s6610_s30  ;;  %5276 = vrot.lane.b32.xlu1 %v5266_v43, %s6610_s30 }
 0x560   : > { %v4251_v12 = vsel %vm9379_vm15, %v4185_v37, %v4250_v29  ;;  %5278 = vrot.lane.b32.xlu2 %v5267_v34, %s6610_s30  ;;  %v5268_v37 = vpack.c.b16 %v5128_v25, %v5128_v25 }
 0x561   : > { %4252 = vst [vmem:[#allocation3 + $0x38] sm:$0xf] %v4251_v12  ;;  %v4999_v16 = vpop.permute.xlu0 %4998 }
 0x562   : > { %v5060_v48 = vsel %vm9403_vm2, %v4999_v16, %v5059_v35  ;;  %v6480_v35 = vld [vmem:[%s9876_s6 + $0x30] sm:$0xff] }
 0x563   : > { %5061 = vst [vmem:[#allocation3 + $0x24] sm:$0x1] %v5060_v48  ;;  %v6479_v48 = vld [vmem:[%s9876_s6 + $0x28] sm:$0xff] }
 0x567   : > { %5292 = vrot.lane.b32.xlu0 %v5164_v30, %s6612_s11  ;;  %5294 = vrot.lane.b32.xlu1 %v5171_v45, %s6612_s11 }
 0x568   : > { %5308 = vrot.lane.b32.xlu2 %v5242_v10, %s6614_s21  ;;  %v5074_v46 = vld [vmem:[#allocation3 + $0x38] sm:$0xf] }
 0x569   : > { %v5001_v61 = vpop.permute.xlu1 %5000 }
 0x56a   : > { %v5063_v11 = vsel %vm9416_vm12, %v5001_v61, %v5062_v8  ;;  %v5092_v52 = vld [vmem:[#allocation3 + $0x24] sm:$0x1] }
 0x56b   : > { %5064 = vst [vmem:[#allocation3 + $0x28] sm:$0xf] %v5063_v11  ;;  %v5129_v24 = vunpack.c.l.b16 %v5092_v52 }
 0x56d   : > { %v5140_v54 = vpack.c.b16 %v5129_v24, %v5128_v25 }
 0x56f   : > { %5310 = vrot.lane.b32.xlu0 %v9496_v32, %s6614_s21  ;;  %5324 = vrot.lane.b32.xlu1 %v5266_v43, %s6614_s21  ;;  %v4181_v22 = vpop.permute.xlu0 %4180  ;;  %v5175_v51 = vshll.u32 %v5140_v54, 16  ;;  %v5173_v4 = vshrl.u32 %v5140_v54, 16 }
 0x570   : > { %5326 = vrot.lane.b32.xlu2 %v5267_v34, %s6614_s21  ;;  %v4245_v9 = vsel %vm9379_vm15, %v4181_v22, %v4244_v58  ;;  %v6477_v22 = vld [vmem:[%s9876_s6 + $0x18] sm:$0xff]  ;;  %vm10298_vm15 = vcmask 654336  }
 0x571   : > { %4246 = vst [vmem:[#allocation3 + $0x30] sm:$0xf] %v4245_v9  ;;  %v4183_v50 = vpop.permute.xlu1 %4182  ;;  %v5177_v19 = vrot.slane %v5175_v51, 1  ;;  %v6476_v51 = vld [vmem:[%s9876_s6 + $0x10] sm:$0xff] }
 0x572   : > { %v4248_v31 = vsel %vm9390_vm9, %v4183_v50, %v4247_v38  ;;  %v9522_v41 = vld [vmem:[#allocation3 + $0x28] sm:$0xf] }
 0x573   : > { %4249 = vst [vmem:[#allocation3 + $0x34] sm:$0x1] %v4248_v31  ;;  %v5130_v6 = vunpack.c.l.b16 %v9522_v41  ;;  %v5101_v20 = vld [vmem:[#allocation3 + $0x28] sm:$0xe] }
 0x575   : > { %v5141_v57 = vpack.c.b16 %v5131_v28, %v5130_v6  ;;  %v5269_v16 = vpack.c.b16 %v5130_v6, %v5130_v6 }
 0x577   : > { %5340 = vrot.lane.b32.xlu0 %v5164_v30, %s6618_s15  ;;  %5342 = vrot.lane.b32.xlu1 %v5171_v45, %s6618_s15  ;;  %v4187_v56 = vpop.permute.xlu0 %4186  ;;  %v5182_v39 = vshll.u32 %v5141_v57, 16  ;;  %v5180_v26 = vshrl.u32 %v5141_v57, 16  ;;  %v5178_v30 = vor.u32 %v5177_v19, %v5173_v4  ;;  %v5229_v45 = vunpack.c.l.b16 %v5101_v20 }
 0x578   : > { %5356 = vrot.lane.b32.xlu2 %v5242_v10, %s6616_s8  ;;  %v4254_v40 = vsel %vm9390_vm9, %v4187_v56, %v4253_v17  ;;  %v5236_v10 = vpack.c.b16 %v5129_v24, %v5228_v2  ;;  %v5068_v8 = vld [vmem:[#allocation3 + $0x30] sm:$0xf]  ;;  %vm10299_vm9 = vcmask 785408  }
 0x579   : > { %4255 = vst [vmem:[#allocation3 + $0x3c] sm:$0x1] %v4254_v40  ;;  %v5007_v36 = vpop.permute.xlu2 %5006  ;;  %v5184_v13 = vrot.slane %v5182_v39, 1  ;;  %v5237_v33 = vpack.c.b16 %v5131_v28, %v5229_v45  ;;  %v6478_v24 = vld [vmem:[%s9876_s6 + $0x20] sm:$0xff]  ;;  %vm10302_vm13 = vmmov %vm10299_vm9 }
 0x57a   : > { %v5071_v27 = vld [vmem:[#allocation3 + $0x34] sm:$0x1]  ;;  %v9538_v34 = vrot.slane %v5236_v10, 1  ;;  %vm10306_vm5 = vmmov %vm10299_vm9 }
 0x57b   : > { %v5072_v59 = vsel %vm9403_vm2, %v5007_v36, %v5071_v27  ;;  %v5185_v1 = vor.u32 %v5184_v13, %v5180_v26  ;;  %v9540_v29 = vrot.slane %v5237_v33, 1 }
 0x57c   : > { %5073 = vst [vmem:[#allocation3 + $0x34] sm:$0x1] %v5072_v59 }
 0x57f   : > { %5358 = vrot.lane.b32.xlu0 %v9496_v32, %s6616_s8  ;;  %5208 = vrot.lane.b32.xlu1 %v5178_v30, %s6608_s24  ;;  %v6481_v32 = vld [vmem:[%s9876_s6 + $0x38] sm:$0xff] }
 0x580   : > { %5210 = vrot.lane.b32.xlu2 %v5185_v1, %s6608_s24  ;;  %5608 = vmatpush.bf16.msrb.mxu3 %v6481_v32  ;;  %v5077_v9 = vld [vmem:[#allocation3 + $0x3c] sm:$0x1] }
 0x582   : > { %v9536_v43 = vpop.permute.xlu2 %5200 }
 0x583   : > { %v5094_v58 = vld [vmem:[#allocation3 + $0x34] sm:$0x1] }
 0x584   : > { %5609 = vmatpush.bf16.msrb.mxu3 %v6480_v35  ;;  %v5133_v57 = vunpack.c.l.b16 %v5094_v58 }
 0x587   : > { %5256 = vrot.lane.b32.xlu0 %v9538_v34, %s6610_s30  ;;  %5258 = vrot.lane.b32.xlu1 %v9540_v29, %s6610_s30 }
 0x588   : > { %5280 = vrot.lane.b32.xlu2 %v5268_v37, %s6610_s30  ;;  %5610 = vmatpush.bf16.msrb.mxu3 %v6479_v48 }
 0x58a   : > { %v9550_v12 = vpop.permute.xlu2 %5250 }
 0x58c   : > { %5611 = vmatpush.bf16.msrb.mxu3 %v6478_v24 }
 0x58f   : > { %5282 = vrot.lane.b32.xlu0 %v5269_v16, %s6610_s30  ;;  %5296 = vrot.lane.b32.xlu1 %v5178_v30, %s6612_s11 }
 0x590   : > { %5298 = vrot.lane.b32.xlu2 %v5185_v1, %s6612_s11  ;;  %5612 = vmatpush.bf16.msrb.mxu3 %v6477_v22 }
 0x591   : > { %v5005_v61 = vpop.permute.xlu1 %5004 }
 0x592   : > { %v5069_v11 = vsel %vm9416_vm12, %v5005_v61, %v5068_v8  ;;  %v9563_v52 = vpop.permute.xlu2 %5288 }
 0x593   : > { %5070 = vst [vmem:[#allocation3 + $0x30] sm:$0xf] %v5069_v11 }
 0x594   : > { %5613 = vmatpush.bf16.msrb.mxu3 %v6476_v51 }
 0x597   : > { %5312 = vrot.lane.b32.xlu0 %v9538_v34, %s6614_s21  ;;  %5314 = vrot.lane.b32.xlu1 %v9540_v29, %s6614_s21 }
 0x598   : > { %5328 = vrot.lane.b32.xlu2 %v5268_v37, %s6614_s21  ;;  %5614 = vmatpush.bf16.msrb.mxu3 %v6475_v7 }
 0x599   : > { %v5011_v25 = vpop.permute.xlu1 %5010  ;;  %v5009_v38 = vpop.permute.xlu0 %5008 }
 0x59a   : > { %v5078_v50 = vsel %vm9403_vm2, %v5011_v25, %v5077_v9  ;;  %v9578_v54 = vpop.permute.xlu2 %5306  ;;  %v5075_v31 = vsel %vm9416_vm12, %v5009_v38, %v5074_v46  ;;  %v9582_v6 = vld [vmem:[#allocation3 + $0x30] sm:$0xf]  ;;  %v5370_v46 = vsel %vm1291_vm4, %v9436_v62, %v9536_v43  ;;  %vm10300_vm2 = vmmov %vm10298_vm15 }
 0x59b   : > { %5079 = vst [vmem:[#allocation3 + $0x3c] sm:$0x1] %v5078_v50  ;;  %v5132_v28 = vunpack.c.l.b16 %v9582_v6  ;;  %v5102_v19 = vld [vmem:[#allocation3 + $0x30] sm:$0xe]  ;;  %vm10303_vm12 = vmmov %vm10301_vm7 }
 0x59c   : > { %5076 = vst [vmem:[#allocation3 + $0x38] sm:$0xf] %v5075_v31  ;;  %v5230_v45 = vunpack.c.l.b16 %v5102_v19  ;;  %vm10304_vm11 = vmmov %vm10300_vm2 }
 0x59d   : > { %v5142_v17 = vpack.c.b16 %v5133_v57, %v5132_v28  ;;  %v5270_v9 = vpack.c.b16 %v5132_v28, %v5132_v28  ;;  %vm10305_vm3 = vmmov %vm10300_vm2 }
 0x59e   : > { %v5238_v35 = vpack.c.b16 %v5133_v57, %v5230_v45 }
 0x59f   : > { %5330 = vrot.lane.b32.xlu0 %v5269_v16, %s6614_s21  ;;  %5344 = vrot.lane.b32.xlu1 %v5178_v30, %s6618_s15  ;;  %v5189_v21 = vshll.u32 %v5142_v17, 16  ;;  %v5187_v4 = vshrl.u32 %v5142_v17, 16  ;;  %v6474_v30 = vld [vmem:[%s9876_s6] sm:$0xff] }
 0x5a0   : > { %5346 = vrot.lane.b32.xlu2 %v5185_v1, %s6618_s15  ;;  %5615 = vmatpush.bf16.msrb.mxu3 %v6474_v30  ;;  %v5246_v11 = vrot.slane %v5238_v35, 1 }
 0x5a1   : > { %v5249_v56 = vpop.permute.xlu1 %5248  ;;  %v5203_v39 = vpop.permute.xlu0 %5202  ;;  %v5191_v36 = vrot.slane %v5189_v21, 1 }
 0x5a2   : > { %v5337_v40 = vpop.permute.xlu2 %5336  ;;  %v5095_v27 = vld [vmem:[#allocation3 + $0x3c] sm:$0x1]  ;;  %v5393_v38 = vsel %vm1325_vm6, %v5370_v46, %v5249_v56  ;;  %v5373_v50 = vsel %vm1291_vm4, %v9444_v14, %v5203_v39 }
 0x5a3   : > { %v5103_v13 = vld [vmem:[#allocation3 + $0x38] sm:$0xe]  ;;  %v5135_v20 = vunpack.c.l.b16 %v5095_v27  ;;  %v5192_v1 = vor.u32 %v5191_v36, %v5187_v4  ;;  %v5395_v17 = vsel %vm1325_vm6, %v5373_v50, %v9550_v12 }
 0x5a4   : > { %v9594_v59 = vld [vmem:[#allocation3 + $0x38] sm:$0xf]  ;;  %v5231_v2 = vunpack.c.l.b16 %v5103_v13 }
 0x5a5   : > { %v5134_v26 = vunpack.c.l.b16 %v9594_v59 }
 0x5a6   : > { %v5239_v48 = vpack.c.b16 %v5135_v20, %v5231_v2 }
 0x5a7   : > { %v5143_v10 = vpack.c.b16 %v5135_v20, %v5134_v26  ;;  %5360 = vrot.lane.b32.xlu0 %v9538_v34, %s6616_s8  ;;  %5362 = vrot.lane.b32.xlu1 %v9540_v29, %s6616_s8  ;;  %v5271_v25 = vpack.c.b16 %v5134_v26, %v5134_v26 }
 0x5a8   : > { %5212 = vrot.lane.b32.xlu2 %v5192_v1, %s6608_s24  ;;  %v5247_v58 = vrot.slane %v5239_v48, 1 }
 0x5a9   : > { %v5196_v33 = vshll.u32 %v5143_v10, 16  ;;  %v5275_v37 = vpop.permute.xlu1 %5274  ;;  %v5273_v32 = vpop.permute.xlu0 %5272  ;;  %v5194_v8 = vshrl.u32 %v5143_v10, 16 }
 0x5aa   : > { %v5355_v16 = vpop.permute.xlu2 %5354  ;;  %v5409_v31 = vsel %vm1359_vm8, %v5393_v38, %v5273_v32  ;;  %v5411_v43 = vsel %vm1359_vm8, %v5395_v17, %v5275_v37 }
 0x5ab   : > { %v5198_v61 = vrot.slane %v5196_v33, 1  ;;  %v5425_v62 = vsel %vm1393_vm10, %v5409_v31, %v9563_v52  ;;  %v5499_v19 = vunpack.c.l.b16 %v5355_v16 }
 0x5ad   : > { %v5199_v24 = vor.u32 %v5198_v61, %v5194_v8 }
 0x5af   : > { %5260 = vrot.lane.b32.xlu1 %v5246_v11, %s6610_s30  ;;  %5214 = vrot.lane.b32.xlu0 %v5199_v24, %s6608_s24 }
 0x5b0   : > { %5262 = vrot.lane.b32.xlu2 %v5247_v58, %s6610_s30 }
 0x5b1   : > { %v5305_v34 = vpop.permute.xlu1 %5304  ;;  %v5291_v29 = vpop.permute.xlu0 %5290 }
 0x5b2   : > { %v5253_v22 = vpop.permute.xlu2 %5252  ;;  %v5441_v21 = vsel %vm10298_vm15, %v5425_v62, %v5305_v34  ;;  %v5427_v7 = vsel %vm1393_vm10, %v5411_v43, %v5291_v29  ;;  %vm10307_vm15 = vmmov %vm10306_vm5 }
 0x5b3   : > { %v5443_v56 = vsel %vm10300_vm2, %v5427_v7, %v9578_v54  ;;  %vm10309_vm2 = vmmov %vm10301_vm7 }
 0x5b7   : > { %5286 = vrot.lane.b32.xlu1 %v5271_v25, %s6610_s30  ;;  %5284 = vrot.lane.b32.xlu0 %v5270_v9, %s6610_s30 }
 0x5b8   : > { %5300 = vrot.lane.b32.xlu2 %v5192_v1, %s6612_s11 }
 0x5b9   : > { %v5323_v57 = vpop.permute.xlu1 %5322  ;;  %v5321_v51 = vpop.permute.xlu0 %5320 }
 0x5ba   : > { %v5279_v28 = vpop.permute.xlu2 %5278  ;;  %v5457_v14 = vsel %vm10299_vm9, %v5441_v21, %v5321_v51  ;;  %v5459_v52 = vsel %vm10302_vm13, %v5443_v56, %v5323_v57  ;;  %vm10308_vm9 = vmmov %vm10301_vm7 }
 0x5bb   : > { %v5473_v12 = vsel %vm10301_vm7, %v5457_v14, %v5337_v40  ;;  %vm10310_vm7 = vmmov %vm10305_vm3 }
 0x5bc   : > { %v5496_v4 = vunpack.c.l.b16 %v5473_v12  ;;  %vm10311_vm13 = vmmov %vm10305_vm3 }
 0x5bf   : > { %5316 = vrot.lane.b32.xlu1 %v5246_v11, %s6614_s21  ;;  %5302 = vrot.lane.b32.xlu0 %v5199_v24, %s6612_s11 }
 0x5c0   : > { %5318 = vrot.lane.b32.xlu2 %v5247_v58, %s6614_s21 }
 0x5c1   : > { %v5353_v39 = vpop.permute.xlu1 %5352  ;;  %v5339_v36 = vpop.permute.xlu0 %5338 }
 0x5c2   : > { %v5497_v27 = vunpack.c.l.b16 %v5353_v39  ;;  %v5309_v13 = vpop.permute.xlu2 %5308  ;;  %v5475_v20 = vsel %vm10303_vm12, %v5459_v52, %v5339_v36  ;;  %v9661_v39 = vpop.f32.mrf.mxu1  ;;  %vm10312_vm12 = vmmov %vm10306_vm5 }
 0x5c3   : > { %v5498_v26 = vunpack.c.l.b16 %v5475_v20 }
 0x5c4   : > { %v5531_v47 = vpack.c.b16 %v5499_v19, %v5497_v27 }
 0x5c5   : > { %v5530_v30 = vpack.c.b16 %v5498_v26, %v5496_v4 }
 0x5c6   : > { %6391 = vmatmul.msk.bf16.vlgmr.msrb.gmra.mxu1 %vm1291_vm4, %v5531_v47 }
 0x5c7   : > { %5334 = vrot.lane.b32.xlu1 %v5271_v25, %s6614_s21  ;;  %5332 = vrot.lane.b32.xlu0 %v5270_v9, %s6614_s21 }
 0x5c8   : > { %5348 = vrot.lane.b32.xlu2 %v5192_v1, %s6618_s15  ;;  %5616 = vmatmul.bf16.vlgmr.msrb.gmra.mxu3 %v5530_v30 }
 0x5c9   : > { %v5207_v54 = vpop.permute.xlu1 %5206  ;;  %v5205_v40 = vpop.permute.xlu0 %5204 }
 0x5ca   : > { %v5327_v45 = vpop.permute.xlu2 %5326  ;;  %v5379_v16 = vsel %vm1291_vm4, %v9479_v53, %v5207_v54  ;;  %v5376_v1 = vsel %vm1291_vm4, %v9477_v60, %v5205_v40  ;;  %v9666_v47 = vpop.f32.mrf.mxu1 }
 0x5cf   : > { %5364 = vrot.lane.b32.xlu1 %v5246_v11, %s6616_s8  ;;  %5350 = vrot.lane.b32.xlu0 %v5199_v24, %s6618_s15  ;;  %v5397_v11 = vsel %vm1325_vm6, %v5376_v1, %v5253_v22 }
 0x5d0   : > { %5366 = vrot.lane.b32.xlu2 %v5247_v58, %s6616_s8 }
 0x5d1   : > { %v5277_v2 = vpop.permute.xlu1 %5276  ;;  %v5255_v10 = vpop.permute.xlu0 %5254 }
 0x5d2   : > { %v5357_v33 = vpop.permute.xlu2 %5356  ;;  %v5399_v48 = vsel %vm1325_vm6, %v5379_v16, %v5255_v10  ;;  %v5413_v24 = vsel %vm1359_vm8, %v5397_v11, %v5277_v2 }
 0x5d3   : > { %v5415_v58 = vsel %vm1359_vm8, %v5399_v48, %v5279_v28  ;;  %v5501_v21 = vunpack.c.l.b16 %v5357_v33 }
 0x5d9   : > { %v5295_v37 = vpop.permute.xlu1 %5294  ;;  %v5293_v32 = vpop.permute.xlu0 %5292 }
 0x5da   : > { %v5211_v35 = vpop.permute.xlu2 %5210  ;;  %v5431_v29 = vsel %vm1393_vm10, %v5415_v58, %v5295_v37  ;;  %v5429_v25 = vsel %vm1393_vm10, %v5413_v24, %v5293_v32 }
 0x5db   : > { %v5445_v9 = vsel %vm10305_vm3, %v5429_v25, %v5309_v13  ;;  %v5385_v30 = vsel %vm1291_vm4, %v9522_v41, %v5211_v35  ;;  %v9678_v41 = vpop.f32.mrf.mxu1  ;;  %vm10314_vm3 = vmmov %vm10306_vm5 }
 0x5e1   : > { %v5325_v61 = vpop.permute.xlu1 %5324  ;;  %v5311_v8 = vpop.permute.xlu0 %5310 }
 0x5e2   : > { %v5281_v34 = vpop.permute.xlu2 %5280  ;;  %v5447_v53 = vsel %vm10304_vm11, %v5431_v29, %v5311_v8  ;;  %v5461_v60 = vsel %vm10306_vm5, %v5445_v9, %v5325_v61  ;;  %vm10313_vm11 = vmmov %vm10309_vm2 }
 0x5e3   : > { %v5463_v38 = vsel %vm10307_vm15, %v5447_v53, %v5327_v45  ;;  %vm10315_vm5 = vmmov %vm10309_vm2  ;;  %v9683_v9 = vpop.f32.mrf.mxu1 }
 0x5e4   : > { %vm10317_vm15 = vmmov %vm10310_vm7 }
 0x5e9   : > { %v5343_v46 = vpop.permute.xlu1 %5342  ;;  %v5341_v50 = vpop.permute.xlu0 %5340 }
 0x5ea   : > { %v5479_v22 = vsel %vm10308_vm9, %v5463_v38, %v5343_v46  ;;  %v5477_v31 = vsel %vm10309_vm2, %v5461_v60, %v5341_v50  ;;  %v5299_v17 = vpop.permute.xlu2 %5298  ;;  %vm10318_vm9 = vmmov %vm10314_vm3 }
 0x5eb   : > { %v5502_v57 = vunpack.c.l.b16 %v5479_v22  ;;  %v5500_v51 = vunpack.c.l.b16 %v5477_v31  ;;  %v9686_v22 = vpop.f32.mrf.mxu1 }
 0x5ed   : > { %v5532_v28 = vpack.c.b16 %v5502_v57, %v5500_v51 }
 0x5ef   : > { %5621 = vmatmul.bf16.gmra.mxu3 %v5532_v28 }
 0x5f1   : > { %v5209_v62 = vpop.permute.xlu1 %5208  ;;  %v5359_v43 = vpop.permute.xlu0 %5358 }
 0x5f2   : > { %v5503_v7 = vunpack.c.l.b16 %v5359_v43  ;;  %v5329_v56 = vpop.permute.xlu2 %5328  ;;  %v5382_v13 = vsel %vm1291_vm4, %v9511_v0, %v5209_v62  ;;  %v5706_v43 = vld [vmem:[%s6725_s22 + $0x8] sm:$0x1] }
 0x5f3   : > { %v9688_v28 = vpop.f32.mrf.mxu1 }
 0x5f4   : > { %v5533_v14 = vpack.c.b16 %v5503_v7, %v5501_v21  ;;  %v5736_v21 = vld [vmem:[%s6725_s22 + $0xc] sm:$0x1]  ;;  %v5707_v7 = vsel %vm7454_vm0, 0, %v5706_v43 }
 0x5f5   : > { %5708 = vst [vmem:[%s6725_s22 + $0x8] sm:$0x1] %v5707_v7 }
 0x5f6   : > { %6392 = vmatmul.msk.bf16.gmra.mxu1 %vm1291_vm4, %v5533_v14 }
 0x5f9   : > { %v5259_v12 = vpop.permute.xlu1 %5258  ;;  %v5257_v52 = vpop.permute.xlu0 %5256 }
 0x5fa   : > { %v5347_v27 = vpop.permute.xlu2 %5346  ;;  %v5401_v20 = vsel %vm1325_vm6, %v5382_v13, %v5257_v52  ;;  %v5403_v54 = vsel %vm1325_vm6, %v5385_v30, %v5259_v12 }
 0x5fb   : > { %v5417_v40 = vsel %vm1359_vm8, %v5401_v20, %v5281_v34  ;;  %v9698_v52 = vpop.f32.mrf.mxu1 }
 0x601   : > { %v5297_v36 = vpop.permute.xlu1 %5296  ;;  %v5283_v19 = vpop.permute.xlu0 %5282 }
 0x602   : > { %v5213_v45 = vpop.permute.xlu2 %5212  ;;  %v5433_v2 = vsel %vm1393_vm10, %v5417_v40, %v5297_v36  ;;  %v5419_v10 = vsel %vm1359_vm8, %v5403_v54, %v5283_v19 }
 0x603   : > { %v5435_v33 = vsel %vm1393_vm10, %v5419_v10, %v5299_v17  ;;  %v5388_v36 = vsel %vm1291_vm4, %v9582_v6, %v5213_v45  ;;  %v5739_v10 = vld [vmem:[%s6725_s22 + $0x14] sm:$0x1] }
 0x609   : > { %v5315_v4 = vpop.permute.xlu1 %5314  ;;  %v5313_v26 = vpop.permute.xlu0 %5312 }
 0x60a   : > { %v5449_v0 = vsel %vm10310_vm7, %v5433_v2, %v5313_v26  ;;  %v5451_v37 = vsel %vm10311_vm13, %v5435_v33, %v5315_v4  ;;  %v5263_v24 = vpop.permute.xlu2 %5262  ;;  %v5709_v2 = vld [vmem:[%s6725_s22 + $0x10] sm:$0x1] }
 0x60b   : > { %v5465_v16 = vsel %vm10312_vm12, %v5449_v0, %v5329_v56  ;;  %v5737_v56 = vsel %vm7464_vm1, 0, %v5736_v21  ;;  %v5740_v0 = vsel %vm7464_vm1, 0, %v5739_v10 }
 0x60c   : > { %5738 = vst [vmem:[%s6725_s22 + $0xc] sm:$0x1] %v5737_v56 }
 0x60d   : > { %5741 = vst [vmem:[%s6725_s22 + $0x14] sm:$0x1] %v5740_v0 }
 0x611   : > { %v5345_v32 = vpop.permute.xlu1 %5344  ;;  %v5331_v1 = vpop.permute.xlu0 %5330 }
 0x612   : > { %v5481_v35 = vsel %vm10313_vm11, %v5465_v16, %v5345_v32  ;;  %v5467_v48 = vsel %vm10314_vm3, %v5451_v37, %v5331_v1  ;;  %v5301_v46 = vpop.permute.xlu2 %5300  ;;  %v9719_v37 = vpop.f32.mrf.mxu1 }
 0x613   : > { %v5504_v61 = vunpack.c.l.b16 %v5481_v35  ;;  %v5483_v8 = vsel %vm10315_vm5, %v5467_v48, %v5347_v27 }
 0x614   : > { %v5506_v11 = vunpack.c.l.b16 %v5483_v8 }
 0x616   : > { %v5534_v58 = vpack.c.b16 %v5506_v11, %v5504_v61 }
 0x618   : > { %5626 = vmatmul.bf16.gmra.mxu3 %v5534_v58 }
 0x619   : > { %v5363_v34 = vpop.permute.xlu1 %5362  ;;  %v5361_v29 = vpop.permute.xlu0 %5360 }
 0x61a   : > { %v5507_v25 = vunpack.c.l.b16 %v5363_v34  ;;  %v5505_v53 = vunpack.c.l.b16 %v5361_v29  ;;  %v5319_v51 = vpop.permute.xlu2 %5318 }
 0x61c   : > { %v5535_v60 = vpack.c.b16 %v5507_v25, %v5505_v53  ;;  %v2614_v25 = vadd.f32 %v9101_v23, %v9661_v39 }
 0x61e   : > { %6393 = vmatmul.msk.bf16.gmra.mxu1 %vm1291_vm4, %v5535_v60 }
 0x621   : > { %v5261_v38 = vpop.permute.xlu1 %5260  ;;  %v5215_v50 = vpop.permute.xlu0 %5214 }
 0x622   : > { %v5349_v12 = vpop.permute.xlu2 %5348  ;;  %v5405_v19 = vsel %vm1325_vm6, %v5388_v36, %v5261_v38  ;;  %v5391_v27 = vsel %vm1291_vm4, %v9594_v59, %v5215_v50  ;;  %v5710_v59 = vsel %vm7454_vm0, 0, %v5709_v2 }
 0x623   : > { %v5407_v26 = vsel %vm1325_vm6, %v5391_v27, %v5263_v24  ;;  %5711 = vst [vmem:[%s6725_s22 + $0x10] sm:$0x1] %v5710_v59  ;;  %vm10319_vm6 = vmmov %vm10310_vm7  ;;  %vm2633_vm7 = vcmp.gt.f32.partialorder %v2614_v25, 0.0 }
 0x629   : > { %v5287_v31 = vpop.permute.xlu1 %5286  ;;  %v5285_v57 = vpop.permute.xlu0 %5284 }
 0x62a   : > { %v5421_v13 = vsel %vm1359_vm8, %v5405_v19, %v5285_v57  ;;  %v5423_v54 = vsel %vm1359_vm8, %v5407_v26, %v5287_v31  ;;  %v5367_v33 = vpop.permute.xlu2 %5366  ;;  %vm10320_vm8 = vmmov %vm10309_vm2  ;;  %v2616_v57 = vadd.f32 %v9153_v15, %v9666_v47  ;;  %v6397_v15 = vld [vmem:[%s6725_s22 + $0x8] sm:$0xf]  ;;  %v6399_v47 = vld [vmem:[%s6725_s22 + $0xc] sm:$0x1] }
 0x62b   : > { %v5437_v30 = vsel %vm1393_vm10, %v5421_v13, %v5301_v46  ;;  %v5511_v61 = vunpack.c.l.b16 %v5367_v33  ;;  %v2641_v46 = vmul.f32 0.01, %v2614_v25  ;;  %v5712_v26 = vld [vmem:[%s6725_s22 + $0x18] sm:$0x1]  ;;  %v6401_v33 = vld [vmem:[%s6725_s22 + $0x10] sm:$0xf] }
 0x62c   : > { %v2642_v23 = vmul.f32 0.01, %v2616_v57 }
 0x62d   : > { %v2649_v31 = vsel %vm2633_vm7, %v2614_v25, %v2641_v46 }
 0x631   : > { %v5317_v17 = vpop.permute.xlu1 %5316  ;;  %v5303_v62 = vpop.permute.xlu0 %5302 }
 0x632   : > { %v5453_v40 = vsel %vm10317_vm15, %v5437_v30, %v5317_v17  ;;  %v5439_v6 = vsel %vm1393_vm10, %v5423_v54, %v5303_v62  ;;  %vm10321_vm10 = vmmov %vm10314_vm3  ;;  %v5742_v30 = vld [vmem:[%s6725_s22 + $0x1c] sm:$0x1]  ;;  %v5713_v54 = vsel %vm7454_vm0, 0, %v5712_v26 }
 0x633   : > { %v5455_v32 = vsel %vm10319_vm6, %v5439_v6, %v5319_v51  ;;  %5714 = vst [vmem:[%s6725_s22 + $0x18] sm:$0x1] %v5713_v54  ;;  %v5743_v2 = vsel %vm7464_vm1, 0, %v5742_v30 }
 0x634   : > { %5744 = vst [vmem:[%s6725_s22 + $0x1c] sm:$0x1] %v5743_v2 }
 0x639   : > { %v5335_v20 = vpop.permute.xlu1 %5334  ;;  %v5333_v4 = vpop.permute.xlu0 %5332 }
 0x63a   : > { %v5469_v45 = vsel %vm10318_vm9, %v5453_v40, %v5333_v4  ;;  %v5471_v1 = vsel %vm10321_vm10, %v5455_v32, %v5335_v20  ;;  %v6403_v32 = vld [vmem:[%s6725_s22 + $0x14] sm:$0x1] }
 0x63b   : > { %v5485_v16 = vsel %vm10320_vm8, %v5469_v45, %v5349_v12 }
 0x63c   : > { %v5508_v58 = vunpack.c.l.b16 %v5485_v16 }
 0x641   : > { %v5365_v35 = vpop.permute.xlu1 %5364  ;;  %v5351_v48 = vpop.permute.xlu0 %5350 }
 0x642   : > { %v5509_v8 = vunpack.c.l.b16 %v5365_v35  ;;  %v5487_v11 = vsel %vm10309_vm2, %v5471_v1, %v5351_v48 }
 0x643   : > { %v5510_v24 = vunpack.c.l.b16 %v5487_v11  ;;  %v5646_v53 = vpop.f32.mrf.mxu1  ;;  %v5745_v11 = vld [vmem:[%s6725_s22 + $0x24] sm:$0x1] }
 0x644   : > { %v5537_v34 = vpack.c.b16 %v5511_v61, %v5509_v8  ;;  %v5715_v61 = vld [vmem:[%s6725_s22 + $0x20] sm:$0x1] }
 0x645   : > { %v5536_v29 = vpack.c.b16 %v5510_v24, %v5508_v58  ;;  %v5716_v8 = vsel %vm7454_vm0, 0, %v5715_v61  ;;  %v5746_v24 = vsel %vm7464_vm1, 0, %v5745_v11  ;;  %v2619_v58 = vadd.f32 %v9183_v49, %v9678_v41 }
 0x646   : > { %6394 = vmatmul.msk.bf16.gmra.mxu1 %vm1291_vm4, %v5537_v34  ;;  %vm2634_vm4 = vcmp.gt.f32.partialorder %v2616_v57, 0.0  ;;  %5717 = vst [vmem:[%s6725_s22 + $0x20] sm:$0x1] %v5716_v8 }
 0x647   : > { %5631 = vmatmul.bf16.gmra.mxu3 %v5536_v29  ;;  %v2650_v19 = vsel %vm2634_vm4, %v2616_v57, %v2642_v23  ;;  %5747 = vst [vmem:[%s6725_s22 + $0x24] sm:$0x1] %v5746_v24  ;;  %v2643_v25 = vmul.f32 0.01, %v2619_v58  ;;  %vm2635_vm11 = vcmp.gt.f32.partialorder %v2619_v58, 0.0 }
 0x649   : > { %v2651_v46 = vsel %vm2635_vm11, %v2619_v58, %v2643_v25  ;;  %v2626_v58 = vadd.f32 %v9271_v63, %v9688_v28 }
 0x64b   : > { %v5617_v60 = vpop.f32.mrf.mxu3  ;;  %v5648_v43 = vpop.f32.mrf.mxu1  ;;  %vm2638_vm8 = vcmp.gt.f32.partialorder %v2626_v58, 0.0 }
 0x64c   : > { %v5647_v38 = vadd.f32 %v5646_v53, %v5617_v60 }
 0x64e   : > { %vm5666_vm13 = vcmp.gt.f32.partialorder %v5647_v38, 0.0  ;;  %v5674_v50 = vmul.f32 0.01, %v5647_v38 }
 0x650   : > { %v5682_v51 = vsel %vm5666_vm13, %v5647_v38, %v5674_v50  ;;  %v2621_v38 = vadd.f32 %v9212_v55, %v9683_v9  ;;  %v6405_v55 = vld [vmem:[%s6725_s22 + $0x18] sm:$0xf]  ;;  %v6407_v9 = vld [vmem:[%s6725_s22 + $0x1c] sm:$0x1] }
 0x651   : > { %v5690_v17 = vadd.f32 %v5682_v51, %v2649_v31 }
 0x652   : > { %v2644_v49 = vmul.f32 0.01, %v2621_v38  ;;  %vm2636_vm5 = vcmp.gt.f32.partialorder %v2621_v38, 0.0 }
 0x653   : > { %v5763_v62 = vpack.c.bf16 %v5690_v17, %v5690_v17  ;;  %v5619_v21 = vpop.f32.mrf.mxu3 }
 0x654   : > { %v5649_v39 = vadd.f32 %v5648_v43, %v5619_v21 }
 0x655   : > { %v5772_v7 = vshrl.u32 %v5763_v62, 16  ;;  %v5775_v36 = vshll.u32 %v5763_v62, 16 }
 0x656   : > { %vm5667_vm12 = vcmp.gt.f32.partialorder %v5649_v39, 0.0  ;;  %v5675_v56 = vmul.f32 0.01, %v5649_v39 }
 0x657   : > { %v5774_v12 = vrot.slane %v5772_v7, 7 }
 0x658   : > { %v5683_v27 = vsel %vm5667_vm12, %v5649_v39, %v5675_v56  ;;  %v2652_v39 = vsel %vm2636_vm5, %v2621_v38, %v2644_v49 }
 0x659   : > { %v5777_v13 = vor.u32 %v5775_v36, %v5774_v12  ;;  %v5778_v20 = vrot.slane %v5774_v12, 4  ;;  %v5691_v4 = vadd.f32 %v5683_v27, %v2650_v19  ;;  %v5718_v19 = vld [vmem:[%s6725_s22 + $0x28] sm:$0x1] }
 0x65b   : > { %v5853_v40 = vsel %vm7635_vm14, %v5777_v13, %v6397_v15  ;;  %v5856_v6 = vsel %vm7454_vm0, %v5778_v20, %v6399_v47  ;;  %v5764_v45 = vpack.c.bf16 %v5691_v4, %v5691_v4  ;;  %v5748_v15 = vld [vmem:[%s6725_s22 + $0x2c] sm:$0x1]  ;;  %v5719_v47 = vsel %vm7454_vm0, 0, %v5718_v19 }
 0x65c   : > { %6398 = vst [vmem:[%s6725_s22 + $0x8] sm:$0xf] %v5853_v40  ;;  %v5749_v4 = vsel %vm7464_vm1, 0, %v5748_v15  ;;  %v6409_v40 = vld [vmem:[%s6725_s22 + $0x20] sm:$0xf] }
 0x65d   : > { %6400 = vst [vmem:[%s6725_s22 + $0xc] sm:$0x1] %v5856_v6  ;;  %v5780_v10 = vshrl.u32 %v5764_v45, 16  ;;  %v5783_v0 = vshll.u32 %v5764_v45, 16  ;;  %v6411_v6 = vld [vmem:[%s6725_s22 + $0x24] sm:$0x1] }
 0x65e   : > { %5720 = vst [vmem:[%s6725_s22 + $0x28] sm:$0x1] %v5719_v47 }
 0x65f   : > { %v5782_v59 = vrot.slane %v5780_v10, 7  ;;  %5750 = vst [vmem:[%s6725_s22 + $0x2c] sm:$0x1] %v5749_v4  ;;  %v5757_v4 = vld [vmem:[%s6725_s22 + $0x44] sm:$0x1] }
 0x661   : > { %v5785_v16 = vor.u32 %v5783_v0, %v5782_v59  ;;  %v5786_v1 = vrot.slane %v5782_v59, 4  ;;  %v5721_v0 = vld [vmem:[%s6725_s22 + $0x30] sm:$0x1] }
 0x663   : > { %v5859_v35 = vsel %vm7635_vm14, %v5785_v16, %v6401_v33  ;;  %v5862_v48 = vsel %vm7454_vm0, %v5786_v1, %v6403_v32  ;;  %v5722_v33 = vsel %vm7454_vm0, 0, %v5721_v0  ;;  %v5751_v32 = vld [vmem:[%s6725_s22 + $0x34] sm:$0x1]  ;;  %v2624_v1 = vadd.f32 %v9247_v3, %v9686_v22 }
 0x664   : > { %6402 = vst [vmem:[%s6725_s22 + $0x10] sm:$0xf] %v5859_v35  ;;  %v5752_v16 = vsel %vm7464_vm1, 0, %v5751_v32  ;;  %v2631_v0 = vadd.f32 %v9289_v44, %v9719_v37 }
 0x665   : > { %6404 = vst [vmem:[%s6725_s22 + $0x14] sm:$0x1] %v5862_v48  ;;  %v2645_v61 = vmul.f32 0.01, %v2624_v1  ;;  %vm2637_vm9 = vcmp.gt.f32.partialorder %v2624_v1, 0.0 }
 0x666   : > { %5723 = vst [vmem:[%s6725_s22 + $0x30] sm:$0x1] %v5722_v33  ;;  %v6413_v63 = vld [vmem:[%s6725_s22 + $0x28] sm:$0xf]  ;;  %v6415_v28 = vld [vmem:[%s6725_s22 + $0x2c] sm:$0x1] }
 0x667   : > { %5753 = vst [vmem:[%s6725_s22 + $0x34] sm:$0x1] %v5752_v16  ;;  %v2653_v24 = vsel %vm2637_vm9, %v2624_v1, %v2645_v61 }
 0x672   : > { %v5622_v34 = vpop.f32.mrf.mxu3 }
 0x673   : > { %v5651_v29 = vpop.f32.mrf.mxu1 }
 0x674   : > { %v5652_v53 = vadd.f32 %v5651_v29, %v5622_v34 }
 0x676   : > { %vm5668_vm3 = vcmp.gt.f32.partialorder %v5652_v53, 0.0  ;;  %v5676_v60 = vmul.f32 0.01, %v5652_v53 }
 0x678   : > { %v5684_v50 = vsel %vm5668_vm3, %v5652_v53, %v5676_v60 }
 0x679   : > { %v5692_v31 = vadd.f32 %v5684_v50, %v2651_v46  ;;  %v2646_v46 = vmul.f32 0.01, %v2626_v58 }
 0x67a   : > { %v5624_v57 = vpop.f32.mrf.mxu3 }
 0x67b   : > { %v5765_v51 = vpack.c.bf16 %v5692_v31, %v5692_v31  ;;  %v5653_v17 = vpop.f32.mrf.mxu1 }
 0x67c   : > { %v5654_v41 = vadd.f32 %v5653_v17, %v5624_v57  ;;  %v2654_v57 = vsel %vm2638_vm8, %v2626_v58, %v2646_v46 }
 0x67d   : > { %v5788_v62 = vshrl.u32 %v5765_v51, 16  ;;  %v5791_v23 = vshll.u32 %v5765_v51, 16 }
 0x67e   : > { %vm5669_vm15 = vcmp.gt.f32.partialorder %v5654_v41, 0.0  ;;  %v5677_v43 = vmul.f32 0.01, %v5654_v41 }
 0x67f   : > { %v5790_v21 = vrot.slane %v5788_v62, 7 }
 0x680   : > { %v5685_v7 = vsel %vm5669_vm15, %v5654_v41, %v5677_v43 }
 0x681   : > { %v5793_v56 = vor.u32 %v5791_v23, %v5790_v21  ;;  %v5794_v12 = vrot.slane %v5790_v21, 4  ;;  %v5693_v36 = vadd.f32 %v5685_v7, %v2652_v39  ;;  %v6419_v7 = vld [vmem:[%s6725_s22 + $0x34] sm:$0x1] }
 0x683   : > { %v5865_v27 = vsel %vm7635_vm14, %v5793_v56, %v6405_v55  ;;  %v5868_v13 = vsel %vm7454_vm0, %v5794_v12, %v6407_v9  ;;  %v5766_v20 = vpack.c.bf16 %v5693_v36, %v5693_v36  ;;  %v6417_v9 = vld [vmem:[%s6725_s22 + $0x30] sm:$0xf]  ;;  %v5724_v56 = vld [vmem:[%s6725_s22 + $0x38] sm:$0x1]  ;;  %v5754_v12 = vld [vmem:[%s6725_s22 + $0x3c] sm:$0x1] }
 0x684   : > { %6406 = vst [vmem:[%s6725_s22 + $0x18] sm:$0xf] %v5865_v27  ;;  %v5725_v15 = vsel %vm7454_vm0, 0, %v5724_v56  ;;  %v5755_v47 = vsel %vm7464_vm1, 0, %v5754_v12 }
 0x685   : > { %6408 = vst [vmem:[%s6725_s22 + $0x1c] sm:$0x1] %v5868_v13  ;;  %v5796_v26 = vshrl.u32 %v5766_v20, 16  ;;  %v5799_v54 = vshll.u32 %v5766_v20, 16  ;;  %v5727_v20 = vld [vmem:[%s6725_s22 + $0x40] sm:$0x1] }
 0x686   : > { %5726 = vst [vmem:[%s6725_s22 + $0x38] sm:$0x1] %v5725_v15 }
 0x687   : > { %v5798_v30 = vrot.slane %v5796_v26, 7  ;;  %5756 = vst [vmem:[%s6725_s22 + $0x3c] sm:$0x1] %v5755_v47  ;;  %v5728_v26 = vsel %vm7454_vm0, 0, %v5727_v20 }
 0x688   : > { %5729 = vst [vmem:[%s6725_s22 + $0x40] sm:$0x1] %v5728_v26 }
 0x689   : > { %v5801_v45 = vor.u32 %v5799_v54, %v5798_v30  ;;  %v5802_v2 = vrot.slane %v5798_v30, 4  ;;  %v5758_v30 = vsel %vm7464_vm1, 0, %v5757_v4  ;;  %v2629_v54 = vadd.f32 %v9287_v18, %v9698_v52 }
 0x68a   : > { %5759 = vst [vmem:[%s6725_s22 + $0x44] sm:$0x1] %v5758_v30  ;;  %vm2640_vm1 = vcmp.gt.f32.partialorder %v2631_v0, 0.0 }
 0x68b   : > { %v5871_v10 = vsel %vm7635_vm14, %v5801_v45, %v6409_v40  ;;  %v5874_v59 = vsel %vm7454_vm0, %v5802_v2, %v6411_v6  ;;  %v2647_v45 = vmul.f32 0.01, %v2629_v54  ;;  %vm2639_vm2 = vcmp.gt.f32.partialorder %v2629_v54, 0.0 }
 0x68c   : > { %6410 = vst [vmem:[%s6725_s22 + $0x20] sm:$0xf] %v5871_v10 }
 0x68d   : > { %6412 = vst [vmem:[%s6725_s22 + $0x24] sm:$0x1] %v5874_v59  ;;  %v2655_v59 = vsel %vm2639_vm2, %v2629_v54, %v2647_v45  ;;  %v6421_v44 = vld [vmem:[%s6725_s22 + $0x38] sm:$0xf] }
 0x68e   : > { %v6423_v37 = vld [vmem:[%s6725_s22 + $0x3c] sm:$0x1] }
 0x69b   : > { %v5627_v35 = vpop.f32.mrf.mxu3  ;;  %v5656_v48 = vpop.f32.mrf.mxu1 }
 0x69c   : > { %v5657_v8 = vadd.f32 %v5656_v48, %v5627_v35  ;;  %v2648_v35 = vmul.f32 0.01, %v2631_v0 }
 0x69e   : > { %vm5670_vm6 = vcmp.gt.f32.partialorder %v5657_v8, 0.0  ;;  %v5678_v11 = vmul.f32 0.01, %v5657_v8 }
 0x6a0   : > { %v5686_v34 = vsel %vm5670_vm6, %v5657_v8, %v5678_v11  ;;  %v2656_v11 = vsel %vm2640_vm1, %v2631_v0, %v2648_v35 }
 0x6a1   : > { %v5694_v29 = vadd.f32 %v5686_v34, %v2653_v24 }
 0x6a3   : > { %v5767_v25 = vpack.c.bf16 %v5694_v29, %v5694_v29  ;;  %v5629_v53 = vpop.f32.mrf.mxu3  ;;  %v5658_v60 = vpop.f32.mrf.mxu1 }
 0x6a4   : > { %v5659_v3 = vadd.f32 %v5658_v60, %v5629_v53 }
 0x6a5   : > { %v5804_v22 = vshrl.u32 %v5767_v25, 16  ;;  %v5807_v31 = vshll.u32 %v5767_v25, 16 }
 0x6a6   : > { %vm5671_vm10 = vcmp.gt.f32.partialorder %v5659_v3, 0.0  ;;  %v5679_v38 = vmul.f32 0.01, %v5659_v3 }
 0x6a7   : > { %v5806_v50 = vrot.slane %v5804_v22, 7 }
 0x6a8   : > { %v5687_v51 = vsel %vm5671_vm10, %v5659_v3, %v5679_v38  ;;  %v6425_v38 = vld [vmem:[%s6725_s22 + $0x40] sm:$0xf] }
 0x6a9   : > { %v5809_v17 = vor.u32 %v5807_v31, %v5806_v50  ;;  %v5810_v49 = vrot.slane %v5806_v50, 4  ;;  %v5695_v41 = vadd.f32 %v5687_v51, %v2654_v57  ;;  %v6427_v50 = vld [vmem:[%s6725_s22 + $0x44] sm:$0x1] }
 0x6ab   : > { %v5877_v62 = vsel %vm7635_vm14, %v5809_v17, %v6413_v63  ;;  %v5880_v43 = vsel %vm7454_vm0, %v5810_v49, %v6415_v28  ;;  %v5768_v21 = vpack.c.bf16 %v5695_v41, %v5695_v41 }
 0x6ac   : > { %6414 = vst [vmem:[%s6725_s22 + $0x28] sm:$0xf] %v5877_v62 }
 0x6ad   : > { %6416 = vst [vmem:[%s6725_s22 + $0x2c] sm:$0x1] %v5880_v43  ;;  %v5812_v23 = vshrl.u32 %v5768_v21, 16  ;;  %v5815_v55 = vshll.u32 %v5768_v21, 16 }
 0x6af   : > { %v5814_v39 = vrot.slane %v5812_v23, 7 }
 0x6b1   : > { %v5817_v36 = vor.u32 %v5815_v55, %v5814_v39  ;;  %v5818_v19 = vrot.slane %v5814_v39, 4 }
 0x6b3   : > { %v5883_v27 = vsel %vm7635_vm14, %v5817_v36, %v6417_v9  ;;  %v5886_v13 = vsel %vm7454_vm0, %v5818_v19, %v6419_v7 }
 0x6b4   : > { %6418 = vst [vmem:[%s6725_s22 + $0x30] sm:$0xf] %v5883_v27 }
 0x6b5   : > { %6420 = vst [vmem:[%s6725_s22 + $0x34] sm:$0x1] %v5886_v13 }
 0x6c3   : > { %v5661_v40 = vpop.f32.mrf.mxu1 }
 0x6ca   : > { %v5632_v6 = vpop.f32.mrf.mxu3 }
 0x6cb   : > { %v5662_v2 = vadd.f32 %v5661_v40, %v5632_v6  ;;  %v5663_v16 = vpop.f32.mrf.mxu1 }
 0x6cd   : > { %vm5672_vm7 = vcmp.gt.f32.partialorder %v5662_v2, 0.0  ;;  %v5680_v10 = vmul.f32 0.01, %v5662_v2 }
 0x6cf   : > { %v5688_v14 = vsel %vm5672_vm7, %v5662_v2, %v5680_v10 }
 0x6d0   : > { %v5696_v33 = vadd.f32 %v5688_v14, %v2655_v59 }
 0x6d2   : > { %v5769_v32 = vpack.c.bf16 %v5696_v33, %v5696_v33  ;;  %v5634_v1 = vpop.f32.mrf.mxu3 }
 0x6d3   : > { %v5664_v18 = vadd.f32 %v5663_v16, %v5634_v1 }
 0x6d4   : > { %v5820_v52 = vshrl.u32 %v5769_v32, 16  ;;  %v5823_v8 = vshll.u32 %v5769_v32, 16 }
 0x6d5   : > { %vm5673_vm13 = vcmp.gt.f32.partialorder %v5664_v18, 0.0  ;;  %v5681_v48 = vmul.f32 0.01, %v5664_v18 }
 0x6d6   : > { %v5822_v61 = vrot.slane %v5820_v52, 7 }
 0x6d7   : > { %v5689_v24 = vsel %vm5673_vm13, %v5664_v18, %v5681_v48 }
 0x6d8   : > { %v5825_v58 = vor.u32 %v5823_v8, %v5822_v61  ;;  %v5826_v34 = vrot.slane %v5822_v61, 4  ;;  %v5697_v29 = vadd.f32 %v5689_v24, %v2656_v11 }
 0x6da   : > { %v5889_v25 = vsel %vm7635_vm14, %v5825_v58, %v6421_v44  ;;  %v5892_v53 = vsel %vm7454_vm0, %v5826_v34, %v6423_v37  ;;  %v5770_v60 = vpack.c.bf16 %v5697_v29, %v5697_v29 }
 0x6db   : > { %6422 = vst [vmem:[%s6725_s22 + $0x38] sm:$0xf] %v5889_v25 }
 0x6dc   : > { %6424 = vst [vmem:[%s6725_s22 + $0x3c] sm:$0x1] %v5892_v53  ;;  %v5828_v46 = vshrl.u32 %v5770_v60, 16  ;;  %v5831_v22 = vshll.u32 %v5770_v60, 16 }
 0x6de   : > { %v5830_v3 = vrot.slane %v5828_v46, 7 }
 0x6e0   : > { %v5833_v31 = vor.u32 %v5831_v22, %v5830_v3  ;;  %v5834_v57 = vrot.slane %v5830_v3, 4 }
 0x6e2   : > { %v5895_v63 = vsel %vm7635_vm14, %v5833_v31, %v6425_v38  ;;  %v5898_v28 = vsel %vm7454_vm0, %v5834_v57, %v6427_v50 }
 0x6e3   : > { %6426 = vst [vmem:[%s6725_s22 + $0x40] sm:$0xf] %v5895_v63 }
 0x6e4   : > { %6428 = vst [vmem:[%s6725_s22 + $0x44] sm:$0x1] %v5898_v28 }
 0x6e5 PF: > { %s17_s28 = sadd.s32 1, %s6604_s28   ;;  %s10322_s30 = sld [smem:[#allocation4_spill]] }
 0x6e6   : > { %p14_p7 = scmp.ge.s32.totalorder %s17_s28, 22   ;;  %s10323_s11 = sld [smem:[#allocation5_spill]] }
 0x6e7   : > { %s10324_s24 = smov %s6596_s26  ;;  %s10325_s25 = smov %s6600_s27 }
 0x6e8   :  { %16 = sbr.rel (!%p14_p7) target bundleno = 3 (0x3), region = 103 }
 0x6eb   : > { %s10326_s26 = smov %s10322_s30 }
 0x6ec   : > { %s10327_s27 = smov %s10323_s11 }

</bundles_post_ra>
